<compile_context>
chip_gen: v6e
topology: v6e:2x2x1
jax: 0.10.0
libtpu: 0.0.40
codegen_flags: <defaults>
</compile_context>

<pallas_src>
import functools

import jax
import jax.numpy as jnp
from jax.experimental import pallas as pl
from jax.experimental.pallas import tpu as pltpu

EPS = 1e-5          # BatchNorm1d default eps
P_EDGE = 0.2        # hyperedge dropout prob
P_DROP = 0.4        # nn.Dropout prob

_VMEM = pl.BlockSpec(memory_space=pltpu.MemorySpace.VMEM)


def _round_up(a, b):
    return -(-a // b) * b


# ---------------------------------------------------------------------------
# Fused kernel: the entire HgnnEncoder forward
# ---------------------------------------------------------------------------
def _hgnn_fused_kernel(x_ref, h_ref, dinv_ref, binv_ref, rmask_ref, dmask_ref,
                       ln_w_ref,
                       c1_w_ref, c1_b_ref, bn1_g_ref, bn1_b_ref,
                       fc1_w_ref, fc1_b_ref, fc2_w_ref, fc2_b_ref,
                       cs_w_ref, cs_b_ref, bns_g_ref, bns_b_ref,
                       f1s_w_ref, f1s_b_ref, f2s_w_ref, f2s_b_ref,
                       c3_w_ref, c3_b_ref,
                       o_ref, *, inv_n, use_row_mask):
    f32 = jnp.float32
    bf16 = jnp.bfloat16

    h_bf = h_ref[...]            # [N, M] bf16, edge dropout already applied
    d_inv = dinv_ref[...]        # [N, 1] f32
    b_inv = binv_ref[...]        # [M, 1] f32

    def mm(a, w_bf):
        # bf16 operands on the MXU, f32 accumulation (weights are pre-cast bf16).
        return jnp.dot(a.astype(bf16), w_bf, preferred_element_type=f32)

    def hgconv_relu(xi, w_bf, b):
        # relu( D^{-1} H B^{-1} H^T (X W) + bias ),  W is [Cin, Cout] bf16.
        xw = mm(xi, w_bf)                                            # [N, C] f32
        # e = H^T (X W) without materializing H^T: contract the node axis of both.
        e = jax.lax.dot_general(
            h_bf, xw.astype(bf16),
            dimension_numbers=(((0,), (0,)), ((), ())),
            preferred_element_type=f32) * b_inv                      # [M, C]
        nd = jnp.dot(h_bf, e.astype(bf16), preferred_element_type=f32) * d_inv
        return jnp.maximum(nd + b, 0.0)

    def se_block(xi, w1, b1, w2, b2):
        # sigmoid(fc2(relu(fc1(x)))); avg_pool1d(kernel=1, stride=1) is the identity.
        s = jnp.maximum(mm(xi, w1) + b1, 0.0)
        return jax.nn.sigmoid(mm(s, w2) + b2)

    def bn_dropout(z, gamma, beta, mask_idx):
        # Training-mode BatchNorm1d (one-pass stats over true nodes), then Dropout(P_DROP).
        zm = z * rmask_ref[...] if use_row_mask else z
        mean = jnp.sum(zm, axis=0, keepdims=True) * inv_n
        ex2 = jnp.sum(zm * zm, axis=0, keepdims=True) * inv_n
        var = jnp.maximum(ex2 - mean * mean, 0.0)                    # biased variance
        zn = (z - mean) * jax.lax.rsqrt(var + EPS) * gamma + beta
        return zn * dmask_ref[mask_idx]                              # mask pre-scaled 1/(1-p)

    x = x_ref[...]                                                   # [N, Cin] bf16

    x0 = mm(x, ln_w_ref[...])                                        # self.ln (no bias)
    x1 = hgconv_relu(x, c1_w_ref[...], c1_b_ref[...])
    s1 = se_block(x1, fc1_w_ref[...], fc1_b_ref[...],
                  fc2_w_ref[...], fc2_b_ref[...])
    xc = bn_dropout(x1 + s1 + x0, bn1_g_ref[...], bn1_b_ref[...], 0)

    for i in range(3):  # statically unrolled; stacked weights indexed with static i
        xh = hgconv_relu(xc, cs_w_ref[i], cs_b_ref[i])
        xh = bn_dropout(0.8 * xh + 0.2 * x0, bns_g_ref[i], bns_b_ref[i], i + 1)
        xc = se_block(xh, f1s_w_ref[i], f1s_b_ref[i],
                      f2s_w_ref[i], f2s_b_ref[i])

    o_ref[...] = hgconv_relu(xc, c3_w_ref[...], c3_b_ref[...]).astype(o_ref.dtype)


# ---------------------------------------------------------------------------
# Parameters (deterministic synthetic init; shapes from HgnnEncoder.__init__,
# stored pre-transposed as [in, out]; per-stage params stacked on a leading axis)
# ---------------------------------------------------------------------------
def init_params(key, in_channels, out_channels):
    ks = iter(jax.random.split(key, 64))

    def w(shape, s=0.05):
        return jax.random.normal(next(ks), shape, jnp.float32) * s

    return {
        "ln_w": w((in_channels, 256)),                              # Linear(in,256,bias=False)
        "conv1_w": w((in_channels, 256)), "conv1_b": w((1, 256), 0.01),
        "bn1_g": jnp.ones((1, 256), jnp.float32), "bn1_b": jnp.zeros((1, 256), jnp.float32),
        "fc1_w": w((256, 128)), "fc1_b": w((1, 128), 0.01),
        "fc2_w": w((128, 256)), "fc2_b": w((1, 256), 0.01),
        "conv3_w": w((256, out_channels)), "conv3_b": w((1, out_channels), 0.01),
        # stacked loop-stage params
        "convs_w": w((3, 256, 256)), "convs_b": w((3, 1, 256), 0.01),
        "bns_g": jnp.ones((3, 1, 256), jnp.float32),
        "bns_b": jnp.zeros((3, 1, 256), jnp.float32),
        "fc1s_w": w((3, 256, 128)), "fc1s_b": w((3, 1, 128), 0.01),
        "fc2s_w": w((3, 128, 256)), "fc2s_b": w((3, 1, 256), 0.01),
    }


# ---------------------------------------------------------------------------
# Wrapper: host-side prep (RNG masks, degrees, padding, bf16 casts) + one pallas_call
# ---------------------------------------------------------------------------
def hgnn_encoder_forward(params, x, edge, seed):
    f32, bf16 = jnp.float32, jnp.bfloat16
    n, in_ch = x.shape
    n2, m = edge.shape
    assert n == n2, (x.shape, edge.shape)
    out_ch = params["conv3_w"].shape[1]

    # Padding: lane-dense (128) contraction / hyperedge / output axes, sublane (8) node axis.
    n_pad = _round_up(max(n, 8), 8)
    m_pad = _round_up(max(m, 128), 128)
    in_pad = _round_up(max(in_ch, 128), 128)
    out_pad = _round_up(max(out_ch, 128), 128)

    # ---- host-side RNG (TPU hardware PRNG is unavailable in interpret mode) ----
    key = jax.random.PRNGKey(seed)
    k_edge, k_drop = jax.random.split(key)
    edge_keep = jax.random.bernoulli(k_edge, 1.0 - P_EDGE, edge.shape)
    edge_d = edge * edge_keep.astype(edge.dtype)                 # no inverse scaling (as ref)
    drop_masks = (jax.random.bernoulli(k_drop, 1.0 - P_DROP, (4, n_pad, 256))
                  .astype(f32) * (1.0 / (1.0 - P_DROP)))         # pre-scaled Dropout masks

    # ---- degrees from the post-dropout incidence ----
    d_deg = jnp.sum(edge_d, axis=1)
    b_deg = jnp.sum(edge_d, axis=0)
    d_inv = jnp.where(d_deg > 0, 1.0 / d_deg, 0.0).astype(f32).reshape(n, 1)
    b_inv = jnp.where(b_deg > 0, 1.0 / b_deg, 0.0).astype(f32).reshape(m, 1)

    # ---- zero-pad + bf16 casts (padded rows/cols are inert; output is sliced back) ----
    x_p = jnp.zeros((n_pad, in_pad), bf16).at[:n, :in_ch].set(x.astype(bf16))
    h_p = jnp.zeros((n_pad, m_pad), bf16).at[:n, :m].set(edge_d.astype(bf16))
    d_inv_p = jnp.zeros((n_pad, 1), f32).at[:n].set(d_inv)
    b_inv_p = jnp.zeros((m_pad, 1), f32).at[:m].set(b_inv)
    row_mask = (jnp.arange(n_pad) < n).astype(f32).reshape(n_pad, 1)

    def pad_w(w, rows=None, cols=None):
        r0, c0 = w.shape
        r = rows if rows is not None else r0
        c = cols if cols is not None else c0
        return jnp.zeros((r, c), bf16).at[:r0, :c0].set(w.astype(bf16))

    def pad_b(b, cols):
        c0 = b.shape[-1]
        return jnp.zeros((1, cols), f32).at[:, :c0].set(b.astype(f32))

    args = (
        x_p, h_p, d_inv_p, b_inv_p, row_mask, drop_masks,
        pad_w(params["ln_w"], rows=in_pad),
        pad_w(params["conv1_w"], rows=in_pad), params["conv1_b"].astype(f32),
        params["bn1_g"].astype(f32), params["bn1_b"].astype(f32),
        params["fc1_w"].astype(bf16), params["fc1_b"].astype(f32),
        params["fc2_w"].astype(bf16), params["fc2_b"].astype(f32),
        params["convs_w"].astype(bf16), params["convs_b"].astype(f32),
        params["bns_g"].astype(f32), params["bns_b"].astype(f32),
        params["fc1s_w"].astype(bf16), params["fc1s_b"].astype(f32),
        params["fc2s_w"].astype(bf16), params["fc2s_b"].astype(f32),
        pad_w(params["conv3_w"], cols=out_pad), pad_b(params["conv3_b"], out_pad),
    )

    kernel = functools.partial(_hgnn_fused_kernel,
                               inv_n=float(1.0 / n),
                               use_row_mask=(n_pad != n))

    # Explicit VMEM budget: inputs + ~16 live [N,256] f32 temporaries + output, 2x headroom,
    # capped at v7x's 64 MiB physical ceiling.
    input_bytes = sum(int(a.size) * int(a.dtype.itemsize) for a in args)
    est = input_bytes + 16 * n_pad * 256 * 4 + n_pad * out_pad * 4
    vmem_limit = int(min(64 * 1024 * 1024, max(32 * 1024 * 1024, 2 * est)))

    # TODO(synk): single graph -> grid=() runs on one TensorCore; on v7x a batched workload
    #             should add a leading "parallel" grid axis to use the second core.
    out = pl.pallas_call(
        kernel,
        out_shape=jax.ShapeDtypeStruct((n_pad, out_pad), f32),
        in_specs=[_VMEM] * len(args),
        out_specs=_VMEM,
        compiler_params=pltpu.CompilerParams(vmem_limit_bytes=vmem_limit),
    )(*args)
    return out[:n, :out_ch]


# ---------------------------------------------------------------------------
if __name__ == "__main__":
    N, M = 64, 32                 # nodes, hyperedges
    IN_CH, OUT_CH = 64, 128

    key = jax.random.PRNGKey(0)
    k_x, k_e, k_p = jax.random.split(key, 3)

    x = jax.random.normal(k_x, (N, IN_CH), jnp.float32)
    # dense incidence matrix (binary)
    edge = (jax.random.uniform(k_e, (N, M)) < 0.3).astype(jnp.float32)

    params = init_params(k_p, IN_CH, OUT_CH)

    out = hgnn_encoder_forward(params, x, edge, seed=42)
    out = jax.block_until_ready(out)

    assert out.shape == (N, OUT_CH), out.shape
    assert bool(jnp.all(jnp.isfinite(out)))
    print("KERNEL_OK")
</pallas_src>

<mosaic_0001>
module attributes {stable_mosaic.version = 11 : i64} {
  func.func @_hgnn_fused_kernel(%arg0: memref<64x128xbf16, #tpu.memory_space<vmem>>, %arg1: memref<64x128xbf16, #tpu.memory_space<vmem>>, %arg2: memref<64x1xf32, #tpu.memory_space<vmem>>, %arg3: memref<128x1xf32, #tpu.memory_space<vmem>>, %arg4: memref<64x1xf32, #tpu.memory_space<vmem>>, %arg5: memref<4x64x256xf32, #tpu.memory_space<vmem>>, %arg6: memref<128x256xbf16, #tpu.memory_space<vmem>>, %arg7: memref<128x256xbf16, #tpu.memory_space<vmem>>, %arg8: memref<1x256xf32, #tpu.memory_space<vmem>>, %arg9: memref<1x256xf32, #tpu.memory_space<vmem>>, %arg10: memref<1x256xf32, #tpu.memory_space<vmem>>, %arg11: memref<256x128xbf16, #tpu.memory_space<vmem>>, %arg12: memref<1x128xf32, #tpu.memory_space<vmem>>, %arg13: memref<128x256xbf16, #tpu.memory_space<vmem>>, %arg14: memref<1x256xf32, #tpu.memory_space<vmem>>, %arg15: memref<3x256x256xbf16, #tpu.memory_space<vmem>>, %arg16: memref<3x1x256xf32, #tpu.memory_space<vmem>>, %arg17: memref<3x1x256xf32, #tpu.memory_space<vmem>>, %arg18: memref<3x1x256xf32, #tpu.memory_space<vmem>>, %arg19: memref<3x256x128xbf16, #tpu.memory_space<vmem>>, %arg20: memref<3x1x128xf32, #tpu.memory_space<vmem>>, %arg21: memref<3x128x256xbf16, #tpu.memory_space<vmem>>, %arg22: memref<3x1x256xf32, #tpu.memory_space<vmem>>, %arg23: memref<256x128xbf16, #tpu.memory_space<vmem>>, %arg24: memref<1x128xf32, #tpu.memory_space<vmem>>, %arg25: memref<64x128xf32, #tpu.memory_space<vmem>>) attributes {dimension_semantics = [], scalar_prefetch = 0 : i64, scratch_operands = 0 : i64, tpu.core_type = #tpu.core_type<tc>} {
    %c0 = arith.constant 0 : index
    %c0_0 = arith.constant 0 : index
    %0 = vector.load %arg1[%c0, %c0_0] : memref<64x128xbf16, #tpu.memory_space<vmem>>, vector<64x128xbf16>
    %c0_1 = arith.constant 0 : index
    %c0_2 = arith.constant 0 : index
    %1 = vector.load %arg2[%c0_1, %c0_2] : memref<64x1xf32, #tpu.memory_space<vmem>>, vector<64x1xf32>
    %c0_3 = arith.constant 0 : index
    %c0_4 = arith.constant 0 : index
    %2 = vector.load %arg3[%c0_3, %c0_4] : memref<128x1xf32, #tpu.memory_space<vmem>>, vector<128x1xf32>
    %c0_5 = arith.constant 0 : index
    %c0_6 = arith.constant 0 : index
    %3 = vector.load %arg0[%c0_5, %c0_6] : memref<64x128xbf16, #tpu.memory_space<vmem>>, vector<64x128xbf16>
    %c0_7 = arith.constant 0 : index
    %c0_8 = arith.constant 0 : index
    %4 = vector.load %arg6[%c0_7, %c0_8] : memref<128x256xbf16, #tpu.memory_space<vmem>>, vector<128x256xbf16>
    %cst = arith.constant dense<0.000000e+00> : vector<64x256xf32>
    %5 = tpu.matmul %3, %4, %cst {dimension_numbers = #tpu.dot_dimension_numbers<[1], [0], [0], [1], [0, 0, 1, 1], [], []>} : vector<64x128xbf16>, vector<128x256xbf16>, vector<64x256xf32> -> vector<64x256xf32>
    %c0_9 = arith.constant 0 : index
    %c0_10 = arith.constant 0 : index
    %6 = vector.load %arg7[%c0_9, %c0_10] : memref<128x256xbf16, #tpu.memory_space<vmem>>, vector<128x256xbf16>
    %c0_11 = arith.constant 0 : index
    %c0_12 = arith.constant 0 : index
    %7 = vector.load %arg8[%c0_11, %c0_12] : memref<1x256xf32, #tpu.memory_space<vmem>>, vector<1x256xf32>
    %cst_13 = arith.constant dense<0.000000e+00> : vector<64x256xf32>
    %8 = tpu.matmul %3, %6, %cst_13 {dimension_numbers = #tpu.dot_dimension_numbers<[1], [0], [0], [1], [0, 0, 1, 1], [], []>} : vector<64x128xbf16>, vector<128x256xbf16>, vector<64x256xf32> -> vector<64x256xf32>
    %9 = arith.truncf %8 : vector<64x256xf32> to vector<64x256xbf16>
    %cst_14 = arith.constant dense<0.000000e+00> : vector<128x256xf32>
    %10 = tpu.matmul %0, %9, %cst_14 {dimension_numbers = #tpu.dot_dimension_numbers<[0], [0], [1], [1], [0, 1, 1, 1], [], []>} : vector<64x128xbf16>, vector<64x256xbf16>, vector<128x256xf32> -> vector<128x256xf32>
    %11 = vector.broadcast %2 : vector<128x1xf32> to vector<128x256xf32>
    %12 = arith.mulf %10, %11 : vector<128x256xf32>
    %13 = arith.truncf %12 : vector<128x256xf32> to vector<128x256xbf16>
    %cst_15 = arith.constant dense<0.000000e+00> : vector<64x256xf32>
    %14 = tpu.matmul %0, %13, %cst_15 {dimension_numbers = #tpu.dot_dimension_numbers<[1], [0], [0], [1], [0, 0, 1, 1], [], []>} : vector<64x128xbf16>, vector<128x256xbf16>, vector<64x256xf32> -> vector<64x256xf32>
    %15 = vector.broadcast %1 : vector<64x1xf32> to vector<64x256xf32>
    %16 = arith.mulf %14, %15 : vector<64x256xf32>
    %17 = vector.broadcast %7 : vector<1x256xf32> to vector<64x256xf32>
    %18 = arith.addf %16, %17 : vector<64x256xf32>
    %cst_16 = arith.constant 0.000000e+00 : f32
    %19 = vector.broadcast %cst_16 : f32 to vector<64x256xf32>
    %20 = arith.maximumf %18, %19 : vector<64x256xf32>
    %c0_17 = arith.constant 0 : index
    %c0_18 = arith.constant 0 : index
    %21 = vector.load %arg11[%c0_17, %c0_18] : memref<256x128xbf16, #tpu.memory_space<vmem>>, vector<256x128xbf16>
    %c0_19 = arith.constant 0 : index
    %c0_20 = arith.constant 0 : index
    %22 = vector.load %arg12[%c0_19, %c0_20] : memref<1x128xf32, #tpu.memory_space<vmem>>, vector<1x128xf32>
    %c0_21 = arith.constant 0 : index
    %c0_22 = arith.constant 0 : index
    %23 = vector.load %arg13[%c0_21, %c0_22] : memref<128x256xbf16, #tpu.memory_space<vmem>>, vector<128x256xbf16>
    %c0_23 = arith.constant 0 : index
    %c0_24 = arith.constant 0 : index
    %24 = vector.load %arg14[%c0_23, %c0_24] : memref<1x256xf32, #tpu.memory_space<vmem>>, vector<1x256xf32>
    %25 = arith.truncf %20 : vector<64x256xf32> to vector<64x256xbf16>
    %cst_25 = arith.constant dense<0.000000e+00> : vector<64x128xf32>
    %26 = tpu.matmul %25, %21, %cst_25 {dimension_numbers = #tpu.dot_dimension_numbers<[1], [0], [0], [1], [0, 0, 1, 1], [], []>} : vector<64x256xbf16>, vector<256x128xbf16>, vector<64x128xf32> -> vector<64x128xf32>
    %27 = vector.broadcast %22 : vector<1x128xf32> to vector<64x128xf32>
    %28 = arith.addf %26, %27 : vector<64x128xf32>
    %cst_26 = arith.constant 0.000000e+00 : f32
    %29 = vector.broadcast %cst_26 : f32 to vector<64x128xf32>
    %30 = arith.maximumf %28, %29 : vector<64x128xf32>
    %31 = arith.truncf %30 : vector<64x128xf32> to vector<64x128xbf16>
    %cst_27 = arith.constant dense<0.000000e+00> : vector<64x256xf32>
    %32 = tpu.matmul %31, %23, %cst_27 {dimension_numbers = #tpu.dot_dimension_numbers<[1], [0], [0], [1], [0, 0, 1, 1], [], []>} : vector<64x128xbf16>, vector<128x256xbf16>, vector<64x256xf32> -> vector<64x256xf32>
    %33 = vector.broadcast %24 : vector<1x256xf32> to vector<64x256xf32>
    %34 = arith.addf %32, %33 : vector<64x256xf32>
    %35 = arith.negf %34 : vector<64x256xf32>
    %36 = math.exp %35 : vector<64x256xf32>
    %cst_28 = arith.constant 1.000000e+00 : f32
    %37 = vector.broadcast %cst_28 : f32 to vector<64x256xf32>
    %38 = arith.addf %37, %36 : vector<64x256xf32>
    %39 = arith.divf %37, %38 : vector<64x256xf32>
    %40 = arith.addf %20, %39 : vector<64x256xf32>
    %41 = arith.addf %40, %5 : vector<64x256xf32>
    %c0_29 = arith.constant 0 : index
    %c0_30 = arith.constant 0 : index
    %42 = vector.load %arg9[%c0_29, %c0_30] : memref<1x256xf32, #tpu.memory_space<vmem>>, vector<1x256xf32>
    %c0_31 = arith.constant 0 : index
    %c0_32 = arith.constant 0 : index
    %43 = vector.load %arg10[%c0_31, %c0_32] : memref<1x256xf32, #tpu.memory_space<vmem>>, vector<1x256xf32>
    %cst_33 = arith.constant dense<0.000000e+00> : vector<256xf32>
    %44 = vector.multi_reduction <add>, %41, %cst_33 [0] : vector<64x256xf32> to vector<256xf32>
    %45 = vector.shape_cast %44 : vector<256xf32> to vector<1x256xf32>
    %cst_34 = arith.constant 1.562500e-02 : f32
    %46 = vector.broadcast %cst_34 : f32 to vector<1x256xf32>
    %47 = arith.mulf %45, %46 : vector<1x256xf32>
    %48 = arith.mulf %41, %41 : vector<64x256xf32>
    %cst_35 = arith.constant dense<0.000000e+00> : vector<256xf32>
    %49 = vector.multi_reduction <add>, %48, %cst_35 [0] : vector<64x256xf32> to vector<256xf32>
    %50 = vector.shape_cast %49 : vector<256xf32> to vector<1x256xf32>
    %cst_36 = arith.constant 1.562500e-02 : f32
    %51 = vector.broadcast %cst_36 : f32 to vector<1x256xf32>
    %52 = arith.mulf %50, %51 : vector<1x256xf32>
    %53 = arith.mulf %47, %47 : vector<1x256xf32>
    %54 = arith.subf %52, %53 : vector<1x256xf32>
    %cst_37 = arith.constant 0.000000e+00 : f32
    %55 = vector.broadcast %cst_37 : f32 to vector<1x256xf32>
    %56 = arith.maximumf %54, %55 : vector<1x256xf32>
    %57 = vector.broadcast %47 : vector<1x256xf32> to vector<64x256xf32>
    %58 = arith.subf %41, %57 : vector<64x256xf32>
    %cst_38 = arith.constant 9.99999974E-6 : f32
    %59 = vector.broadcast %cst_38 : f32 to vector<1x256xf32>
    %60 = arith.addf %56, %59 : vector<1x256xf32>
    %61 = math.rsqrt %60 : vector<1x256xf32>
    %62 = vector.broadcast %61 : vector<1x256xf32> to vector<64x256xf32>
    %63 = arith.mulf %58, %62 : vector<64x256xf32>
    %64 = vector.broadcast %42 : vector<1x256xf32> to vector<64x256xf32>
    %65 = arith.mulf %63, %64 : vector<64x256xf32>
    %66 = vector.broadcast %43 : vector<1x256xf32> to vector<64x256xf32>
    %67 = arith.addf %65, %66 : vector<64x256xf32>
    %c0_39 = arith.constant 0 : index
    %c0_40 = arith.constant 0 : index
    %c0_41 = arith.constant 0 : index
    %68 = vector.load %arg5[%c0_39, %c0_40, %c0_41] : memref<4x64x256xf32, #tpu.memory_space<vmem>>, vector<1x64x256xf32>
    %69 = vector.shape_cast %68 : vector<1x64x256xf32> to vector<64x256xf32>
    %70 = arith.mulf %67, %69 : vector<64x256xf32>
    %c0_42 = arith.constant 0 : index
    %c0_43 = arith.constant 0 : index
    %c0_44 = arith.constant 0 : index
    %71 = vector.load %arg15[%c0_42, %c0_43, %c0_44] : memref<3x256x256xbf16, #tpu.memory_space<vmem>>, vector<1x256x256xbf16>
    %72 = vector.shape_cast %71 : vector<1x256x256xbf16> to vector<256x256xbf16>
    %c0_45 = arith.constant 0 : index
    %c0_46 = arith.constant 0 : index
    %c0_47 = arith.constant 0 : index
    %73 = vector.load %arg16[%c0_45, %c0_46, %c0_47] : memref<3x1x256xf32, #tpu.memory_space<vmem>>, vector<1x1x256xf32>
    %74 = vector.shape_cast %73 : vector<1x1x256xf32> to vector<1x256xf32>
    %75 = arith.truncf %70 : vector<64x256xf32> to vector<64x256xbf16>
    %cst_48 = arith.constant dense<0.000000e+00> : vector<64x256xf32>
    %76 = tpu.matmul %75, %72, %cst_48 {dimension_numbers = #tpu.dot_dimension_numbers<[1], [0], [0], [1], [0, 0, 1, 1], [], []>} : vector<64x256xbf16>, vector<256x256xbf16>, vector<64x256xf32> -> vector<64x256xf32>
    %77 = arith.truncf %76 : vector<64x256xf32> to vector<64x256xbf16>
    %cst_49 = arith.constant dense<0.000000e+00> : vector<128x256xf32>
    %78 = tpu.matmul %0, %77, %cst_49 {dimension_numbers = #tpu.dot_dimension_numbers<[0], [0], [1], [1], [0, 1, 1, 1], [], []>} : vector<64x128xbf16>, vector<64x256xbf16>, vector<128x256xf32> -> vector<128x256xf32>
    %79 = vector.broadcast %2 : vector<128x1xf32> to vector<128x256xf32>
    %80 = arith.mulf %78, %79 : vector<128x256xf32>
    %81 = arith.truncf %80 : vector<128x256xf32> to vector<128x256xbf16>
    %cst_50 = arith.constant dense<0.000000e+00> : vector<64x256xf32>
    %82 = tpu.matmul %0, %81, %cst_50 {dimension_numbers = #tpu.dot_dimension_numbers<[1], [0], [0], [1], [0, 0, 1, 1], [], []>} : vector<64x128xbf16>, vector<128x256xbf16>, vector<64x256xf32> -> vector<64x256xf32>
    %83 = vector.broadcast %1 : vector<64x1xf32> to vector<64x256xf32>
    %84 = arith.mulf %82, %83 : vector<64x256xf32>
    %85 = vector.broadcast %74 : vector<1x256xf32> to vector<64x256xf32>
    %86 = arith.addf %84, %85 : vector<64x256xf32>
    %cst_51 = arith.constant 0.000000e+00 : f32
    %87 = vector.broadcast %cst_51 : f32 to vector<64x256xf32>
    %88 = arith.maximumf %86, %87 : vector<64x256xf32>
    %cst_52 = arith.constant 8.000000e-01 : f32
    %89 = vector.broadcast %cst_52 : f32 to vector<64x256xf32>
    %90 = arith.mulf %89, %88 : vector<64x256xf32>
    %cst_53 = arith.constant 2.000000e-01 : f32
    %91 = vector.broadcast %cst_53 : f32 to vector<64x256xf32>
    %92 = arith.mulf %91, %5 : vector<64x256xf32>
    %93 = arith.addf %90, %92 : vector<64x256xf32>
    %c0_54 = arith.constant 0 : index
    %c0_55 = arith.constant 0 : index
    %c0_56 = arith.constant 0 : index
    %94 = vector.load %arg17[%c0_54, %c0_55, %c0_56] : memref<3x1x256xf32, #tpu.memory_space<vmem>>, vector<1x1x256xf32>
    %95 = vector.shape_cast %94 : vector<1x1x256xf32> to vector<1x256xf32>
    %c0_57 = arith.constant 0 : index
    %c0_58 = arith.constant 0 : index
    %c0_59 = arith.constant 0 : index
    %96 = vector.load %arg18[%c0_57, %c0_58, %c0_59] : memref<3x1x256xf32, #tpu.memory_space<vmem>>, vector<1x1x256xf32>
    %97 = vector.shape_cast %96 : vector<1x1x256xf32> to vector<1x256xf32>
    %cst_60 = arith.constant dense<0.000000e+00> : vector<256xf32>
    %98 = vector.multi_reduction <add>, %93, %cst_60 [0] : vector<64x256xf32> to vector<256xf32>
    %99 = vector.shape_cast %98 : vector<256xf32> to vector<1x256xf32>
    %cst_61 = arith.constant 1.562500e-02 : f32
    %100 = vector.broadcast %cst_61 : f32 to vector<1x256xf32>
    %101 = arith.mulf %99, %100 : vector<1x256xf32>
    %102 = arith.mulf %93, %93 : vector<64x256xf32>
    %cst_62 = arith.constant dense<0.000000e+00> : vector<256xf32>
    %103 = vector.multi_reduction <add>, %102, %cst_62 [0] : vector<64x256xf32> to vector<256xf32>
    %104 = vector.shape_cast %103 : vector<256xf32> to vector<1x256xf32>
    %cst_63 = arith.constant 1.562500e-02 : f32
    %105 = vector.broadcast %cst_63 : f32 to vector<1x256xf32>
    %106 = arith.mulf %104, %105 : vector<1x256xf32>
    %107 = arith.mulf %101, %101 : vector<1x256xf32>
    %108 = arith.subf %106, %107 : vector<1x256xf32>
    %cst_64 = arith.constant 0.000000e+00 : f32
    %109 = vector.broadcast %cst_64 : f32 to vector<1x256xf32>
    %110 = arith.maximumf %108, %109 : vector<1x256xf32>
    %111 = vector.broadcast %101 : vector<1x256xf32> to vector<64x256xf32>
    %112 = arith.subf %93, %111 : vector<64x256xf32>
    %cst_65 = arith.constant 9.99999974E-6 : f32
    %113 = vector.broadcast %cst_65 : f32 to vector<1x256xf32>
    %114 = arith.addf %110, %113 : vector<1x256xf32>
    %115 = math.rsqrt %114 : vector<1x256xf32>
    %116 = vector.broadcast %115 : vector<1x256xf32> to vector<64x256xf32>
    %117 = arith.mulf %112, %116 : vector<64x256xf32>
    %118 = vector.broadcast %95 : vector<1x256xf32> to vector<64x256xf32>
    %119 = arith.mulf %117, %118 : vector<64x256xf32>
    %120 = vector.broadcast %97 : vector<1x256xf32> to vector<64x256xf32>
    %121 = arith.addf %119, %120 : vector<64x256xf32>
    %c1 = arith.constant 1 : index
    %c0_66 = arith.constant 0 : index
    %c0_67 = arith.constant 0 : index
    %122 = vector.load %arg5[%c1, %c0_66, %c0_67] : memref<4x64x256xf32, #tpu.memory_space<vmem>>, vector<1x64x256xf32>
    %123 = vector.shape_cast %122 : vector<1x64x256xf32> to vector<64x256xf32>
    %124 = arith.mulf %121, %123 : vector<64x256xf32>
    %c0_68 = arith.constant 0 : index
    %c0_69 = arith.constant 0 : index
    %c0_70 = arith.constant 0 : index
    %125 = vector.load %arg19[%c0_68, %c0_69, %c0_70] : memref<3x256x128xbf16, #tpu.memory_space<vmem>>, vector<1x256x128xbf16>
    %126 = vector.shape_cast %125 : vector<1x256x128xbf16> to vector<256x128xbf16>
    %c0_71 = arith.constant 0 : index
    %c0_72 = arith.constant 0 : index
    %c0_73 = arith.constant 0 : index
    %127 = vector.load %arg20[%c0_71, %c0_72, %c0_73] : memref<3x1x128xf32, #tpu.memory_space<vmem>>, vector<1x1x128xf32>
    %128 = vector.shape_cast %127 : vector<1x1x128xf32> to vector<1x128xf32>
    %c0_74 = arith.constant 0 : index
    %c0_75 = arith.constant 0 : index
    %c0_76 = arith.constant 0 : index
    %129 = vector.load %arg21[%c0_74, %c0_75, %c0_76] : memref<3x128x256xbf16, #tpu.memory_space<vmem>>, vector<1x128x256xbf16>
    %130 = vector.shape_cast %129 : vector<1x128x256xbf16> to vector<128x256xbf16>
    %c0_77 = arith.constant 0 : index
    %c0_78 = arith.constant 0 : index
    %c0_79 = arith.constant 0 : index
    %131 = vector.load %arg22[%c0_77, %c0_78, %c0_79] : memref<3x1x256xf32, #tpu.memory_space<vmem>>, vector<1x1x256xf32>
    %132 = vector.shape_cast %131 : vector<1x1x256xf32> to vector<1x256xf32>
    %133 = arith.truncf %124 : vector<64x256xf32> to vector<64x256xbf16>
    %cst_80 = arith.constant dense<0.000000e+00> : vector<64x128xf32>
    %134 = tpu.matmul %133, %126, %cst_80 {dimension_numbers = #tpu.dot_dimension_numbers<[1], [0], [0], [1], [0, 0, 1, 1], [], []>} : vector<64x256xbf16>, vector<256x128xbf16>, vector<64x128xf32> -> vector<64x128xf32>
    %135 = vector.broadcast %128 : vector<1x128xf32> to vector<64x128xf32>
    %136 = arith.addf %134, %135 : vector<64x128xf32>
    %cst_81 = arith.constant 0.000000e+00 : f32
    %137 = vector.broadcast %cst_81 : f32 to vector<64x128xf32>
    %138 = arith.maximumf %136, %137 : vector<64x128xf32>
    %139 = arith.truncf %138 : vector<64x128xf32> to vector<64x128xbf16>
    %cst_82 = arith.constant dense<0.000000e+00> : vector<64x256xf32>
    %140 = tpu.matmul %139, %130, %cst_82 {dimension_numbers = #tpu.dot_dimension_numbers<[1], [0], [0], [1], [0, 0, 1, 1], [], []>} : vector<64x128xbf16>, vector<128x256xbf16>, vector<64x256xf32> -> vector<64x256xf32>
    %141 = vector.broadcast %132 : vector<1x256xf32> to vector<64x256xf32>
    %142 = arith.addf %140, %141 : vector<64x256xf32>
    %143 = arith.negf %142 : vector<64x256xf32>
    %144 = math.exp %143 : vector<64x256xf32>
    %cst_83 = arith.constant 1.000000e+00 : f32
    %145 = vector.broadcast %cst_83 : f32 to vector<64x256xf32>
    %146 = arith.addf %145, %144 : vector<64x256xf32>
    %147 = arith.divf %145, %146 : vector<64x256xf32>
    %c1_84 = arith.constant 1 : index
    %c0_85 = arith.constant 0 : index
    %c0_86 = arith.constant 0 : index
    %148 = vector.load %arg15[%c1_84, %c0_85, %c0_86] : memref<3x256x256xbf16, #tpu.memory_space<vmem>>, vector<1x256x256xbf16>
    %149 = vector.shape_cast %148 : vector<1x256x256xbf16> to vector<256x256xbf16>
    %c1_87 = arith.constant 1 : index
    %c0_88 = arith.constant 0 : index
    %c0_89 = arith.constant 0 : index
    %150 = vector.load %arg16[%c1_87, %c0_88, %c0_89] : memref<3x1x256xf32, #tpu.memory_space<vmem>>, vector<1x1x256xf32>
    %151 = vector.shape_cast %150 : vector<1x1x256xf32> to vector<1x256xf32>
    %152 = arith.truncf %147 : vector<64x256xf32> to vector<64x256xbf16>
    %cst_90 = arith.constant dense<0.000000e+00> : vector<64x256xf32>
    %153 = tpu.matmul %152, %149, %cst_90 {dimension_numbers = #tpu.dot_dimension_numbers<[1], [0], [0], [1], [0, 0, 1, 1], [], []>} : vector<64x256xbf16>, vector<256x256xbf16>, vector<64x256xf32> -> vector<64x256xf32>
    %154 = arith.truncf %153 : vector<64x256xf32> to vector<64x256xbf16>
    %cst_91 = arith.constant dense<0.000000e+00> : vector<128x256xf32>
    %155 = tpu.matmul %0, %154, %cst_91 {dimension_numbers = #tpu.dot_dimension_numbers<[0], [0], [1], [1], [0, 1, 1, 1], [], []>} : vector<64x128xbf16>, vector<64x256xbf16>, vector<128x256xf32> -> vector<128x256xf32>
    %156 = vector.broadcast %2 : vector<128x1xf32> to vector<128x256xf32>
    %157 = arith.mulf %155, %156 : vector<128x256xf32>
    %158 = arith.truncf %157 : vector<128x256xf32> to vector<128x256xbf16>
    %cst_92 = arith.constant dense<0.000000e+00> : vector<64x256xf32>
    %159 = tpu.matmul %0, %158, %cst_92 {dimension_numbers = #tpu.dot_dimension_numbers<[1], [0], [0], [1], [0, 0, 1, 1], [], []>} : vector<64x128xbf16>, vector<128x256xbf16>, vector<64x256xf32> -> vector<64x256xf32>
    %160 = vector.broadcast %1 : vector<64x1xf32> to vector<64x256xf32>
    %161 = arith.mulf %159, %160 : vector<64x256xf32>
    %162 = vector.broadcast %151 : vector<1x256xf32> to vector<64x256xf32>
    %163 = arith.addf %161, %162 : vector<64x256xf32>
    %cst_93 = arith.constant 0.000000e+00 : f32
    %164 = vector.broadcast %cst_93 : f32 to vector<64x256xf32>
    %165 = arith.maximumf %163, %164 : vector<64x256xf32>
    %cst_94 = arith.constant 8.000000e-01 : f32
    %166 = vector.broadcast %cst_94 : f32 to vector<64x256xf32>
    %167 = arith.mulf %166, %165 : vector<64x256xf32>
    %cst_95 = arith.constant 2.000000e-01 : f32
    %168 = vector.broadcast %cst_95 : f32 to vector<64x256xf32>
    %169 = arith.mulf %168, %5 : vector<64x256xf32>
    %170 = arith.addf %167, %169 : vector<64x256xf32>
    %c1_96 = arith.constant 1 : index
    %c0_97 = arith.constant 0 : index
    %c0_98 = arith.constant 0 : index
    %171 = vector.load %arg17[%c1_96, %c0_97, %c0_98] : memref<3x1x256xf32, #tpu.memory_space<vmem>>, vector<1x1x256xf32>
    %172 = vector.shape_cast %171 : vector<1x1x256xf32> to vector<1x256xf32>
    %c1_99 = arith.constant 1 : index
    %c0_100 = arith.constant 0 : index
    %c0_101 = arith.constant 0 : index
    %173 = vector.load %arg18[%c1_99, %c0_100, %c0_101] : memref<3x1x256xf32, #tpu.memory_space<vmem>>, vector<1x1x256xf32>
    %174 = vector.shape_cast %173 : vector<1x1x256xf32> to vector<1x256xf32>
    %cst_102 = arith.constant dense<0.000000e+00> : vector<256xf32>
    %175 = vector.multi_reduction <add>, %170, %cst_102 [0] : vector<64x256xf32> to vector<256xf32>
    %176 = vector.shape_cast %175 : vector<256xf32> to vector<1x256xf32>
    %cst_103 = arith.constant 1.562500e-02 : f32
    %177 = vector.broadcast %cst_103 : f32 to vector<1x256xf32>
    %178 = arith.mulf %176, %177 : vector<1x256xf32>
    %179 = arith.mulf %170, %170 : vector<64x256xf32>
    %cst_104 = arith.constant dense<0.000000e+00> : vector<256xf32>
    %180 = vector.multi_reduction <add>, %179, %cst_104 [0] : vector<64x256xf32> to vector<256xf32>
    %181 = vector.shape_cast %180 : vector<256xf32> to vector<1x256xf32>
    %cst_105 = arith.constant 1.562500e-02 : f32
    %182 = vector.broadcast %cst_105 : f32 to vector<1x256xf32>
    %183 = arith.mulf %181, %182 : vector<1x256xf32>
    %184 = arith.mulf %178, %178 : vector<1x256xf32>
    %185 = arith.subf %183, %184 : vector<1x256xf32>
    %cst_106 = arith.constant 0.000000e+00 : f32
    %186 = vector.broadcast %cst_106 : f32 to vector<1x256xf32>
    %187 = arith.maximumf %185, %186 : vector<1x256xf32>
    %188 = vector.broadcast %178 : vector<1x256xf32> to vector<64x256xf32>
    %189 = arith.subf %170, %188 : vector<64x256xf32>
    %cst_107 = arith.constant 9.99999974E-6 : f32
    %190 = vector.broadcast %cst_107 : f32 to vector<1x256xf32>
    %191 = arith.addf %187, %190 : vector<1x256xf32>
    %192 = math.rsqrt %191 : vector<1x256xf32>
    %193 = vector.broadcast %192 : vector<1x256xf32> to vector<64x256xf32>
    %194 = arith.mulf %189, %193 : vector<64x256xf32>
    %195 = vector.broadcast %172 : vector<1x256xf32> to vector<64x256xf32>
    %196 = arith.mulf %194, %195 : vector<64x256xf32>
    %197 = vector.broadcast %174 : vector<1x256xf32> to vector<64x256xf32>
    %198 = arith.addf %196, %197 : vector<64x256xf32>
    %c2 = arith.constant 2 : index
    %c0_108 = arith.constant 0 : index
    %c0_109 = arith.constant 0 : index
    %199 = vector.load %arg5[%c2, %c0_108, %c0_109] : memref<4x64x256xf32, #tpu.memory_space<vmem>>, vector<1x64x256xf32>
    %200 = vector.shape_cast %199 : vector<1x64x256xf32> to vector<64x256xf32>
    %201 = arith.mulf %198, %200 : vector<64x256xf32>
    %c1_110 = arith.constant 1 : index
    %c0_111 = arith.constant 0 : index
    %c0_112 = arith.constant 0 : index
    %202 = vector.load %arg19[%c1_110, %c0_111, %c0_112] : memref<3x256x128xbf16, #tpu.memory_space<vmem>>, vector<1x256x128xbf16>
    %203 = vector.shape_cast %202 : vector<1x256x128xbf16> to vector<256x128xbf16>
    %c1_113 = arith.constant 1 : index
    %c0_114 = arith.constant 0 : index
    %c0_115 = arith.constant 0 : index
    %204 = vector.load %arg20[%c1_113, %c0_114, %c0_115] : memref<3x1x128xf32, #tpu.memory_space<vmem>>, vector<1x1x128xf32>
    %205 = vector.shape_cast %204 : vector<1x1x128xf32> to vector<1x128xf32>
    %c1_116 = arith.constant 1 : index
    %c0_117 = arith.constant 0 : index
    %c0_118 = arith.constant 0 : index
    %206 = vector.load %arg21[%c1_116, %c0_117, %c0_118] : memref<3x128x256xbf16, #tpu.memory_space<vmem>>, vector<1x128x256xbf16>
    %207 = vector.shape_cast %206 : vector<1x128x256xbf16> to vector<128x256xbf16>
    %c1_119 = arith.constant 1 : index
    %c0_120 = arith.constant 0 : index
    %c0_121 = arith.constant 0 : index
    %208 = vector.load %arg22[%c1_119, %c0_120, %c0_121] : memref<3x1x256xf32, #tpu.memory_space<vmem>>, vector<1x1x256xf32>
    %209 = vector.shape_cast %208 : vector<1x1x256xf32> to vector<1x256xf32>
    %210 = arith.truncf %201 : vector<64x256xf32> to vector<64x256xbf16>
    %cst_122 = arith.constant dense<0.000000e+00> : vector<64x128xf32>
    %211 = tpu.matmul %210, %203, %cst_122 {dimension_numbers = #tpu.dot_dimension_numbers<[1], [0], [0], [1], [0, 0, 1, 1], [], []>} : vector<64x256xbf16>, vector<256x128xbf16>, vector<64x128xf32> -> vector<64x128xf32>
    %212 = vector.broadcast %205 : vector<1x128xf32> to vector<64x128xf32>
    %213 = arith.addf %211, %212 : vector<64x128xf32>
    %cst_123 = arith.constant 0.000000e+00 : f32
    %214 = vector.broadcast %cst_123 : f32 to vector<64x128xf32>
    %215 = arith.maximumf %213, %214 : vector<64x128xf32>
    %216 = arith.truncf %215 : vector<64x128xf32> to vector<64x128xbf16>
    %cst_124 = arith.constant dense<0.000000e+00> : vector<64x256xf32>
    %217 = tpu.matmul %216, %207, %cst_124 {dimension_numbers = #tpu.dot_dimension_numbers<[1], [0], [0], [1], [0, 0, 1, 1], [], []>} : vector<64x128xbf16>, vector<128x256xbf16>, vector<64x256xf32> -> vector<64x256xf32>
    %218 = vector.broadcast %209 : vector<1x256xf32> to vector<64x256xf32>
    %219 = arith.addf %217, %218 : vector<64x256xf32>
    %220 = arith.negf %219 : vector<64x256xf32>
    %221 = math.exp %220 : vector<64x256xf32>
    %cst_125 = arith.constant 1.000000e+00 : f32
    %222 = vector.broadcast %cst_125 : f32 to vector<64x256xf32>
    %223 = arith.addf %222, %221 : vector<64x256xf32>
    %224 = arith.divf %222, %223 : vector<64x256xf32>
    %c2_126 = arith.constant 2 : index
    %c0_127 = arith.constant 0 : index
    %c0_128 = arith.constant 0 : index
    %225 = vector.load %arg15[%c2_126, %c0_127, %c0_128] : memref<3x256x256xbf16, #tpu.memory_space<vmem>>, vector<1x256x256xbf16>
    %226 = vector.shape_cast %225 : vector<1x256x256xbf16> to vector<256x256xbf16>
    %c2_129 = arith.constant 2 : index
    %c0_130 = arith.constant 0 : index
    %c0_131 = arith.constant 0 : index
    %227 = vector.load %arg16[%c2_129, %c0_130, %c0_131] : memref<3x1x256xf32, #tpu.memory_space<vmem>>, vector<1x1x256xf32>
    %228 = vector.shape_cast %227 : vector<1x1x256xf32> to vector<1x256xf32>
    %229 = arith.truncf %224 : vector<64x256xf32> to vector<64x256xbf16>
    %cst_132 = arith.constant dense<0.000000e+00> : vector<64x256xf32>
    %230 = tpu.matmul %229, %226, %cst_132 {dimension_numbers = #tpu.dot_dimension_numbers<[1], [0], [0], [1], [0, 0, 1, 1], [], []>} : vector<64x256xbf16>, vector<256x256xbf16>, vector<64x256xf32> -> vector<64x256xf32>
    %231 = arith.truncf %230 : vector<64x256xf32> to vector<64x256xbf16>
    %cst_133 = arith.constant dense<0.000000e+00> : vector<128x256xf32>
    %232 = tpu.matmul %0, %231, %cst_133 {dimension_numbers = #tpu.dot_dimension_numbers<[0], [0], [1], [1], [0, 1, 1, 1], [], []>} : vector<64x128xbf16>, vector<64x256xbf16>, vector<128x256xf32> -> vector<128x256xf32>
    %233 = vector.broadcast %2 : vector<128x1xf32> to vector<128x256xf32>
    %234 = arith.mulf %232, %233 : vector<128x256xf32>
    %235 = arith.truncf %234 : vector<128x256xf32> to vector<128x256xbf16>
    %cst_134 = arith.constant dense<0.000000e+00> : vector<64x256xf32>
    %236 = tpu.matmul %0, %235, %cst_134 {dimension_numbers = #tpu.dot_dimension_numbers<[1], [0], [0], [1], [0, 0, 1, 1], [], []>} : vector<64x128xbf16>, vector<128x256xbf16>, vector<64x256xf32> -> vector<64x256xf32>
    %237 = vector.broadcast %1 : vector<64x1xf32> to vector<64x256xf32>
    %238 = arith.mulf %236, %237 : vector<64x256xf32>
    %239 = vector.broadcast %228 : vector<1x256xf32> to vector<64x256xf32>
    %240 = arith.addf %238, %239 : vector<64x256xf32>
    %cst_135 = arith.constant 0.000000e+00 : f32
    %241 = vector.broadcast %cst_135 : f32 to vector<64x256xf32>
    %242 = arith.maximumf %240, %241 : vector<64x256xf32>
    %cst_136 = arith.constant 8.000000e-01 : f32
    %243 = vector.broadcast %cst_136 : f32 to vector<64x256xf32>
    %244 = arith.mulf %243, %242 : vector<64x256xf32>
    %cst_137 = arith.constant 2.000000e-01 : f32
    %245 = vector.broadcast %cst_137 : f32 to vector<64x256xf32>
    %246 = arith.mulf %245, %5 : vector<64x256xf32>
    %247 = arith.addf %244, %246 : vector<64x256xf32>
    %c2_138 = arith.constant 2 : index
    %c0_139 = arith.constant 0 : index
    %c0_140 = arith.constant 0 : index
    %248 = vector.load %arg17[%c2_138, %c0_139, %c0_140] : memref<3x1x256xf32, #tpu.memory_space<vmem>>, vector<1x1x256xf32>
    %249 = vector.shape_cast %248 : vector<1x1x256xf32> to vector<1x256xf32>
    %c2_141 = arith.constant 2 : index
    %c0_142 = arith.constant 0 : index
    %c0_143 = arith.constant 0 : index
    %250 = vector.load %arg18[%c2_141, %c0_142, %c0_143] : memref<3x1x256xf32, #tpu.memory_space<vmem>>, vector<1x1x256xf32>
    %251 = vector.shape_cast %250 : vector<1x1x256xf32> to vector<1x256xf32>
    %cst_144 = arith.constant dense<0.000000e+00> : vector<256xf32>
    %252 = vector.multi_reduction <add>, %247, %cst_144 [0] : vector<64x256xf32> to vector<256xf32>
    %253 = vector.shape_cast %252 : vector<256xf32> to vector<1x256xf32>
    %cst_145 = arith.constant 1.562500e-02 : f32
    %254 = vector.broadcast %cst_145 : f32 to vector<1x256xf32>
    %255 = arith.mulf %253, %254 : vector<1x256xf32>
    %256 = arith.mulf %247, %247 : vector<64x256xf32>
    %cst_146 = arith.constant dense<0.000000e+00> : vector<256xf32>
    %257 = vector.multi_reduction <add>, %256, %cst_146 [0] : vector<64x256xf32> to vector<256xf32>
    %258 = vector.shape_cast %257 : vector<256xf32> to vector<1x256xf32>
    %cst_147 = arith.constant 1.562500e-02 : f32
    %259 = vector.broadcast %cst_147 : f32 to vector<1x256xf32>
    %260 = arith.mulf %258, %259 : vector<1x256xf32>
    %261 = arith.mulf %255, %255 : vector<1x256xf32>
    %262 = arith.subf %260, %261 : vector<1x256xf32>
    %cst_148 = arith.constant 0.000000e+00 : f32
    %263 = vector.broadcast %cst_148 : f32 to vector<1x256xf32>
    %264 = arith.maximumf %262, %263 : vector<1x256xf32>
    %265 = vector.broadcast %255 : vector<1x256xf32> to vector<64x256xf32>
    %266 = arith.subf %247, %265 : vector<64x256xf32>
    %cst_149 = arith.constant 9.99999974E-6 : f32
    %267 = vector.broadcast %cst_149 : f32 to vector<1x256xf32>
    %268 = arith.addf %264, %267 : vector<1x256xf32>
    %269 = math.rsqrt %268 : vector<1x256xf32>
    %270 = vector.broadcast %269 : vector<1x256xf32> to vector<64x256xf32>
    %271 = arith.mulf %266, %270 : vector<64x256xf32>
    %272 = vector.broadcast %249 : vector<1x256xf32> to vector<64x256xf32>
    %273 = arith.mulf %271, %272 : vector<64x256xf32>
    %274 = vector.broadcast %251 : vector<1x256xf32> to vector<64x256xf32>
    %275 = arith.addf %273, %274 : vector<64x256xf32>
    %c3 = arith.constant 3 : index
    %c0_150 = arith.constant 0 : index
    %c0_151 = arith.constant 0 : index
    %276 = vector.load %arg5[%c3, %c0_150, %c0_151] : memref<4x64x256xf32, #tpu.memory_space<vmem>>, vector<1x64x256xf32>
    %277 = vector.shape_cast %276 : vector<1x64x256xf32> to vector<64x256xf32>
    %278 = arith.mulf %275, %277 : vector<64x256xf32>
    %c2_152 = arith.constant 2 : index
    %c0_153 = arith.constant 0 : index
    %c0_154 = arith.constant 0 : index
    %279 = vector.load %arg19[%c2_152, %c0_153, %c0_154] : memref<3x256x128xbf16, #tpu.memory_space<vmem>>, vector<1x256x128xbf16>
    %280 = vector.shape_cast %279 : vector<1x256x128xbf16> to vector<256x128xbf16>
    %c2_155 = arith.constant 2 : index
    %c0_156 = arith.constant 0 : index
    %c0_157 = arith.constant 0 : index
    %281 = vector.load %arg20[%c2_155, %c0_156, %c0_157] : memref<3x1x128xf32, #tpu.memory_space<vmem>>, vector<1x1x128xf32>
    %282 = vector.shape_cast %281 : vector<1x1x128xf32> to vector<1x128xf32>
    %c2_158 = arith.constant 2 : index
    %c0_159 = arith.constant 0 : index
    %c0_160 = arith.constant 0 : index
    %283 = vector.load %arg21[%c2_158, %c0_159, %c0_160] : memref<3x128x256xbf16, #tpu.memory_space<vmem>>, vector<1x128x256xbf16>
    %284 = vector.shape_cast %283 : vector<1x128x256xbf16> to vector<128x256xbf16>
    %c2_161 = arith.constant 2 : index
    %c0_162 = arith.constant 0 : index
    %c0_163 = arith.constant 0 : index
    %285 = vector.load %arg22[%c2_161, %c0_162, %c0_163] : memref<3x1x256xf32, #tpu.memory_space<vmem>>, vector<1x1x256xf32>
    %286 = vector.shape_cast %285 : vector<1x1x256xf32> to vector<1x256xf32>
    %287 = arith.truncf %278 : vector<64x256xf32> to vector<64x256xbf16>
    %cst_164 = arith.constant dense<0.000000e+00> : vector<64x128xf32>
    %288 = tpu.matmul %287, %280, %cst_164 {dimension_numbers = #tpu.dot_dimension_numbers<[1], [0], [0], [1], [0, 0, 1, 1], [], []>} : vector<64x256xbf16>, vector<256x128xbf16>, vector<64x128xf32> -> vector<64x128xf32>
    %289 = vector.broadcast %282 : vector<1x128xf32> to vector<64x128xf32>
    %290 = arith.addf %288, %289 : vector<64x128xf32>
    %cst_165 = arith.constant 0.000000e+00 : f32
    %291 = vector.broadcast %cst_165 : f32 to vector<64x128xf32>
    %292 = arith.maximumf %290, %291 : vector<64x128xf32>
    %293 = arith.truncf %292 : vector<64x128xf32> to vector<64x128xbf16>
    %cst_166 = arith.constant dense<0.000000e+00> : vector<64x256xf32>
    %294 = tpu.matmul %293, %284, %cst_166 {dimension_numbers = #tpu.dot_dimension_numbers<[1], [0], [0], [1], [0, 0, 1, 1], [], []>} : vector<64x128xbf16>, vector<128x256xbf16>, vector<64x256xf32> -> vector<64x256xf32>
    %295 = vector.broadcast %286 : vector<1x256xf32> to vector<64x256xf32>
    %296 = arith.addf %294, %295 : vector<64x256xf32>
    %297 = arith.negf %296 : vector<64x256xf32>
    %298 = math.exp %297 : vector<64x256xf32>
    %cst_167 = arith.constant 1.000000e+00 : f32
    %299 = vector.broadcast %cst_167 : f32 to vector<64x256xf32>
    %300 = arith.addf %299, %298 : vector<64x256xf32>
    %301 = arith.divf %299, %300 : vector<64x256xf32>
    %c0_168 = arith.constant 0 : index
    %c0_169 = arith.constant 0 : index
    %302 = vector.load %arg23[%c0_168, %c0_169] : memref<256x128xbf16, #tpu.memory_space<vmem>>, vector<256x128xbf16>
    %c0_170 = arith.constant 0 : index
    %c0_171 = arith.constant 0 : index
    %303 = vector.load %arg24[%c0_170, %c0_171] : memref<1x128xf32, #tpu.memory_space<vmem>>, vector<1x128xf32>
    %304 = arith.truncf %301 : vector<64x256xf32> to vector<64x256xbf16>
    %cst_172 = arith.constant dense<0.000000e+00> : vector<64x128xf32>
    %305 = tpu.matmul %304, %302, %cst_172 {dimension_numbers = #tpu.dot_dimension_numbers<[1], [0], [0], [1], [0, 0, 1, 1], [], []>} : vector<64x256xbf16>, vector<256x128xbf16>, vector<64x128xf32> -> vector<64x128xf32>
    %306 = arith.truncf %305 : vector<64x128xf32> to vector<64x128xbf16>
    %cst_173 = arith.constant dense<0.000000e+00> : vector<128x128xf32>
    %307 = tpu.matmul %0, %306, %cst_173 {dimension_numbers = #tpu.dot_dimension_numbers<[0], [0], [1], [1], [0, 1, 1, 1], [], []>} : vector<64x128xbf16>, vector<64x128xbf16>, vector<128x128xf32> -> vector<128x128xf32>
    %308 = vector.broadcast %2 : vector<128x1xf32> to vector<128x128xf32>
    %309 = arith.mulf %307, %308 : vector<128x128xf32>
    %310 = arith.truncf %309 : vector<128x128xf32> to vector<128x128xbf16>
    %cst_174 = arith.constant dense<0.000000e+00> : vector<64x128xf32>
    %311 = tpu.matmul %0, %310, %cst_174 {dimension_numbers = #tpu.dot_dimension_numbers<[1], [0], [0], [1], [0, 0, 1, 1], [], []>} : vector<64x128xbf16>, vector<128x128xbf16>, vector<64x128xf32> -> vector<64x128xf32>
    %312 = vector.broadcast %1 : vector<64x1xf32> to vector<64x128xf32>
    %313 = arith.mulf %311, %312 : vector<64x128xf32>
    %314 = vector.broadcast %303 : vector<1x128xf32> to vector<64x128xf32>
    %315 = arith.addf %313, %314 : vector<64x128xf32>
    %cst_175 = arith.constant 0.000000e+00 : f32
    %316 = vector.broadcast %cst_175 : f32 to vector<64x128xf32>
    %317 = arith.maximumf %315, %316 : vector<64x128xf32>
    %c0_176 = arith.constant 0 : index
    %c0_177 = arith.constant 0 : index
    %318 = vector.load %arg25[%c0_176, %c0_177] : memref<64x128xf32, #tpu.memory_space<vmem>>, vector<64x128xf32>
    tpu.vector_store %arg25[%c0_176, %c0_177], %317 {strides = array<i32>} : memref<64x128xf32, #tpu.memory_space<vmem>>, vector<64x128xf32>,
    return
  }
}

</mosaic_0001>

<bundles_post_ra>
// kernel: tpu_custom_call.1
= control target key start
LH: loop header
LB: loop body
LE: loop exit
PB: predicated region body
PF: predicated region fallthrough
CT: control target
= control target key end

     0   :  { %s10139_s0 = inlined_call_operand.hbm [shape: bf16[64,128], index: 0, kind: input, shape index: {}]   ;;  %s10140_s1 = inlined_call_operand.hbm [shape: bf16[64,128], index: 1, kind: input, shape index: {}]   ;;  %s10141_s2 = inlined_call_operand.vmem [shape: f32[64,1], index: 2, kind: input, shape index: {}]   ;;  %s10142_s3 = inlined_call_operand.vmem [shape: f32[128,1], index: 3, kind: input, shape index: {}]   ;;  %s10143_s4 = inlined_call_operand.vmem [shape: f32[64,1], index: 4, kind: input, shape index: {}]   ;;  %s10144_s5 = inlined_call_operand.hbm [shape: f32[4,64,256], index: 5, kind: input, shape index: {}]   ;;  %s10145_s6 = inlined_call_operand.vmem [shape: bf16[128,256], index: 6, kind: input, shape index: {}]   ;;  %s10146_s7 = inlined_call_operand.vmem [shape: bf16[128,256], index: 7, kind: input, shape index: {}]   ;;  %s10147_s8 = inlined_call_operand.hbm [shape: f32[1,256], index: 8, kind: input, shape index: {}]   ;;  %s10148_s9 = inlined_call_operand.hbm [shape: f32[1,256], index: 9, kind: input, shape index: {}]   ;;  %s10149_s10 = inlined_call_operand.hbm [shape: f32[1,256], index: 10, kind: input, shape index: {}]   ;;  %s10150_s11 = inlined_call_operand.hbm [shape: bf16[256,128], index: 11, kind: input, shape index: {}]   ;;  %s10151_s12 = inlined_call_operand.hbm [shape: f32[1,128], index: 12, kind: input, shape index: {}]   ;;  %s10152_s13 = inlined_call_operand.hbm [shape: bf16[128,256], index: 13, kind: input, shape index: {}]   ;;  %s10153_s14 = inlined_call_operand.hbm [shape: f32[1,256], index: 14, kind: input, shape index: {}]   ;;  %s10154_s15 = inlined_call_operand.hbm [shape: bf16[3,256,256], index: 15, kind: input, shape index: {}]   ;;  %s10155_s16 = inlined_call_operand.vmem [shape: f32[3,1,256], index: 16, kind: input, shape index: {}]   ;;  %s10156_s17 = inlined_call_operand.vmem [shape: f32[3,1,256], index: 17, kind: input, shape index: {}]   ;;  %s10157_s18 = inlined_call_operand.vmem [shape: f32[3,1,256], index: 18, kind: input, shape index: {}]   ;;  %s10158_s19 = inlined_call_operand.hbm [shape: bf16[3,256,128], index: 19, kind: input, shape index: {}]   ;;  %s10159_s20 = inlined_call_operand.vmem [shape: f32[3,1,128], index: 20, kind: input, shape index: {}]   ;;  %s10160_s21 = inlined_call_operand.hbm [shape: bf16[3,128,256], index: 21, kind: input, shape index: {}]   ;;  %s10161_s22 = inlined_call_operand.vmem [shape: f32[3,1,256], index: 22, kind: input, shape index: {}]   ;;  %s10162_s23 = inlined_call_operand.hbm [shape: bf16[256,128], index: 23, kind: input, shape index: {}]   ;;  %s10163_s24 = inlined_call_operand.vmem [shape: f32[1,128], index: 24, kind: input, shape index: {}]   ;;  %s10164_s25 = inlined_call_operand.hbm [shape: f32[64,128], index: 25, kind: output, shape index: {}]  }
   0x1   :  { %10296 = sst [smem:[#allocation72_spill]] %s10139_s0 }
   0x2   :  { %10297 = sst [smem:[#allocation73_spill]] %s10140_s1 }
   0x3   :  { %10298 = sst [smem:[#allocation74_spill]] %s10141_s2 }
   0x4   :  { %10299 = sst [smem:[#allocation75_spill]] %s10142_s3 }
   0x5   :  { %10300 = sst [smem:[#allocation76_spill]] %s10144_s5 }
   0x6   :  { %10301 = sst [smem:[#allocation77_spill]] %s10145_s6 }
   0x7   :  { %10302 = sst [smem:[#allocation78_spill]] %s10146_s7 }
   0x8   :  { %10303 = sst [smem:[#allocation79_spill]] %s10147_s8 }
   0x9   :  { %10304 = sst [smem:[#allocation80_spill]] %s10148_s9 }
   0xa   :  { %10305 = sst [smem:[#allocation81_spill]] %s10164_s25 }
   0xb   :  { %30 = vsyncpa [#allocation3], 0 }
   0xc   :  { %31 = vsyncpa [#allocation6], 0 }
   0xd   :  { %32 = vsyncpa [#allocation9], 0 }
   0xe   :  { %33 = vsyncpa [#allocation12], 0 }
   0xf   :  { %34 = vsyncpa [#allocation15], 0 }
  0x10   :  { %35 = vsyncpa [#allocation18], 0 }
  0x11   :  { %36 = vsyncpa [#allocation21], 0 }
  0x12   :  { %37 = vsyncpa [#allocation24], 0 }
  0x13   :  { %38 = vsyncpa [#allocation4], 0  ;;  %s7986_s29 = smov [#allocation5]   ;;  %s7987_s6 = smov [#allocation8]  }
  0x14   :  { %s56_s2 = sshll.u32 %s7986_s29, 4  ;;  %s91_s30 = sshll.u32 %s7987_s6, 4  ;;  %s57_s2 = int_to_ptr.vmem [resolvable:$true] %s56_s2  ;;  %s92_s30 = int_to_ptr.vmem [resolvable:$true] %s91_s30 }
  0x15   :  { %s7676_s7 = scalar_lea.vmem %s57_s2, 512  ;;  %p7681_p1 = scmp.lt.s32.totalorder %s57_s2, %s57_s2 }
  0x16   :  { %p7677_p0 = scmp.ne.s32.totalorder %s57_s2, %s7676_s7  ;;  %p7682_p2 = scmp.lt.s32.totalorder %s7676_s7, %s7676_s7 }
  0x18   :  { %p7683_p3 = por %p7682_p2, %p7681_p1 }
  0x1a   :  { %p7684_p4 = pnand %p7683_p3, %p7677_p0 }
  0x1c   :  { %7687 = shalt.err (!%p7684_p4)
}
  0x1d   :  { %s7988_s3 = smov 64   ;;  %s7989_s26 = smov 4  }
  0x1e   :  { %s10306_s27 = sld [smem:[#allocation73_spill]]  ;;  %s7696_s4 = scalar_lea.vmem %s92_s30, 32 }
  0x1f   :  { %p7697_p5 = scmp.ne.s32.totalorder %s92_s30, %s7696_s4  ;;  %p7701_p6 = scmp.lt.s32.totalorder %s92_s30, %s92_s30 }
  0x20   :  { %p7702_p7 = scmp.lt.s32.totalorder %s7696_s4, %s7696_s4 }
  0x22   :  { %p7703_p8 = por %p7702_p7, %p7701_p6 }
  0x24   :  { %62 = dma.hbm_to_vmem [thread:$0]  %s10306_s27, 512, %s57_s2, [#allocation6], %s7988_s3, %s7988_s3, %s7989_s26  }
  0x25   :  { %p7704_p9 = pnand %p7703_p8, %p7697_p5 }
  0x27   :  { %7707 = shalt.err (!%p7704_p9)
}
  0x28   :  { %s10307_s5 = sld [smem:[#allocation79_spill]]  ;;  %s7990_s0 = smov [#allocation11]  }
  0x29   :  { %s111_s29 = sshll.u32 %s7990_s0, 4  ;;  %s7991_s6 = smov [#allocation14]   ;;  %s112_s29 = int_to_ptr.vmem [resolvable:$true] %s111_s29 }
  0x2a   :  { %s133_s7 = sshll.u32 %s7991_s6, 4  ;;  %s7716_s25 = scalar_lea.vmem %s112_s29, 32  ;;  %s134_s7 = int_to_ptr.vmem [resolvable:$true] %s133_s7 }
  0x2b   :  { %p7717_p10 = scmp.ne.s32.totalorder %s112_s29, %s7716_s25  ;;  %p7721_p11 = scmp.lt.s32.totalorder %s112_s29, %s112_s29 }
  0x2c   :  { %p7722_p12 = scmp.lt.s32.totalorder %s7716_s25, %s7716_s25 }
  0x2e   :  { %94 = dma.hbm_to_vmem [thread:$0]  %s10307_s5, 32, %s92_s30, [#allocation9]  }
  0x2f   :  { %p7723_p13 = por %p7722_p12, %p7721_p11 }
  0x31   :  { %p7724_p0 = pnand %p7723_p13, %p7717_p10 }
  0x33   :  { %7727 = shalt.err (!%p7724_p0)
}
  0x34   :  { %114 = dma.hbm_to_vmem [thread:$0]  %s10149_s10, 32, %s112_s29, [#allocation12]  }
  0x35   :  { %s7736_s8 = scalar_lea.vmem %s134_s7, 16  ;;  %s7740_s30 = scalar_lea.vmem %s134_s7, 32 }
  0x36   :  { %p7737_p1 = scmp.ne.s32.totalorder %s134_s7, %s7736_s8  ;;  %p7741_p2 = scmp.lt.s32.totalorder %s134_s7, %s134_s7 }
  0x37   :  { %p7742_p3 = scmp.lt.s32.totalorder %s7740_s30, %s7736_s8 }
  0x39   :  { %p7743_p4 = por %p7742_p3, %p7741_p2 }
  0x3b   :  { %p7744_p5 = pnand %p7743_p4, %p7737_p1 }
  0x3d   :  { %7747 = shalt.err (!%p7744_p5)
}
  0x3e   :  { %136 = dma.hbm_to_vmem [thread:$0]  %s10151_s12, 16, %s134_s7, [#allocation15]  }
  0x3f   :  { %s7992_s25 = smov [#allocation17]   ;;  %s7993_s9 = smov [#allocation20]  }
  0x40   :  { %s155_s28 = sshll.u32 %s7992_s25, 4  ;;  %s182_s5 = sshll.u32 %s7993_s9, 4  ;;  %s156_s28 = int_to_ptr.vmem [resolvable:$true] %s155_s28  ;;  %s183_s5 = int_to_ptr.vmem [resolvable:$true] %s182_s5 }
  0x41   :  { %s7756_s0 = scalar_lea.vmem %s156_s28, 32  ;;  %p7761_p7 = scmp.lt.s32.totalorder %s156_s28, %s156_s28 }
  0x42   :  { %p7757_p6 = scmp.ne.s32.totalorder %s156_s28, %s7756_s0  ;;  %p7762_p8 = scmp.lt.s32.totalorder %s7756_s0, %s7756_s0 }
  0x44   :  { %p7763_p9 = por %p7762_p8, %p7761_p7 }
  0x46   :  { %p7764_p10 = pnand %p7763_p9, %p7757_p6 }
  0x48   :  { %7767 = shalt.err (!%p7764_p10)
}
  0x49   :  { %158 = dma.hbm_to_vmem [thread:$0]  %s10153_s14, 32, %s156_s28, [#allocation18]  }
  0x4a   :  { %s7776_s6 = scalar_lea.vmem %s183_s5, 6144  ;;  %p7781_p12 = scmp.lt.s32.totalorder %s183_s5, %s183_s5 }
  0x4b   :  { %p7777_p11 = scmp.ne.s32.totalorder %s183_s5, %s7776_s6  ;;  %p7782_p13 = scmp.lt.s32.totalorder %s7776_s6, %s7776_s6 }
  0x4d   :  { %p7783_p0 = por %p7782_p13, %p7781_p12 }
  0x4f   :  { %p7784_p1 = pnand %p7783_p0, %p7777_p11 }
  0x51   :  { %7787 = shalt.err (!%p7784_p1)
}
  0x52   :  { %188 = dma.hbm_to_vmem [thread:$0]  %s10158_s19, 6144, %s183_s5, [#allocation21], %s7988_s3, %s7988_s3, %s7989_s26  }
  0x53   :  { %s7994_s2 = smov [#allocation2]   ;;  %s7995_s8 = smov [#allocation7]  }
  0x54   :  { %s44_s1 = sshll.u32 %s7994_s2, 4  ;;  %s74_s30 = sshll.u32 %s7995_s8, 4  ;;  %s45_s1 = int_to_ptr.vmem [resolvable:$true] %s44_s1  ;;  %s75_s30 = int_to_ptr.vmem [resolvable:$true] %s74_s30 }
  0x55   :  { %s7796_s14 = scalar_lea.vmem %s45_s1, 512  ;;  %p7801_p3 = scmp.lt.s32.totalorder %s45_s1, %s45_s1 }
  0x56   :  { %p7797_p2 = scmp.ne.s32.totalorder %s45_s1, %s7796_s14  ;;  %p7802_p4 = scmp.lt.s32.totalorder %s7796_s14, %s7796_s14 }
  0x58   :  { %p7803_p5 = por %p7802_p4, %p7801_p3 }
  0x5a   :  { %p7804_p6 = pnand %p7803_p5, %p7797_p2 }
  0x5c   :  { %7807 = shalt.err (!%p7804_p6)
}
  0x5d   :  { %s10308_s25 = sld [smem:[#allocation72_spill]]  ;;  %s7816_s19 = scalar_lea.vmem %s75_s30, 8192 }
  0x5e   :  { %p7817_p7 = scmp.ne.s32.totalorder %s75_s30, %s7816_s19  ;;  %p7821_p8 = scmp.lt.s32.totalorder %s75_s30, %s75_s30 }
  0x5f   :  { %p7822_p9 = scmp.lt.s32.totalorder %s7816_s19, %s7816_s19 }
  0x61   :  { %p7823_p10 = por %p7822_p9, %p7821_p8 }
  0x63   :  { %50 = dma.hbm_to_vmem [thread:$0]  %s10308_s25, 512, %s45_s1, [#allocation3], %s7988_s3, %s7988_s3, %s7989_s26  }
  0x64   :  { %p7824_p11 = pnand %p7823_p10, %p7817_p7 }
  0x66   :  { %7827 = shalt.err (!%p7824_p11)
}
  0x67   :  { %s7996_s28 = smov 256   ;;  %s7997_s9 = smov 16  }
  0x68   :  { %s10309_s10 = sld [smem:[#allocation76_spill]]  ;;  %s7998_s29 = smov [#allocation10]  }
  0x69   :  { %s101_s6 = sshll.u32 %s7998_s29, 4  ;;  %s7999_s12 = smov [#allocation13]   ;;  %s102_s6 = int_to_ptr.vmem [resolvable:$true] %s101_s6 }
  0x6a   :  { %s120_s7 = sshll.u32 %s7999_s12, 4  ;;  %s7836_s2 = scalar_lea.vmem %s102_s6, 32  ;;  %s121_s7 = int_to_ptr.vmem [resolvable:$true] %s120_s7 }
  0x6b   :  { %p7837_p12 = scmp.ne.s32.totalorder %s102_s6, %s7836_s2  ;;  %p7841_p13 = scmp.lt.s32.totalorder %s102_s6, %s102_s6 }
  0x6c   :  { %p7842_p0 = scmp.lt.s32.totalorder %s7836_s2, %s7836_s2 }
  0x6e   :  { %80 = dma.hbm_to_vmem [thread:$0]  %s10309_s10, 8192, %s75_s30, [#allocation6], %s7996_s28, %s7996_s28, %s7997_s9  }
  0x6f   :  { %p7843_p1 = por %p7842_p0, %p7841_p13 }
  0x71   :  { %p7844_p2 = pnand %p7843_p1, %p7837_p12 }
  0x73   :  { %7847 = shalt.err (!%p7844_p2)
}
  0x74   :  { %s10310_s14 = sld [smem:[#allocation80_spill]]  ;;  %s7856_s27 = scalar_lea.vmem %s121_s7, 2048 }
  0x75   :  { %p7857_p3 = scmp.ne.s32.totalorder %s121_s7, %s7856_s27  ;;  %p7861_p4 = scmp.lt.s32.totalorder %s121_s7, %s121_s7 }
  0x76   :  { %p7862_p5 = scmp.lt.s32.totalorder %s7856_s27, %s7856_s27 }
  0x78   :  { %p7863_p6 = por %p7862_p5, %p7861_p4 }
  0x7a   :  { %104 = dma.hbm_to_vmem [thread:$0]  %s10310_s14, 32, %s102_s6, [#allocation9]  }
  0x7b   :  { %p7864_p7 = pnand %p7863_p6, %p7857_p3 }
  0x7d   :  { %7867 = shalt.err (!%p7864_p7)
}
  0x7e   :  { %126 = dma.hbm_to_vmem [thread:$0]  %s10150_s11, 2048, %s121_s7, [#allocation12], %s7988_s3, %s7988_s3, %s7989_s26  }
  0x7f   :  { %s8000_s25 = smov [#allocation16]  }
  0x80   :  { %s142_s19 = sshll.u32 %s8000_s25, 4  ;;  %s143_s19 = int_to_ptr.vmem [resolvable:$true] %s142_s19 }
  0x81   :  { %s7876_s28 = scalar_lea.vmem %s143_s19, 2048  ;;  %p7881_p9 = scmp.lt.s32.totalorder %s143_s19, %s143_s19 }
  0x82   :  { %p7877_p8 = scmp.ne.s32.totalorder %s143_s19, %s7876_s28  ;;  %p7882_p10 = scmp.lt.s32.totalorder %s7876_s28, %s7876_s28 }
  0x84   :  { %p7883_p11 = por %p7882_p10, %p7881_p9 }
  0x86   :  { %p7884_p12 = pnand %p7883_p11, %p7877_p8 }
  0x88   :  { %7887 = shalt.err (!%p7884_p12)
}
  0x89   :  { %s8001_s9 = smov 128   ;;  %s8002_s5 = smov 8  }
  0x8a   :  { %148 = dma.hbm_to_vmem [thread:$0]  %s10152_s13, 2048, %s143_s19, [#allocation15], %s8001_s9, %s8001_s9, %s8002_s5  }
  0x8b   :  { %s8003_s11 = smov [#allocation19]   ;;  %s8004_s6 = smov [#allocation22]  }
  0x8c   :  { %s164_s29 = sshll.u32 %s8003_s11, 4  ;;  %s196_s12 = sshll.u32 %s8004_s6, 4  ;;  %s165_s29 = int_to_ptr.vmem [resolvable:$true] %s164_s29  ;;  %s197_s12 = int_to_ptr.vmem [resolvable:$true] %s196_s12 }
  0x8d   :  { %s7896_s7 = scalar_lea.vmem %s165_s29, 12288  ;;  %p7901_p0 = scmp.lt.s32.totalorder %s165_s29, %s165_s29 }
  0x8e   :  { %p7897_p13 = scmp.ne.s32.totalorder %s165_s29, %s7896_s7  ;;  %p7902_p1 = scmp.lt.s32.totalorder %s7896_s7, %s7896_s7 }
  0x90   :  { %p7903_p2 = por %p7902_p1, %p7901_p0 }
  0x92   :  { %p7904_p3 = pnand %p7903_p2, %p7897_p13 }
  0x94   :  { %7907 = shalt.err (!%p7904_p3)
}
  0x95   :  { %170 = dma.hbm_to_vmem [thread:$0]  %s10154_s15, 12288, %s165_s29, [#allocation18], %s8001_s9, %s8001_s9, %s8002_s5  }
  0x96   :  { %s7916_s13 = scalar_lea.vmem %s197_s12, 6144  ;;  %p7921_p5 = scmp.lt.s32.totalorder %s197_s12, %s197_s12 }
  0x97   :  { %p7917_p4 = scmp.ne.s32.totalorder %s197_s12, %s7916_s13  ;;  %p7922_p6 = scmp.lt.s32.totalorder %s7916_s13, %s7916_s13 }
  0x99   :  { %p7923_p7 = por %p7922_p6, %p7921_p5 }
  0x9b   :  { %p7924_p8 = pnand %p7923_p7, %p7917_p4 }
  0x9d   :  { %7927 = shalt.err (!%p7924_p8)
}
  0x9e   :  { %202 = dma.hbm_to_vmem [thread:$0]  %s10160_s21, 6144, %s197_s12, [#allocation21], %s8001_s9, %s8001_s9, %s8002_s5  }
  0x9f   :  { %s8005_s27 = smov [#allocation23]  }
  0xa0   :  { %s210_s30 = sshll.u32 %s8005_s27, 4  ;;  %s211_s30 = int_to_ptr.vmem [resolvable:$true] %s210_s30 }
  0xa1   :  { %s7936_s4 = scalar_lea.vmem %s211_s30, 2048  ;;  %p7941_p10 = scmp.lt.s32.totalorder %s211_s30, %s211_s30 }
  0xa2   :  { %p7937_p9 = scmp.ne.s32.totalorder %s211_s30, %s7936_s4  ;;  %p7942_p11 = scmp.lt.s32.totalorder %s7936_s4, %s7936_s4 }
  0xa4   :  { %p7943_p12 = por %p7942_p11, %p7941_p10 }
  0xa6   :  { %p7944_p13 = pnand %p7943_p12, %p7937_p9 }
  0xa8   :  { %7947 = shalt.err (!%p7944_p13)
}
  0xa9   :  { %216 = dma.hbm_to_vmem [thread:$0]  %s10162_s23, 2048, %s211_s30, [#allocation24], %s7988_s3, %s7988_s3, %s7989_s26  }
  0xaa   :  { %7968 = dma.done.wait [#allocation3], 512  }
  0xab   :  { %7969 = vsyncadd [#allocation3], 4294966784 }
  0xac   :  { %7970 = dma.done.wait [#allocation6], 8704  }
  0xad   :  { %7971 = vsyncadd [#allocation6], 4294958592 }
  0xae   :  { %7972 = dma.done.wait [#allocation9], 64  }
  0xaf   :  { %7973 = vsyncadd [#allocation9], 4294967232 }
  0xb0   :  { %7974 = dma.done.wait [#allocation12], 2080  }
  0xb1   :  { %7975 = vsyncadd [#allocation12], 4294965216 }
  0xb2   :  { %7976 = dma.done.wait [#allocation15], 2064  }
  0xb3   :  { %7977 = vsyncadd [#allocation15], 4294965232 }
  0xb4   :  { %7978 = dma.done.wait [#allocation18], 12320  }
  0xb5   :  { %7979 = vsyncadd [#allocation18], 4294954976 }
  0xb6   :  { %7980 = dma.done.wait [#allocation21], 12288  }
  0xb7   :  { %7981 = vsyncadd [#allocation21], 4294955008 }
  0xb8   :  { %7982 = dma.done.wait [#allocation24], 2048  }
  0xb9   :  { %7983 = vsyncadd [#allocation24], 4294965248  ;;  %v10169_v0 = vmov 0   ;;  %s10311_s3 = sld [smem:[#allocation78_spill]]  ;;  %v7028_v11 = vld [vmem:[#allocation5] sm:$0xff]   ;;  %v7029_v14 = vld [vmem:[#allocation5 + $0x8] sm:$0xff]  }
  0xba   :  { %624 = vmatprep.mubr.bf16.mxu1 %v10169_v0  ;;  %454 = vmatprep.mubr.bf16.mxu0 %v10169_v0  ;;  %s10312_s10 = sld [smem:[#allocation77_spill]]  ;;  %v7030_v19 = vld [vmem:[#allocation5 + $0x10] sm:$0xff]   ;;  %v7031_v25 = vld [vmem:[#allocation5 + $0x18] sm:$0xff]   ;;  %v7024_v28 = vld [vmem:[#allocation2] sm:$0xff]   ;;  %vm713_vm0 = vcmask 523264  }
  0xbb   :  { %6998 = vset.pattern.permute.xlu1 %v10169_v0  ;;  %697 = vxpose.xlu0.c.b16.start [1/4] (short) %v7028_v11, 128  ;;  %v7025_v33 = vld [vmem:[#allocation2 + $0x8] sm:$0xff]   ;;  %v7026_v35 = vld [vmem:[#allocation2 + $0x10] sm:$0xff]   ;;  %v7027_v36 = vld [vmem:[#allocation2 + $0x18] sm:$0xff]   ;;  %s10313_s23 = sld [smem:[#allocation75_spill]] }
  0xbc   :  { %s10314_s6 = sld [smem:[#allocation74_spill]] }
  0xbf   :  { %v7000_v1 = vld [vmem:[%s10311_s3 + $0x74] ss:$8 sps:$4 sm:$0xff]   ;;  %v7002_v2 = vld [vmem:[%s10311_s3 + $0x70] ss:$8 sps:$4 sm:$0xff]   ;;  %v7003_v3 = vld [vmem:[%s10311_s3 + $0x64] ss:$8 sps:$4 sm:$0xff]   ;;  %698 = vxpose.xlu0.c.b16.cont [2/4] (short) %v7029_v14, 128 }
  0xc0   :  { %592 = vmatprep.subr.bf16.mxu1 %v7000_v1  ;;  %v7005_v4 = vld [vmem:[%s10311_s3 + $0x60] ss:$8 sps:$4 sm:$0xff]   ;;  %v7006_v5 = vld [vmem:[%s10311_s3 + $0x54] ss:$8 sps:$4 sm:$0xff]   ;;  %v7008_v6 = vld [vmem:[%s10311_s3 + $0x50] ss:$8 sps:$4 sm:$0xff]  }
  0xc1   :  { %593 = vmatpush1.bf16.msra.mxu1 %v7002_v2  ;;  %v7009_v7 = vld [vmem:[%s10311_s3 + $0x44] ss:$8 sps:$4 sm:$0xff]   ;;  %v7011_v8 = vld [vmem:[%s10311_s3 + $0x40] ss:$8 sps:$4 sm:$0xff]   ;;  %v7012_v9 = vld [vmem:[%s10311_s3 + $0x34] ss:$8 sps:$4 sm:$0xff]  }
  0xc2   :  { %594 = vmatprep.subr.bf16.mxu1 %v7003_v3  ;;  %v7014_v10 = vld [vmem:[%s10311_s3 + $0x30] ss:$8 sps:$4 sm:$0xff]   ;;  %v7015_v12 = vld [vmem:[%s10311_s3 + $0x24] ss:$8 sps:$4 sm:$0xff]   ;;  %v7017_v13 = vld [vmem:[%s10311_s3 + $0x20] ss:$8 sps:$4 sm:$0xff]  }
  0xc3   :  { %v7018_v15 = vld [vmem:[%s10311_s3 + $0x14] ss:$8 sps:$4 sm:$0xff]   ;;  %v7034_v17 = vld [vmem:[%s10312_s10 + $0x70] ss:$8 sps:$4 sm:$0xff]   ;;  %v7035_v18 = vld [vmem:[%s10312_s10 + $0x64] ss:$8 sps:$4 sm:$0xff]   ;;  %699 = vxpose.xlu0.c.b16.cont [3/4] (short) %v7030_v19, 128 }
  0xc4   :  { %v7032_v16 = vld [vmem:[%s10312_s10 + $0x74] ss:$8 sps:$4 sm:$0xff]   ;;  %v7037_v20 = vld [vmem:[%s10312_s10 + $0x60] ss:$8 sps:$4 sm:$0xff]   ;;  %v7020_v21 = vld [vmem:[%s10311_s3 + $0x10] ss:$8 sps:$4 sm:$0xff]  }
  0xc5   :  { %595 = vmatpush1.bf16.msra.mxu1 %v7005_v4  ;;  %422 = vmatprep.subr.bf16.mxu0 %v7032_v16  ;;  %v7038_v22 = vld [vmem:[%s10312_s10 + $0x54] ss:$8 sps:$4 sm:$0xff]   ;;  %v7021_v23 = vld [vmem:[%s10311_s3 + $0x4] ss:$8 sps:$4 sm:$0xff]   ;;  %v7023_v24 = vld [vmem:[%s10311_s3] ss:$8 sps:$4 sm:$0xff]  }
  0xc6   :  { %596 = vmatprep.subr.bf16.mxu1 %v7006_v5  ;;  %423 = vmatpush1.bf16.msra.mxu0 %v7034_v17  ;;  %v7040_v26 = vld [vmem:[%s10312_s10 + $0x50] ss:$8 sps:$4 sm:$0xff]   ;;  %v7041_v27 = vld [vmem:[%s10312_s10 + $0x44] ss:$8 sps:$4 sm:$0xff]   ;;  %v7043_v29 = vld [vmem:[%s10312_s10 + $0x40] ss:$8 sps:$4 sm:$0xff]  }
  0xc7   :  { %424 = vmatprep.subr.bf16.mxu0 %v7035_v18  ;;  %700 = vxpose.xlu0.c.b16.end [4/4] (short) %v7031_v25, 128  ;;  %v7044_v30 = vld [vmem:[%s10312_s10 + $0x34] ss:$8 sps:$4 sm:$0xff]   ;;  %v7046_v31 = vld [vmem:[%s10312_s10 + $0x30] ss:$8 sps:$4 sm:$0xff]   ;;  %v7047_v32 = vld [vmem:[%s10312_s10 + $0x24] ss:$8 sps:$4 sm:$0xff]  }
  0xc8   :  { %v7049_v34 = vld [vmem:[%s10312_s10 + $0x20] ss:$8 sps:$4 sm:$0xff]   ;;  %v7050_v37 = vld [vmem:[%s10312_s10 + $0x14] ss:$8 sps:$4 sm:$0xff]   ;;  %v7052_v38 = vld [vmem:[%s10312_s10 + $0x10] ss:$8 sps:$4 sm:$0xff]  }
  0xc9   :  { %597 = vmatpush1.bf16.msra.mxu1 %v7008_v6  ;;  %v7053_v39 = vld [vmem:[%s10312_s10 + $0x4] ss:$8 sps:$4 sm:$0xff]   ;;  %v7055_v40 = vld [vmem:[%s10312_s10] ss:$8 sps:$4 sm:$0xff]   ;;  %v292_v41 = vld [vmem:[%s10313_s23 + $0x70] sm:$0xff] }
  0xca   :  { %598 = vmatprep.subr.bf16.mxu1 %v7009_v7  ;;  %425 = vmatpush1.bf16.msra.mxu0 %v7037_v20  ;;  %v293_v42 = vld [vmem:[%s10313_s23 + $0x78] sm:$0xff]  ;;  %v290_v43 = vld [vmem:[%s10313_s23 + $0x60] sm:$0xff]  ;;  %v291_v44 = vld [vmem:[%s10313_s23 + $0x68] sm:$0xff] }
  0xcb   :  { %426 = vmatprep.subr.bf16.mxu0 %v7038_v22  ;;  %923 = vperm.xlu1 %6998, %v292_v41   ;;  %v289_v45 = vld [vmem:[%s10313_s23 + $0x58] sm:$0xff]  ;;  %v286_v46 = vld [vmem:[%s10313_s23 + $0x40] sm:$0xff]  ;;  %v287_v47 = vld [vmem:[%s10313_s23 + $0x48] sm:$0xff] }
  0xcc   :  { %v284_v48 = vld [vmem:[%s10313_s23 + $0x30] sm:$0xff]  ;;  %v285_v49 = vld [vmem:[%s10313_s23 + $0x38] sm:$0xff]  ;;  %v282_v51 = vld [vmem:[%s10313_s23 + $0x20] sm:$0xff] }
  0xcd   :  { %599 = vmatpush1.bf16.msra.mxu1 %v7011_v8  ;;  %v288_v50 = vld [vmem:[%s10313_s23 + $0x50] sm:$0xff]  ;;  %v283_v53 = vld [vmem:[%s10313_s23 + $0x28] sm:$0xff]  ;;  %v278_v54 = vld [vmem:[%s10313_s23] sm:$0xff] }
  0xce   :  { %600 = vmatprep.subr.bf16.mxu1 %v7012_v9  ;;  %427 = vmatpush1.bf16.msra.mxu0 %v7040_v26  ;;  %v280_v52 = vld [vmem:[%s10313_s23 + $0x10] sm:$0xff]  ;;  %v281_v55 = vld [vmem:[%s10313_s23 + $0x18] sm:$0xff]  ;;  %v270_v56 = vld [vmem:[%s10314_s6] sm:$0xff] }
  0xcf   :  { %428 = vmatprep.subr.bf16.mxu0 %v7041_v27  ;;  %928 = vperm.xlu1 %6998, %v293_v42   ;;  %v279_v57 = vld [vmem:[%s10313_s23 + $0x8] sm:$0xff]  ;;  %v272_v58 = vld [vmem:[%s10314_s6 + $0x10] sm:$0xff]  ;;  %v274_v60 = vld [vmem:[%s10314_s6 + $0x20] sm:$0xff] }
  0xd0   :  { %6999 = vset.pattern.permute.xlu0 %v10169_v0  ;;  %v271_v59 = vld [vmem:[%s10314_s6 + $0x8] sm:$0xff]  ;;  %v273_v61 = vld [vmem:[%s10314_s6 + $0x18] sm:$0xff]  ;;  %v276_v62 = vld [vmem:[%s10314_s6 + $0x30] sm:$0xff] }
  0xd1   :  { %601 = vmatpush1.bf16.msra.mxu1 %v7014_v10  ;;  %v275_v2 = vld [vmem:[%s10314_s6 + $0x28] sm:$0xff]  ;;  %v277_v5 = vld [vmem:[%s10314_s6 + $0x38] sm:$0xff] }
  0xd2   :  { %602 = vmatprep.subr.bf16.mxu1 %v7015_v12  ;;  %429 = vmatpush1.bf16.msra.mxu0 %v7043_v29 }
  0xd3   :  { %430 = vmatprep.subr.bf16.mxu0 %v7044_v30  ;;  %913 = vperm.xlu1 %6998, %v290_v43  }
  0xd5   :  { %603 = vmatpush1.bf16.msra.mxu1 %v7017_v13 }
  0xd6   :  { %604 = vmatprep.subr.bf16.mxu1 %v7018_v15  ;;  %431 = vmatpush1.bf16.msra.mxu0 %v7046_v31 }
  0xd7   :  { %432 = vmatprep.subr.bf16.mxu0 %v7047_v32  ;;  %918 = vperm.xlu1 %6998, %v291_v44  }
  0xd9   :  { %605 = vmatpush1.bf16.msra.mxu1 %v7020_v21 }
  0xda   :  { %606 = vmatprep.subr.bf16.mxu1 %v7021_v23  ;;  %433 = vmatpush1.bf16.msra.mxu0 %v7049_v34 }
  0xdb   :  { %434 = vmatprep.subr.bf16.mxu0 %v7050_v37  ;;  %908 = vperm.xlu1 %6998, %v289_v45  }
  0xdd   :  { %607 = vmatpush1.bf16.msra.mxu1 %v7023_v24 }
  0xde   :  { %435 = vmatpush1.bf16.msra.mxu0 %v7052_v38 }
  0xdf   :  { %436 = vmatprep.subr.bf16.mxu0 %v7053_v39  ;;  %893 = vperm.xlu1 %6998, %v286_v46  }
  0xe0   :  { %625 = vmatmul.mubr.bf16.vlgmr.msra.gmra.mxu1 %v7024_v28  ;;  %903 = vperm.xlu0 %6999, %v288_v50  }
  0xe1   :  { %634 = vmatprep.mubr.bf16.mxu1 %v10169_v0 }
  0xe2   :  { %437 = vmatpush1.bf16.msra.mxu0 %v7055_v40 }
  0xe3   :  { %898 = vperm.xlu1 %6998, %v287_v47  }
  0xe4   :  { %863 = vperm.xlu0 %6999, %v280_v52  }
  0xe5   :  { %455 = vmatmul.mubr.bf16.vlgmr.msra.gmra.mxu0 %v7024_v28 }
  0xe6   :  { %464 = vmatprep.mubr.bf16.mxu0 %v10169_v0 }
  0xe7   :  { %883 = vperm.xlu1 %6998, %v284_v48  }
  0xe8   :  { %635 = vmatmul.mubr.bf16.gmra.mxu1 %v7025_v33  ;;  %853 = vperm.xlu0 %6999, %v278_v54  }
  0xe9   :  { %644 = vmatprep.mubr.bf16.mxu1 %v10169_v0 }
  0xeb   :  { %888 = vperm.xlu1 %6998, %v285_v49  }
  0xec   :  { %1054 = vperm.xlu0 %6999, %v270_v56  }
  0xed   :  { %465 = vmatmul.mubr.bf16.gmra.mxu0 %v7025_v33 }
  0xee   :  { %474 = vmatprep.mubr.bf16.mxu0 %v10169_v0 }
  0xef   :  { %873 = vperm.xlu1 %6998, %v282_v51  }
  0xf0   :  { %645 = vmatmul.mubr.bf16.gmra.mxu1 %v7026_v35  ;;  %1064 = vperm.xlu0 %6999, %v272_v58  }
  0xf1   :  { %654 = vmatprep.mubr.bf16.mxu1 %v10169_v0 }
  0xf3   :  { %878 = vperm.xlu1 %6998, %v283_v53  }
  0xf4   :  { %1074 = vperm.xlu0 %6999, %v274_v60  }
  0xf5   :  { %475 = vmatmul.mubr.bf16.gmra.mxu0 %v7026_v35 }
  0xf6   :  { %484 = vmatprep.mubr.bf16.mxu0 %v10169_v0 }
  0xf7   :  { %868 = vperm.xlu1 %6998, %v281_v55  }
  0xf8   :  { %655 = vmatmul.mubr.bf16.gmra.mxu1 %v7027_v36  ;;  %1084 = vperm.xlu0 %6999, %v276_v62  }
  0xf9   :  { %1011 = vmatprep.mubr.bf16.mxu1 %v10169_v0 }
  0xfb   :  { %858 = vperm.xlu1 %6998, %v279_v57  }
  0xfd   :  { %485 = vmatmul.mubr.bf16.gmra.mxu0 %v7027_v36 }
  0xfe   :  { %770 = vmatprep.mubr.bf16.mxu0 %v10169_v0 }
  0xff   :  { %1059 = vperm.xlu1 %6998, %v271_v59  }
 0x103   :  { %1069 = vperm.xlu1 %6998, %v273_v61  }
 0x107   :  { %1079 = vperm.xlu1 %6998, %v275_v2  }
 0x10b   :  { %1089 = vperm.xlu1 %6998, %v277_v5  }
 0x11d   :  { %v8384_v26 = vpop.trf.xlu0 }
 0x11e   :  { %10315 = vst [vmem:[#allocation35_spill] sm:$0xff] %v8384_v26 }
 0x121   :  { %v8389_v27 = vpop.trf.xlu0 }
 0x122   :  { %10316 = vst [vmem:[#allocation36_spill] sm:$0xff] %v8389_v27 }
 0x125   :  { %v8394_v28 = vpop.trf.xlu0 }
 0x126   :  { %10317 = vst [vmem:[#allocation37_spill] sm:$0xff] %v8394_v28 }
 0x129   :  { %v8399_v29 = vpop.trf.xlu0 }
 0x12a   :  { %10318 = vst [vmem:[#allocation38_spill] sm:$0xff] %v8399_v29 }
 0x12d   :  { %v8404_v30 = vpop.trf.xlu0 }
 0x12e   :  { %10319 = vst [vmem:[#allocation39_spill] sm:$0xff] %v8404_v30 }
 0x131   :  { %v8409_v31 = vpop.trf.xlu0 }
 0x132   :  { %10320 = vst [vmem:[#allocation40_spill] sm:$0xff] %v8409_v31 }
 0x135   :  { %v8414_v32 = vpop.trf.xlu0 }
 0x136   :  { %10321 = vst [vmem:[#allocation41_spill] sm:$0xff] %v8414_v32 }
 0x139   :  { %v8419_v33 = vpop.trf.xlu0 }
 0x13a   :  { %10322 = vst [vmem:[#allocation42_spill] sm:$0xff] %v8419_v33 }
 0x146   :  { %v8424_v34 = vpop.permute.xlu1 %923 }
 0x14a   :  { %v8426_v35 = vpop.permute.xlu1 %928 }
 0x14e   :  { %v8432_v38 = vpop.permute.xlu1 %913 }
 0x152   :  { %v8436_v40 = vpop.permute.xlu1 %918 }
 0x156   :  { %v8442_v43 = vpop.permute.xlu1 %908 }
 0x15a   :  { %v8446_v45 = vpop.permute.xlu1 %893 }
 0x15b   :  { %v8470_v57 = vpop.permute.xlu0 %903 }
 0x15e   :  { %v8452_v48 = vpop.permute.xlu1 %898 }
 0x15f   :  { %v8478_v61 = vpop.permute.xlu0 %863 }
 0x160   :  { %10339 = vst [vmem:[#allocation59_spill] sm:$0xff] %v8478_v61 }
 0x162   :  { %v8456_v50 = vpop.permute.xlu1 %883 }
 0x163   :  { %v8484_v2 = vpop.permute.xlu0 %853 }
 0x164   :  { %10342 = vst [vmem:[#allocation62_spill] sm:$0xff] %v8484_v2 }
 0x166   :  { %v8462_v53 = vpop.permute.xlu1 %888 }
 0x16a   :  { %v8466_v55 = vpop.permute.xlu1 %873 }
 0x16b   :  { %10335 = vst [vmem:[#allocation55_spill] sm:$0xff] %v8466_v55 }
 0x16e   :  { %v8474_v59 = vpop.permute.xlu1 %878 }
 0x172   :  { %v8480_v62 = vpop.permute.xlu1 %868 }
 0x173   :  { %10340 = vst [vmem:[#allocation60_spill] sm:$0xff] %v8480_v62 }
 0x1a0   :  { %v626_v63 = vpop.f32.mrf.mxu1 }
 0x1a2   :  { %v628_v1 = vpop.f32.mrf.mxu1 }
 0x1a4   :  { %v630_v3 = vpop.f32.mrf.mxu1 }
 0x1a5   :  { %v665_v25 = vpack.c.bf16 %v630_v3, %v626_v63  ;;  %v8428_v36 = vpop.f32.mrf.mxu0 }
 0x1a6   :  { %v632_v4 = vpop.f32.mrf.mxu1  ;;  %10323 = vst [vmem:[#allocation43_spill] sm:$0xff] %v8428_v36 }
 0x1a7   :  { %v666_v24 = vpack.c.bf16 %v632_v4, %v628_v1  ;;  %v8430_v37 = vpop.f32.mrf.mxu0  ;;  %v8488_v4 = vpop.permute.xlu1 %858 }
 0x1a8   :  { %v636_v6 = vpop.f32.mrf.mxu1  ;;  %10324 = vst [vmem:[#allocation44_spill] sm:$0xff] %v8430_v37  ;;  %10343 = vst [vmem:[#allocation63_spill] sm:$0xff] %v8488_v4 }
 0x1a9   :  { %v8434_v39 = vpop.f32.mrf.mxu0 }
 0x1aa   :  { %v638_v7 = vpop.f32.mrf.mxu1  ;;  %10325 = vst [vmem:[#allocation45_spill] sm:$0xff] %v8434_v39 }
 0x1ab   :  { %v8438_v41 = vpop.f32.mrf.mxu0 }
 0x1ac   :  { %v640_v8 = vpop.f32.mrf.mxu1  ;;  %10326 = vst [vmem:[#allocation46_spill] sm:$0xff] %v8438_v41 }
 0x1ad   :  { %v667_v23 = vpack.c.bf16 %v640_v8, %v636_v6  ;;  %v8440_v42 = vpop.f32.mrf.mxu0 }
 0x1ae   :  { %v642_v9 = vpop.f32.mrf.mxu1  ;;  %10327 = vst [vmem:[#allocation47_spill] sm:$0xff] %v8440_v42 }
 0x1af   :  { %v668_v22 = vpack.c.bf16 %v642_v9, %v638_v7  ;;  %v8444_v44 = vpop.f32.mrf.mxu0 }
 0x1b0   :  { %v646_v10 = vpop.f32.mrf.mxu1  ;;  %10328 = vst [vmem:[#allocation48_spill] sm:$0xff] %v8444_v44 }
 0x1b1   :  { %v8448_v46 = vpop.f32.mrf.mxu0 }
 0x1b2   :  { %v648_v11 = vpop.f32.mrf.mxu1  ;;  %10329 = vst [vmem:[#allocation49_spill] sm:$0xff] %v8448_v46 }
 0x1b3   :  { %v8450_v47 = vpop.f32.mrf.mxu0 }
 0x1b4   :  { %v650_v12 = vpop.f32.mrf.mxu1  ;;  %10330 = vst [vmem:[#allocation50_spill] sm:$0xff] %v8450_v47 }
 0x1b5   :  { %v669_v21 = vpack.c.bf16 %v650_v12, %v646_v10  ;;  %v8454_v49 = vpop.f32.mrf.mxu0 }
 0x1b6   :  { %v652_v13 = vpop.f32.mrf.mxu1  ;;  %10331 = vst [vmem:[#allocation51_spill] sm:$0xff] %v8454_v49 }
 0x1b7   :  { %v670_v20 = vpack.c.bf16 %v652_v13, %v648_v11  ;;  %v8458_v51 = vpop.f32.mrf.mxu0 }
 0x1b8   :  { %v656_v14 = vpop.f32.mrf.mxu1  ;;  %10332 = vst [vmem:[#allocation52_spill] sm:$0xff] %v8458_v51 }
 0x1b9   :  { %v8460_v52 = vpop.f32.mrf.mxu0 }
 0x1ba   :  { %v658_v15 = vpop.f32.mrf.mxu1  ;;  %10333 = vst [vmem:[#allocation53_spill] sm:$0xff] %v8460_v52 }
 0x1bb   :  { %v8464_v54 = vpop.f32.mrf.mxu0 }
 0x1bc   :  { %v660_v16 = vpop.f32.mrf.mxu1  ;;  %10334 = vst [vmem:[#allocation54_spill] sm:$0xff] %v8464_v54 }
 0x1bd   :  { %v671_v19 = vpack.c.bf16 %v660_v16, %v656_v14  ;;  %v8468_v56 = vpop.f32.mrf.mxu0 }
 0x1be   :  { %v662_v17 = vpop.f32.mrf.mxu1  ;;  %10336 = vst [vmem:[#allocation56_spill] sm:$0xff] %v8468_v56 }
 0x1bf   :  { %v672_v18 = vpack.c.bf16 %v662_v17, %v658_v15  ;;  %v8472_v58 = vpop.f32.mrf.mxu0 }
 0x1c0   :  { %10337 = vst [vmem:[#allocation57_spill] sm:$0xff] %v8472_v58 }
 0x1c1   :  { %746 = vmatprep.subr.bf16.mxu0 %v672_v18  ;;  %v8476_v60 = vpop.f32.mrf.mxu0 }
 0x1c2   :  { %747 = vmatpush1.bf16.msra.mxu0 %v671_v19  ;;  %10338 = vst [vmem:[#allocation58_spill] sm:$0xff] %v8476_v60 }
 0x1c3   :  { %748 = vmatprep.subr.bf16.mxu0 %v670_v20  ;;  %v8482_v63 = vpop.f32.mrf.mxu0 }
 0x1c4   :  { %10341 = vst [vmem:[#allocation61_spill] sm:$0xff] %v8482_v63 }
 0x1c6   :  { %749 = vmatpush1.bf16.msra.mxu0 %v669_v21 }
 0x1c7   :  { %750 = vmatprep.subr.bf16.mxu0 %v668_v22 }
 0x1ca   :  { %751 = vmatpush1.bf16.msra.mxu0 %v667_v23 }
 0x1cb   :  { %752 = vmatprep.subr.bf16.mxu0 %v666_v24 }
 0x1ce   :  { %753 = vmatpush1.bf16.msra.mxu0 %v665_v25 }
 0x1d1   :  { %6329 = vmatmul.mubr.msk.bf16.vlgmr.msra.gmra.mxu0 %vm713_vm0, %v8384_v26 }
 0x1d2   :  { %780 = vmatprep.mubr.bf16.mxu0 %v10169_v0 }
 0x1d9   :  { %6330 = vmatmul.mubr.msk.bf16.gmra.mxu0 %vm713_vm0, %v8389_v27 }
 0x1da   :  { %790 = vmatprep.mubr.bf16.mxu0 %v10169_v0 }
 0x1e1   :  { %6331 = vmatmul.mubr.msk.bf16.gmra.mxu0 %vm713_vm0, %v8394_v28 }
 0x1e2   :  { %800 = vmatprep.mubr.bf16.mxu0 %v10169_v0 }
 0x1e9   :  { %6332 = vmatmul.mubr.msk.bf16.gmra.mxu0 %vm713_vm0, %v8399_v29 }
 0x1ea   :  { %810 = vmatprep.mubr.bf16.mxu0 %v10169_v0 }
 0x1f1   :  { %6333 = vmatmul.mubr.msk.bf16.gmra.mxu0 %vm713_vm0, %v8404_v30 }
 0x1f2   :  { %820 = vmatprep.mubr.bf16.mxu0 %v10169_v0 }
 0x1f9   :  { %6334 = vmatmul.mubr.msk.bf16.gmra.mxu0 %vm713_vm0, %v8409_v31 }
 0x1fa   :  { %830 = vmatprep.mubr.bf16.mxu0 %v10169_v0 }
 0x201   :  { %6335 = vmatmul.mubr.msk.bf16.gmra.mxu0 %vm713_vm0, %v8414_v32 }
 0x202   :  { %840 = vmatprep.mubr.bf16.mxu0 %v10169_v0 }
 0x209   :  { %6336 = vmatmul.mubr.msk.bf16.gmra.mxu0 %vm713_vm0, %v8419_v33 }
 0x20a   :  { %1511 = vmatprep.mubr.bf16.mxu0 %v10169_v0 }
 0x291   :  { %v772_v1 = vpop.f32.mrf.mxu0 }
 0x292   :  { %v8491_v6 = vmul.f32 %v8484_v2, %v772_v1 }
 0x293   :  { %v8486_v3 = vpop.f32.mrf.mxu0 }
 0x295   :  { %v776_v5 = vpop.f32.mrf.mxu0 }
 0x296   :  { %v8494_v7 = vmul.f32 %v8488_v4, %v776_v5 }
 0x297   :  { %v8496_v8 = vpop.f32.mrf.mxu0 }
 0x299   :  { %v782_v10 = vpop.f32.mrf.mxu0 }
 0x29a   :  { %v8503_v13 = vmul.f32 %v8478_v61, %v782_v10 }
 0x29b   :  { %v8500_v11 = vpop.f32.mrf.mxu0 }
 0x29d   :  { %v786_v12 = vpop.f32.mrf.mxu0 }
 0x29e   :  { %v8506_v14 = vmul.f32 %v8480_v62, %v786_v12 }
 0x29f   :  { %v8508_v15 = vpop.f32.mrf.mxu0 }
 0x2a1   :  { %v8512_v17 = vpop.f32.mrf.mxu0 }
 0x2a3   :  { %v794_v18 = vpop.f32.mrf.mxu0 }
 0x2a5   :  { %v796_v19 = vpop.f32.mrf.mxu0 }
 0x2a7   :  { %v798_v20 = vpop.f32.mrf.mxu0 }
 0x2a9   :  { %v802_v21 = vpop.f32.mrf.mxu0 }
 0x2ab   :  { %v804_v22 = vpop.f32.mrf.mxu0 }
 0x2ad   :  { %v806_v23 = vpop.f32.mrf.mxu0 }
 0x2af   :  { %v808_v24 = vpop.f32.mrf.mxu0 }
 0x2b1   :  { %v812_v25 = vpop.f32.mrf.mxu0 }
 0x2b3   :  { %v814_v1 = vpop.f32.mrf.mxu0 }
 0x2b5   :  { %v816_v5 = vpop.f32.mrf.mxu0 }
 0x2b7   :  { %v818_v10 = vpop.f32.mrf.mxu0 }
 0x2b9   :  { %v822_v12 = vpop.f32.mrf.mxu0 }
 0x2bb   :  { %v824_v0 = vpop.f32.mrf.mxu0 }
 0x2bd   :  { %v826_v9 = vpop.f32.mrf.mxu0 }
 0x2bf   :  { %v828_v33 = vpop.f32.mrf.mxu0 }
 0x2c0   :  { %v954_v46 = vmul.f32 %v8442_v43, %v828_v33  ;;  %v949_v33 = vmul.f32 %v8452_v48, %v816_v5  ;;  %v7057_v5 = vld [vmem:[#allocation13 + $0x38] sm:$0xff]  }
 0x2c1   :  { %v832_v32 = vpop.f32.mrf.mxu0 }
 0x2c3   :  { %v834_v31 = vpop.f32.mrf.mxu0 }
 0x2c4   :  { %v956_v52 = vmul.f32 %v8432_v38, %v834_v31 }
 0x2c5   :  { %v836_v16 = vpop.f32.mrf.mxu0 }
 0x2c6   :  { %v957_v49 = vmul.f32 %v8436_v40, %v836_v16 }
 0x2c7   :  { %v838_v30 = vpop.f32.mrf.mxu0 }
 0x2c8   :  { %v958_v60 = vmul.f32 %v8436_v40, %v838_v30  ;;  %v952_v30 = vmul.f32 %v8470_v57, %v824_v0  ;;  %v947_v0 = vmul.f32 %v8446_v45, %v812_v25 }
 0x2c9   :  { %v842_v29 = vpop.f32.mrf.mxu0 }
 0x2ca   :  { %v959_v54 = vmul.f32 %v8424_v34, %v842_v29  ;;  %v976_v37 = vpack.c.bf16 %v958_v60, %v956_v52  ;;  %v950_v29 = vmul.f32 %v8452_v48, %v818_v10  ;;  %v974_v31 = vpack.c.bf16 %v954_v46, %v952_v30  ;;  %v7648_v10 = vld [vmem:[#allocation5] sm:$0xff]   ;;  %v7649_v30 = vld [vmem:[#allocation5 + $0x8] sm:$0xff]  }
 0x2cb   :  { %v844_v28 = vpop.f32.mrf.mxu0  ;;  %v945_v46 = vmul.f32 %v8462_v53, %v806_v23  ;;  %v942_v52 = vmul.f32 %v8474_v59, %v798_v20  ;;  %v940_v60 = vmul.f32 %v8466_v55, %v794_v18  ;;  %v939_v23 = vmul.f32 %v8466_v55, %v8512_v17  ;;  %v7056_v17 = vld [vmem:[#allocation13 + $0x78] sm:$0xff]  }
 0x2cc   :  { %v960_v58 = vmul.f32 %v8424_v34, %v844_v28  ;;  %v953_v28 = vmul.f32 %v8442_v43, %v826_v9  ;;  %v941_v9 = vmul.f32 %v8474_v59, %v796_v19  ;;  %v936_v20 = vmul.f32 %v8478_v61, %v8500_v11 }
 0x2cd   :  { %v846_v27 = vpop.f32.mrf.mxu0  ;;  %v934_v18 = vmul.f32 %v8488_v4, %v8496_v8  ;;  %v932_v19 = vmul.f32 %v8484_v2, %v8486_v3  ;;  %v10345_v11 = vpack.c.bf16 %v8494_v7, %v8491_v6  ;;  %v7058_v8 = vld [vmem:[#allocation13 + $0x70] sm:$0xff]   ;;  %v7063_v6 = vld [vmem:[#allocation13 + $0x20] sm:$0xff]  }
 0x2ce   :  { %v961_v26 = vmul.f32 %v8426_v35, %v846_v27  ;;  %v955_v27 = vmul.f32 %v8432_v38, %v832_v32  ;;  %v946_v32 = vmul.f32 %v8462_v53, %v808_v24  ;;  %v938_v24 = vmul.f32 %v8480_v62, %v8508_v15  ;;  %v7059_v3 = vld [vmem:[#allocation13 + $0x30] sm:$0xff]  }
 0x2cf   :  { %v848_v63 = vpop.f32.mrf.mxu0  ;;  %v964_v15 = vpack.c.bf16 %v934_v18, %v932_v19  ;;  %v7650_v7 = vld [vmem:[#allocation5 + $0x10] sm:$0xff]   ;;  %v8560_v18 = vpop.permute.xlu0 %1054 }
 0x2d0   :  { %v962_v56 = vmul.f32 %v8426_v35, %v848_v63  ;;  %v977_v47 = vpack.c.bf16 %v961_v26, %v959_v54  ;;  %v975_v63 = vpack.c.bf16 %v957_v49, %v955_v27  ;;  %v948_v26 = vmul.f32 %v8446_v45, %v814_v1  ;;  %v7060_v27 = vld [vmem:[#allocation13 + $0x68] sm:$0xff]   ;;  %10347 = vst [vmem:[#allocation64_spill] sm:$0xff] %v8560_v18 }
 0x2d1   :  { %v971_v49 = vpack.c.bf16 %v949_v33, %v947_v0  ;;  %v966_v25 = vpack.c.bf16 %v938_v24, %v936_v20  ;;  %v10344_v1 = vpack.c.bf16 %v8506_v14, %v8503_v13  ;;  %v7061_v13 = vld [vmem:[#allocation13 + $0x28] sm:$0xff]   ;;  %v7062_v14 = vld [vmem:[#allocation13 + $0x60] sm:$0xff]  }
 0x2d2   :  { %v978_v51 = vpack.c.bf16 %v962_v56, %v960_v58  ;;  %v951_v56 = vmul.f32 %v8470_v57, %v822_v12  ;;  %v943_v58 = vmul.f32 %v8456_v50, %v802_v21  ;;  %v967_v21 = vpack.c.bf16 %v941_v9, %v939_v23  ;;  %v7069_v33 = vld [vmem:[#allocation13 + $0x8] sm:$0xff]   ;;  %v7074_v0 = vld [vmem:[#allocation16 + $0x74] ss:$8 sps:$4 sm:$0xff]   ;;  %v7084_v9 = vld [vmem:[#allocation16 + $0x30] ss:$8 sps:$4 sm:$0xff]  }
 0x2d3   :  { %v10346_v12 = vmov 0   ;;  %1479 = vmatprep.subr.bf16.mxu0 %v7074_v0 }
 0x2d4   :  { %979 = vmatprep.subr.bf16.mxu1 %v978_v51  ;;  %v973_v51 = vpack.c.bf16 %v953_v28, %v951_v56  ;;  %v969_v16 = vpack.c.bf16 %v945_v46, %v943_v58  ;;  %v7651_v28 = vld [vmem:[#allocation5 + $0x18] sm:$0xff]   ;;  %v7075_v46 = vld [vmem:[#allocation16 + $0x60] ss:$8 sps:$4 sm:$0xff]  }
 0x2d5   :  { %980 = vmatpush1.bf16.msra.mxu1 %v977_v47  ;;  %v972_v47 = vpack.c.bf16 %v950_v29, %v948_v26  ;;  %v7065_v29 = vld [vmem:[#allocation13 + $0x18] sm:$0xff]   ;;  %v7067_v56 = vld [vmem:[#allocation13 + $0x10] sm:$0xff]   ;;  %v7068_v26 = vld [vmem:[#allocation13 + $0x48] sm:$0xff]  }
 0x2d6   :  { %981 = vmatprep.subr.bf16.mxu1 %v976_v37  ;;  %v944_v37 = vmul.f32 %v8456_v50, %v804_v22  ;;  %v968_v22 = vpack.c.bf16 %v942_v52, %v940_v60  ;;  %v7078_v52 = vld [vmem:[#allocation16 + $0x50] ss:$8 sps:$4 sm:$0xff]   ;;  %v7081_v58 = vld [vmem:[#allocation16 + $0x40] ss:$8 sps:$4 sm:$0xff]   ;;  %v7086_v60 = vld [vmem:[#allocation16 + $0x34] ss:$8 sps:$4 sm:$0xff]  }
 0x2d8   :  { %v970_v54 = vpack.c.bf16 %v946_v32, %v944_v37  ;;  %v7071_v32 = vld [vmem:[#allocation13] sm:$0xff]  }
 0x2d9   :  { %982 = vmatpush1.bf16.msra.mxu1 %v975_v63  ;;  %v7064_v63 = vld [vmem:[#allocation13 + $0x58] sm:$0xff]   ;;  %v7077_v37 = vld [vmem:[#allocation16 + $0x64] ss:$8 sps:$4 sm:$0xff]  }
 0x2da   :  { %983 = vmatprep.subr.bf16.mxu1 %v974_v31  ;;  %v7066_v31 = vld [vmem:[#allocation13 + $0x50] sm:$0xff]  }
 0x2dd   :  { %984 = vmatpush1.bf16.msra.mxu1 %v973_v51  ;;  %v7070_v51 = vld [vmem:[#allocation13 + $0x40] sm:$0xff]  }
 0x2de   :  { %985 = vmatprep.subr.bf16.mxu1 %v972_v47  ;;  %v7072_v47 = vld [vmem:[#allocation16 + $0x70] ss:$8 sps:$4 sm:$0xff]  }
 0x2df   :  { %1480 = vmatpush1.bf16.msra.mxu0 %v7072_v47 }
 0x2e0   :  { %1481 = vmatprep.subr.bf16.mxu0 %v7077_v37 }
 0x2e1   :  { %986 = vmatpush1.bf16.msra.mxu1 %v971_v49  ;;  %v7080_v49 = vld [vmem:[#allocation16 + $0x54] ss:$8 sps:$4 sm:$0xff]  }
 0x2e2   :  { %987 = vmatprep.subr.bf16.mxu1 %v970_v54  ;;  %v7083_v54 = vld [vmem:[#allocation16 + $0x44] ss:$8 sps:$4 sm:$0xff]  }
 0x2e3   :  { %1482 = vmatpush1.bf16.msra.mxu0 %v7075_v46 }
 0x2e4   :  { %1483 = vmatprep.subr.bf16.mxu0 %v7080_v49 }
 0x2e5   :  { %988 = vmatpush1.bf16.msra.mxu1 %v969_v16  ;;  %v1109_v16 = vlaneseq }
 0x2e6   :  { %989 = vmatprep.subr.bf16.mxu1 %v968_v22 }
 0x2e7   :  { %1484 = vmatpush1.bf16.msra.mxu0 %v7078_v52  ;;  %v1110_v24 = vshrl.u32 %v1109_v16, 7 }
 0x2e8   :  { %1485 = vmatprep.subr.bf16.mxu0 %v7083_v54 }
 0x2e9   :  { %990 = vmatpush1.bf16.msra.mxu1 %v967_v21  ;;  %v8556_v22 = vsub.s32 1, %v1110_v24  ;;  %v8558_v20 = vsub.s32 0, %v1110_v24  ;;  %v511_v21 = vld [vmem:[#allocation8] sm:$0x3] }
 0x2ea   :  { %991 = vmatprep.subr.bf16.mxu1 %v966_v25 }
 0x2eb   :  { %1486 = vmatpush1.bf16.msra.mxu0 %v7081_v58 }
 0x2ec   :  { %1487 = vmatprep.subr.bf16.mxu0 %v7086_v60 }
 0x2ed   :  { %992 = vmatpush1.bf16.msra.mxu1 %v10344_v1  ;;  %v8566_v1 = vpop.permute.xlu1 %1059 }
 0x2ee   :  { %993 = vmatprep.subr.bf16.mxu1 %v964_v15  ;;  %v8564_v15 = vrot.slane %v511_v21, %v8556_v22  ;;  %10348 = vst [vmem:[#allocation65_spill] sm:$0xff] %v8566_v1 }
 0x2ef   :  { %1488 = vmatpush1.bf16.msra.mxu0 %v7084_v9 }
 0x2f1   :  { %994 = vmatpush1.bf16.msra.mxu1 %v10345_v11  ;;  %v8570_v11 = vrot.slane %v511_v21, %v8558_v20 }
 0x2f2   :  { %6688 = vmatprep.subr.bf16.mxu1 %v7056_v17 }
 0x2f4   :  { %1012 = vmatmul.mubr.bf16.vlgmr.msra.gmra.mxu1 %v7648_v10 }
 0x2f5   :  { %1021 = vmatprep.mubr.bf16.mxu1 %v10346_v12  ;;  %6689 = vmatpush3.bf16.msra.mxu1 %v7057_v5 }
 0x2f6   :  { %6690 = vmatprep.subr.bf16.mxu1 %v7058_v8 }
 0x2f9   :  { %6691 = vmatpush3.bf16.msra.mxu1 %v7059_v3 }
 0x2fa   :  { %6692 = vmatprep.subr.bf16.mxu1 %v7060_v27 }
 0x2fc   :  { %1022 = vmatmul.mubr.bf16.gmra.mxu1 %v7649_v30 }
 0x2fd   :  { %1031 = vmatprep.mubr.bf16.mxu1 %v10346_v12  ;;  %6693 = vmatpush3.bf16.msra.mxu1 %v7061_v13 }
 0x2fe   :  { %6694 = vmatprep.subr.bf16.mxu1 %v7062_v14 }
 0x301   :  { %6695 = vmatpush3.bf16.msra.mxu1 %v7063_v6 }
 0x302   :  { %6696 = vmatprep.subr.bf16.mxu1 %v7064_v63 }
 0x304   :  { %1032 = vmatmul.mubr.bf16.gmra.mxu1 %v7650_v7  ;;  %v8586_v7 = vpop.permute.xlu0 %1064 }
 0x305   :  { %1041 = vmatprep.mubr.bf16.mxu1 %v10346_v12  ;;  %6697 = vmatpush3.bf16.msra.mxu1 %v7065_v29  ;;  %10349 = vst [vmem:[#allocation66_spill] sm:$0xff] %v8586_v7 }
 0x306   :  { %6698 = vmatprep.subr.bf16.mxu1 %v7066_v31 }
 0x308   :  { %v8618_v16 = vpop.permute.xlu0 %1074 }
 0x309   :  { %6699 = vmatpush3.bf16.msra.mxu1 %v7067_v56  ;;  %10351 = vst [vmem:[#allocation68_spill] sm:$0xff] %v8618_v16 }
 0x30a   :  { %6700 = vmatprep.subr.bf16.mxu1 %v7068_v26  ;;  %v8592_v26 = vpop.permute.xlu1 %1069 }
 0x30b   :  { %10350 = vst [vmem:[#allocation67_spill] sm:$0xff] %v8592_v26 }
 0x30c   :  { %1042 = vmatmul.mubr.bf16.gmra.mxu1 %v7651_v28 }
 0x30d   :  { %6701 = vmatpush3.bf16.msra.mxu1 %v7069_v33 }
 0x30e   :  { %6702 = vmatprep.subr.bf16.mxu1 %v7070_v51 }
 0x311   :  { %6703 = vmatpush3.bf16.msra.mxu1 %v7071_v32 }
 0x3b4   :  { %v1013_v23 = vpop.f32.mrf.mxu1 }
 0x3b5   :  { %v1092_v17 = vmul.f32 %v8560_v18, %v1013_v23 }
 0x3b6   :  { %v1015_v25 = vpop.f32.mrf.mxu1 }
 0x3b7   :  { %v1093_v19 = vmul.f32 %v8560_v18, %v1015_v25  ;;  %v8581_v14 = vadd.f32 %v8570_v11, %v1092_v17  ;;  %v8624_v17 = vpop.permute.xlu1 %1079 }
 0x3b8   :  { %v1017_v5 = vpop.f32.mrf.mxu1  ;;  %10352 = vst [vmem:[#allocation69_spill] sm:$0xff] %v8624_v17 }
 0x3b9   :  { %v1094_v8 = vmul.f32 %v8566_v1, %v1017_v5  ;;  %v8574_v3 = vadd.f32 %v8564_v15, %v1093_v19  ;;  %v10209_v33 = vmax.f32 %v8581_v14, 0.0 }
 0x3ba   :  { %v1019_v10 = vpop.f32.mrf.mxu1 }
 0x3bb   :  { %v8577_v27 = vadd.f32 %v8570_v11, %v1094_v8  ;;  %v1095_v13 = vmul.f32 %v8566_v1, %v1019_v10  ;;  %v10201_v29 = vmax.f32 %v8574_v3, 0.0 }
 0x3bc   :  { %v1023_v30 = vpop.f32.mrf.mxu1 }
 0x3bd   :  { %v8584_v6 = vadd.f32 %v8564_v15, %v1095_v13  ;;  %v10213_v28 = vmax.f32 %v8577_v27, 0.0  ;;  %v1096_v51 = vmul.f32 %v8586_v7, %v1023_v30 }
 0x3be   :  { %v1025_v63 = vpop.f32.mrf.mxu1 }
 0x3bf   :  { %v10210_v31 = vmax.f32 %v8584_v6, 0.0  ;;  %v1097_v56 = vmul.f32 %v8586_v7, %v1025_v63  ;;  %v1201_v37 = vpack.c.bf16 %v10213_v28, %v10209_v33  ;;  %v8613_v58 = vadd.f32 %v8570_v11, %v1096_v51  ;;  %v6337_v33 = vld [vmem:[#allocation14] ss:$0 sm:$0xff] }
 0x3c0   :  { %v1027_v32 = vpop.f32.mrf.mxu1 }
 0x3c1   :  { %v1098_v47 = vmul.f32 %v8592_v26, %v1027_v32  ;;  %v1202_v0 = vpack.c.bf16 %v10210_v31, %v10201_v29  ;;  %v8606_v49 = vadd.f32 %v8564_v15, %v1097_v56  ;;  %v10208_v5 = vmax.f32 %v8613_v58, 0.0 }
 0x3c2   :  { %v1029_v46 = vpop.f32.mrf.mxu1 }
 0x3c3   :  { %v8609_v52 = vadd.f32 %v8570_v11, %v1098_v47  ;;  %v1099_v54 = vmul.f32 %v8592_v26, %v1029_v46  ;;  %1343 = vmatprep.mubr.bf16.mxu1 %v1202_v0  ;;  %v10200_v21 = vmax.f32 %v8606_v49, 0.0 }
 0x3c4   :  { %v1033_v60 = vpop.f32.mrf.mxu1  ;;  %1344 = vmatmul.mubr.bf16.vlgmr.msra.gmra.mxu1 %v1201_v37 }
 0x3c5   :  { %v8616_v9 = vadd.f32 %v8564_v15, %v1099_v54  ;;  %v10199_v24 = vmax.f32 %v8609_v52, 0.0  ;;  %v1100_v8 = vmul.f32 %v8618_v16, %v1033_v60  ;;  %v8650_v54 = vpop.permute.xlu0 %1084 }
 0x3c6   :  { %v1035_v23 = vpop.f32.mrf.mxu1  ;;  %10353 = vst [vmem:[#allocation70_spill] sm:$0xff] %v8650_v54 }
 0x3c7   :  { %v10198_v25 = vmax.f32 %v8616_v9, 0.0  ;;  %v1101_v19 = vmul.f32 %v8618_v16, %v1035_v23  ;;  %v1203_v56 = vpack.c.bf16 %v10199_v24, %v10208_v5  ;;  %v8645_v0 = vadd.f32 %v8570_v11, %v1100_v8 }
 0x3c8   :  { %v1037_v10 = vpop.f32.mrf.mxu1 }
 0x3c9   :  { %v1102_v13 = vmul.f32 %v8624_v17, %v1037_v10  ;;  %v1204_v30 = vpack.c.bf16 %v10198_v25, %v10200_v21  ;;  %v8638_v51 = vadd.f32 %v8564_v15, %v1101_v19  ;;  %v10205_v8 = vmax.f32 %v8645_v0, 0.0 }
 0x3ca   :  { %v1039_v63 = vpop.f32.mrf.mxu1 }
 0x3cb   :  { %v8641_v32 = vadd.f32 %v8570_v11, %v1102_v13  ;;  %v1103_v47 = vmul.f32 %v8624_v17, %v1039_v63  ;;  %1351 = vmatprep.mubr.bf16.mxu1 %v1204_v30  ;;  %v10203_v19 = vmax.f32 %v8638_v51, 0.0  ;;  %v8656_v30 = vpop.permute.xlu1 %1089 }
 0x3cc   :  { %v1043_v37 = vpop.f32.mrf.mxu1  ;;  %1352 = vmatmul.mubr.bf16.gmra.mxu1 %v1203_v56  ;;  %10354 = vst [vmem:[#allocation71_spill] sm:$0xff] %v8656_v30 }
 0x3cd   :  { %v8648_v46 = vadd.f32 %v8564_v15, %v1103_v47  ;;  %v10204_v60 = vmax.f32 %v8641_v32, 0.0  ;;  %v1104_v63 = vmul.f32 %v8650_v54, %v1043_v37 }
 0x3ce   :  { %v1045_v23 = vpop.f32.mrf.mxu1 }
 0x3cf   :  { %v10202_v10 = vmax.f32 %v8648_v46, 0.0  ;;  %v1105_v13 = vmul.f32 %v8650_v54, %v1045_v23  ;;  %v1205_v23 = vpack.c.bf16 %v10204_v60, %v10205_v8 }
 0x3d0   :  { %v1047_v56 = vpop.f32.mrf.mxu1 }
 0x3d1   :  { %v1106_v47 = vmul.f32 %v8656_v30, %v1047_v56  ;;  %v1206_v25 = vpack.c.bf16 %v10202_v10, %v10203_v19  ;;  %v8670_v21 = vadd.f32 %v8564_v15, %v1105_v13  ;;  %v8677_v56 = vadd.f32 %v8570_v11, %v1104_v63  ;;  %v7092_v63 = vld [vmem:[#allocation16 + $0x14] ss:$8 sps:$4 sm:$0xff]  }
 0x3d2   :  { %v1049_v24 = vpop.f32.mrf.mxu1 }
 0x3d3   :  { %v8673_v29 = vadd.f32 %v8570_v11, %v1106_v47  ;;  %v1107_v37 = vmul.f32 %v8656_v30, %v1049_v24  ;;  %1359 = vmatprep.mubr.bf16.mxu1 %v1206_v25  ;;  %v10207_v60 = vmax.f32 %v8670_v21, 0.0  ;;  %v10212_v8 = vmax.f32 %v8677_v56, 0.0  ;;  %v7087_v25 = vld [vmem:[#allocation16 + $0x20] ss:$8 sps:$4 sm:$0xff]   ;;  %v7090_v47 = vld [vmem:[#allocation16 + $0x10] ss:$8 sps:$4 sm:$0xff]  }
 0x3d4   :  { %1360 = vmatmul.mubr.bf16.gmra.mxu1 %v1205_v23  ;;  %v7095_v23 = vld [vmem:[#allocation16 + $0x4] ss:$8 sps:$4 sm:$0xff]  }
 0x3d5   :  { %v8680_v10 = vadd.f32 %v8564_v15, %v1107_v37  ;;  %v10211_v19 = vmax.f32 %v8673_v29, 0.0  ;;  %v7089_v15 = vld [vmem:[#allocation16 + $0x24] ss:$8 sps:$4 sm:$0xff]   ;;  %v7093_v37 = vld [vmem:[#allocation16] ss:$8 sps:$4 sm:$0xff]  }
 0x3d6   :  { %1489 = vmatprep.subr.bf16.mxu0 %v7089_v15 }
 0x3d7   :  { %v10206_v13 = vmax.f32 %v8680_v10, 0.0  ;;  %v1207_v11 = vpack.c.bf16 %v10211_v19, %v10212_v8  ;;  %1490 = vmatpush1.bf16.msra.mxu0 %v7087_v25 }
 0x3d8   :  { %1491 = vmatprep.subr.bf16.mxu0 %v7092_v63 }
 0x3d9   :  { %v1208_v24 = vpack.c.bf16 %v10206_v13, %v10207_v60 }
 0x3db   :  { %1367 = vmatprep.mubr.bf16.mxu1 %v1208_v24  ;;  %1492 = vmatpush1.bf16.msra.mxu0 %v7090_v47 }
 0x3dc   :  { %1368 = vmatmul.mubr.bf16.gmra.mxu1 %v1207_v11  ;;  %1493 = vmatprep.subr.bf16.mxu0 %v7095_v23 }
 0x3df   :  { %1494 = vmatpush1.bf16.msra.mxu0 %v7093_v37 }
 0x484   :  { %v6704_v13 = vpop.f32.mrf.mxu1 }
 0x486   :  { %v6705_v60 = vpop.f32.mrf.mxu1 }
 0x487   :  { %v6706_v5 = vadd.f32 %v6705_v60, %v6704_v13 }
 0x488   :  { %v6707_v31 = vpop.f32.mrf.mxu1 }
 0x489   :  { %v1346_v24 = vadd.f32 %v6706_v5, %v6337_v33 }
 0x48a   :  { %v6708_v19 = vpop.f32.mrf.mxu1 }
 0x48b   :  { %v6709_v11 = vadd.f32 %v6708_v19, %v6707_v31  ;;  %v1376_v25 = vmax.f32 %v1346_v24, 0.0 }
 0x48c   :  { %v6710_v8 = vpop.f32.mrf.mxu1 }
 0x48d   :  { %v1349_v28 = vadd.f32 %v6709_v11, %v6337_v33 }
 0x48e   :  { %v6711_v15 = vpop.f32.mrf.mxu1 }
 0x48f   :  { %v1377_v30 = vmax.f32 %v1349_v28, 0.0  ;;  %v6712_v54 = vadd.f32 %v6711_v15, %v6710_v8 }
 0x490   :  { %v6713_v63 = vpop.f32.mrf.mxu1 }
 0x491   :  { %v1384_v47 = vpack.c.bf16 %v1377_v30, %v1376_v25  ;;  %v1354_v16 = vadd.f32 %v6712_v54, %v6337_v33 }
 0x492   :  { %v6714_v17 = vpop.f32.mrf.mxu1 }
 0x493   :  { %v6715_v23 = vadd.f32 %v6714_v17, %v6713_v63  ;;  %1512 = vmatmul.mubr.bf16.vlgmr.msra.gmra.mxu0 %v1384_v47  ;;  %v1378_v26 = vmax.f32 %v1354_v16, 0.0 }
 0x494   :  { %v6716_v37 = vpop.f32.mrf.mxu1  ;;  %1521 = vmatprep.mubr.bf16.mxu0 %v10346_v12 }
 0x495   :  { %v1357_v60 = vadd.f32 %v6715_v23, %v6337_v33 }
 0x496   :  { %v6717_v13 = vpop.f32.mrf.mxu1 }
 0x497   :  { %v1379_v5 = vmax.f32 %v1357_v60, 0.0  ;;  %v6718_v31 = vadd.f32 %v6717_v13, %v6716_v37 }
 0x498   :  { %v6719_v19 = vpop.f32.mrf.mxu1 }
 0x499   :  { %v1385_v11 = vpack.c.bf16 %v1379_v5, %v1378_v26  ;;  %v1362_v24 = vadd.f32 %v6718_v31, %v6337_v33  ;;  %v7098_v5 = vld [vmem:[#allocation19 + $0x74] ss:$8 sps:$4 sm:$0xff]   ;;  %v7096_v31 = vld [vmem:[#allocation19 + $0x70] ss:$8 sps:$4 sm:$0xff]  }
 0x49a   :  { %v6720_v7 = vpop.f32.mrf.mxu1  ;;  %2083 = vmatprep.subr.bf16.mxu1 %v7098_v5  ;;  %v7131_v5 = vld [vmem:[#allocation19 + $0xc4] ss:$8 sps:$4 sm:$0xff]  }
 0x49b   :  { %v6721_v28 = vadd.f32 %v6720_v7, %v6719_v19  ;;  %1522 = vmatmul.mubr.bf16.gmra.mxu0 %v1385_v11  ;;  %v1380_v30 = vmax.f32 %v1362_v24, 0.0  ;;  %2084 = vmatpush1.bf16.msra.mxu1 %v7096_v31  ;;  %v7101_v19 = vld [vmem:[#allocation19 + $0x64] ss:$8 sps:$4 sm:$0xff]   ;;  %v7099_v11 = vld [vmem:[#allocation19 + $0x60] ss:$8 sps:$4 sm:$0xff]  }
 0x49c   :  { %v6722_v8 = vpop.f32.mrf.mxu1  ;;  %1531 = vmatprep.mubr.bf16.mxu0 %v10346_v12  ;;  %2085 = vmatprep.subr.bf16.mxu1 %v7101_v19  ;;  %v7104_v24 = vld [vmem:[#allocation19 + $0x54] ss:$8 sps:$4 sm:$0xff]   ;;  %v7129_v31 = vld [vmem:[#allocation19 + $0xc0] ss:$8 sps:$4 sm:$0xff]  }
 0x49d   :  { %v1365_v54 = vadd.f32 %v6721_v28, %v6337_v33  ;;  %v7102_v28 = vld [vmem:[#allocation19 + $0x50] ss:$8 sps:$4 sm:$0xff]   ;;  %v7134_v19 = vld [vmem:[#allocation19 + $0xb4] ss:$8 sps:$4 sm:$0xff]  }
 0x49e   :  { %v6723_v17 = vpop.f32.mrf.mxu1 }
 0x49f   :  { %v1381_v15 = vmax.f32 %v1365_v54, 0.0  ;;  %v6724_v25 = vadd.f32 %v6723_v17, %v6722_v8  ;;  %2086 = vmatpush1.bf16.msra.mxu1 %v7099_v11  ;;  %v7107_v8 = vld [vmem:[#allocation19 + $0x44] ss:$8 sps:$4 sm:$0xff]   ;;  %v7110_v54 = vld [vmem:[#allocation19 + $0x34] ss:$8 sps:$4 sm:$0xff]  }
 0x4a0   :  { %v6725_v63 = vpop.f32.mrf.mxu1  ;;  %2087 = vmatprep.subr.bf16.mxu1 %v7104_v24  ;;  %v7108_v17 = vld [vmem:[#allocation19 + $0x30] ss:$8 sps:$4 sm:$0xff]   ;;  %v7137_v24 = vld [vmem:[#allocation19 + $0xa4] ss:$8 sps:$4 sm:$0xff]  }
 0x4a1   :  { %v1386_v47 = vpack.c.bf16 %v1381_v15, %v1380_v30  ;;  %v1370_v16 = vadd.f32 %v6724_v25, %v6337_v33  ;;  %v7113_v30 = vld [vmem:[#allocation19 + $0x24] ss:$8 sps:$4 sm:$0xff]   ;;  %v7111_v15 = vld [vmem:[#allocation19 + $0x20] ss:$8 sps:$4 sm:$0xff]   ;;  %v7116_v25 = vld [vmem:[#allocation19 + $0x14] ss:$8 sps:$4 sm:$0xff]  }
 0x4a2   :  { %v6726_v23 = vpop.f32.mrf.mxu1  ;;  %v7132_v11 = vld [vmem:[#allocation19 + $0xb0] ss:$8 sps:$4 sm:$0xff]  }
 0x4a3   :  { %v6727_v60 = vadd.f32 %v6726_v23, %v6725_v63  ;;  %1532 = vmatmul.mubr.bf16.gmra.mxu0 %v1386_v47  ;;  %v1382_v37 = vmax.f32 %v1370_v16, 0.0  ;;  %2088 = vmatpush1.bf16.msra.mxu1 %v7102_v28  ;;  %v7114_v63 = vld [vmem:[#allocation19 + $0x10] ss:$8 sps:$4 sm:$0xff]   ;;  %v7119_v47 = vld [vmem:[#allocation19 + $0x4] ss:$8 sps:$4 sm:$0xff]  }
 0x4a4   :  { %1541 = vmatprep.mubr.bf16.mxu0 %v10346_v12  ;;  %2089 = vmatprep.subr.bf16.mxu1 %v7107_v8  ;;  %v7117_v23 = vld [vmem:[#allocation19] ss:$8 sps:$4 sm:$0xff]   ;;  %v7122_v16 = vld [vmem:[#allocation19 + $0xf4] ss:$8 sps:$4 sm:$0xff]  }
 0x4a5   :  { %v1373_v26 = vadd.f32 %v6727_v60, %v6337_v33  ;;  %v7105_v33 = vld [vmem:[#allocation19 + $0x40] ss:$8 sps:$4 sm:$0xff]   ;;  %v7120_v60 = vld [vmem:[#allocation19 + $0xf0] ss:$8 sps:$4 sm:$0xff]   ;;  %v7140_v8 = vld [vmem:[#allocation19 + $0x94] ss:$8 sps:$4 sm:$0xff]  }
 0x4a6   :  { %v7135_v28 = vld [vmem:[#allocation19 + $0xa0] ss:$8 sps:$4 sm:$0xff]  }
 0x4a7   :  { %v1383_v7 = vmax.f32 %v1373_v26, 0.0  ;;  %2090 = vmatpush1.bf16.msra.mxu1 %v7105_v33  ;;  %v7125_v26 = vld [vmem:[#allocation19 + $0xe4] ss:$8 sps:$4 sm:$0xff]   ;;  %v7138_v33 = vld [vmem:[#allocation19 + $0x90] ss:$8 sps:$4 sm:$0xff]  }
 0x4a8   :  { %2091 = vmatprep.subr.bf16.mxu1 %v7110_v54  ;;  %v7143_v54 = vld [vmem:[#allocation19 + $0x84] ss:$8 sps:$4 sm:$0xff]  }
 0x4a9   :  { %v1387_v13 = vpack.c.bf16 %v1383_v7, %v1382_v37  ;;  %v7123_v37 = vld [vmem:[#allocation19 + $0xe0] ss:$8 sps:$4 sm:$0xff]   ;;  %v7126_v7 = vld [vmem:[#allocation19 + $0xd0] ss:$8 sps:$4 sm:$0xff]  }
 0x4ab   :  { %1542 = vmatmul.mubr.bf16.gmra.mxu0 %v1387_v13  ;;  %2092 = vmatpush1.bf16.msra.mxu1 %v7108_v17  ;;  %v7128_v13 = vld [vmem:[#allocation19 + $0xd4] ss:$8 sps:$4 sm:$0xff]   ;;  %v7141_v17 = vld [vmem:[#allocation19 + $0x80] ss:$8 sps:$4 sm:$0xff]  }
 0x4ac   :  { %2196 = vmatprep.mubr.bf16.mxu0 %v10346_v12  ;;  %2093 = vmatprep.subr.bf16.mxu1 %v7113_v30  ;;  %v1200_v30 = vld [vmem:[#allocation17] sm:$0x3] }
 0x4af   :  { %2094 = vmatpush1.bf16.msra.mxu1 %v7111_v15  ;;  %v8699_v15 = vrot.slane %v1200_v30, %v8558_v20 }
 0x4b0   :  { %2095 = vmatprep.subr.bf16.mxu1 %v7116_v25  ;;  %v8702_v25 = vrot.slane %v1200_v30, %v8556_v22 }
 0x4b3   :  { %2096 = vmatpush1.bf16.msra.mxu1 %v7114_v63 }
 0x4b4   :  { %2097 = vmatprep.subr.bf16.mxu1 %v7119_v47 }
 0x4b7   :  { %2098 = vmatpush1.bf16.msra.mxu1 %v7117_v23 }
 0x4b8   :  { %2099 = vmatprep.subr.bf16.mxu1 %v7122_v16 }
 0x4bb   :  { %2100 = vmatpush2.bf16.msra.mxu1 %v7120_v60 }
 0x4bc   :  { %2101 = vmatprep.subr.bf16.mxu1 %v7125_v26 }
 0x4bf   :  { %2102 = vmatpush2.bf16.msra.mxu1 %v7123_v37 }
 0x4c0   :  { %2103 = vmatprep.subr.bf16.mxu1 %v7128_v13 }
 0x4c3   :  { %2104 = vmatpush2.bf16.msra.mxu1 %v7126_v7 }
 0x4c4   :  { %2105 = vmatprep.subr.bf16.mxu1 %v7131_v5 }
 0x4c7   :  { %2106 = vmatpush2.bf16.msra.mxu1 %v7129_v31 }
 0x4c8   :  { %2107 = vmatprep.subr.bf16.mxu1 %v7134_v19 }
 0x4cb   :  { %2108 = vmatpush2.bf16.msra.mxu1 %v7132_v11 }
 0x4cc   :  { %2109 = vmatprep.subr.bf16.mxu1 %v7137_v24 }
 0x4cf   :  { %2110 = vmatpush2.bf16.msra.mxu1 %v7135_v28 }
 0x4d0   :  { %2111 = vmatprep.subr.bf16.mxu1 %v7140_v8 }
 0x4d3   :  { %2112 = vmatpush2.bf16.msra.mxu1 %v7138_v33 }
 0x4d4   :  { %2113 = vmatprep.subr.bf16.mxu1 %v7143_v54 }
 0x4d7   :  { %2114 = vmatpush2.bf16.msra.mxu1 %v7141_v17 }
 0x553   :  { %v1513_v63 = vpop.f32.mrf.mxu0 }
 0x554   :  { %v1514_v47 = vadd.f32 %v1513_v63, %v8699_v15 }
 0x555   :  { %v1515_v23 = vpop.f32.mrf.mxu0 }
 0x556   :  { %v6370_v16 = vmul.f32 -1.442695, %v1514_v47  ;;  %v1516_v60 = vadd.f32 %v1515_v23, %v8702_v25 }
 0x557   :  { %v1517_v26 = vpop.f32.mrf.mxu0 }
 0x558   :  { %7376 = vpow2.f32 %v6370_v16  ;;  %v6371_v37 = vmul.f32 -1.442695, %v1516_v60  ;;  %v1518_v7 = vadd.f32 %v1517_v26, %v8699_v15 }
 0x559   :  { %v1519_v13 = vpop.f32.mrf.mxu0 }
 0x55a   :  { %7378 = vpow2.f32 %v6371_v37  ;;  %v6372_v5 = vmul.f32 -1.442695, %v1518_v7  ;;  %v1520_v31 = vadd.f32 %v1519_v13, %v8702_v25 }
 0x55b   :  { %v1523_v19 = vpop.f32.mrf.mxu0 }
 0x55c   :  { %7380 = vpow2.f32 %v6372_v5  ;;  %v6373_v11 = vmul.f32 -1.442695, %v1520_v31  ;;  %v1524_v24 = vadd.f32 %v1523_v19, %v8699_v15 }
 0x55d   :  { %v1525_v28 = vpop.f32.mrf.mxu0 }
 0x55e   :  { %7382 = vpow2.f32 %v6373_v11  ;;  %v6374_v8 = vmul.f32 -1.442695, %v1524_v24  ;;  %v1526_v33 = vadd.f32 %v1525_v28, %v8702_v25 }
 0x55f   :  { %v1527_v54 = vpop.f32.mrf.mxu0 }
 0x560   :  { %7384 = vpow2.f32 %v6374_v8  ;;  %v6375_v17 = vmul.f32 -1.442695, %v1526_v33  ;;  %v1528_v30 = vadd.f32 %v1527_v54, %v8699_v15 }
 0x561   :  { %v1529_v63 = vpop.f32.mrf.mxu0 }
 0x562   :  { %7386 = vpow2.f32 %v6375_v17  ;;  %v6376_v47 = vmul.f32 -1.442695, %v1528_v30  ;;  %v1530_v23 = vadd.f32 %v1529_v63, %v8702_v25 }
 0x563   :  { %v1533_v16 = vpop.f32.mrf.mxu0 }
 0x564   :  { %7388 = vpow2.f32 %v6376_v47  ;;  %v6377_v60 = vmul.f32 -1.442695, %v1530_v23  ;;  %v1534_v26 = vadd.f32 %v1533_v16, %v8699_v15 }
 0x565   :  { %v7377_v37 = vpop.eup %7376  ;;  %v1535_v7 = vpop.f32.mrf.mxu0 }
 0x566   :  { %v1600_v13 = vadd.f32 1.0, %v7377_v37  ;;  %7390 = vpow2.f32 %v6377_v60  ;;  %v6378_v5 = vmul.f32 -1.442695, %v1534_v26  ;;  %v1536_v31 = vadd.f32 %v1535_v7, %v8702_v25 }
 0x567   :  { %v7379_v19 = vpop.eup %7378  ;;  %v1537_v11 = vpop.f32.mrf.mxu0 }
 0x568   :  { %7392 = vrcp.f32 %v1600_v13  ;;  %v1601_v24 = vadd.f32 1.0, %v7379_v19  ;;  %v6379_v28 = vmul.f32 -1.442695, %v1536_v31  ;;  %v1538_v8 = vadd.f32 %v1537_v11, %v8699_v15 }
 0x569   :  { %v7381_v33 = vpop.eup %7380  ;;  %7394 = vpow2.f32 %v6378_v5  ;;  %v1539_v54 = vpop.f32.mrf.mxu0 }
 0x56a   :  { %7396 = vrcp.f32 %v1601_v24  ;;  %v1602_v17 = vadd.f32 1.0, %v7381_v33  ;;  %v6380_v30 = vmul.f32 -1.442695, %v1538_v8  ;;  %v1540_v63 = vadd.f32 %v1539_v54, %v8702_v25 }
 0x56b   :  { %v7383_v47 = vpop.eup %7382  ;;  %7398 = vpow2.f32 %v6379_v28  ;;  %v1543_v23 = vpop.f32.mrf.mxu0 }
 0x56c   :  { %7400 = vrcp.f32 %v1602_v17  ;;  %v1603_v16 = vadd.f32 1.0, %v7383_v47  ;;  %v6381_v60 = vmul.f32 -1.442695, %v1540_v63  ;;  %v1544_v26 = vadd.f32 %v1543_v23, %v8699_v15 }
 0x56d   :  { %v7385_v37 = vpop.eup %7384  ;;  %7402 = vpow2.f32 %v6380_v30  ;;  %v1545_v7 = vpop.f32.mrf.mxu0 }
 0x56e   :  { %7404 = vrcp.f32 %v1603_v16  ;;  %v1604_v13 = vadd.f32 1.0, %v7385_v37  ;;  %v6382_v5 = vmul.f32 -1.442695, %v1544_v26  ;;  %v1546_v31 = vadd.f32 %v1545_v7, %v8702_v25 }
 0x56f   :  { %v7387_v19 = vpop.eup %7386  ;;  %7406 = vpow2.f32 %v6381_v60  ;;  %v1547_v11 = vpop.f32.mrf.mxu0 }
 0x570   :  { %7408 = vrcp.f32 %v1604_v13  ;;  %v1605_v24 = vadd.f32 1.0, %v7387_v19  ;;  %v6383_v28 = vmul.f32 -1.442695, %v1546_v31  ;;  %v1548_v8 = vadd.f32 %v1547_v11, %v8699_v15 }
 0x571   :  { %v7389_v33 = vpop.eup %7388  ;;  %7410 = vpow2.f32 %v6382_v5  ;;  %v1549_v54 = vpop.f32.mrf.mxu0 }
 0x572   :  { %7412 = vrcp.f32 %v1605_v24  ;;  %v1606_v17 = vadd.f32 1.0, %v7389_v33  ;;  %v6384_v30 = vmul.f32 -1.442695, %v1548_v8  ;;  %v1550_v63 = vadd.f32 %v1549_v54, %v8702_v25 }
 0x573   :  { %v7391_v47 = vpop.eup %7390  ;;  %7414 = vpow2.f32 %v6383_v28 }
 0x574   :  { %7416 = vrcp.f32 %v1606_v17  ;;  %v1607_v23 = vadd.f32 1.0, %v7391_v47  ;;  %v6385_v16 = vmul.f32 -1.442695, %v1550_v63 }
 0x575   :  { %v7393_v60 = vpop.eup %7392  ;;  %7418 = vpow2.f32 %v6384_v30  ;;  %v10355_v30 = vmax.f32 %v8577_v27, 0.0  ;;  %v10360_v27 = vmax.f32 %v8606_v49, 0.0 }
 0x576   :  { %v7395_v26 = vpop.eup %7394  ;;  %7420 = vrcp.f32 %v1607_v23 }
 0x577   :  { %v7397_v37 = vpop.eup %7396  ;;  %v1608_v7 = vadd.f32 1.0, %v7395_v26  ;;  %7422 = vpow2.f32 %v6385_v16  ;;  %v10356_v16 = vmax.f32 %v8584_v6, 0.0 }
 0x578   :  { %v7399_v15 = vpop.eup %7398 }
 0x579   :  { %v7401_v13 = vpop.eup %7400  ;;  %7424 = vrcp.f32 %v1608_v7  ;;  %v1609_v5 = vadd.f32 1.0, %v7399_v15  ;;  %v10357_v15 = vmax.f32 %v8581_v14, 0.0 }
 0x57a   :  { %v7403_v31 = vpop.eup %7402  ;;  %v1650_v63 = vadd.f32 %v7401_v13, %v10355_v30 }
 0x57b   :  { %v7405_v19 = vpop.eup %7404  ;;  %7426 = vrcp.f32 %v1609_v5  ;;  %v1610_v25 = vadd.f32 1.0, %v7403_v31  ;;  %v1648_v5 = vadd.f32 %v7393_v60, %v10357_v15  ;;  %v10358_v31 = vmax.f32 %v8613_v58, 0.0 }
 0x57c   :  { %v7407_v11 = vpop.eup %7406  ;;  %v1651_v26 = vadd.f32 %v7405_v19, %v10356_v16  ;;  %v8733_v6 = vadd.f32 %v1650_v63, %v8434_v39  ;;  %v10361_v19 = vmax.f32 %v8609_v52, 0.0  ;;  %v10363_v52 = vmax.f32 %v8645_v0, 0.0 }
 0x57d   :  { %v7409_v24 = vpop.eup %7408  ;;  %7428 = vrcp.f32 %v1610_v25  ;;  %v1611_v28 = vadd.f32 1.0, %v7407_v11 }
 0x57e   :  { %v7411_v8 = vpop.eup %7410  ;;  %v1652_v25 = vadd.f32 %v7409_v24, %v10358_v31  ;;  %v8738_v58 = vadd.f32 %v1651_v26, %v8438_v41  ;;  %v1712_v26 = vmul.f32 %v8733_v6, %v8733_v6 }
 0x57f   :  { %v7413_v33 = vpop.eup %7412  ;;  %7430 = vrcp.f32 %v1611_v28  ;;  %v1612_v54 = vadd.f32 1.0, %v7411_v8  ;;  %v10359_v28 = vmax.f32 %v8574_v3, 0.0  ;;  %v8741_v3 = vadd.f32 %v1648_v5, %v8428_v36 }
 0x580   :  { %v7415_v17 = vpop.eup %7414  ;;  %v1653_v13 = vadd.f32 %v7413_v33, %v10360_v27  ;;  %v8744_v49 = vadd.f32 %v1652_v25, %v8440_v42  ;;  %v1713_v31 = vmul.f32 %v8738_v58, %v8738_v58  ;;  %v10368_v27 = vld [vmem:[#allocation51_spill] sm:$0xff] }
 0x581   :  { %v7417_v47 = vpop.eup %7416  ;;  %7432 = vrcp.f32 %v1612_v54  ;;  %v1613_v23 = vadd.f32 1.0, %v7415_v17  ;;  %v1649_v8 = vadd.f32 %v7397_v37, %v10359_v28  ;;  %v10362_v37 = vmax.f32 %v8616_v9, 0.0  ;;  %v10367_v28 = vld [vmem:[#allocation50_spill] sm:$0xff] }
 0x582   :  { %v7419_v7 = vpop.eup %7418  ;;  %v1654_v14 = vadd.f32 %v7417_v47, %v10361_v19  ;;  %v8749_v30 = vadd.f32 %v1653_v13, %v8444_v44  ;;  %v10364_v47 = vld [vmem:[#allocation44_spill] sm:$0xff]  ;;  %v10366_v9 = vmax.f32 %v8638_v51, 0.0  ;;  %v1710_v0 = vmul.f32 %v8741_v3, %v8741_v3 }
 0x583   :  { %v7421_v11 = vpop.eup %7420  ;;  %7434 = vrcp.f32 %v1613_v23  ;;  %v1614_v54 = vadd.f32 1.0, %v7419_v7  ;;  %v8754_v23 = vadd.f32 %v1649_v8, %v10364_v47  ;;  %v10365_v7 = vld [vmem:[#allocation49_spill] sm:$0xff]  ;;  %v1682_v51 = vadd.f32 %v8733_v6, %v8741_v3 }
 0x584   :  { %v7423_v17 = vpop.eup %7422  ;;  %v1655_v33 = vadd.f32 %v7421_v11, %v10362_v37  ;;  %v8759_v15 = vadd.f32 %v1654_v14, %v10365_v7  ;;  %v1714_v11 = vmul.f32 %v8744_v49, %v8744_v49 }
 0x585   :  { %7436 = vrcp.f32 %v1614_v54  ;;  %v1615_v60 = vadd.f32 1.0, %v7423_v17  ;;  %v1715_v54 = vmul.f32 %v8749_v30, %v8749_v30  ;;  %v10369_v17 = vmax.f32 %v8641_v32, 0.0 }
 0x586   :  { %v7425_v24 = vpop.eup %7424  ;;  %v8770_v8 = vadd.f32 %v1655_v33, %v10367_v28  ;;  %v1711_v14 = vmul.f32 %v8754_v23, %v8754_v23  ;;  %v1716_v37 = vmul.f32 %v8759_v15, %v8759_v15  ;;  %v10370_v33 = vld [vmem:[#allocation52_spill] sm:$0xff]  ;;  %v10372_v32 = vmax.f32 %v8648_v46, 0.0 }
 0x587   :  { %v1656_v63 = vadd.f32 %v7425_v24, %v10363_v52  ;;  %7438 = vrcp.f32 %v1615_v60  ;;  %v1726_v24 = vadd.f32 %v1712_v26, %v1710_v0 }
 0x588   :  { %v7427_v16 = vpop.eup %7426  ;;  %v1717_v0 = vmul.f32 %v8770_v8, %v8770_v8 }
 0x589   :  { %v1657_v5 = vadd.f32 %v7427_v16, %v10366_v9  ;;  %v8773_v13 = vadd.f32 %v1656_v63, %v10368_v27  ;;  %v1695_v63 = vadd.f32 %v8738_v58, %v8754_v23  ;;  %v1683_v16 = vadd.f32 %v1682_v51, %v8744_v49  ;;  %v10371_v9 = vld [vmem:[#allocation53_spill] sm:$0xff]  ;;  %v10373_v51 = vld [vmem:[#allocation54_spill] sm:$0xff] }
 0x58a   :  { %v7429_v25 = vpop.eup %7428  ;;  %v1727_v26 = vadd.f32 %v1726_v24, %v1714_v11 }
 0x58b   :  { %v1658_v19 = vadd.f32 %v7429_v25, %v10369_v17  ;;  %v8786_v52 = vadd.f32 %v1657_v5, %v10370_v33  ;;  %v1739_v17 = vadd.f32 %v1713_v31, %v1711_v14  ;;  %v1718_v5 = vmul.f32 %v8773_v13, %v8773_v13 }
 0x58c   :  { %v7431_v60 = vpop.eup %7430  ;;  %v1696_v33 = vadd.f32 %v1695_v63, %v8749_v30  ;;  %v1684_v7 = vadd.f32 %v1683_v16, %v8759_v15  ;;  %v1728_v14 = vadd.f32 %v1727_v26, %v1716_v37  ;;  %v10375_v16 = vld [vmem:[#allocation56_spill] sm:$0xff] }
 0x58d   :  { %v8792_v27 = vadd.f32 %v1658_v19, %v10371_v9  ;;  %v1659_v25 = vadd.f32 %v7431_v60, %v10372_v32  ;;  %v10374_v19 = vmax.f32 %v8677_v56, 0.0  ;;  %v1740_v60 = vadd.f32 %v1739_v17, %v1715_v54 }
 0x58e   :  { %v7433_v28 = vpop.eup %7432  ;;  %v1719_v11 = vmul.f32 %v8786_v52, %v8786_v52  ;;  %v1697_v32 = vadd.f32 %v1696_v33, %v8770_v8  ;;  %v1685_v63 = vadd.f32 %v1684_v7, %v8773_v13  ;;  %v1729_v54 = vadd.f32 %v1728_v14, %v1718_v5  ;;  %v10377_v7 = vld [vmem:[#allocation57_spill] sm:$0xff] }
 0x58f   :  { %v8803_v44 = vadd.f32 %v1659_v25, %v10373_v51  ;;  %v1660_v46 = vadd.f32 %v7433_v28, %v10374_v19  ;;  %v1720_v24 = vmul.f32 %v8792_v27, %v8792_v27  ;;  %v10376_v25 = vmax.f32 %v8670_v21, 0.0 }
 0x590   :  { %v7435_v31 = vpop.eup %7434  ;;  %v1698_v17 = vadd.f32 %v1697_v32, %v8786_v52  ;;  %v1741_v26 = vadd.f32 %v1740_v60, %v1717_v0  ;;  %v1686_v19 = vadd.f32 %v1685_v63, %v8792_v27  ;;  %v10379_v60 = vld [vmem:[#allocation58_spill] sm:$0xff]  ;;  %v10380_v63 = vmax.f32 %v8680_v10, 0.0 }
 0x591   :  { %v8814_v9 = vadd.f32 %v1660_v46, %v10375_v16  ;;  %v1661_v56 = vadd.f32 %v7435_v31, %v10376_v25  ;;  %v1721_v37 = vmul.f32 %v8803_v44, %v8803_v44  ;;  %v10378_v46 = vmax.f32 %v8673_v29, 0.0 }
 0x592   :  { %v7437_v28 = vpop.eup %7436  ;;  %v1730_v25 = vadd.f32 %v1729_v54, %v1720_v24  ;;  %v1699_v5 = vadd.f32 %v1698_v17, %v8803_v44  ;;  %v1742_v14 = vadd.f32 %v1741_v26, %v1719_v11 }
 0x593   :  { %v1722_v33 = vmul.f32 %v8814_v9, %v8814_v9  ;;  %v8825_v51 = vadd.f32 %v1661_v56, %v10377_v7  ;;  %v1662_v21 = vadd.f32 %v7437_v28, %v10378_v46  ;;  %v1687_v16 = vadd.f32 %v1686_v19, %v8814_v9  ;;  %v10381_v28 = vld [vmem:[#allocation61_spill] sm:$0xff] }
 0x594   :  { %v7439_v31 = vpop.eup %7438  ;;  %v1743_v42 = vadd.f32 %v1742_v14, %v1721_v37 }
 0x595   :  { %v1723_v0 = vmul.f32 %v8825_v51, %v8825_v51  ;;  %v8834_v32 = vadd.f32 %v1662_v21, %v10379_v60  ;;  %v1663_v56 = vadd.f32 %v7439_v31, %v10380_v63  ;;  %v1731_v7 = vadd.f32 %v1730_v25, %v1722_v33 }
 0x596   :  { %v1700_v54 = vadd.f32 %v1699_v5, %v8825_v51 }
 0x597   :  { %v1688_v29 = vadd.f32 %v1687_v16, %v8834_v32  ;;  %v1724_v24 = vmul.f32 %v8834_v32, %v8834_v32  ;;  %v8842_v11 = vadd.f32 %v1663_v56, %v10381_v28  ;;  %v1744_v17 = vadd.f32 %v1743_v42, %v1723_v0 }
 0x599   :  { %v1689_v26 = vrot.slane %v1688_v29, 4  ;;  %v1732_v19 = vadd.f32 %v1731_v7, %v1724_v24  ;;  %v1725_v46 = vmul.f32 %v8842_v11, %v8842_v11  ;;  %v1701_v10 = vadd.f32 %v1700_v54, %v8842_v11 }
 0x59b   :  { %v1690_v33 = vadd.f32 %v1689_v26, %v1688_v29  ;;  %v1733_v37 = vrot.slane %v1732_v19, 4  ;;  %v1702_v21 = vrot.slane %v1701_v10, 4  ;;  %v1745_v16 = vadd.f32 %v1744_v17, %v1725_v46 }
 0x59d   :  { %v1691_v31 = vrot.slane %v1690_v33, 2  ;;  %v1734_v25 = vadd.f32 %v1733_v37, %v1732_v19  ;;  %v1703_v14 = vadd.f32 %v1702_v21, %v1701_v10  ;;  %v1746_v63 = vrot.slane %v1745_v16, 4 }
 0x59f   :  { %v1692_v56 = vadd.f32 %v1691_v31, %v1690_v33  ;;  %v1735_v28 = vrot.slane %v1734_v25, 2  ;;  %v1704_v60 = vrot.slane %v1703_v14, 2  ;;  %v1747_v5 = vadd.f32 %v1746_v63, %v1745_v16 }
 0x5a1   :  { %v1693_v42 = vrot.slane %v1692_v56, 1  ;;  %v1736_v0 = vadd.f32 %v1735_v28, %v1734_v25  ;;  %v1705_v7 = vadd.f32 %v1704_v60, %v1703_v14  ;;  %v1748_v24 = vrot.slane %v1747_v5, 2  ;;  %v1681_v14 = vld [vmem:[#allocation11] sm:$0x3] }
 0x5a3   :  { %v1694_v41 = vadd.f32 %v1693_v42, %v1692_v56  ;;  %v1737_v39 = vrot.slane %v1736_v0, 1  ;;  %v1706_v47 = vrot.slane %v1705_v7, 1  ;;  %v1749_v54 = vadd.f32 %v1748_v24, %v1747_v5 }
 0x5a4   :  { %v8872_v24 = vrot.slane %v1681_v14, %v8556_v22 }
 0x5a5   :  { %v8848_v29 = vmul.f32 0.015625, %v1694_v41  ;;  %v1738_v26 = vadd.f32 %v1737_v39, %v1736_v0  ;;  %v1707_v17 = vadd.f32 %v1706_v47, %v1705_v7  ;;  %v1750_v46 = vrot.slane %v1749_v54, 1  ;;  %v1680_v47 = vld [vmem:[#allocation10] sm:$0x3] }
 0x5a6   :  { %v8857_v63 = vrot.slane %v1680_v47, %v8558_v20  ;;  %v8860_v56 = vrot.slane %v1680_v47, %v8556_v22  ;;  %v8869_v7 = vrot.slane %v1681_v14, %v8558_v20  ;;  %v1850_v47 = vld [vmem:[#allocation7] sm:$0xff]  ;;  %v1852_v14 = vld [vmem:[#allocation7 + $0x10] sm:$0xff] }
 0x5a7   :  { %v1752_v19 = vmul.f32 0.015625, %v1738_v26  ;;  %v1754_v10 = vmul.f32 %v8848_v29, %v8848_v29  ;;  %v8852_v33 = vmul.f32 0.015625, %v1707_v17  ;;  %v1751_v37 = vadd.f32 %v1750_v46, %v1749_v54 }
 0x5a8   :  { %v1760_v5 = vsub.f32 %v8741_v3, %v8848_v29  ;;  %v1762_v42 = vsub.f32 %v8733_v6, %v8848_v29  ;;  %v1764_v54 = vsub.f32 %v8744_v49, %v8848_v29  ;;  %v1766_v26 = vsub.f32 %v8759_v15, %v8848_v29 }
 0x5a9   :  { %v1756_v21 = vsub.f32 %v1752_v19, %v1754_v10  ;;  %v1753_v28 = vmul.f32 0.015625, %v1751_v37  ;;  %v1755_v60 = vmul.f32 %v8852_v33, %v8852_v33  ;;  %v1761_v3 = vsub.f32 %v8754_v23, %v8852_v33 }
 0x5aa   :  { %v1763_v6 = vsub.f32 %v8738_v58, %v8852_v33  ;;  %v1765_v10 = vsub.f32 %v8749_v30, %v8852_v33  ;;  %v1767_v49 = vsub.f32 %v8770_v8, %v8852_v33  ;;  %v1771_v30 = vsub.f32 %v8803_v44, %v8852_v33 }
 0x5ab   :  { %v1758_v16 = vmax.f32 %v1756_v21, 0.0  ;;  %v1757_v31 = vsub.f32 %v1753_v28, %v1755_v60  ;;  %v1770_v44 = vsub.f32 %v8792_v27, %v8848_v29  ;;  %v1773_v27 = vsub.f32 %v8825_v51, %v8852_v33 }
 0x5ad   :  { %v1776_v25 = vadd.f32 1e-05, %v1758_v16  ;;  %v1759_v41 = vmax.f32 %v1757_v31, 0.0  ;;  %v1769_v31 = vsub.f32 %v8786_v52, %v8852_v33  ;;  %v1768_v52 = vsub.f32 %v8773_v13, %v8848_v29 }
 0x5af   :  { %7440 = vrsqrt.f32 %v1776_v25  ;;  %v1777_v39 = vadd.f32 1e-05, %v1759_v41 }
 0x5b1   :  { %7442 = vrsqrt.f32 %v1777_v39 }
 0x5bc   :  { %v8866_v0 = vpop.eup %7440 }
 0x5bd   :  { %v1780_v17 = vmul.f32 %v8866_v0, %v1760_v5  ;;  %v1782_v46 = vmul.f32 %v8866_v0, %v1762_v42  ;;  %v1784_v37 = vmul.f32 %v8866_v0, %v1764_v54  ;;  %v1786_v15 = vmul.f32 %v8866_v0, %v1766_v26  ;;  %v1851_v5 = vld [vmem:[#allocation7 + $0x8] sm:$0xff]  ;;  %v1853_v42 = vld [vmem:[#allocation7 + $0x18] sm:$0xff] }
 0x5be   :  { %v7443_v19 = vpop.eup %7442 }
 0x5bf   :  { %v1781_v21 = vmul.f32 %v7443_v19, %v1761_v3  ;;  %v1783_v23 = vmul.f32 %v7443_v19, %v1763_v6  ;;  %v1807_v28 = vmul.f32 %v8857_v63, %v1780_v17  ;;  %v1809_v58 = vmul.f32 %v8857_v63, %v1782_v46  ;;  %v1855_v17 = vld [vmem:[#allocation7 + $0x28] sm:$0xff]  ;;  %v1857_v46 = vld [vmem:[#allocation7 + $0x38] sm:$0xff] }
 0x5c0   :  { %v1785_v60 = vmul.f32 %v7443_v19, %v1765_v10  ;;  %v1787_v16 = vmul.f32 %v7443_v19, %v1767_v49  ;;  %v1811_v10 = vmul.f32 %v8857_v63, %v1784_v37  ;;  %v1813_v49 = vmul.f32 %v8857_v63, %v1786_v15 }
 0x5c1   :  { %v1808_v8 = vmul.f32 %v8860_v56, %v1781_v21  ;;  %v1810_v25 = vmul.f32 %v8860_v56, %v1783_v23  ;;  %v1834_v41 = vadd.f32 %v8869_v7, %v1807_v28  ;;  %v1836_v39 = vadd.f32 %v8869_v7, %v1809_v58 }
 0x5c2   :  { %v1812_v54 = vmul.f32 %v8860_v56, %v1785_v60  ;;  %v1814_v26 = vmul.f32 %v8860_v56, %v1787_v16  ;;  %v1789_v16 = vmul.f32 %v7443_v19, %v1769_v31  ;;  %v1791_v36 = vmul.f32 %v7443_v19, %v1771_v30  ;;  %v1854_v30 = vld [vmem:[#allocation7 + $0x20] sm:$0xff] }
 0x5c3   :  { %v1835_v3 = vadd.f32 %v8872_v24, %v1808_v8  ;;  %v1837_v6 = vadd.f32 %v8872_v24, %v1810_v25  ;;  %v1866_v21 = vmul.f32 %v1850_v47, %v1834_v41  ;;  %v1868_v23 = vmul.f32 %v1852_v14, %v1836_v39 }
 0x5c4   :  { %v1839_v28 = vadd.f32 %v8872_v24, %v1812_v54  ;;  %v1841_v58 = vadd.f32 %v8872_v24, %v1814_v26  ;;  %v1775_v37 = vsub.f32 %v8842_v11, %v8852_v33  ;;  %v1816_v15 = vmul.f32 %v8860_v56, %v1789_v16  ;;  %v1858_v16 = vld [vmem:[#allocation7 + $0x40] sm:$0xff] }
 0x5c5   :  { %v1867_v13 = vmul.f32 %v1851_v5, %v1835_v3  ;;  %v1869_v60 = vmul.f32 %v1853_v42, %v1837_v6  ;;  %v1788_v41 = vmul.f32 %v8866_v0, %v1768_v52  ;;  %v1790_v39 = vmul.f32 %v8866_v0, %v1770_v44  ;;  %v1856_v42 = vld [vmem:[#allocation7 + $0x30] sm:$0xff]  ;;  %v1859_v52 = vld [vmem:[#allocation7 + $0x48] sm:$0xff]  ;;  %v1861_v44 = vld [vmem:[#allocation7 + $0x58] sm:$0xff] }
 0x5c6   :  { %v1871_v8 = vmul.f32 %v1855_v17, %v1839_v28  ;;  %v1873_v25 = vmul.f32 %v1857_v46, %v1841_v58  ;;  %v1915_v47 = vpack.c.bf16 %v1868_v23, %v1866_v21  ;;  %v1838_v14 = vadd.f32 %v8869_v7, %v1811_v10 }
 0x5c7   :  { %v1916_v1 = vpack.c.bf16 %v1869_v60, %v1867_v13  ;;  %v1840_v31 = vadd.f32 %v8869_v7, %v1813_v49  ;;  %v1818_v51 = vmul.f32 %v8860_v56, %v1791_v36  ;;  %v1843_v11 = vadd.f32 %v8872_v24, %v1816_v15 }
 0x5c8   :  { %v1918_v5 = vpack.c.bf16 %v1873_v25, %v1871_v8  ;;  %v1793_v33 = vmul.f32 %v7443_v19, %v1773_v27  ;;  %v1795_v54 = vmul.f32 %v7443_v19, %v1775_v37  ;;  %v1772_v3 = vsub.f32 %v8814_v9, %v8848_v29  ;;  %v1860_v27 = vld [vmem:[#allocation7 + $0x50] sm:$0xff]  ;;  %v1865_v37 = vld [vmem:[#allocation7 + $0x78] sm:$0xff] }
 0x5c9   :  { %2115 = vmatprep.mubr.bf16.mxu1 %v1916_v1  ;;  %v1845_v26 = vadd.f32 %v8872_v24, %v1818_v51  ;;  %v1870_v6 = vmul.f32 %v1854_v30, %v1838_v14  ;;  %v1872_v17 = vmul.f32 %v1856_v42, %v1840_v31  ;;  %v1815_v36 = vmul.f32 %v8857_v63, %v1788_v41 }
 0x5ca   :  { %2116 = vmatmul.mubr.bf16.vlgmr.msra.gmra.mxu1 %v1915_v47  ;;  %v1817_v1 = vmul.f32 %v8857_v63, %v1790_v39  ;;  %v1875_v46 = vmul.f32 %v1859_v52, %v1843_v11  ;;  %v1820_v49 = vmul.f32 %v8860_v56, %v1793_v33  ;;  %v1822_v19 = vmul.f32 %v8860_v56, %v1795_v54  ;;  %v1863_v56 = vld [vmem:[#allocation7 + $0x68] sm:$0xff] }
 0x5cb   :  { %2125 = vmatprep.mubr.bf16.mxu1 %v1918_v5  ;;  %v1877_v10 = vmul.f32 %v1861_v44, %v1845_v26  ;;  %v1774_v21 = vsub.f32 %v8834_v32, %v8848_v29  ;;  %v1792_v23 = vmul.f32 %v8866_v0, %v1772_v3  ;;  %v1917_v28 = vpack.c.bf16 %v1872_v17, %v1870_v6  ;;  %v1862_v5 = vld [vmem:[#allocation7 + $0x60] sm:$0xff] }
 0x5cc   :  { %v1842_v9 = vadd.f32 %v8869_v7, %v1815_v36  ;;  %v1844_v58 = vadd.f32 %v8869_v7, %v1817_v1  ;;  %v1847_v8 = vadd.f32 %v8872_v24, %v1820_v49  ;;  %v1849_v25 = vadd.f32 %v8872_v24, %v1822_v19  ;;  %v1864_v24 = vld [vmem:[#allocation7 + $0x70] sm:$0xff] }
 0x5cd   :  { %v1794_v13 = vmul.f32 %v8866_v0, %v1774_v21  ;;  %v1920_v60 = vpack.c.bf16 %v1877_v10, %v1875_v46  ;;  %v1819_v15 = vmul.f32 %v8857_v63, %v1792_v23 }
 0x5ce   :  { %v1874_v32 = vmul.f32 %v1858_v16, %v1842_v9  ;;  %v1876_v29 = vmul.f32 %v1860_v27, %v1844_v58  ;;  %v1879_v39 = vmul.f32 %v1863_v56, %v1847_v8  ;;  %v1881_v47 = vmul.f32 %v1865_v37, %v1849_v25  ;;  %v10382_v27 = vld [vmem:[#allocation35_spill] sm:$0xff]  ;;  %v10383_v8 = vld [vmem:[#allocation36_spill] sm:$0xff]  ;;  %v10384_v25 = vld [vmem:[#allocation37_spill] sm:$0xff] }
 0x5cf   :  { %v1821_v41 = vmul.f32 %v8857_v63, %v1794_v13  ;;  %v1846_v14 = vadd.f32 %v8869_v7, %v1819_v15  ;;  %v10385_v56 = vld [vmem:[#allocation38_spill] sm:$0xff]  ;;  %v10386_v37 = vld [vmem:[#allocation39_spill] sm:$0xff] }
 0x5d0   :  { %v1919_v0 = vpack.c.bf16 %v1876_v29, %v1874_v32  ;;  %v1922_v51 = vpack.c.bf16 %v1881_v47, %v1879_v39  ;;  %v10387_v32 = vld [vmem:[#allocation40_spill] sm:$0xff]  ;;  %v10388_v29 = vld [vmem:[#allocation41_spill] sm:$0xff]  ;;  %v10389_v15 = vld [vmem:[#allocation42_spill] sm:$0xff] }
 0x5d1   :  { %v1848_v31 = vadd.f32 %v8869_v7, %v1821_v41  ;;  %v1878_v30 = vmul.f32 %v1862_v5, %v1846_v14 }
 0x5d2   :  { %2126 = vmatmul.mubr.bf16.gmra.mxu1 %v1917_v28 }
 0x5d3   :  { %2135 = vmatprep.mubr.bf16.mxu1 %v1920_v60  ;;  %v1880_v42 = vmul.f32 %v1864_v24, %v1848_v31 }
 0x5d5   :  { %v1921_v11 = vpack.c.bf16 %v1880_v42, %v1878_v30 }
 0x5da   :  { %2136 = vmatmul.mubr.bf16.gmra.mxu1 %v1919_v0 }
 0x5db   :  { %2145 = vmatprep.mubr.bf16.mxu1 %v1922_v51 }
 0x5e2   :  { %2146 = vmatmul.mubr.bf16.gmra.mxu1 %v1921_v11 }
 0x5e3   :  { %2357 = vmatprep.mubr.bf16.mxu1 %v10346_v12 }
 0x68a   :  { %v2117_v33 = vpop.f32.mrf.mxu1 }
 0x68c   :  { %v2119_v63 = vpop.f32.mrf.mxu1 }
 0x68e   :  { %v2121_v54 = vpop.f32.mrf.mxu1 }
 0x68f   :  { %v2156_v16 = vpack.c.bf16 %v2121_v54, %v2117_v33 }
 0x690   :  { %v2123_v26 = vpop.f32.mrf.mxu1 }
 0x691   :  { %v2157_v60 = vpack.c.bf16 %v2123_v26, %v2119_v63 }
 0x692   :  { %v2127_v52 = vpop.f32.mrf.mxu1 }
 0x694   :  { %v2129_v44 = vpop.f32.mrf.mxu1 }
 0x696   :  { %v2131_v3 = vpop.f32.mrf.mxu1 }
 0x697   :  { %v2158_v13 = vpack.c.bf16 %v2131_v3, %v2127_v52 }
 0x698   :  { %v2133_v6 = vpop.f32.mrf.mxu1 }
 0x699   :  { %v2159_v58 = vpack.c.bf16 %v2133_v6, %v2129_v44 }
 0x69a   :  { %v2137_v7 = vpop.f32.mrf.mxu1 }
 0x69c   :  { %v2139_v17 = vpop.f32.mrf.mxu1 }
 0x69e   :  { %v2141_v36 = vpop.f32.mrf.mxu1 }
 0x69f   :  { %v2160_v9 = vpack.c.bf16 %v2141_v36, %v2137_v7 }
 0x6a0   :  { %v2143_v1 = vpop.f32.mrf.mxu1 }
 0x6a1   :  { %v2161_v28 = vpack.c.bf16 %v2143_v1, %v2139_v17 }
 0x6a2   :  { %v2147_v46 = vpop.f32.mrf.mxu1 }
 0x6a4   :  { %v2149_v10 = vpop.f32.mrf.mxu1 }
 0x6a6   :  { %v2151_v49 = vpop.f32.mrf.mxu1 }
 0x6a7   :  { %v2162_v23 = vpack.c.bf16 %v2151_v49, %v2147_v46 }
 0x6a8   :  { %v2153_v19 = vpop.f32.mrf.mxu1 }
 0x6a9   :  { %v2163_v21 = vpack.c.bf16 %v2153_v19, %v2149_v10 }
 0x6ab   :  { %2172 = vmatprep.subr.bf16.mxu0 %v2163_v21 }
 0x6ac   :  { %2173 = vmatpush1.bf16.msra.mxu0 %v2162_v23 }
 0x6ad   :  { %2174 = vmatprep.subr.bf16.mxu0 %v2161_v28 }
 0x6b0   :  { %2175 = vmatpush1.bf16.msra.mxu0 %v2160_v9 }
 0x6b1   :  { %2176 = vmatprep.subr.bf16.mxu0 %v2159_v58 }
 0x6b4   :  { %2177 = vmatpush1.bf16.msra.mxu0 %v2158_v13 }
 0x6b5   :  { %2178 = vmatprep.subr.bf16.mxu0 %v2157_v60 }
 0x6b8   :  { %2179 = vmatpush1.bf16.msra.mxu0 %v2156_v16 }
 0x6bb   :  { %6418 = vmatmul.mubr.msk.bf16.vlgmr.msra.gmra.mxu0 %vm713_vm0, %v10382_v27 }
 0x6bc   :  { %2206 = vmatprep.mubr.bf16.mxu0 %v10346_v12 }
 0x6c3   :  { %6419 = vmatmul.mubr.msk.bf16.gmra.mxu0 %vm713_vm0, %v10383_v8 }
 0x6c4   :  { %2216 = vmatprep.mubr.bf16.mxu0 %v10346_v12 }
 0x6cb   :  { %6420 = vmatmul.mubr.msk.bf16.gmra.mxu0 %vm713_vm0, %v10384_v25 }
 0x6cc   :  { %2226 = vmatprep.mubr.bf16.mxu0 %v10346_v12 }
 0x6d3   :  { %6421 = vmatmul.mubr.msk.bf16.gmra.mxu0 %vm713_vm0, %v10385_v56 }
 0x6d4   :  { %2236 = vmatprep.mubr.bf16.mxu0 %v10346_v12 }
 0x6db   :  { %6422 = vmatmul.mubr.msk.bf16.gmra.mxu0 %vm713_vm0, %v10386_v37 }
 0x6dc   :  { %2246 = vmatprep.mubr.bf16.mxu0 %v10346_v12 }
 0x6e3   :  { %6423 = vmatmul.mubr.msk.bf16.gmra.mxu0 %vm713_vm0, %v10387_v32 }
 0x6e4   :  { %2256 = vmatprep.mubr.bf16.mxu0 %v10346_v12 }
 0x6eb   :  { %6424 = vmatmul.mubr.msk.bf16.gmra.mxu0 %vm713_vm0, %v10388_v29 }
 0x6ec   :  { %2266 = vmatprep.mubr.bf16.mxu0 %v10346_v12 }
 0x6f3   :  { %6425 = vmatmul.mubr.msk.bf16.gmra.mxu0 %vm713_vm0, %v10389_v15 }
 0x77b   :  { %v2198_v41 = vpop.f32.mrf.mxu0 }
 0x77c   :  { %v8969_v0 = vmul.f32 %v2198_v41, %v8484_v2 }
 0x77d   :  { %v8966_v39 = vpop.f32.mrf.mxu0 }
 0x77f   :  { %v2202_v47 = vpop.f32.mrf.mxu0 }
 0x780   :  { %v8972_v14 = vmul.f32 %v2202_v47, %v8488_v4 }
 0x781   :  { %v8974_v31 = vpop.f32.mrf.mxu0 }
 0x783   :  { %v2208_v5 = vpop.f32.mrf.mxu0 }
 0x784   :  { %v8981_v42 = vmul.f32 %v2208_v5, %v8478_v61 }
 0x785   :  { %v8978_v24 = vpop.f32.mrf.mxu0 }
 0x787   :  { %v2212_v30 = vpop.f32.mrf.mxu0 }
 0x788   :  { %v8984_v11 = vmul.f32 %v2212_v30, %v8480_v62 }
 0x789   :  { %v8986_v33 = vpop.f32.mrf.mxu0 }
 0x78b   :  { %v8990_v54 = vpop.f32.mrf.mxu0 }
 0x78d   :  { %v2220_v26 = vpop.f32.mrf.mxu0 }
 0x78f   :  { %v2222_v52 = vpop.f32.mrf.mxu0 }
 0x791   :  { %v2224_v44 = vpop.f32.mrf.mxu0 }
 0x793   :  { %v2228_v3 = vpop.f32.mrf.mxu0 }
 0x795   :  { %v2230_v6 = vpop.f32.mrf.mxu0 }
 0x797   :  { %v2232_v7 = vpop.f32.mrf.mxu0 }
 0x799   :  { %v2234_v17 = vpop.f32.mrf.mxu0 }
 0x79b   :  { %v2238_v36 = vpop.f32.mrf.mxu0 }
 0x79d   :  { %v2240_v1 = vpop.f32.mrf.mxu0 }
 0x79f   :  { %v2242_v46 = vpop.f32.mrf.mxu0 }
 0x7a1   :  { %v2244_v10 = vpop.f32.mrf.mxu0 }
 0x7a3   :  { %v2248_v49 = vpop.f32.mrf.mxu0 }
 0x7a5   :  { %v2250_v19 = vpop.f32.mrf.mxu0 }
 0x7a7   :  { %v2252_v21 = vpop.f32.mrf.mxu0 }
 0x7a9   :  { %v2254_v23 = vpop.f32.mrf.mxu0 }
 0x7aa   :  { %v2300_v25 = vmul.f32 %v2254_v23, %v8442_v43 }
 0x7ab   :  { %v2258_v28 = vpop.f32.mrf.mxu0 }
 0x7ad   :  { %v2260_v9 = vpop.f32.mrf.mxu0 }
 0x7ae   :  { %v2302_v29 = vmul.f32 %v2260_v9, %v8432_v38 }
 0x7af   :  { %v2262_v58 = vpop.f32.mrf.mxu0 }
 0x7b0   :  { %v2303_v37 = vmul.f32 %v2262_v58, %v8436_v40  ;;  %v7655_v58 = vld [vmem:[#allocation5 + $0x18] sm:$0xff]  }
 0x7b1   :  { %v2264_v13 = vpop.f32.mrf.mxu0 }
 0x7b2   :  { %v2304_v30 = vmul.f32 %v2264_v13, %v8436_v40  ;;  %v2298_v13 = vmul.f32 %v2250_v19, %v8470_v57 }
 0x7b3   :  { %v2268_v60 = vpop.f32.mrf.mxu0 }
 0x7b4   :  { %v2305_v15 = vmul.f32 %v2268_v60, %v8424_v34  ;;  %v2322_v8 = vpack.c.bf16 %v2304_v30, %v2302_v29  ;;  %v2296_v60 = vmul.f32 %v2244_v10, %v8452_v48  ;;  %v2320_v9 = vpack.c.bf16 %v2300_v25, %v2298_v13  ;;  %v7149_v30 = vld [vmem:[#allocation20 + $0x28] sm:$0xff]   ;;  %v7151_v13 = vld [vmem:[#allocation20 + $0x20] sm:$0xff]  }
 0x7b5   :  { %v2270_v16 = vpop.f32.mrf.mxu0  ;;  %v2291_v25 = vmul.f32 %v2232_v7, %v8462_v53  ;;  %v2285_v7 = vmul.f32 %v8990_v54, %v8466_v55  ;;  %v7652_v54 = vld [vmem:[#allocation5] sm:$0xff]  }
 0x7b6   :  { %v2306_v51 = vmul.f32 %v2270_v16, %v8424_v34  ;;  %v2299_v16 = vmul.f32 %v2252_v21, %v8442_v43 }
 0x7b7   :  { %v2272_v41 = vpop.f32.mrf.mxu0 }
 0x7b8   :  { %v2307_v47 = vmul.f32 %v2272_v41, %v8426_v35  ;;  %v2301_v41 = vmul.f32 %v2258_v28, %v8432_v38  ;;  %v10390_v28 = vpack.c.bf16 %v8984_v11, %v8981_v42  ;;  %v7144_v42 = vld [vmem:[#allocation20 + $0x78] sm:$0xff]  }
 0x7b9   :  { %v2274_v5 = vpop.f32.mrf.mxu0  ;;  %v7145_v11 = vld [vmem:[#allocation20 + $0x38] sm:$0xff]   ;;  %6728 = vmatprep.subr.bf16.mxu0 %v7144_v42 }
 0x7ba   :  { %v2308_v63 = vmul.f32 %v2274_v5, %v8426_v35  ;;  %v2323_v56 = vpack.c.bf16 %v2307_v47, %v2305_v15  ;;  %v2321_v5 = vpack.c.bf16 %v2303_v37, %v2301_v41  ;;  %v2294_v15 = vmul.f32 %v2240_v1, %v8446_v45  ;;  %6729 = vmatpush3.bf16.msra.mxu0 %v7145_v11  ;;  %v7148_v47 = vld [vmem:[#allocation20 + $0x68] sm:$0xff]   ;;  %v7150_v41 = vld [vmem:[#allocation20 + $0x60] sm:$0xff]  }
 0x7bb   :  { %v2290_v37 = vmul.f32 %v2230_v6, %v8456_v50  ;;  %v2289_v1 = vmul.f32 %v2228_v3, %v8456_v50 }
 0x7bc   :  { %v2324_v32 = vpack.c.bf16 %v2308_v63, %v2306_v51  ;;  %v2297_v51 = vmul.f32 %v2248_v49, %v8470_v57  ;;  %v2318_v63 = vpack.c.bf16 %v2296_v60, %v2294_v15  ;;  %v2288_v49 = vmul.f32 %v2224_v44, %v8474_v59  ;;  %v7154_v60 = vld [vmem:[#allocation20 + $0x50] sm:$0xff]   ;;  %v7157_v15 = vld [vmem:[#allocation20 + $0x8] sm:$0xff]  }
 0x7bd   :  { %v2315_v21 = vpack.c.bf16 %v2291_v25, %v2289_v1  ;;  %v2282_v44 = vmul.f32 %v8978_v24, %v8478_v61  ;;  %v10391_v24 = vpack.c.bf16 %v8972_v14, %v8969_v0  ;;  %v7146_v0 = vld [vmem:[#allocation20 + $0x70] sm:$0xff]   ;;  %v7169_v1 = vld [vmem:[#allocation22 + $0x40] ss:$8 sps:$4 sm:$0xff]  }
 0x7be   :  { %2325 = vmatprep.subr.bf16.mxu1 %v2324_v32  ;;  %v2295_v32 = vmul.f32 %v2242_v46, %v8452_v48  ;;  %v2319_v29 = vpack.c.bf16 %v2299_v16, %v2297_v51  ;;  %v2286_v46 = vmul.f32 %v2220_v26, %v8466_v55  ;;  %v2280_v26 = vmul.f32 %v8974_v31, %v8488_v4  ;;  %v7653_v31 = vld [vmem:[#allocation5 + $0x8] sm:$0xff]   ;;  %v7147_v14 = vld [vmem:[#allocation20 + $0x30] sm:$0xff]   ;;  %v7156_v51 = vld [vmem:[#allocation20 + $0x48] sm:$0xff]  }
 0x7bf   :  { %2326 = vmatpush1.bf16.msra.mxu1 %v2323_v56  ;;  %v2292_v56 = vmul.f32 %v2234_v17, %v8462_v53  ;;  %v2287_v17 = vmul.f32 %v2222_v52, %v8474_v59  ;;  %v2278_v52 = vmul.f32 %v8966_v39, %v8484_v2  ;;  %v7654_v39 = vld [vmem:[#allocation5 + $0x10] sm:$0xff]   ;;  %6730 = vmatprep.subr.bf16.mxu0 %v7146_v0  ;;  %v7152_v16 = vld [vmem:[#allocation20 + $0x58] sm:$0xff]  }
 0x7c0   :  { %2327 = vmatprep.subr.bf16.mxu1 %v2322_v8  ;;  %v2293_v8 = vmul.f32 %v2238_v36, %v8446_v45  ;;  %v2284_v36 = vmul.f32 %v8986_v33, %v8480_v62  ;;  %v2314_v6 = vpack.c.bf16 %v2288_v49, %v2286_v46  ;;  %6731 = vmatpush3.bf16.msra.mxu0 %v7147_v14  ;;  %v7168_v25 = vld [vmem:[#allocation22 + $0x54] ss:$8 sps:$4 sm:$0xff]   ;;  %v7171_v49 = vld [vmem:[#allocation22 + $0x44] ss:$8 sps:$4 sm:$0xff]  }
 0x7c1   :  { %v2316_v19 = vpack.c.bf16 %v2292_v56, %v2290_v37  ;;  %v2313_v3 = vpack.c.bf16 %v2287_v17, %v2285_v7  ;;  %v2310_v33 = vpack.c.bf16 %v2280_v26, %v2278_v52  ;;  %6732 = vmatprep.subr.bf16.mxu0 %v7148_v47  ;;  %v7160_v56 = vld [vmem:[#allocation22 + $0x70] ss:$8 sps:$4 sm:$0xff]   ;;  %v7163_v37 = vld [vmem:[#allocation22 + $0x60] ss:$8 sps:$4 sm:$0xff]   ;;  %v7174_v46 = vld [vmem:[#allocation22 + $0x34] ss:$8 sps:$4 sm:$0xff]  }
 0x7c2   :  { %v2317_v10 = vpack.c.bf16 %v2295_v32, %v2293_v8  ;;  %v2312_v23 = vpack.c.bf16 %v2284_v36, %v2282_v44  ;;  %v7158_v32 = vld [vmem:[#allocation20 + $0x40] sm:$0xff]   ;;  %v7172_v44 = vld [vmem:[#allocation22 + $0x30] ss:$8 sps:$4 sm:$0xff]   ;;  %v10395_v0 = vld [vmem:[#allocation44_spill] sm:$0xff] }
 0x7c3   :  { %2328 = vmatpush1.bf16.msra.mxu1 %v2321_v5  ;;  %v7153_v5 = vld [vmem:[#allocation20 + $0x18] sm:$0xff]   ;;  %v7165_v8 = vld [vmem:[#allocation22 + $0x64] ss:$8 sps:$4 sm:$0xff]   ;;  %v9055_v14 = vmul.f32 0.2, %v10395_v0 }
 0x7c4   :  { %2329 = vmatprep.subr.bf16.mxu1 %v2320_v9  ;;  %6733 = vmatpush3.bf16.msra.mxu0 %v7149_v30  ;;  %v7155_v9 = vld [vmem:[#allocation20 + $0x10] sm:$0xff]  }
 0x7c5   :  { %6734 = vmatprep.subr.bf16.mxu0 %v7150_v41 }
 0x7c7   :  { %2330 = vmatpush1.bf16.msra.mxu1 %v2319_v29  ;;  %v7159_v29 = vld [vmem:[#allocation20] sm:$0xff]  }
 0x7c8   :  { %2331 = vmatprep.subr.bf16.mxu1 %v2318_v63  ;;  %6735 = vmatpush3.bf16.msra.mxu0 %v7151_v13  ;;  %v7162_v63 = vld [vmem:[#allocation22 + $0x74] ss:$8 sps:$4 sm:$0xff]  }
 0x7c9   :  { %6736 = vmatprep.subr.bf16.mxu0 %v7152_v16  ;;  %v10397_v13 = vld [vmem:[#allocation45_spill] sm:$0xff] }
 0x7ca   :  { %v9059_v16 = vmul.f32 0.2, %v10397_v13 }
 0x7cb   :  { %2332 = vmatpush1.bf16.msra.mxu1 %v2317_v10  ;;  %v7166_v10 = vld [vmem:[#allocation22 + $0x50] ss:$8 sps:$4 sm:$0xff]  }
 0x7cc   :  { %2333 = vmatprep.subr.bf16.mxu1 %v2316_v19  ;;  %6737 = vmatpush3.bf16.msra.mxu0 %v7153_v5  ;;  %v1914_v19 = vld [vmem:[%s10155_s16] sm:$0x3]  ;;  %10398 = vst [vmem:[#allocation44_spill] sm:$0xff] %v9059_v16  ;;  %v10399_v5 = vld [vmem:[#allocation46_spill] sm:$0xff] }
 0x7cd   :  { %6738 = vmatprep.subr.bf16.mxu0 %v7154_v60  ;;  %v9062_v60 = vmul.f32 0.2, %v10399_v5 }
 0x7cf   :  { %2334 = vmatpush1.bf16.msra.mxu1 %v2315_v21  ;;  %v9039_v21 = vrot.slane %v1914_v19, %v8558_v20  ;;  %10400 = vst [vmem:[#allocation45_spill] sm:$0xff] %v9062_v60 }
 0x7d0   :  { %2335 = vmatprep.subr.bf16.mxu1 %v2314_v6  ;;  %6739 = vmatpush3.bf16.msra.mxu0 %v7155_v9  ;;  %v9043_v6 = vrot.slane %v1914_v19, %v8556_v22  ;;  %v10401_v9 = vld [vmem:[#allocation47_spill] sm:$0xff] }
 0x7d1   :  { %6740 = vmatprep.subr.bf16.mxu0 %v7156_v51  ;;  %v9065_v51 = vmul.f32 0.2, %v10401_v9 }
 0x7d3   :  { %2336 = vmatpush1.bf16.msra.mxu1 %v2313_v3  ;;  %10402 = vst [vmem:[#allocation46_spill] sm:$0xff] %v9065_v51 }
 0x7d4   :  { %2337 = vmatprep.subr.bf16.mxu1 %v2312_v23  ;;  %6741 = vmatpush3.bf16.msra.mxu0 %v7157_v15  ;;  %v10403_v15 = vld [vmem:[#allocation66_spill] sm:$0xff] }
 0x7d5   :  { %6742 = vmatprep.subr.bf16.mxu0 %v7158_v32 }
 0x7d7   :  { %2338 = vmatpush1.bf16.msra.mxu1 %v10390_v28 }
 0x7d8   :  { %2339 = vmatprep.subr.bf16.mxu1 %v2310_v33  ;;  %6743 = vmatpush3.bf16.msra.mxu0 %v7159_v29  ;;  %v10392_v33 = vld [vmem:[#allocation65_spill] sm:$0xff] }
 0x7db   :  { %2340 = vmatpush1.bf16.msra.mxu1 %v10391_v24 }
 0x7dc   :  { %3036 = vmatprep.subr.bf16.mxu1 %v7162_v63 }
 0x7de   :  { %2358 = vmatmul.mubr.bf16.vlgmr.msra.gmra.mxu1 %v7652_v54 }
 0x7df   :  { %2367 = vmatprep.mubr.bf16.mxu1 %v10346_v12  ;;  %3037 = vmatpush1.bf16.msra.mxu1 %v7160_v56  ;;  %v10404_v56 = vld [vmem:[#allocation48_spill] sm:$0xff] }
 0x7e0   :  { %3038 = vmatprep.subr.bf16.mxu1 %v7165_v8  ;;  %v9069_v63 = vmul.f32 0.2, %v10404_v56  ;;  %v10419_v56 = vld [vmem:[#allocation56_spill] sm:$0xff] }
 0x7e2   :  { %10405 = vst [vmem:[#allocation47_spill] sm:$0xff] %v9069_v63 }
 0x7e3   :  { %3039 = vmatpush1.bf16.msra.mxu1 %v7163_v37 }
 0x7e4   :  { %3040 = vmatprep.subr.bf16.mxu1 %v7168_v25  ;;  %v10406_v25 = vld [vmem:[#allocation49_spill] sm:$0xff] }
 0x7e6   :  { %2368 = vmatmul.mubr.bf16.gmra.mxu1 %v7653_v31 }
 0x7e7   :  { %2377 = vmatprep.mubr.bf16.mxu1 %v10346_v12  ;;  %3041 = vmatpush1.bf16.msra.mxu1 %v7166_v10  ;;  %v9072_v10 = vmul.f32 0.2, %v10406_v25 }
 0x7e8   :  { %3042 = vmatprep.subr.bf16.mxu1 %v7171_v49 }
 0x7e9   :  { %10407 = vst [vmem:[#allocation48_spill] sm:$0xff] %v9072_v10 }
 0x7eb   :  { %3043 = vmatpush1.bf16.msra.mxu1 %v7169_v1 }
 0x7ec   :  { %3044 = vmatprep.subr.bf16.mxu1 %v7174_v46 }
 0x7ee   :  { %2378 = vmatmul.mubr.bf16.gmra.mxu1 %v7654_v39  ;;  %v10393_v39 = vld [vmem:[#allocation43_spill] sm:$0xff] }
 0x7ef   :  { %2387 = vmatprep.mubr.bf16.mxu1 %v10346_v12  ;;  %3045 = vmatpush1.bf16.msra.mxu1 %v7172_v44  ;;  %10396 = vst [vmem:[#allocation43_spill] sm:$0xff] %v9055_v14 }
 0x7f6   :  { %2388 = vmatmul.mubr.bf16.gmra.mxu1 %v7655_v58  ;;  %v9052_v58 = vmul.f32 0.2, %v10393_v39  ;;  %v10413_v39 = vld [vmem:[#allocation52_spill] sm:$0xff] }
 0x7f7   :  { %3068 = vmatprep.mubr.bf16.mxu1 %v10346_v12 }
 0x7f8   :  { %10394 = vst [vmem:[#allocation35_spill] sm:$0xff] %v9052_v58 }
 0x89e   :  { %v2359_v17 = vpop.f32.mrf.mxu1 }
 0x89f   :  { %v2398_v36 = vmul.f32 %v2359_v17, %v8560_v18  ;;  %v10408_v17 = vld [vmem:[#allocation50_spill] sm:$0xff] }
 0x8a0   :  { %v2361_v7 = vpop.f32.mrf.mxu1 }
 0x8a1   :  { %v2399_v3 = vmul.f32 %v2361_v7, %v8560_v18  ;;  %v2425_v26 = vadd.f32 %v9039_v21, %v2398_v36  ;;  %v9077_v36 = vmul.f32 0.2, %v10408_v17  ;;  %v10421_v17 = vld [vmem:[#allocation68_spill] sm:$0xff] }
 0x8a2   :  { %v2363_v23 = vpop.f32.mrf.mxu1 }
 0x8a3   :  { %v2426_v52 = vadd.f32 %v9043_v6, %v2399_v3  ;;  %v2400_v28 = vmul.f32 %v2363_v23, %v10392_v33  ;;  %v2441_v42 = vmax.f32 %v2425_v26, 0.0  ;;  %10409 = vst [vmem:[#allocation49_spill] sm:$0xff] %v9077_v36  ;;  %v10410_v3 = vld [vmem:[#allocation67_spill] sm:$0xff] }
 0x8a4   :  { %v2365_v24 = vpop.f32.mrf.mxu1  ;;  %v10411_v23 = vld [vmem:[#allocation51_spill] sm:$0xff] }
 0x8a5   :  { %v2427_v54 = vadd.f32 %v9039_v21, %v2400_v28  ;;  %v2401_v31 = vmul.f32 %v2365_v24, %v10392_v33  ;;  %v2442_v47 = vmax.f32 %v2426_v52, 0.0  ;;  %v2457_v49 = vmul.f32 0.8, %v2441_v42 }
 0x8a6   :  { %v2369_v11 = vpop.f32.mrf.mxu1  ;;  %v9084_v52 = vmul.f32 0.2, %v10411_v23  ;;  %v9088_v42 = vmul.f32 0.2, %v10413_v39 }
 0x8a7   :  { %v2443_v30 = vmax.f32 %v2427_v54, 0.0  ;;  %v2428_v41 = vadd.f32 %v9043_v6, %v2401_v31  ;;  %v2402_v32 = vmul.f32 %v2369_v11, %v10403_v15  ;;  %v2458_v7 = vmul.f32 0.8, %v2442_v47  ;;  %v10415_v11 = vld [vmem:[#allocation53_spill] sm:$0xff]  ;;  %v10417_v47 = vld [vmem:[#allocation54_spill] sm:$0xff] }
 0x8a8   :  { %v2371_v29 = vpop.f32.mrf.mxu1  ;;  %10412 = vst [vmem:[#allocation50_spill] sm:$0xff] %v9084_v52  ;;  %10414 = vst [vmem:[#allocation51_spill] sm:$0xff] %v9088_v42  ;;  %v9091_v0 = vmul.f32 0.2, %v10415_v11  ;;  %v9098_v13 = vadd.f32 %v9052_v58, %v2457_v49 }
 0x8a9   :  { %v2459_v8 = vmul.f32 0.8, %v2443_v30  ;;  %v2444_v37 = vmax.f32 %v2428_v41, 0.0  ;;  %v2429_v19 = vadd.f32 %v9039_v21, %v2402_v32  ;;  %v2403_v1 = vmul.f32 %v2371_v29, %v10403_v15 }
 0x8aa   :  { %v2373_v46 = vpop.f32.mrf.mxu1  ;;  %10416 = vst [vmem:[#allocation52_spill] sm:$0xff] %v9091_v0  ;;  %v9094_v30 = vmul.f32 0.2, %v10417_v47  ;;  %v10426_v47 = vld [vmem:[#allocation61_spill] sm:$0xff] }
 0x8ab   :  { %v9080_v44 = vadd.f32 %v9059_v16, %v2459_v8  ;;  %v2404_v26 = vmul.f32 %v2373_v46, %v10410_v3  ;;  %v2460_v28 = vmul.f32 0.8, %v2444_v37  ;;  %v2445_v24 = vmax.f32 %v2429_v19, 0.0 }
 0x8ac   :  { %v2430_v54 = vadd.f32 %v9043_v6, %v2403_v1  ;;  %v2375_v31 = vpop.f32.mrf.mxu1  ;;  %10418 = vst [vmem:[#allocation53_spill] sm:$0xff] %v9094_v30  ;;  %v9102_v8 = vmul.f32 0.2, %v10419_v56  ;;  %v9105_v37 = vadd.f32 %v9055_v14, %v2458_v7 }
 0x8ad   :  { %v2431_v41 = vadd.f32 %v9039_v21, %v2404_v26  ;;  %v2461_v5 = vmul.f32 0.8, %v2445_v24  ;;  %v2405_v32 = vmul.f32 %v2375_v31, %v10410_v3  ;;  %v2537_v25 = vmul.f32 %v9080_v44, %v9080_v44  ;;  %v10422_v24 = vld [vmem:[#allocation57_spill] sm:$0xff]  ;;  %v10424_v31 = vld [vmem:[#allocation58_spill] sm:$0xff] }
 0x8ae   :  { %v2446_v9 = vmax.f32 %v2430_v54, 0.0  ;;  %v2379_v29 = vpop.f32.mrf.mxu1  ;;  %10420 = vst [vmem:[#allocation54_spill] sm:$0xff] %v9102_v8  ;;  %v9110_v1 = vadd.f32 %v9062_v60, %v2460_v28  ;;  %v9115_v54 = vmul.f32 0.2, %v10422_v24  ;;  %v9118_v39 = vmul.f32 0.2, %v10424_v31 }
 0x8af   :  { %v2447_v19 = vmax.f32 %v2431_v41, 0.0  ;;  %v2432_v46 = vadd.f32 %v9043_v6, %v2405_v32  ;;  %v2406_v26 = vmul.f32 %v2379_v29, %v10421_v17  ;;  %v9122_v41 = vmul.f32 0.2, %v10426_v47  ;;  %v10428_v31 = vld [vmem:[#allocation69_spill] sm:$0xff] }
 0x8b0   :  { %v2462_v49 = vmul.f32 0.8, %v2446_v9  ;;  %v2381_v23 = vpop.f32.mrf.mxu1  ;;  %10423 = vst [vmem:[#allocation56_spill] sm:$0xff] %v9115_v54  ;;  %10425 = vst [vmem:[#allocation57_spill] sm:$0xff] %v9118_v39  ;;  %v2535_v28 = vmul.f32 %v9098_v13, %v9098_v13  ;;  %v9127_v9 = vadd.f32 %v9065_v51, %v2461_v5  ;;  %v2536_v47 = vmul.f32 %v9105_v37, %v9105_v37 }
 0x8b1   :  { %v2463_v7 = vmul.f32 0.8, %v2447_v19  ;;  %v2407_v11 = vmul.f32 %v2381_v23, %v10421_v17  ;;  %10427 = vst [vmem:[#allocation58_spill] sm:$0xff] %v9122_v41  ;;  %v2448_v32 = vmax.f32 %v2432_v46, 0.0  ;;  %v2433_v24 = vadd.f32 %v9039_v21, %v2406_v26 }
 0x8b2   :  { %v2383_v29 = vpop.f32.mrf.mxu1  ;;  %v9130_v56 = vadd.f32 %v9069_v63, %v2462_v49  ;;  %v2507_v17 = vadd.f32 %v9080_v44, %v9098_v13  ;;  %v2551_v60 = vadd.f32 %v2537_v25, %v2535_v28  ;;  %v2538_v5 = vmul.f32 %v9110_v1, %v9110_v1 }
 0x8b3   :  { %v2434_v19 = vadd.f32 %v9043_v6, %v2407_v11  ;;  %v2408_v23 = vmul.f32 %v2383_v29, %v10428_v31  ;;  %v9142_v49 = vadd.f32 %v9072_v10, %v2463_v7  ;;  %v2464_v63 = vmul.f32 0.8, %v2448_v32  ;;  %v10429_v10 = vld [vmem:[#allocation70_spill] sm:$0xff] }
 0x8b4   :  { %v2385_v46 = vpop.f32.mrf.mxu1  ;;  %v2449_v26 = vmax.f32 %v2433_v24, 0.0  ;;  %v2520_v11 = vadd.f32 %v9110_v1, %v9105_v37  ;;  %v2539_v29 = vmul.f32 %v9127_v9, %v9127_v9  ;;  %v2540_v58 = vmul.f32 %v9130_v56, %v9130_v56 }
 0x8b5   :  { %v2450_v51 = vmax.f32 %v2434_v19, 0.0  ;;  %v2435_v14 = vadd.f32 %v9039_v21, %v2408_v23  ;;  %v2409_v25 = vmul.f32 %v2385_v46, %v10428_v31  ;;  %v2564_v24 = vadd.f32 %v2538_v5, %v2536_v47 }
 0x8b6   :  { %v2389_v28 = vpop.f32.mrf.mxu1  ;;  %v2465_v3 = vmul.f32 0.8, %v2449_v26  ;;  %v2508_v19 = vadd.f32 %v2507_v17, %v9127_v9  ;;  %v2541_v23 = vmul.f32 %v9142_v49, %v9142_v49  ;;  %v9158_v46 = vadd.f32 %v9077_v36, %v2464_v63 }
 0x8b7   :  { %v2466_v7 = vmul.f32 0.8, %v2450_v51  ;;  %v2410_v32 = vmul.f32 %v2389_v28, %v10429_v10  ;;  %v2451_v16 = vmax.f32 %v2435_v14, 0.0  ;;  %v2436_v15 = vadd.f32 %v9043_v6, %v2409_v25 }
 0x8b8   :  { %v2391_v33 = vpop.f32.mrf.mxu1  ;;  %v2552_v51 = vadd.f32 %v2551_v60, %v2539_v29  ;;  %v9163_v28 = vadd.f32 %v9084_v52, %v2465_v3  ;;  %v2521_v5 = vadd.f32 %v2520_v11, %v9130_v56  ;;  %v2565_v25 = vadd.f32 %v2564_v24, %v2540_v58 }
 0x8b9   :  { %v2437_v31 = vadd.f32 %v9039_v21, %v2410_v32  ;;  %v2411_v26 = vmul.f32 %v2391_v33, %v10429_v10  ;;  %v2467_v47 = vmul.f32 0.8, %v2451_v16  ;;  %v2452_v17 = vmax.f32 %v2436_v15, 0.0  ;;  %v10430_v15 = vld [vmem:[#allocation71_spill] sm:$0xff] }
 0x8ba   :  { %v2393_v14 = vpop.f32.mrf.mxu1  ;;  %v2509_v18 = vadd.f32 %v2508_v19, %v9142_v49  ;;  %v9168_v55 = vadd.f32 %v9088_v42, %v2466_v7  ;;  %v2553_v29 = vadd.f32 %v2552_v51, %v2541_v23  ;;  %v2542_v16 = vmul.f32 %v9158_v46, %v9158_v46 }
 0x8bb   :  { %v9171_v63 = vadd.f32 %v9091_v0, %v2467_v47  ;;  %v2468_v32 = vmul.f32 0.8, %v2452_v17  ;;  %v2453_v33 = vmax.f32 %v2437_v31, 0.0  ;;  %v2438_v60 = vadd.f32 %v9043_v6, %v2411_v26 }
 0x8bc   :  { %v2395_v3 = vpop.f32.mrf.mxu1  ;;  %v2412_v11 = vmul.f32 %v2393_v14, %v10430_v15  ;;  %v2522_v24 = vadd.f32 %v2521_v5, %v9158_v46  ;;  %v2543_v7 = vmul.f32 %v9163_v28, %v9163_v28  ;;  %v2510_v26 = vadd.f32 %v2509_v18, %v9163_v28 }
 0x8bd   :  { %v2413_v58 = vmul.f32 %v2395_v3, %v10430_v15  ;;  %v9182_v19 = vadd.f32 %v9094_v30, %v2468_v32  ;;  %v2469_v31 = vmul.f32 0.8, %v2453_v33  ;;  %v2454_v47 = vmax.f32 %v2438_v60, 0.0 }
 0x8be   :  { %v2439_v23 = vadd.f32 %v9039_v21, %v2412_v11  ;;  %v2523_v17 = vadd.f32 %v2522_v24, %v9168_v55  ;;  %v2544_v14 = vmul.f32 %v9168_v55, %v9168_v55  ;;  %v2545_v5 = vmul.f32 %v9171_v63, %v9171_v63 }
 0x8bf   :  { %v2440_v51 = vadd.f32 %v9043_v6, %v2413_v58  ;;  %v9193_v3 = vadd.f32 %v9102_v8, %v2469_v31  ;;  %v2566_v32 = vadd.f32 %v2565_v25, %v2542_v16  ;;  %v2470_v33 = vmul.f32 0.8, %v2454_v47 }
 0x8c0   :  { %v2455_v30 = vmax.f32 %v2439_v23, 0.0  ;;  %v2554_v60 = vadd.f32 %v2553_v29, %v2543_v7  ;;  %v2511_v21 = vadd.f32 %v2510_v26, %v9171_v63  ;;  %v2524_v6 = vadd.f32 %v2523_v17, %v9182_v19 }
 0x8c1   :  { %v2456_v18 = vmax.f32 %v2440_v51, 0.0  ;;  %v2546_v11 = vmul.f32 %v9182_v19, %v9182_v19  ;;  %v2547_v58 = vmul.f32 %v9193_v3, %v9193_v3  ;;  %v9202_v24 = vadd.f32 %v9115_v54, %v2470_v33 }
 0x8c2   :  { %v2471_v31 = vmul.f32 0.8, %v2455_v30  ;;  %v2567_v25 = vadd.f32 %v2566_v32, %v2544_v14  ;;  %v2555_v16 = vadd.f32 %v2554_v60, %v2545_v5  ;;  %v2512_v47 = vadd.f32 %v2511_v21, %v9193_v3 }
 0x8c3   :  { %v2472_v8 = vmul.f32 0.8, %v2456_v18  ;;  %v2525_v29 = vadd.f32 %v2524_v6, %v9202_v24  ;;  %v2548_v7 = vmul.f32 %v9202_v24, %v9202_v24 }
 0x8c4   :  { %v9209_v26 = vadd.f32 %v9118_v39, %v2471_v31  ;;  %v2568_v51 = vadd.f32 %v2567_v25, %v2546_v11  ;;  %v2556_v17 = vadd.f32 %v2555_v16, %v2547_v58 }
 0x8c5   :  { %v9212_v23 = vadd.f32 %v9122_v41, %v2472_v8 }
 0x8c6   :  { %v2513_v30 = vadd.f32 %v2512_v47, %v9209_v26  ;;  %v2549_v14 = vmul.f32 %v9209_v26, %v9209_v26  ;;  %v2569_v32 = vadd.f32 %v2568_v51, %v2548_v7 }
 0x8c7   :  { %v2526_v5 = vadd.f32 %v2525_v29, %v9212_v23  ;;  %v2550_v33 = vmul.f32 %v9212_v23, %v9212_v23 }
 0x8c8   :  { %v2514_v18 = vrot.slane %v2513_v30, 4  ;;  %v2557_v60 = vadd.f32 %v2556_v17, %v2549_v14 }
 0x8c9   :  { %v2527_v21 = vrot.slane %v2526_v5, 4  ;;  %v2570_v6 = vadd.f32 %v2569_v32, %v2550_v33 }
 0x8ca   :  { %v2515_v31 = vadd.f32 %v2514_v18, %v2513_v30  ;;  %v2558_v8 = vrot.slane %v2557_v60, 4 }
 0x8cb   :  { %v2528_v41 = vadd.f32 %v2527_v21, %v2526_v5  ;;  %v2571_v11 = vrot.slane %v2570_v6, 4 }
 0x8cc   :  { %v2516_v58 = vrot.slane %v2515_v31, 2  ;;  %v2559_v25 = vadd.f32 %v2558_v8, %v2557_v60 }
 0x8cd   :  { %v2529_v16 = vrot.slane %v2528_v41, 2  ;;  %v2572_v47 = vadd.f32 %v2571_v11, %v2570_v6 }
 0x8ce   :  { %v2517_v39 = vadd.f32 %v2516_v58, %v2515_v31  ;;  %v2560_v54 = vrot.slane %v2559_v25, 2 }
 0x8cf   :  { %v2530_v15 = vadd.f32 %v2529_v16, %v2528_v41  ;;  %v2573_v29 = vrot.slane %v2572_v47, 2 }
 0x8d0   :  { %v2518_v7 = vrot.slane %v2517_v39, 1  ;;  %v2561_v51 = vadd.f32 %v2560_v54, %v2559_v25 }
 0x8d1   :  { %v2531_v0 = vrot.slane %v2530_v15, 1  ;;  %v2574_v42 = vadd.f32 %v2573_v29, %v2572_v47 }
 0x8d2   :  { %v2519_v52 = vadd.f32 %v2518_v7, %v2517_v39  ;;  %v2562_v17 = vrot.slane %v2561_v51, 1 }
 0x8d3   :  { %v2532_v14 = vadd.f32 %v2531_v0, %v2530_v15  ;;  %v2575_v32 = vrot.slane %v2574_v42, 1 }
 0x8d4   :  { %v9220_v30 = vmul.f32 0.015625, %v2519_v52  ;;  %v2563_v5 = vadd.f32 %v2562_v17, %v2561_v51  ;;  %v2505_v52 = vld [vmem:[%s10156_s17] sm:$0x3] }
 0x8d5   :  { %v9222_v33 = vmul.f32 0.015625, %v2532_v14  ;;  %v2576_v18 = vadd.f32 %v2575_v32, %v2574_v42  ;;  %v2506_v42 = vld [vmem:[%s10157_s18] sm:$0x3]  ;;  %v9235_v11 = vrot.slane %v2505_v52, %v8558_v20  ;;  %v9238_v58 = vrot.slane %v2505_v52, %v8556_v22 }
 0x8d6   :  { %v2577_v60 = vmul.f32 0.015625, %v2563_v5  ;;  %v2579_v21 = vmul.f32 %v9220_v30, %v9220_v30  ;;  %v9241_v25 = vrot.slane %v2506_v42, %v8558_v20  ;;  %v9244_v16 = vrot.slane %v2506_v42, %v8556_v22 }
 0x8d7   :  { %v2580_v41 = vmul.f32 %v9222_v33, %v9222_v33  ;;  %v2578_v54 = vmul.f32 0.015625, %v2576_v18  ;;  %v2585_v47 = vsub.f32 %v9098_v13, %v9220_v30  ;;  %v2587_v29 = vsub.f32 %v9080_v44, %v9220_v30 }
 0x8d8   :  { %v2581_v6 = vsub.f32 %v2577_v60, %v2579_v21  ;;  %v2589_v7 = vsub.f32 %v9127_v9, %v9220_v30  ;;  %v2591_v51 = vsub.f32 %v9142_v49, %v9220_v30  ;;  %v2586_v14 = vsub.f32 %v9105_v37, %v9222_v33 }
 0x8d9   :  { %v2582_v31 = vsub.f32 %v2578_v54, %v2580_v41  ;;  %v2588_v32 = vsub.f32 %v9110_v1, %v9222_v33  ;;  %v2590_v13 = vsub.f32 %v9130_v56, %v9222_v33  ;;  %v2592_v44 = vsub.f32 %v9158_v46, %v9222_v33 }
 0x8da   :  { %v2583_v39 = vmax.f32 %v2581_v6, 0.0  ;;  %v2600_v1 = vsub.f32 %v9212_v23, %v9222_v33  ;;  %v2594_v6 = vsub.f32 %v9168_v55, %v9222_v33 }
 0x8db   :  { %v2584_v8 = vmax.f32 %v2582_v31, 0.0 }
 0x8dc   :  { %v2601_v0 = vadd.f32 1e-05, %v2583_v39 }
 0x8dd   :  { %v2602_v15 = vadd.f32 1e-05, %v2584_v8  ;;  %v2677_v8 = vld [vmem:[#allocation7 + $0x88] sm:$0xff] }
 0x8de   :  { %7444 = vrsqrt.f32 %v2601_v0  ;;  %v2676_v0 = vld [vmem:[#allocation7 + $0x80] sm:$0xff] }
 0x8df   :  { %7446 = vrsqrt.f32 %v2602_v15  ;;  %v2678_v15 = vld [vmem:[#allocation7 + $0x90] sm:$0xff] }
 0x8eb   :  { %v9254_v17 = vpop.eup %7444 }
 0x8ec   :  { %v7447_v5 = vpop.eup %7446  ;;  %v2605_v9 = vmul.f32 %v9254_v17, %v2585_v47  ;;  %v2607_v18 = vmul.f32 %v9254_v17, %v2587_v29  ;;  %v2609_v49 = vmul.f32 %v9254_v17, %v2589_v7  ;;  %v2611_v60 = vmul.f32 %v9254_v17, %v2591_v51  ;;  %v2679_v47 = vld [vmem:[#allocation7 + $0x98] sm:$0xff]  ;;  %v2681_v7 = vld [vmem:[#allocation7 + $0xa8] sm:$0xff] }
 0x8ed   :  { %v2606_v21 = vmul.f32 %v7447_v5, %v2586_v14  ;;  %v2608_v37 = vmul.f32 %v7447_v5, %v2588_v32  ;;  %v2610_v41 = vmul.f32 %v7447_v5, %v2590_v13  ;;  %v2612_v54 = vmul.f32 %v7447_v5, %v2592_v44  ;;  %v2683_v51 = vld [vmem:[#allocation7 + $0xb8] sm:$0xff] }
 0x8ee   :  { %v2632_v56 = vmul.f32 %v9235_v11, %v2605_v9  ;;  %v2634_v46 = vmul.f32 %v9235_v11, %v2607_v18  ;;  %v2636_v55 = vmul.f32 %v9235_v11, %v2609_v49  ;;  %v2638_v14 = vmul.f32 %v9235_v11, %v2611_v60 }
 0x8ef   :  { %v2633_v31 = vmul.f32 %v9238_v58, %v2606_v21  ;;  %v2635_v39 = vmul.f32 %v9238_v58, %v2608_v37  ;;  %v2637_v52 = vmul.f32 %v9238_v58, %v2610_v41  ;;  %v2639_v42 = vmul.f32 %v9238_v58, %v2612_v54 }
 0x8f0   :  { %v2659_v23 = vadd.f32 %v9241_v25, %v2632_v56  ;;  %v2661_v29 = vadd.f32 %v9241_v25, %v2634_v46  ;;  %v2596_v37 = vsub.f32 %v9182_v19, %v9222_v33  ;;  %v2593_v41 = vsub.f32 %v9163_v28, %v9220_v30  ;;  %v2682_v28 = vld [vmem:[#allocation7 + $0xb0] sm:$0xff] }
 0x8f1   :  { %v2660_v32 = vadd.f32 %v9244_v16, %v2633_v31  ;;  %v2662_v13 = vadd.f32 %v9244_v16, %v2635_v39  ;;  %v2664_v44 = vadd.f32 %v9244_v16, %v2637_v52  ;;  %v2666_v9 = vadd.f32 %v9244_v16, %v2639_v42 }
 0x8f2   :  { %v2692_v18 = vmul.f32 %v2676_v0, %v2659_v23  ;;  %v2694_v21 = vmul.f32 %v2678_v15, %v2661_v29  ;;  %v2614_v46 = vmul.f32 %v7447_v5, %v2594_v6  ;;  %v2616_v31 = vmul.f32 %v7447_v5, %v2596_v37  ;;  %v2680_v23 = vld [vmem:[#allocation7 + $0xa0] sm:$0xff] }
 0x8f3   :  { %v2693_v54 = vmul.f32 %v2677_v8, %v2660_v32  ;;  %v2695_v49 = vmul.f32 %v2679_v47, %v2662_v13  ;;  %v2697_v56 = vmul.f32 %v2681_v7, %v2664_v44  ;;  %v2699_v60 = vmul.f32 %v2683_v51, %v2666_v9 }
 0x8f4   :  { %v2595_v39 = vsub.f32 %v9171_v63, %v9220_v30  ;;  %v2598_v52 = vsub.f32 %v9202_v24, %v9222_v33  ;;  %v2758_v15 = vpack.c.bf16 %v2694_v21, %v2692_v18  ;;  %v2663_v42 = vadd.f32 %v9241_v25, %v2636_v55  ;;  %v2685_v55 = vld [vmem:[#allocation7 + $0xc8] sm:$0xff] }
 0x8f5   :  { %v2759_v0 = vpack.c.bf16 %v2695_v49, %v2693_v54  ;;  %v2665_v19 = vadd.f32 %v9241_v25, %v2638_v14  ;;  %v2641_v8 = vmul.f32 %v9238_v58, %v2614_v46  ;;  %v2643_v47 = vmul.f32 %v9238_v58, %v2616_v31  ;;  %v2687_v14 = vld [vmem:[#allocation7 + $0xd8] sm:$0xff] }
 0x8f6   :  { %v2613_v6 = vmul.f32 %v9254_v17, %v2593_v41  ;;  %v2615_v29 = vmul.f32 %v9254_v17, %v2595_v39  ;;  %v2761_v63 = vpack.c.bf16 %v2699_v60, %v2697_v56  ;;  %v2618_v7 = vmul.f32 %v7447_v5, %v2598_v52  ;;  %v2684_v39 = vld [vmem:[#allocation7 + $0xc0] sm:$0xff]  ;;  %v2686_v52 = vld [vmem:[#allocation7 + $0xd0] sm:$0xff] }
 0x8f7   :  { %2900 = vmatprep.mubr.bf16.mxu0 %v2759_v0  ;;  %v2620_v24 = vmul.f32 %v7447_v5, %v2600_v1  ;;  %v2668_v33 = vadd.f32 %v9244_v16, %v2641_v8  ;;  %v2670_v51 = vadd.f32 %v9244_v16, %v2643_v47  ;;  %v2696_v32 = vmul.f32 %v2680_v23, %v2663_v42 }
 0x8f8   :  { %2901 = vmatmul.mubr.bf16.vlgmr.msra.gmra.mxu0 %v2758_v15  ;;  %v2698_v13 = vmul.f32 %v2682_v28, %v2665_v19  ;;  %v2640_v44 = vmul.f32 %v9235_v11, %v2613_v6  ;;  %v2642_v9 = vmul.f32 %v9235_v11, %v2615_v29  ;;  %v2645_v37 = vmul.f32 %v9238_v58, %v2618_v7  ;;  %v2691_v15 = vld [vmem:[#allocation7 + $0xf8] sm:$0xff]  ;;  %v2688_v29 = vld [vmem:[#allocation7 + $0xe0] sm:$0xff] }
 0x8f9   :  { %2908 = vmatprep.mubr.bf16.mxu0 %v2761_v63  ;;  %v2701_v18 = vmul.f32 %v2685_v55, %v2668_v33  ;;  %v2703_v21 = vmul.f32 %v2687_v14, %v2670_v51  ;;  %v2647_v5 = vmul.f32 %v9238_v58, %v2620_v24  ;;  %v2599_v1 = vsub.f32 %v9209_v26, %v9220_v30  ;;  %v2689_v26 = vld [vmem:[#allocation7 + $0xe8] sm:$0xff] }
 0x8fa   :  { %v2597_v41 = vsub.f32 %v9193_v3, %v9220_v30  ;;  %v2760_v54 = vpack.c.bf16 %v2698_v13, %v2696_v32  ;;  %v2667_v49 = vadd.f32 %v9241_v25, %v2640_v44  ;;  %v2669_v56 = vadd.f32 %v9241_v25, %v2642_v9  ;;  %v7175_v33 = vld [vmem:[#allocation22 + $0x20] ss:$8 sps:$4 sm:$0xff]   ;;  %v7177_v51 = vld [vmem:[#allocation22 + $0x24] ss:$8 sps:$4 sm:$0xff]   ;;  %v7180_v55 = vld [vmem:[#allocation22 + $0x14] ss:$8 sps:$4 sm:$0xff]  }
 0x8fb   :  { %v2619_v46 = vmul.f32 %v9254_v17, %v2599_v1  ;;  %v2763_v31 = vpack.c.bf16 %v2703_v21, %v2701_v18  ;;  %v2672_v58 = vadd.f32 %v9244_v16, %v2645_v37  ;;  %v2674_v0 = vadd.f32 %v9244_v16, %v2647_v5  ;;  %v2690_v16 = vld [vmem:[#allocation7 + $0xf0] sm:$0xff]  ;;  %3046 = vmatprep.subr.bf16.mxu1 %v7177_v51  ;;  %v7186_v13 = vld [vmem:[#allocation19 + $0x174] ss:$8 sps:$4 sm:$0xff]   ;;  %v7190_v21 = vld [vmem:[#allocation19 + $0x150] ss:$8 sps:$4 sm:$0xff]  }
 0x8fc   :  { %v2617_v60 = vmul.f32 %v9254_v17, %v2597_v41  ;;  %v2700_v3 = vmul.f32 %v2684_v39, %v2667_v49  ;;  %v2702_v30 = vmul.f32 %v2686_v52, %v2669_v56  ;;  %3047 = vmatpush1.bf16.msra.mxu1 %v7175_v33  ;;  %v7183_v14 = vld [vmem:[#allocation22 + $0x4] ss:$8 sps:$4 sm:$0xff]   ;;  %v7181_v32 = vld [vmem:[#allocation22] ss:$8 sps:$4 sm:$0xff]   ;;  %3408 = vmatprep.subr.bf16.mxu0 %v7186_v13  ;;  %v7192_v18 = vld [vmem:[#allocation19 + $0x154] ss:$8 sps:$4 sm:$0xff]  }
 0x8fd   :  { %v2646_v19 = vmul.f32 %v9235_v11, %v2619_v46  ;;  %v2705_v23 = vmul.f32 %v2689_v26, %v2672_v58  ;;  %v2707_v28 = vmul.f32 %v2691_v15, %v2674_v0  ;;  %3048 = vmatprep.subr.bf16.mxu1 %v7180_v55  ;;  %v7189_v44 = vld [vmem:[#allocation19 + $0x164] ss:$8 sps:$4 sm:$0xff]   ;;  %v7187_v9 = vld [vmem:[#allocation19 + $0x160] ss:$8 sps:$4 sm:$0xff]   ;;  %v7198_v1 = vld [vmem:[#allocation19 + $0x134] ss:$8 sps:$4 sm:$0xff]  }
 0x8fe   :  { %v2644_v42 = vmul.f32 %v9235_v11, %v2617_v60  ;;  %v2762_v17 = vpack.c.bf16 %v2702_v30, %v2700_v3  ;;  %v7178_v11 = vld [vmem:[#allocation22 + $0x10] ss:$8 sps:$4 sm:$0xff]   ;;  %v7195_v37 = vld [vmem:[#allocation19 + $0x144] ss:$8 sps:$4 sm:$0xff]   ;;  %v7193_v5 = vld [vmem:[#allocation19 + $0x140] ss:$8 sps:$4 sm:$0xff]  }
 0x8ff   :  { %v2673_v47 = vadd.f32 %v9241_v25, %v2646_v19  ;;  %v2765_v6 = vpack.c.bf16 %v2707_v28, %v2705_v23  ;;  %v7196_v41 = vld [vmem:[#allocation19 + $0x130] ss:$8 sps:$4 sm:$0xff]   ;;  %v6426_v60 = vld [vmem:[%s10159_s20] ss:$0 sm:$0xff] }
 0x900   :  { %2909 = vmatmul.mubr.bf16.gmra.mxu0 %v2760_v54  ;;  %v2671_v8 = vadd.f32 %v9241_v25, %v2644_v42  ;;  %3049 = vmatpush1.bf16.msra.mxu1 %v7178_v11  ;;  %v7184_v25 = vld [vmem:[#allocation19 + $0x170] ss:$8 sps:$4 sm:$0xff]  }
 0x901   :  { %2916 = vmatprep.mubr.bf16.mxu0 %v2763_v31  ;;  %v2706_v7 = vmul.f32 %v2690_v16, %v2673_v47  ;;  %3050 = vmatprep.subr.bf16.mxu1 %v7183_v14 }
 0x902   :  { %v2704_v63 = vmul.f32 %v2688_v29, %v2671_v8  ;;  %3409 = vmatpush1.bf16.msra.mxu0 %v7184_v25 }
 0x903   :  { %3410 = vmatprep.subr.bf16.mxu0 %v7189_v44 }
 0x904   :  { %v2764_v24 = vpack.c.bf16 %v2706_v7, %v2704_v63  ;;  %3051 = vmatpush1.bf16.msra.mxu1 %v7181_v32 }
 0x906   :  { %3411 = vmatpush1.bf16.msra.mxu0 %v7187_v9 }
 0x907   :  { %3412 = vmatprep.subr.bf16.mxu0 %v7192_v18 }
 0x908   :  { %2917 = vmatmul.mubr.bf16.gmra.mxu0 %v2762_v17 }
 0x909   :  { %2924 = vmatprep.mubr.bf16.mxu0 %v2765_v6 }
 0x90a   :  { %3413 = vmatpush1.bf16.msra.mxu0 %v7190_v21 }
 0x90b   :  { %3414 = vmatprep.subr.bf16.mxu0 %v7195_v37 }
 0x90e   :  { %3415 = vmatpush1.bf16.msra.mxu0 %v7193_v5 }
 0x90f   :  { %3416 = vmatprep.subr.bf16.mxu0 %v7198_v1 }
 0x910   :  { %2925 = vmatmul.mubr.bf16.gmra.mxu0 %v2764_v24 }
 0x912   :  { %3417 = vmatpush1.bf16.msra.mxu0 %v7196_v41 }
 0x9b8   :  { %v6744_v54 = vpop.f32.mrf.mxu0 }
 0x9ba   :  { %v6745_v49 = vpop.f32.mrf.mxu0 }
 0x9bb   :  { %v6746_v56 = vadd.f32 %v6745_v49, %v6744_v54 }
 0x9bc   :  { %v6747_v46 = vpop.f32.mrf.mxu0 }
 0x9bd   :  { %v2903_v39 = vadd.f32 %v6746_v56, %v6426_v60  ;;  %v7201_v56 = vld [vmem:[#allocation19 + $0x124] ss:$8 sps:$4 sm:$0xff]  }
 0x9be   :  { %v6748_v31 = vpop.f32.mrf.mxu0  ;;  %3418 = vmatprep.subr.bf16.mxu0 %v7201_v56 }
 0x9bf   :  { %v6749_v52 = vadd.f32 %v6748_v31, %v6747_v46  ;;  %v2933_v15 = vmax.f32 %v2903_v39, 0.0  ;;  %v7199_v46 = vld [vmem:[#allocation19 + $0x120] ss:$8 sps:$4 sm:$0xff]   ;;  %v7204_v31 = vld [vmem:[#allocation19 + $0x114] ss:$8 sps:$4 sm:$0xff]  }
 0x9c0   :  { %v6750_v58 = vpop.f32.mrf.mxu0  ;;  %3419 = vmatpush1.bf16.msra.mxu0 %v7199_v46  ;;  %v7202_v39 = vld [vmem:[#allocation19 + $0x110] ss:$8 sps:$4 sm:$0xff]  }
 0x9c1   :  { %v2906_v0 = vadd.f32 %v6749_v52, %v6426_v60  ;;  %3420 = vmatprep.subr.bf16.mxu0 %v7204_v31  ;;  %v7207_v52 = vld [vmem:[#allocation19 + $0x104] ss:$8 sps:$4 sm:$0xff]  }
 0x9c2   :  { %v6751_v26 = vpop.f32.mrf.mxu0 }
 0x9c3   :  { %v2934_v3 = vmax.f32 %v2906_v0, 0.0  ;;  %v6752_v30 = vadd.f32 %v6751_v26, %v6750_v58  ;;  %v7205_v58 = vld [vmem:[#allocation19 + $0x100] ss:$8 sps:$4 sm:$0xff]   ;;  %v7210_v0 = vld [vmem:[#allocation19 + $0x1f4] ss:$8 sps:$4 sm:$0xff]  }
 0x9c4   :  { %v6753_v42 = vpop.f32.mrf.mxu0  ;;  %3421 = vmatpush1.bf16.msra.mxu0 %v7202_v39  ;;  %v7213_v26 = vld [vmem:[#allocation19 + $0x1e4] ss:$8 sps:$4 sm:$0xff]  }
 0x9c5   :  { %v2941_v19 = vpack.c.bf16 %v2934_v3, %v2933_v15  ;;  %v2911_v28 = vadd.f32 %v6752_v30, %v6426_v60  ;;  %3422 = vmatprep.subr.bf16.mxu0 %v7207_v52  ;;  %v7211_v15 = vld [vmem:[#allocation19 + $0x1e0] ss:$8 sps:$4 sm:$0xff]   ;;  %v7216_v3 = vld [vmem:[#allocation19 + $0x1d4] ss:$8 sps:$4 sm:$0xff]   ;;  %v7214_v30 = vld [vmem:[#allocation19 + $0x1d0] ss:$8 sps:$4 sm:$0xff]  }
 0x9c6   :  { %v6754_v23 = vpop.f32.mrf.mxu0 }
 0x9c7   :  { %v6755_v17 = vadd.f32 %v6754_v23, %v6753_v42  ;;  %3069 = vmatmul.mubr.bf16.vlgmr.msra.gmra.mxu1 %v2941_v19  ;;  %v2935_v29 = vmax.f32 %v2911_v28, 0.0  ;;  %v7219_v42 = vld [vmem:[#allocation19 + $0x1c4] ss:$8 sps:$4 sm:$0xff]   ;;  %v7217_v19 = vld [vmem:[#allocation19 + $0x1c0] ss:$8 sps:$4 sm:$0xff]  }
 0x9c8   :  { %v6756_v8 = vpop.f32.mrf.mxu0  ;;  %3078 = vmatprep.mubr.bf16.mxu1 %v10346_v12  ;;  %3423 = vmatpush1.bf16.msra.mxu0 %v7205_v58  ;;  %v7222_v23 = vld [vmem:[#allocation19 + $0x1b4] ss:$8 sps:$4 sm:$0xff]   ;;  %v7220_v28 = vld [vmem:[#allocation19 + $0x1b0] ss:$8 sps:$4 sm:$0xff]  }
 0x9c9   :  { %v2914_v47 = vadd.f32 %v6755_v17, %v6426_v60  ;;  %3424 = vmatprep.subr.bf16.mxu0 %v7210_v0  ;;  %v7225_v17 = vld [vmem:[#allocation19 + $0x1a4] ss:$8 sps:$4 sm:$0xff]  }
 0x9ca   :  { %v6757_v6 = vpop.f32.mrf.mxu0 }
 0x9cb   :  { %v2936_v16 = vmax.f32 %v2914_v47, 0.0  ;;  %v6758_v63 = vadd.f32 %v6757_v6, %v6756_v8  ;;  %v7223_v8 = vld [vmem:[#allocation19 + $0x1a0] ss:$8 sps:$4 sm:$0xff]   ;;  %v7228_v47 = vld [vmem:[#allocation19 + $0x194] ss:$8 sps:$4 sm:$0xff]  }
 0x9cc   :  { %v6759_v7 = vpop.f32.mrf.mxu0  ;;  %v7226_v6 = vld [vmem:[#allocation19 + $0x190] ss:$8 sps:$4 sm:$0xff]  }
 0x9cd   :  { %v2942_v24 = vpack.c.bf16 %v2936_v16, %v2935_v29  ;;  %v2919_v51 = vadd.f32 %v6758_v63, %v6426_v60  ;;  %v7231_v29 = vld [vmem:[#allocation19 + $0x184] ss:$8 sps:$4 sm:$0xff]   ;;  %v7229_v16 = vld [vmem:[#allocation19 + $0x180] ss:$8 sps:$4 sm:$0xff]   ;;  %v2757_v63 = vld [vmem:[%s10161_s22] sm:$0x3] }
 0x9ce   :  { %v6760_v33 = vpop.f32.mrf.mxu0 }
 0x9cf   :  { %v6761_v11 = vadd.f32 %v6760_v33, %v6759_v7  ;;  %3079 = vmatmul.mubr.bf16.gmra.mxu1 %v2942_v24  ;;  %v2937_v25 = vmax.f32 %v2919_v51, 0.0  ;;  %v9331_v7 = vrot.slane %v2757_v63, %v8558_v20  ;;  %v9334_v24 = vrot.slane %v2757_v63, %v8556_v22 }
 0x9d0   :  { %v6762_v55 = vpop.f32.mrf.mxu0  ;;  %3088 = vmatprep.mubr.bf16.mxu1 %v10346_v12 }
 0x9d1   :  { %v2922_v14 = vadd.f32 %v6761_v11, %v6426_v60 }
 0x9d2   :  { %v6763_v32 = vpop.f32.mrf.mxu0 }
 0x9d3   :  { %v2938_v13 = vmax.f32 %v2922_v14, 0.0  ;;  %v6764_v44 = vadd.f32 %v6763_v32, %v6762_v55 }
 0x9d4   :  { %v6765_v9 = vpop.f32.mrf.mxu0 }
 0x9d5   :  { %v2943_v18 = vpack.c.bf16 %v2938_v13, %v2937_v25  ;;  %v2927_v37 = vadd.f32 %v6764_v44, %v6426_v60 }
 0x9d6   :  { %v6766_v21 = vpop.f32.mrf.mxu0 }
 0x9d7   :  { %v6767_v5 = vadd.f32 %v6766_v21, %v6765_v9  ;;  %3089 = vmatmul.mubr.bf16.gmra.mxu1 %v2943_v18  ;;  %v2939_v41 = vmax.f32 %v2927_v37, 0.0 }
 0x9d8   :  { %3098 = vmatprep.mubr.bf16.mxu1 %v10346_v12 }
 0x9d9   :  { %v2930_v1 = vadd.f32 %v6767_v5, %v6426_v60  ;;  %v7208_v60 = vld [vmem:[#allocation19 + $0x1f0] ss:$8 sps:$4 sm:$0xff]  }
 0x9da   :  { %3425 = vmatpush2.bf16.msra.mxu0 %v7208_v60 }
 0x9db   :  { %v2940_v54 = vmax.f32 %v2930_v1, 0.0  ;;  %3426 = vmatprep.subr.bf16.mxu0 %v7213_v26 }
 0x9dd   :  { %v2944_v49 = vpack.c.bf16 %v2940_v54, %v2939_v41 }
 0x9de   :  { %3427 = vmatpush2.bf16.msra.mxu0 %v7211_v15 }
 0x9df   :  { %3099 = vmatmul.mubr.bf16.gmra.mxu1 %v2944_v49  ;;  %3428 = vmatprep.subr.bf16.mxu0 %v7216_v3 }
 0x9e0   :  { %3521 = vmatprep.mubr.bf16.mxu1 %v10346_v12 }
 0x9e2   :  { %3429 = vmatpush2.bf16.msra.mxu0 %v7214_v30 }
 0x9e3   :  { %3430 = vmatprep.subr.bf16.mxu0 %v7219_v42 }
 0x9e6   :  { %3431 = vmatpush2.bf16.msra.mxu0 %v7217_v19 }
 0x9e7   :  { %3432 = vmatprep.subr.bf16.mxu0 %v7222_v23 }
 0x9ea   :  { %3433 = vmatpush2.bf16.msra.mxu0 %v7220_v28 }
 0x9eb   :  { %3434 = vmatprep.subr.bf16.mxu0 %v7225_v17 }
 0x9ee   :  { %3435 = vmatpush2.bf16.msra.mxu0 %v7223_v8 }
 0x9ef   :  { %3436 = vmatprep.subr.bf16.mxu0 %v7228_v47 }
 0x9f2   :  { %3437 = vmatpush2.bf16.msra.mxu0 %v7226_v6 }
 0x9f3   :  { %3438 = vmatprep.subr.bf16.mxu0 %v7231_v29 }
 0x9f6   :  { %3439 = vmatpush2.bf16.msra.mxu0 %v7229_v16 }
 0xa87   :  { %v3070_v33 = vpop.f32.mrf.mxu1 }
 0xa88   :  { %v3071_v51 = vadd.f32 %v3070_v33, %v9331_v7 }
 0xa89   :  { %v3072_v11 = vpop.f32.mrf.mxu1 }
 0xa8a   :  { %v6459_v55 = vmul.f32 -1.442695, %v3071_v51  ;;  %v3073_v14 = vadd.f32 %v3072_v11, %v9334_v24 }
 0xa8b   :  { %v3074_v32 = vpop.f32.mrf.mxu1 }
 0xa8c   :  { %7448 = vpow2.f32 %v6459_v55  ;;  %v6460_v25 = vmul.f32 -1.442695, %v3073_v14  ;;  %v3075_v13 = vadd.f32 %v3074_v32, %v9331_v7 }
 0xa8d   :  { %v3076_v44 = vpop.f32.mrf.mxu1 }
 0xa8e   :  { %7450 = vpow2.f32 %v6460_v25  ;;  %v6461_v9 = vmul.f32 -1.442695, %v3075_v13  ;;  %v3077_v18 = vadd.f32 %v3076_v44, %v9334_v24 }
 0xa8f   :  { %v3080_v21 = vpop.f32.mrf.mxu1 }
 0xa90   :  { %7452 = vpow2.f32 %v6461_v9  ;;  %v6462_v37 = vmul.f32 -1.442695, %v3077_v18  ;;  %v3081_v5 = vadd.f32 %v3080_v21, %v9331_v7 }
 0xa91   :  { %v3082_v1 = vpop.f32.mrf.mxu1 }
 0xa92   :  { %7454 = vpow2.f32 %v6462_v37  ;;  %v6463_v41 = vmul.f32 -1.442695, %v3081_v5  ;;  %v3083_v54 = vadd.f32 %v3082_v1, %v9334_v24 }
 0xa93   :  { %v3084_v49 = vpop.f32.mrf.mxu1 }
 0xa94   :  { %7456 = vpow2.f32 %v6463_v41  ;;  %v6464_v56 = vmul.f32 -1.442695, %v3083_v54  ;;  %v3085_v46 = vadd.f32 %v3084_v49, %v9331_v7 }
 0xa95   :  { %v3086_v31 = vpop.f32.mrf.mxu1 }
 0xa96   :  { %7458 = vpow2.f32 %v6464_v56  ;;  %v6465_v39 = vmul.f32 -1.442695, %v3085_v46  ;;  %v3087_v52 = vadd.f32 %v3086_v31, %v9334_v24 }
 0xa97   :  { %v3090_v58 = vpop.f32.mrf.mxu1 }
 0xa98   :  { %7460 = vpow2.f32 %v6465_v39  ;;  %v6466_v0 = vmul.f32 -1.442695, %v3087_v52  ;;  %v3091_v60 = vadd.f32 %v3090_v58, %v9331_v7 }
 0xa99   :  { %v7449_v26 = vpop.eup %7448  ;;  %v3092_v15 = vpop.f32.mrf.mxu1 }
 0xa9a   :  { %v3157_v3 = vadd.f32 1.0, %v7449_v26  ;;  %7462 = vpow2.f32 %v6466_v0  ;;  %v6467_v30 = vmul.f32 -1.442695, %v3091_v60  ;;  %v3093_v42 = vadd.f32 %v3092_v15, %v9334_v24 }
 0xa9b   :  { %v7451_v19 = vpop.eup %7450  ;;  %v3094_v23 = vpop.f32.mrf.mxu1 }
 0xa9c   :  { %7464 = vrcp.f32 %v3157_v3  ;;  %v3158_v28 = vadd.f32 1.0, %v7451_v19  ;;  %v6468_v17 = vmul.f32 -1.442695, %v3093_v42  ;;  %v3095_v8 = vadd.f32 %v3094_v23, %v9331_v7 }
 0xa9d   :  { %v7453_v47 = vpop.eup %7452  ;;  %7466 = vpow2.f32 %v6467_v30  ;;  %v3096_v6 = vpop.f32.mrf.mxu1 }
 0xa9e   :  { %7468 = vrcp.f32 %v3158_v28  ;;  %v3159_v29 = vadd.f32 1.0, %v7453_v47  ;;  %v6469_v16 = vmul.f32 -1.442695, %v3095_v8  ;;  %v3097_v63 = vadd.f32 %v3096_v6, %v9334_v24 }
 0xa9f   :  { %v7455_v33 = vpop.eup %7454  ;;  %7470 = vpow2.f32 %v6468_v17  ;;  %v3100_v51 = vpop.f32.mrf.mxu1 }
 0xaa0   :  { %7472 = vrcp.f32 %v3159_v29  ;;  %v3160_v11 = vadd.f32 1.0, %v7455_v33  ;;  %v6470_v55 = vmul.f32 -1.442695, %v3097_v63  ;;  %v3101_v14 = vadd.f32 %v3100_v51, %v9331_v7 }
 0xaa1   :  { %v7457_v32 = vpop.eup %7456  ;;  %7474 = vpow2.f32 %v6469_v16  ;;  %v3102_v25 = vpop.f32.mrf.mxu1 }
 0xaa2   :  { %7476 = vrcp.f32 %v3160_v11  ;;  %v3161_v13 = vadd.f32 1.0, %v7457_v32  ;;  %v6471_v44 = vmul.f32 -1.442695, %v3101_v14  ;;  %v3103_v9 = vadd.f32 %v3102_v25, %v9334_v24 }
 0xaa3   :  { %v7459_v18 = vpop.eup %7458  ;;  %7478 = vpow2.f32 %v6470_v55  ;;  %v3104_v21 = vpop.f32.mrf.mxu1 }
 0xaa4   :  { %7480 = vrcp.f32 %v3161_v13  ;;  %v3162_v37 = vadd.f32 1.0, %v7459_v18  ;;  %v6472_v5 = vmul.f32 -1.442695, %v3103_v9  ;;  %v3105_v1 = vadd.f32 %v3104_v21, %v9331_v7 }
 0xaa5   :  { %v7461_v41 = vpop.eup %7460  ;;  %7482 = vpow2.f32 %v6471_v44  ;;  %v3106_v54 = vpop.f32.mrf.mxu1 }
 0xaa6   :  { %7484 = vrcp.f32 %v3162_v37  ;;  %v3163_v49 = vadd.f32 1.0, %v7461_v41  ;;  %v6473_v56 = vmul.f32 -1.442695, %v3105_v1  ;;  %v3107_v46 = vadd.f32 %v3106_v54, %v9334_v24 }
 0xaa7   :  { %v7463_v31 = vpop.eup %7462  ;;  %7486 = vpow2.f32 %v6472_v5 }
 0xaa8   :  { %7488 = vrcp.f32 %v3163_v49  ;;  %v3164_v39 = vadd.f32 1.0, %v7463_v31  ;;  %v6474_v52 = vmul.f32 -1.442695, %v3107_v46 }
 0xaa9   :  { %v7465_v58 = vpop.eup %7464  ;;  %7490 = vpow2.f32 %v6473_v56 }
 0xaaa   :  { %v7467_v0 = vpop.eup %7466  ;;  %7492 = vrcp.f32 %v3164_v39 }
 0xaab   :  { %v7469_v60 = vpop.eup %7468  ;;  %7494 = vpow2.f32 %v6474_v52  ;;  %v3165_v23 = vadd.f32 1.0, %v7467_v0 }
 0xaac   :  { %v7471_v7 = vpop.eup %7470 }
 0xaad   :  { %v7473_v26 = vpop.eup %7472  ;;  %v3166_v15 = vadd.f32 1.0, %v7471_v7 }
 0xaae   :  { %v7475_v3 = vpop.eup %7474  ;;  %v3240_v8 = vpack.c.bf16 %v7473_v26, %v7465_v58 }
 0xaaf   :  { %v7477_v30 = vpop.eup %7476  ;;  %v3167_v42 = vadd.f32 1.0, %v7475_v3  ;;  %7496 = vrcp.f32 %v3166_v15 }
 0xab0   :  { %v7479_v19 = vpop.eup %7478  ;;  %v3241_v24 = vpack.c.bf16 %v7477_v30, %v7469_v60 }
 0xab1   :  { %v7481_v28 = vpop.eup %7480  ;;  %v3168_v17 = vadd.f32 1.0, %v7479_v19  ;;  %7498 = vrcp.f32 %v3167_v42 }
 0xab2   :  { %v7483_v47 = vpop.eup %7482  ;;  %3440 = vmatprep.mubr.bf16.mxu0 %v3241_v24 }
 0xab3   :  { %v7485_v6 = vpop.eup %7484  ;;  %7500 = vrcp.f32 %v3168_v17  ;;  %3441 = vmatmul.mubr.bf16.vlgmr.msra.gmra.mxu0 %v3240_v8  ;;  %v3169_v14 = vadd.f32 1.0, %v7483_v47 }
 0xab4   :  { %v7487_v29 = vpop.eup %7486  ;;  %7502 = vrcp.f32 %v3165_v23 }
 0xab5   :  { %v7489_v16 = vpop.eup %7488  ;;  %v3170_v63 = vadd.f32 1.0, %v7487_v29 }
 0xab6   :  { %v7491_v33 = vpop.eup %7490  ;;  %v3242_v13 = vpack.c.bf16 %v7489_v16, %v7481_v28 }
 0xab7   :  { %v7493_v51 = vpop.eup %7492  ;;  %v3171_v11 = vadd.f32 1.0, %v7491_v33  ;;  %7504 = vrcp.f32 %v3170_v63 }
 0xab8   :  { %v7495_v55 = vpop.eup %7494  ;;  %v3243_v32 = vpack.c.bf16 %v7493_v51, %v7485_v6  ;;  %v10431_v51 = vld [vmem:[#allocation36_spill] sm:$0xff] }
 0xab9   :  { %v3172_v25 = vadd.f32 1.0, %v7495_v55  ;;  %7506 = vrcp.f32 %v3171_v11  ;;  %v10432_v11 = vld [vmem:[#allocation37_spill] sm:$0xff]  ;;  %v10433_v55 = vld [vmem:[#allocation38_spill] sm:$0xff] }
 0xaba   :  { %3450 = vmatprep.mubr.bf16.mxu0 %v3243_v32  ;;  %v10435_v32 = vld [vmem:[#allocation40_spill] sm:$0xff] }
 0xabb   :  { %7508 = vrcp.f32 %v3172_v25  ;;  %3451 = vmatmul.mubr.bf16.gmra.mxu0 %v3242_v13  ;;  %v10436_v25 = vld [vmem:[#allocation41_spill] sm:$0xff]  ;;  %v10437_v13 = vld [vmem:[#allocation42_spill] sm:$0xff] }
 0xabc   :  { %7510 = vrcp.f32 %v3169_v14  ;;  %v7497_v44 = vpop.eup %7496  ;;  %v10434_v14 = vld [vmem:[#allocation39_spill] sm:$0xff] }
 0xabe   :  { %v7499_v9 = vpop.eup %7498 }
 0xac0   :  { %v7501_v18 = vpop.eup %7500 }
 0xac1   :  { %v7503_v21 = vpop.eup %7502  ;;  %v3245_v37 = vpack.c.bf16 %v7501_v18, %v7497_v44 }
 0xac2   :  { %v3244_v5 = vpack.c.bf16 %v7499_v9, %v7503_v21 }
 0xac3   :  { %3460 = vmatprep.mubr.bf16.mxu0 %v3245_v37 }
 0xac4   :  { %3461 = vmatmul.mubr.bf16.gmra.mxu0 %v3244_v5  ;;  %v7505_v1 = vpop.eup %7504 }
 0xac6   :  { %v7507_v41 = vpop.eup %7506 }
 0xac8   :  { %v7509_v54 = vpop.eup %7508 }
 0xac9   :  { %v7511_v49 = vpop.eup %7510  ;;  %v3247_v56 = vpack.c.bf16 %v7509_v54, %v7505_v1 }
 0xaca   :  { %v3246_v46 = vpack.c.bf16 %v7507_v41, %v7511_v49 }
 0xacb   :  { %3470 = vmatprep.mubr.bf16.mxu0 %v3247_v56 }
 0xacc   :  { %3471 = vmatmul.mubr.bf16.gmra.mxu0 %v3246_v46 }
 0xacd   :  { %3682 = vmatprep.mubr.bf16.mxu0 %v10346_v12 }
 0xb73   :  { %v3442_v31 = vpop.f32.mrf.mxu0 }
 0xb75   :  { %v3444_v39 = vpop.f32.mrf.mxu0 }
 0xb77   :  { %v3446_v52 = vpop.f32.mrf.mxu0 }
 0xb78   :  { %v3481_v33 = vpack.c.bf16 %v3446_v52, %v3442_v31 }
 0xb79   :  { %v3448_v58 = vpop.f32.mrf.mxu0 }
 0xb7a   :  { %v3482_v63 = vpack.c.bf16 %v3448_v58, %v3444_v39 }
 0xb7b   :  { %v3452_v0 = vpop.f32.mrf.mxu0 }
 0xb7d   :  { %v3454_v60 = vpop.f32.mrf.mxu0 }
 0xb7f   :  { %v3456_v7 = vpop.f32.mrf.mxu0 }
 0xb80   :  { %v3483_v16 = vpack.c.bf16 %v3456_v7, %v3452_v0 }
 0xb81   :  { %v3458_v26 = vpop.f32.mrf.mxu0 }
 0xb82   :  { %v3484_v29 = vpack.c.bf16 %v3458_v26, %v3454_v60 }
 0xb84   :  { %v3462_v15 = vpop.f32.mrf.mxu0 }
 0xb86   :  { %v3464_v3 = vpop.f32.mrf.mxu0 }
 0xb88   :  { %v3466_v30 = vpop.f32.mrf.mxu0 }
 0xb89   :  { %v3485_v6 = vpack.c.bf16 %v3466_v30, %v3462_v15 }
 0xb8a   :  { %v3468_v42 = vpop.f32.mrf.mxu0 }
 0xb8b   :  { %v3486_v47 = vpack.c.bf16 %v3468_v42, %v3464_v3 }
 0xb8c   :  { %v3472_v19 = vpop.f32.mrf.mxu0 }
 0xb8e   :  { %v3474_v23 = vpop.f32.mrf.mxu0 }
 0xb90   :  { %v3476_v24 = vpop.f32.mrf.mxu0 }
 0xb91   :  { %v3487_v8 = vpack.c.bf16 %v3476_v24, %v3472_v19 }
 0xb92   :  { %v3478_v28 = vpop.f32.mrf.mxu0 }
 0xb93   :  { %v3488_v17 = vpack.c.bf16 %v3478_v28, %v3474_v23 }
 0xb95   :  { %3497 = vmatprep.subr.bf16.mxu1 %v3488_v17 }
 0xb96   :  { %3498 = vmatpush1.bf16.msra.mxu1 %v3487_v8 }
 0xb97   :  { %3499 = vmatprep.subr.bf16.mxu1 %v3486_v47 }
 0xb9a   :  { %3500 = vmatpush1.bf16.msra.mxu1 %v3485_v6 }
 0xb9b   :  { %3501 = vmatprep.subr.bf16.mxu1 %v3484_v29 }
 0xb9e   :  { %3502 = vmatpush1.bf16.msra.mxu1 %v3483_v16 }
 0xb9f   :  { %3503 = vmatprep.subr.bf16.mxu1 %v3482_v63 }
 0xba2   :  { %3504 = vmatpush1.bf16.msra.mxu1 %v3481_v33 }
 0xba5   :  { %6508 = vmatmul.mubr.msk.bf16.vlgmr.msra.gmra.mxu1 %vm713_vm0, %v10382_v27 }
 0xba6   :  { %3531 = vmatprep.mubr.bf16.mxu1 %v10346_v12 }
 0xbad   :  { %6509 = vmatmul.mubr.msk.bf16.gmra.mxu1 %vm713_vm0, %v10431_v51 }
 0xbae   :  { %3541 = vmatprep.mubr.bf16.mxu1 %v10346_v12 }
 0xbb5   :  { %6510 = vmatmul.mubr.msk.bf16.gmra.mxu1 %vm713_vm0, %v10432_v11 }
 0xbb6   :  { %3551 = vmatprep.mubr.bf16.mxu1 %v10346_v12 }
 0xbbd   :  { %6511 = vmatmul.mubr.msk.bf16.gmra.mxu1 %vm713_vm0, %v10433_v55 }
 0xbbe   :  { %3561 = vmatprep.mubr.bf16.mxu1 %v10346_v12 }
 0xbc5   :  { %6512 = vmatmul.mubr.msk.bf16.gmra.mxu1 %vm713_vm0, %v10434_v14 }
 0xbc6   :  { %3571 = vmatprep.mubr.bf16.mxu1 %v10346_v12 }
 0xbcd   :  { %6513 = vmatmul.mubr.msk.bf16.gmra.mxu1 %vm713_vm0, %v10435_v32 }
 0xbce   :  { %3581 = vmatprep.mubr.bf16.mxu1 %v10346_v12 }
 0xbd5   :  { %6514 = vmatmul.mubr.msk.bf16.gmra.mxu1 %vm713_vm0, %v10436_v25 }
 0xbd6   :  { %3591 = vmatprep.mubr.bf16.mxu1 %v10346_v12 }
 0xbdd   :  { %6515 = vmatmul.mubr.msk.bf16.gmra.mxu1 %vm713_vm0, %v10437_v13 }
 0xc65   :  { %v3523_v44 = vpop.f32.mrf.mxu1 }
 0xc66   :  { %v9379_v21 = vmul.f32 %v3523_v44, %v8484_v2 }
 0xc67   :  { %v9376_v9 = vpop.f32.mrf.mxu1 }
 0xc69   :  { %v3527_v18 = vpop.f32.mrf.mxu1 }
 0xc6a   :  { %v9382_v37 = vmul.f32 %v3527_v18, %v8488_v4 }
 0xc6b   :  { %v9384_v5 = vpop.f32.mrf.mxu1 }
 0xc6d   :  { %v3533_v41 = vpop.f32.mrf.mxu1 }
 0xc6e   :  { %v9389_v56 = vmul.f32 %v3533_v41, %v8478_v61 }
 0xc6f   :  { %v3535_v54 = vpop.f32.mrf.mxu1 }
 0xc70   :  { %v9395_v39 = vmul.f32 %v3535_v54, %v8478_v61 }
 0xc71   :  { %v3537_v49 = vpop.f32.mrf.mxu1 }
 0xc72   :  { %v9392_v46 = vmul.f32 %v3537_v49, %v8480_v62 }
 0xc73   :  { %v3539_v31 = vpop.f32.mrf.mxu1 }
 0xc74   :  { %v9400_v58 = vmul.f32 %v3539_v31, %v8480_v62 }
 0xc75   :  { %v9402_v0 = vpop.f32.mrf.mxu1 }
 0xc77   :  { %v3545_v7 = vpop.f32.mrf.mxu1 }
 0xc79   :  { %v3547_v26 = vpop.f32.mrf.mxu1 }
 0xc7b   :  { %v3549_v15 = vpop.f32.mrf.mxu1 }
 0xc7d   :  { %v3553_v3 = vpop.f32.mrf.mxu1 }
 0xc7f   :  { %v3555_v30 = vpop.f32.mrf.mxu1 }
 0xc81   :  { %v3557_v42 = vpop.f32.mrf.mxu1 }
 0xc83   :  { %v3559_v19 = vpop.f32.mrf.mxu1 }
 0xc85   :  { %v3563_v23 = vpop.f32.mrf.mxu1 }
 0xc87   :  { %v3565_v24 = vpop.f32.mrf.mxu1 }
 0xc89   :  { %v3567_v28 = vpop.f32.mrf.mxu1 }
 0xc8b   :  { %v3569_v17 = vpop.f32.mrf.mxu1 }
 0xc8d   :  { %v3573_v8 = vpop.f32.mrf.mxu1 }
 0xc8f   :  { %v3575_v47 = vpop.f32.mrf.mxu1 }
 0xc91   :  { %v3577_v6 = vpop.f32.mrf.mxu1 }
 0xc93   :  { %v3579_v29 = vpop.f32.mrf.mxu1 }
 0xc94   :  { %v3625_v14 = vmul.f32 %v3579_v29, %v8442_v43  ;;  %v10440_v29 = vpack.c.bf16 %v9392_v46, %v9389_v56  ;;  %v7232_v56 = vld [vmem:[#allocation20 + $0xf8] sm:$0xff]  }
 0xc95   :  { %v3583_v16 = vpop.f32.mrf.mxu1  ;;  %v7233_v46 = vld [vmem:[#allocation20 + $0xb8] sm:$0xff]   ;;  %6768 = vmatprep.subr.bf16.mxu1 %v7232_v56 }
 0xc96   :  { %6769 = vmatpush3.bf16.msra.mxu1 %v7233_v46 }
 0xc97   :  { %v3585_v63 = vpop.f32.mrf.mxu1 }
 0xc98   :  { %v3627_v61 = vmul.f32 %v3585_v63, %v8432_v38 }
 0xc99   :  { %v3587_v33 = vpop.f32.mrf.mxu1 }
 0xc9a   :  { %v3628_v25 = vmul.f32 %v3587_v33, %v8436_v40  ;;  %v7237_v33 = vld [vmem:[#allocation20 + $0xa8] sm:$0xff]  }
 0xc9b   :  { %v3589_v44 = vpop.f32.mrf.mxu1 }
 0xc9c   :  { %v3629_v1 = vmul.f32 %v3589_v44, %v8436_v40  ;;  %v3623_v44 = vmul.f32 %v3575_v47, %v8470_v57 }
 0xc9d   :  { %v3593_v18 = vpop.f32.mrf.mxu1 }
 0xc9e   :  { %v3630_v62 = vmul.f32 %v3593_v18, %v8424_v34  ;;  %v3647_v55 = vpack.c.bf16 %v3629_v1, %v3627_v61  ;;  %v3621_v18 = vmul.f32 %v3569_v17, %v8452_v48  ;;  %v3645_v63 = vpack.c.bf16 %v3625_v14, %v3623_v44  ;;  %v7240_v44 = vld [vmem:[#allocation20 + $0xd8] sm:$0xff]  }
 0xc9f   :  { %v3595_v41 = vpop.f32.mrf.mxu1  ;;  %v3620_v61 = vmul.f32 %v3567_v28, %v8452_v48  ;;  %v3616_v14 = vmul.f32 %v3557_v42, %v8462_v53  ;;  %v3613_v17 = vmul.f32 %v3549_v15, %v8474_v59  ;;  %v10438_v28 = vld [vmem:[#allocation55_spill] sm:$0xff]  ;;  %v3605_v15 = vmul.f32 %v9384_v5, %v8488_v4 }
 0xca0   :  { %v3631_v52 = vmul.f32 %v3595_v41, %v8424_v34  ;;  %v3624_v41 = vmul.f32 %v3577_v6, %v8442_v43  ;;  %v3611_v47 = vmul.f32 %v3545_v7, %v10438_v28  ;;  %v10439_v7 = vpack.c.bf16 %v9400_v58, %v9395_v39  ;;  %v7657_v5 = vld [vmem:[#allocation5 + $0x8] sm:$0xff]   ;;  %v7659_v39 = vld [vmem:[#allocation5 + $0x18] sm:$0xff]  }
 0xca1   :  { %v3597_v54 = vpop.f32.mrf.mxu1  ;;  %v7236_v58 = vld [vmem:[#allocation20 + $0xe8] sm:$0xff]  }
 0xca2   :  { %v3632_v49 = vmul.f32 %v3597_v54, %v8426_v35  ;;  %v3626_v54 = vmul.f32 %v3583_v16, %v8432_v38  ;;  %v7656_v16 = vld [vmem:[#allocation5] sm:$0xff]  }
 0xca3   :  { %v3599_v31 = vpop.f32.mrf.mxu1 }
 0xca4   :  { %v3633_v60 = vmul.f32 %v3599_v31, %v8426_v35  ;;  %v3648_v32 = vpack.c.bf16 %v3632_v49, %v3630_v62  ;;  %v3646_v31 = vpack.c.bf16 %v3628_v25, %v3626_v54  ;;  %v3619_v62 = vmul.f32 %v3565_v24, %v8446_v45  ;;  %v7238_v49 = vld [vmem:[#allocation20 + $0xe0] sm:$0xff]  }
 0xca5   :  { %v3615_v25 = vmul.f32 %v3555_v30, %v8456_v50  ;;  %v3614_v24 = vmul.f32 %v3553_v3, %v8456_v50  ;;  %v3610_v30 = vmul.f32 %v9402_v0, %v10438_v28  ;;  %v3603_v3 = vmul.f32 %v9376_v9, %v8484_v2  ;;  %v7658_v9 = vld [vmem:[#allocation5 + $0x10] sm:$0xff]  }
 0xca6   :  { %v3649_v13 = vpack.c.bf16 %v3633_v60, %v3631_v52  ;;  %v3622_v52 = vmul.f32 %v3573_v8, %v8470_v57  ;;  %v3643_v1 = vpack.c.bf16 %v3621_v18, %v3619_v62  ;;  %v10441_v0 = vpack.c.bf16 %v9382_v37, %v9379_v21  ;;  %v7234_v21 = vld [vmem:[#allocation20 + $0xf0] sm:$0xff]   ;;  %v7239_v54 = vld [vmem:[#allocation20 + $0xa0] sm:$0xff]  }
 0xca7   :  { %v3640_v6 = vpack.c.bf16 %v3616_v14, %v3614_v24  ;;  %v7235_v37 = vld [vmem:[#allocation20 + $0xb0] sm:$0xff]   ;;  %6770 = vmatprep.subr.bf16.mxu1 %v7234_v21  ;;  %v7246_v62 = vld [vmem:[#allocation20 + $0xc0] sm:$0xff]  }
 0xca8   :  { %3650 = vmatprep.subr.bf16.mxu0 %v3649_v13  ;;  %v3644_v13 = vpack.c.bf16 %v3624_v41, %v3622_v52  ;;  %6771 = vmatpush3.bf16.msra.mxu1 %v7235_v37  ;;  %v7241_v41 = vld [vmem:[#allocation20 + $0x98] sm:$0xff]   ;;  %v7243_v18 = vld [vmem:[#allocation20 + $0x90] sm:$0xff]   ;;  %v7245_v52 = vld [vmem:[#allocation20 + $0x88] sm:$0xff]  }
 0xca9   :  { %3651 = vmatpush1.bf16.msra.mxu0 %v3648_v32  ;;  %v3617_v32 = vmul.f32 %v3559_v19, %v8462_v53  ;;  %v3612_v19 = vmul.f32 %v3547_v26, %v8474_v59  ;;  %v3635_v26 = vpack.c.bf16 %v3605_v15, %v3603_v3  ;;  %6772 = vmatprep.subr.bf16.mxu1 %v7236_v58  ;;  %v7254_v14 = vld [vmem:[#allocation22 + $0xd0] ss:$8 sps:$4 sm:$0xff]   ;;  %v7262_v24 = vld [vmem:[#allocation22 + $0xb4] ss:$8 sps:$4 sm:$0xff]  }
 0xcaa   :  { %3652 = vmatprep.subr.bf16.mxu0 %v3647_v55  ;;  %v3618_v55 = vmul.f32 %v3563_v23, %v8446_v45  ;;  %v3639_v23 = vpack.c.bf16 %v3613_v17, %v3611_v47  ;;  %v6475_v17 = vld [vmem:[%s10155_s16 + $0x2] sm:$0x3] }
 0xcab   :  { %v3641_v8 = vpack.c.bf16 %v3617_v32, %v3615_v25  ;;  %v3638_v42 = vpack.c.bf16 %v3612_v19, %v3610_v30  ;;  %v7250_v32 = vld [vmem:[#allocation22 + $0xf4] ss:$8 sps:$4 sm:$0xff]   ;;  %v9452_v19 = vrot.slane %v6475_v17, %v8558_v20  ;;  %v9456_v30 = vrot.slane %v6475_v17, %v8556_v22  ;;  %v7260_v15 = vld [vmem:[#allocation22 + $0xb0] ss:$8 sps:$4 sm:$0xff]  }
 0xcac   :  { %v3642_v60 = vpack.c.bf16 %v3620_v61, %v3618_v55  ;;  %6773 = vmatpush3.bf16.msra.mxu1 %v7237_v33  ;;  %v7247_v61 = vld [vmem:[#allocation20 + $0x80] sm:$0xff]   ;;  %v7256_v25 = vld [vmem:[#allocation22 + $0xd4] ss:$8 sps:$4 sm:$0xff]  }
 0xcad   :  { %3653 = vmatpush1.bf16.msra.mxu0 %v3646_v31  ;;  %6774 = vmatprep.subr.bf16.mxu1 %v7238_v49  ;;  %v7242_v31 = vld [vmem:[#allocation20 + $0xd0] sm:$0xff]   ;;  %v7251_v55 = vld [vmem:[#allocation22 + $0xe0] ss:$8 sps:$4 sm:$0xff]   ;;  %v10444_v33 = vld [vmem:[#allocation66_spill] sm:$0xff] }
 0xcae   :  { %3654 = vmatprep.subr.bf16.mxu0 %v3645_v63  ;;  %v7244_v63 = vld [vmem:[#allocation20 + $0xc8] sm:$0xff]  }
 0xcb0   :  { %6775 = vmatpush3.bf16.msra.mxu1 %v7239_v54 }
 0xcb1   :  { %3655 = vmatpush1.bf16.msra.mxu0 %v3644_v13  ;;  %6776 = vmatprep.subr.bf16.mxu1 %v7240_v44  ;;  %v7248_v13 = vld [vmem:[#allocation22 + $0xf0] ss:$8 sps:$4 sm:$0xff]  }
 0xcb2   :  { %3656 = vmatprep.subr.bf16.mxu0 %v3643_v1  ;;  %v7253_v1 = vld [vmem:[#allocation22 + $0xe4] ss:$8 sps:$4 sm:$0xff]  }
 0xcb4   :  { %6777 = vmatpush3.bf16.msra.mxu1 %v7241_v41 }
 0xcb5   :  { %3657 = vmatpush1.bf16.msra.mxu0 %v3642_v60  ;;  %6778 = vmatprep.subr.bf16.mxu1 %v7242_v31  ;;  %v7259_v60 = vld [vmem:[#allocation22 + $0xc4] ss:$8 sps:$4 sm:$0xff]  }
 0xcb6   :  { %3658 = vmatprep.subr.bf16.mxu0 %v3641_v8  ;;  %v7257_v8 = vld [vmem:[#allocation22 + $0xc0] ss:$8 sps:$4 sm:$0xff]  }
 0xcb8   :  { %6779 = vmatpush3.bf16.msra.mxu1 %v7243_v18 }
 0xcb9   :  { %3659 = vmatpush1.bf16.msra.mxu0 %v3640_v6  ;;  %6780 = vmatprep.subr.bf16.mxu1 %v7244_v63  ;;  %v10442_v6 = vld [vmem:[#allocation64_spill] sm:$0xff] }
 0xcba   :  { %3660 = vmatprep.subr.bf16.mxu0 %v3639_v23 }
 0xcbc   :  { %6781 = vmatpush3.bf16.msra.mxu1 %v7245_v52 }
 0xcbd   :  { %3661 = vmatpush1.bf16.msra.mxu0 %v3638_v42  ;;  %6782 = vmatprep.subr.bf16.mxu1 %v7246_v62 }
 0xcbe   :  { %3662 = vmatprep.subr.bf16.mxu0 %v10439_v7 }
 0xcc0   :  { %6783 = vmatpush3.bf16.msra.mxu1 %v7247_v61  ;;  %v10445_v61 = vld [vmem:[#allocation44_spill] sm:$0xff] }
 0xcc1   :  { %3663 = vmatpush1.bf16.msra.mxu0 %v10440_v29 }
 0xcc2   :  { %3664 = vmatprep.subr.bf16.mxu0 %v3635_v26 }
 0xcc5   :  { %3665 = vmatpush1.bf16.msra.mxu0 %v10441_v0  ;;  %v10443_v0 = vld [vmem:[#allocation65_spill] sm:$0xff] }
 0xcc6   :  { %4351 = vmatprep.subr.bf16.mxu0 %v7250_v32  ;;  %v10446_v32 = vld [vmem:[#allocation67_spill] sm:$0xff] }
 0xcc8   :  { %3683 = vmatmul.mubr.bf16.vlgmr.msra.gmra.mxu0 %v7656_v16 }
 0xcc9   :  { %3692 = vmatprep.mubr.bf16.mxu0 %v10346_v12  ;;  %4352 = vmatpush1.bf16.msra.mxu0 %v7248_v13 }
 0xcca   :  { %4353 = vmatprep.subr.bf16.mxu0 %v7253_v1 }
 0xccd   :  { %4354 = vmatpush1.bf16.msra.mxu0 %v7251_v55 }
 0xcce   :  { %4355 = vmatprep.subr.bf16.mxu0 %v7256_v25 }
 0xcd0   :  { %3693 = vmatmul.mubr.bf16.gmra.mxu0 %v7657_v5 }
 0xcd1   :  { %3702 = vmatprep.mubr.bf16.mxu0 %v10346_v12  ;;  %4356 = vmatpush1.bf16.msra.mxu0 %v7254_v14 }
 0xcd2   :  { %4357 = vmatprep.subr.bf16.mxu0 %v7259_v60 }
 0xcd5   :  { %4358 = vmatpush1.bf16.msra.mxu0 %v7257_v8  ;;  %v10447_v8 = vld [vmem:[#allocation35_spill] sm:$0xff] }
 0xcd6   :  { %4359 = vmatprep.subr.bf16.mxu0 %v7262_v24 }
 0xcd8   :  { %3703 = vmatmul.mubr.bf16.gmra.mxu0 %v7658_v9 }
 0xcd9   :  { %3712 = vmatprep.mubr.bf16.mxu0 %v10346_v12  ;;  %4360 = vmatpush1.bf16.msra.mxu0 %v7260_v15 }
 0xce0   :  { %3713 = vmatmul.mubr.bf16.gmra.mxu0 %v7659_v39 }
 0xce1   :  { %4383 = vmatprep.mubr.bf16.mxu0 %v10346_v12 }
 0xd88   :  { %v3684_v47 = vpop.f32.mrf.mxu0 }
 0xd89   :  { %v3723_v23 = vmul.f32 %v3684_v47, %v10442_v6 }
 0xd8a   :  { %v3686_v42 = vpop.f32.mrf.mxu0 }
 0xd8b   :  { %v3724_v3 = vmul.f32 %v3686_v42, %v10442_v6  ;;  %v3750_v7 = vadd.f32 %v9452_v19, %v3723_v23 }
 0xd8c   :  { %v3688_v26 = vpop.f32.mrf.mxu0 }
 0xd8d   :  { %v3751_v29 = vadd.f32 %v9456_v30, %v3724_v3  ;;  %v3725_v16 = vmul.f32 %v3688_v26, %v10443_v0  ;;  %v3766_v56 = vmax.f32 %v3750_v7, 0.0  ;;  %v10448_v3 = vld [vmem:[#allocation43_spill] sm:$0xff] }
 0xd8e   :  { %v3690_v5 = vpop.f32.mrf.mxu0 }
 0xd8f   :  { %v3752_v9 = vadd.f32 %v9452_v19, %v3725_v16  ;;  %v3726_v39 = vmul.f32 %v3690_v5, %v10443_v0  ;;  %v3767_v21 = vmax.f32 %v3751_v29, 0.0  ;;  %v3782_v31 = vmul.f32 0.8, %v3766_v56  ;;  %v10449_v16 = vld [vmem:[#allocation45_spill] sm:$0xff]  ;;  %v10450_v56 = vld [vmem:[#allocation68_spill] sm:$0xff] }
 0xd90   :  { %v3694_v46 = vpop.f32.mrf.mxu0 }
 0xd91   :  { %v3768_v37 = vmax.f32 %v3752_v9, 0.0  ;;  %v3753_v58 = vadd.f32 %v9456_v30, %v3726_v39  ;;  %v3727_v49 = vmul.f32 %v3694_v46, %v10444_v33  ;;  %v3783_v62 = vmul.f32 0.8, %v3767_v21 }
 0xd92   :  { %v3696_v54 = vpop.f32.mrf.mxu0  ;;  %v9475_v24 = vadd.f32 %v3782_v31, %v10447_v8 }
 0xd93   :  { %v3784_v44 = vmul.f32 0.8, %v3768_v37  ;;  %v3769_v41 = vmax.f32 %v3753_v58, 0.0  ;;  %v3754_v18 = vadd.f32 %v9452_v19, %v3727_v49  ;;  %v3728_v63 = vmul.f32 %v3696_v54, %v10444_v33  ;;  %v10451_v54 = vld [vmem:[#allocation46_spill] sm:$0xff] }
 0xd94   :  { %v3698_v52 = vpop.f32.mrf.mxu0  ;;  %v9479_v7 = vadd.f32 %v3783_v62, %v10448_v3  ;;  %v3846_v49 = vmul.f32 %v9475_v24, %v9475_v24  ;;  %v10456_v3 = vld [vmem:[#allocation51_spill] sm:$0xff] }
 0xd95   :  { %v9469_v13 = vadd.f32 %v3784_v44, %v10445_v61  ;;  %v3729_v1 = vmul.f32 %v3698_v52, %v10446_v32  ;;  %v3785_v55 = vmul.f32 0.8, %v3769_v41  ;;  %v3770_v25 = vmax.f32 %v3754_v18, 0.0  ;;  %v10452_v18 = vld [vmem:[#allocation47_spill] sm:$0xff] }
 0xd96   :  { %v3755_v14 = vadd.f32 %v9456_v30, %v3728_v63  ;;  %v3700_v60 = vpop.f32.mrf.mxu0 }
 0xd97   :  { %v3756_v17 = vadd.f32 %v9452_v19, %v3729_v1  ;;  %v3786_v47 = vmul.f32 0.8, %v3770_v25  ;;  %v3730_v42 = vmul.f32 %v3700_v60, %v10446_v32  ;;  %v3848_v26 = vmul.f32 %v9469_v13, %v9469_v13  ;;  %v10453_v1 = vld [vmem:[#allocation69_spill] sm:$0xff] }
 0xd98   :  { %v3771_v23 = vmax.f32 %v3755_v14, 0.0  ;;  %v3704_v15 = vpop.f32.mrf.mxu0  ;;  %v9484_v5 = vadd.f32 %v3785_v55, %v10449_v16  ;;  %v3847_v25 = vmul.f32 %v9479_v7, %v9479_v7  ;;  %v3818_v14 = vadd.f32 %v9469_v13, %v9475_v24 }
 0xd99   :  { %v3772_v29 = vmax.f32 %v3756_v17, 0.0  ;;  %v3757_v39 = vadd.f32 %v9456_v30, %v3730_v42  ;;  %v3731_v46 = vmul.f32 %v3704_v15, %v10450_v56  ;;  %v9492_v44 = vadd.f32 %v3786_v47, %v10451_v54 }
 0xd9a   :  { %v3787_v9 = vmul.f32 0.8, %v3771_v23  ;;  %v3706_v21 = vpop.f32.mrf.mxu0  ;;  %v3862_v60 = vadd.f32 %v3848_v26, %v3846_v49  ;;  %v3849_v17 = vmul.f32 %v9484_v5, %v9484_v5  ;;  %v10454_v23 = vld [vmem:[#allocation48_spill] sm:$0xff] }
 0xd9b   :  { %v3788_v37 = vmul.f32 0.8, %v3772_v29  ;;  %v3732_v58 = vmul.f32 %v3706_v21, %v10450_v56  ;;  %v3773_v41 = vmax.f32 %v3757_v39, 0.0  ;;  %v3758_v52 = vadd.f32 %v9452_v19, %v3731_v46  ;;  %v10455_v56 = vld [vmem:[#allocation50_spill] sm:$0xff] }
 0xd9c   :  { %v3708_v31 = vpop.f32.mrf.mxu0  ;;  %v9495_v63 = vadd.f32 %v3787_v9, %v10452_v18  ;;  %v3831_v39 = vadd.f32 %v9484_v5, %v9479_v7  ;;  %v3850_v46 = vmul.f32 %v9492_v44, %v9492_v44 }
 0xd9d   :  { %v3759_v62 = vadd.f32 %v9456_v30, %v3732_v58  ;;  %v3733_v55 = vmul.f32 %v3708_v31, %v10453_v1  ;;  %v9507_v42 = vadd.f32 %v3788_v37, %v10454_v23  ;;  %v3789_v15 = vmul.f32 0.8, %v3773_v41 }
 0xd9e   :  { %v3710_v47 = vpop.f32.mrf.mxu0  ;;  %v3774_v29 = vmax.f32 %v3758_v52, 0.0  ;;  %v3851_v49 = vmul.f32 %v9495_v63, %v9495_v63  ;;  %v3875_v52 = vadd.f32 %v3849_v17, %v3847_v25 }
 0xd9f   :  { %v3775_v9 = vmax.f32 %v3759_v62, 0.0  ;;  %v3760_v21 = vadd.f32 %v9452_v19, %v3733_v55  ;;  %v3734_v26 = vmul.f32 %v3710_v47, %v10453_v1  ;;  %v3819_v62 = vadd.f32 %v3818_v14, %v9492_v44 }
 0xda0   :  { %v3714_v58 = vpop.f32.mrf.mxu0  ;;  %v3790_v31 = vmul.f32 0.8, %v3774_v29  ;;  %v3852_v55 = vmul.f32 %v9507_v42, %v9507_v42  ;;  %v9523_v47 = vadd.f32 %v3789_v15, %v9077_v36  ;;  %v10457_v15 = vld [vmem:[#allocation52_spill] sm:$0xff] }
 0xda1   :  { %v3791_v37 = vmul.f32 0.8, %v3775_v9  ;;  %v3735_v41 = vmul.f32 %v3714_v58, %v10429_v10  ;;  %v3776_v23 = vmax.f32 %v3760_v21, 0.0  ;;  %v3761_v18 = vadd.f32 %v9456_v30, %v3734_v26 }
 0xda2   :  { %v3716_v54 = vpop.f32.mrf.mxu0  ;;  %v3863_v9 = vadd.f32 %v3862_v60, %v3850_v46  ;;  %v9528_v58 = vadd.f32 %v3790_v31, %v10455_v56  ;;  %v3832_v21 = vadd.f32 %v3831_v39, %v9495_v63  ;;  %v3876_v26 = vadd.f32 %v3875_v52, %v3851_v49 }
 0xda3   :  { %v3762_v1 = vadd.f32 %v9452_v19, %v3735_v41  ;;  %v3736_v29 = vmul.f32 %v3716_v54, %v10429_v10  ;;  %v3792_v25 = vmul.f32 0.8, %v3776_v23  ;;  %v3777_v14 = vmax.f32 %v3761_v18, 0.0  ;;  %v10458_v23 = vld [vmem:[#allocation71_spill] sm:$0xff] }
 0xda4   :  { %v3718_v17 = vpop.f32.mrf.mxu0  ;;  %v3820_v16 = vadd.f32 %v3819_v62, %v9507_v42  ;;  %v9533_v8 = vadd.f32 %v3791_v37, %v10456_v3  ;;  %v3864_v31 = vadd.f32 %v3863_v9, %v3852_v55  ;;  %v3853_v18 = vmul.f32 %v9523_v47, %v9523_v47  ;;  %v10459_v62 = vld [vmem:[#allocation53_spill] sm:$0xff] }
 0xda5   :  { %v9536_v36 = vadd.f32 %v3792_v25, %v10457_v15  ;;  %v3793_v41 = vmul.f32 0.8, %v3777_v14  ;;  %v3778_v54 = vmax.f32 %v3762_v1, 0.0  ;;  %v3763_v60 = vadd.f32 %v9456_v30, %v3736_v29 }
 0xda6   :  { %v3720_v46 = vpop.f32.mrf.mxu0  ;;  %v3737_v39 = vmul.f32 %v3718_v17, %v10458_v23  ;;  %v3833_v52 = vadd.f32 %v3832_v21, %v9523_v47  ;;  %v3854_v37 = vmul.f32 %v9528_v58, %v9528_v58  ;;  %v3821_v29 = vadd.f32 %v3820_v16, %v9528_v58 }
 0xda7   :  { %v3738_v49 = vmul.f32 %v3720_v46, %v10458_v23  ;;  %v9547_v25 = vadd.f32 %v3793_v41, %v10459_v62  ;;  %v3794_v1 = vmul.f32 0.8, %v3778_v54  ;;  %v3779_v14 = vmax.f32 %v3763_v60, 0.0  ;;  %v10460_v23 = vld [vmem:[#allocation54_spill] sm:$0xff] }
 0xda8   :  { %v3764_v55 = vadd.f32 %v9452_v19, %v3737_v39  ;;  %v3834_v17 = vadd.f32 %v3833_v52, %v9533_v8  ;;  %v3855_v46 = vmul.f32 %v9533_v8, %v9533_v8  ;;  %v3856_v21 = vmul.f32 %v9536_v36, %v9536_v36  ;;  %v10461_v52 = vld [vmem:[#allocation56_spill] sm:$0xff] }
 0xda9   :  { %v3765_v9 = vadd.f32 %v9456_v30, %v3738_v49  ;;  %v9558_v15 = vadd.f32 %v3794_v1, %v10460_v23  ;;  %v3877_v41 = vadd.f32 %v3876_v26, %v3853_v18  ;;  %v3795_v54 = vmul.f32 0.8, %v3779_v14 }
 0xdaa   :  { %v3780_v62 = vmax.f32 %v3764_v55, 0.0  ;;  %v3865_v60 = vadd.f32 %v3864_v31, %v3854_v37  ;;  %v3822_v19 = vadd.f32 %v3821_v29, %v9536_v36  ;;  %v3835_v30 = vadd.f32 %v3834_v17, %v9547_v25  ;;  %v10462_v29 = vld [vmem:[#allocation57_spill] sm:$0xff] }
 0xdab   :  { %v3781_v16 = vmax.f32 %v3765_v9, 0.0  ;;  %v3857_v39 = vmul.f32 %v9547_v25, %v9547_v25  ;;  %v3858_v49 = vmul.f32 %v9558_v15, %v9558_v15  ;;  %v9567_v3 = vadd.f32 %v3795_v54, %v10461_v52  ;;  %v10463_v9 = vld [vmem:[#allocation58_spill] sm:$0xff] }
 0xdac   :  { %v3796_v1 = vmul.f32 0.8, %v3780_v62  ;;  %v3878_v26 = vadd.f32 %v3877_v41, %v3855_v46  ;;  %v3866_v18 = vadd.f32 %v3865_v60, %v3856_v21  ;;  %v3823_v14 = vadd.f32 %v3822_v19, %v9558_v15 }
 0xdad   :  { %v3797_v23 = vmul.f32 0.8, %v3781_v16  ;;  %v3836_v31 = vadd.f32 %v3835_v30, %v9567_v3  ;;  %v3859_v37 = vmul.f32 %v9567_v3, %v9567_v3 }
 0xdae   :  { %v9574_v55 = vadd.f32 %v3796_v1, %v10462_v29  ;;  %v3879_v56 = vadd.f32 %v3878_v26, %v3857_v39  ;;  %v3867_v54 = vadd.f32 %v3866_v18, %v3858_v49 }
 0xdaf   :  { %v9577_v17 = vadd.f32 %v3797_v23, %v10463_v9 }
 0xdb0   :  { %v3824_v62 = vadd.f32 %v3823_v14, %v9574_v55  ;;  %v3860_v46 = vmul.f32 %v9574_v55, %v9574_v55  ;;  %v3880_v41 = vadd.f32 %v3879_v56, %v3859_v37 }
 0xdb1   :  { %v3837_v21 = vadd.f32 %v3836_v31, %v9577_v17  ;;  %v3861_v16 = vmul.f32 %v9577_v17, %v9577_v17 }
 0xdb2   :  { %v3825_v60 = vrot.slane %v3824_v62, 4  ;;  %v3868_v19 = vadd.f32 %v3867_v54, %v3860_v46 }
 0xdb3   :  { %v3838_v30 = vrot.slane %v3837_v21, 4  ;;  %v3881_v1 = vadd.f32 %v3880_v41, %v3861_v16 }
 0xdb4   :  { %v3826_v29 = vadd.f32 %v3825_v60, %v3824_v62  ;;  %v3869_v23 = vrot.slane %v3868_v19, 4 }
 0xdb5   :  { %v3839_v9 = vadd.f32 %v3838_v30, %v3837_v21  ;;  %v3882_v39 = vrot.slane %v3881_v1, 4 }
 0xdb6   :  { %v3827_v49 = vrot.slane %v3826_v29, 2  ;;  %v3870_v26 = vadd.f32 %v3869_v23, %v3868_v19 }
 0xdb7   :  { %v3840_v18 = vrot.slane %v3839_v9, 2  ;;  %v3883_v14 = vadd.f32 %v3882_v39, %v3881_v1 }
 0xdb8   :  { %v3828_v52 = vadd.f32 %v3827_v49, %v3826_v29  ;;  %v3871_v10 = vrot.slane %v3870_v26, 2 }
 0xdb9   :  { %v3841_v32 = vadd.f32 %v3840_v18, %v3839_v9  ;;  %v3884_v31 = vrot.slane %v3883_v14, 2 }
 0xdba   :  { %v3829_v56 = vrot.slane %v3828_v52, 1  ;;  %v3872_v37 = vadd.f32 %v3871_v10, %v3870_v26 }
 0xdbb   :  { %v3842_v61 = vrot.slane %v3841_v32, 1  ;;  %v3885_v33 = vadd.f32 %v3884_v31, %v3883_v14 }
 0xdbc   :  { %v3830_v0 = vadd.f32 %v3829_v56, %v3828_v52  ;;  %v3873_v54 = vrot.slane %v3872_v37, 1 }
 0xdbd   :  { %v3843_v46 = vadd.f32 %v3842_v61, %v3841_v32  ;;  %v3886_v41 = vrot.slane %v3885_v33, 1 }
 0xdbe   :  { %v9585_v62 = vmul.f32 0.015625, %v3830_v0  ;;  %v3874_v21 = vadd.f32 %v3873_v54, %v3872_v37  ;;  %v6516_v0 = vld [vmem:[%s10156_s17 + $0x2] sm:$0x3] }
 0xdbf   :  { %v9587_v16 = vmul.f32 0.015625, %v3843_v46  ;;  %v3887_v60 = vadd.f32 %v3886_v41, %v3885_v33  ;;  %v6517_v33 = vld [vmem:[%s10157_s18 + $0x2] sm:$0x3]  ;;  %v9600_v39 = vrot.slane %v6516_v0, %v8558_v20  ;;  %v9603_v49 = vrot.slane %v6516_v0, %v8556_v22 }
 0xdc0   :  { %v3888_v19 = vmul.f32 0.015625, %v3874_v21  ;;  %v3890_v29 = vmul.f32 %v9585_v62, %v9585_v62  ;;  %v9606_v26 = vrot.slane %v6517_v33, %v8558_v20  ;;  %v9609_v18 = vrot.slane %v6517_v33, %v8556_v22 }
 0xdc1   :  { %v3891_v9 = vmul.f32 %v9587_v16, %v9587_v16  ;;  %v3889_v10 = vmul.f32 0.015625, %v3887_v60  ;;  %v3896_v31 = vsub.f32 %v9475_v24, %v9585_v62  ;;  %v3898_v56 = vsub.f32 %v9469_v13, %v9585_v62 }
 0xdc2   :  { %v3892_v30 = vsub.f32 %v3888_v19, %v3890_v29  ;;  %v3900_v37 = vsub.f32 %v9492_v44, %v9585_v62  ;;  %v3897_v46 = vsub.f32 %v9479_v7, %v9587_v16  ;;  %v3899_v41 = vsub.f32 %v9484_v5, %v9587_v16 }
 0xdc3   :  { %v3893_v1 = vsub.f32 %v3889_v10, %v3891_v9  ;;  %v3901_v21 = vsub.f32 %v9495_v63, %v9587_v16  ;;  %v3903_v24 = vsub.f32 %v9523_v47, %v9587_v16  ;;  %v3902_v44 = vsub.f32 %v9507_v42, %v9585_v62  ;;  %v3988_v42 = vld [vmem:[#allocation7 + $0x108] sm:$0xff] }
 0xdc4   :  { %v3894_v52 = vmax.f32 %v3892_v30, 0.0 }
 0xdc5   :  { %v3895_v23 = vmax.f32 %v3893_v1, 0.0  ;;  %v3905_v1 = vsub.f32 %v9533_v8, %v9587_v16 }
 0xdc6   :  { %v3912_v61 = vadd.f32 1e-05, %v3894_v52 }
 0xdc7   :  { %v3913_v32 = vadd.f32 1e-05, %v3895_v23 }
 0xdc8   :  { %7512 = vrsqrt.f32 %v3912_v61  ;;  %v3987_v61 = vld [vmem:[#allocation7 + $0x100] sm:$0xff] }
 0xdc9   :  { %7514 = vrsqrt.f32 %v3913_v32  ;;  %v3989_v32 = vld [vmem:[#allocation7 + $0x110] sm:$0xff] }
 0xdd5   :  { %v9619_v54 = vpop.eup %7512 }
 0xdd6   :  { %v7515_v60 = vpop.eup %7514  ;;  %v3916_v13 = vmul.f32 %v9619_v54, %v3896_v31  ;;  %v3918_v19 = vmul.f32 %v9619_v54, %v3898_v56  ;;  %v3920_v29 = vmul.f32 %v9619_v54, %v3900_v37  ;;  %v3922_v47 = vmul.f32 %v9619_v54, %v3902_v44  ;;  %v3990_v31 = vld [vmem:[#allocation7 + $0x118] sm:$0xff] }
 0xdd7   :  { %v3917_v7 = vmul.f32 %v7515_v60, %v3897_v46  ;;  %v3919_v9 = vmul.f32 %v7515_v60, %v3899_v41  ;;  %v3921_v10 = vmul.f32 %v7515_v60, %v3901_v21  ;;  %v3923_v5 = vmul.f32 %v7515_v60, %v3903_v24  ;;  %v3992_v46 = vld [vmem:[#allocation7 + $0x128] sm:$0xff]  ;;  %v3994_v41 = vld [vmem:[#allocation7 + $0x138] sm:$0xff] }
 0xdd8   :  { %v3943_v30 = vmul.f32 %v9600_v39, %v3916_v13  ;;  %v3945_v63 = vmul.f32 %v9600_v39, %v3918_v19  ;;  %v3947_v8 = vmul.f32 %v9600_v39, %v3920_v29  ;;  %v3949_v21 = vmul.f32 %v9600_v39, %v3922_v47 }
 0xdd9   :  { %v3944_v52 = vmul.f32 %v9603_v49, %v3917_v7  ;;  %v3946_v23 = vmul.f32 %v9603_v49, %v3919_v9  ;;  %v3948_v0 = vmul.f32 %v9603_v49, %v3921_v10  ;;  %v3950_v33 = vmul.f32 %v9603_v49, %v3923_v5 }
 0xdda   :  { %v3970_v56 = vadd.f32 %v9606_v26, %v3943_v30  ;;  %v3972_v37 = vadd.f32 %v9606_v26, %v3945_v63  ;;  %v3907_v10 = vsub.f32 %v9547_v25, %v9587_v16  ;;  %v3904_v5 = vsub.f32 %v9528_v58, %v9585_v62 }
 0xddb   :  { %v3971_v24 = vadd.f32 %v9609_v18, %v3944_v52  ;;  %v3973_v13 = vadd.f32 %v9609_v18, %v3946_v23  ;;  %v3975_v19 = vadd.f32 %v9609_v18, %v3948_v0  ;;  %v3977_v44 = vadd.f32 %v9609_v18, %v3950_v33 }
 0xddc   :  { %v4003_v7 = vmul.f32 %v3987_v61, %v3970_v56  ;;  %v4005_v9 = vmul.f32 %v3989_v32, %v3972_v37  ;;  %v3925_v14 = vmul.f32 %v7515_v60, %v3905_v1  ;;  %v3927_v52 = vmul.f32 %v7515_v60, %v3907_v10  ;;  %v3993_v37 = vld [vmem:[#allocation7 + $0x130] sm:$0xff] }
 0xddd   :  { %v4004_v30 = vmul.f32 %v3988_v42, %v3971_v24  ;;  %v4006_v29 = vmul.f32 %v3990_v31, %v3973_v13  ;;  %v4008_v63 = vmul.f32 %v3992_v46, %v3975_v19  ;;  %v4010_v47 = vmul.f32 %v3994_v41, %v3977_v44  ;;  %v3998_v24 = vld [vmem:[#allocation7 + $0x158] sm:$0xff] }
 0xdde   :  { %v3906_v23 = vsub.f32 %v9536_v36, %v9585_v62  ;;  %v3909_v0 = vsub.f32 %v9567_v3, %v9587_v16  ;;  %v4073_v32 = vpack.c.bf16 %v4005_v9, %v4003_v7  ;;  %v3974_v33 = vadd.f32 %v9606_v26, %v3947_v8  ;;  %v3991_v36 = vld [vmem:[#allocation7 + $0x120] sm:$0xff] }
 0xddf   :  { %v4074_v61 = vpack.c.bf16 %v4006_v29, %v4004_v30  ;;  %v3976_v25 = vadd.f32 %v9606_v26, %v3949_v21  ;;  %v3952_v58 = vmul.f32 %v9603_v49, %v3925_v14  ;;  %v3954_v42 = vmul.f32 %v9603_v49, %v3927_v52  ;;  %v3996_v21 = vld [vmem:[#allocation7 + $0x148] sm:$0xff] }
 0xde0   :  { %v3924_v31 = vmul.f32 %v9619_v54, %v3904_v5  ;;  %v3926_v1 = vmul.f32 %v9619_v54, %v3906_v23  ;;  %v4076_v56 = vpack.c.bf16 %v4010_v47, %v4008_v63  ;;  %v3929_v46 = vmul.f32 %v7515_v60, %v3909_v0  ;;  %v3995_v23 = vld [vmem:[#allocation7 + $0x140] sm:$0xff]  ;;  %v3997_v0 = vld [vmem:[#allocation7 + $0x150] sm:$0xff] }
 0xde1   :  { %4215 = vmatprep.mubr.bf16.mxu1 %v4074_v61  ;;  %v10464_v3 = vsub.f32 %v9577_v17, %v9587_v16  ;;  %v3979_v8 = vadd.f32 %v9609_v18, %v3952_v58  ;;  %v3981_v14 = vadd.f32 %v9609_v18, %v3954_v42  ;;  %v3910_v13 = vsub.f32 %v9574_v55, %v9585_v62 }
 0xde2   :  { %4216 = vmatmul.mubr.bf16.vlgmr.msra.gmra.mxu1 %v4073_v32  ;;  %v4007_v19 = vmul.f32 %v3991_v36, %v3974_v33  ;;  %v4009_v44 = vmul.f32 %v3993_v37, %v3976_v25  ;;  %v3951_v7 = vmul.f32 %v9600_v39, %v3924_v31  ;;  %v3953_v9 = vmul.f32 %v9600_v39, %v3926_v1  ;;  %v4002_v33 = vld [vmem:[#allocation7 + $0x178] sm:$0xff]  ;;  %v3999_v37 = vld [vmem:[#allocation7 + $0x160] sm:$0xff] }
 0xde3   :  { %v3931_v41 = vmul.f32 %v7515_v60, %v10464_v3  ;;  %4223 = vmatprep.mubr.bf16.mxu1 %v4076_v56  ;;  %v4012_v10 = vmul.f32 %v3996_v21, %v3979_v8  ;;  %v4014_v17 = vmul.f32 %v3998_v24, %v3981_v14  ;;  %v3956_v16 = vmul.f32 %v9603_v49, %v3929_v46  ;;  %v7263_v8 = vld [vmem:[#allocation22 + $0xa0] ss:$8 sps:$4 sm:$0xff]   ;;  %v7265_v14 = vld [vmem:[#allocation22 + $0xa4] ss:$8 sps:$4 sm:$0xff]   ;;  %v7268_v21 = vld [vmem:[#allocation22 + $0x94] ss:$8 sps:$4 sm:$0xff]  }
 0xde4   :  { %v3908_v5 = vsub.f32 %v9558_v15, %v9585_v62  ;;  %v3930_v30 = vmul.f32 %v9619_v54, %v3910_v13  ;;  %v4075_v29 = vpack.c.bf16 %v4009_v44, %v4007_v19  ;;  %v3978_v55 = vadd.f32 %v9606_v26, %v3951_v7  ;;  %4361 = vmatprep.subr.bf16.mxu0 %v7265_v14  ;;  %v7271_v24 = vld [vmem:[#allocation22 + $0x84] ss:$8 sps:$4 sm:$0xff]   ;;  %v7269_v13 = vld [vmem:[#allocation22 + $0x80] ss:$8 sps:$4 sm:$0xff]   ;;  %v7274_v19 = vld [vmem:[#allocation19 + $0x274] ss:$8 sps:$4 sm:$0xff]  }
 0xde5   :  { %v3958_v60 = vmul.f32 %v9603_v49, %v3931_v41  ;;  %v3980_v63 = vadd.f32 %v9606_v26, %v3953_v9  ;;  %v4078_v52 = vpack.c.bf16 %v4014_v17, %v4012_v10  ;;  %v3983_v61 = vadd.f32 %v9609_v18, %v3956_v16  ;;  %v4000_v49 = vld [vmem:[#allocation7 + $0x168] sm:$0xff]  ;;  %4362 = vmatpush1.bf16.msra.mxu0 %v7263_v8  ;;  %v7278_v10 = vld [vmem:[#allocation19 + $0x250] ss:$8 sps:$4 sm:$0xff]  }
 0xde6   :  { %v3928_v47 = vmul.f32 %v9619_v54, %v3908_v5  ;;  %v4011_v15 = vmul.f32 %v3995_v23, %v3978_v55  ;;  %v3957_v58 = vmul.f32 %v9600_v39, %v3930_v30  ;;  %4363 = vmatprep.subr.bf16.mxu0 %v7268_v21  ;;  %v7277_v44 = vld [vmem:[#allocation19 + $0x264] ss:$8 sps:$4 sm:$0xff]   ;;  %4723 = vmatprep.subr.bf16.mxu1 %v7274_v19  ;;  %v7275_v7 = vld [vmem:[#allocation19 + $0x260] ss:$8 sps:$4 sm:$0xff]   ;;  %v7280_v9 = vld [vmem:[#allocation19 + $0x254] ss:$8 sps:$4 sm:$0xff]  }
 0xde7   :  { %v3985_v32 = vadd.f32 %v9609_v18, %v3958_v60  ;;  %v4013_v62 = vmul.f32 %v3997_v0, %v3980_v63  ;;  %v4016_v42 = vmul.f32 %v4000_v49, %v3983_v61  ;;  %v4001_v18 = vld [vmem:[#allocation7 + $0x170] sm:$0xff]  ;;  %v7286_v60 = vld [vmem:[#allocation19 + $0x234] ss:$8 sps:$4 sm:$0xff]   ;;  %v7284_v5 = vld [vmem:[#allocation19 + $0x230] ss:$8 sps:$4 sm:$0xff]  }
 0xde8   :  { %v3955_v25 = vmul.f32 %v9600_v39, %v3928_v47  ;;  %v3984_v56 = vadd.f32 %v9606_v26, %v3957_v58  ;;  %v7266_v39 = vld [vmem:[#allocation22 + $0x90] ss:$8 sps:$4 sm:$0xff]   ;;  %v7283_v17 = vld [vmem:[#allocation19 + $0x244] ss:$8 sps:$4 sm:$0xff]   ;;  %v7281_v16 = vld [vmem:[#allocation19 + $0x240] ss:$8 sps:$4 sm:$0xff]  }
 0xde9   :  { %v4018_v31 = vmul.f32 %v4002_v33, %v3985_v32  ;;  %v4077_v54 = vpack.c.bf16 %v4013_v62, %v4011_v15  ;;  %4364 = vmatpush1.bf16.msra.mxu0 %v7266_v39  ;;  %v6520_v63 = vld [vmem:[%s10159_s20 + $0x1] ss:$0 sm:$0xff] }
 0xdea   :  { %4224 = vmatmul.mubr.bf16.gmra.mxu1 %v4075_v29  ;;  %v3982_v1 = vadd.f32 %v9606_v26, %v3955_v25  ;;  %v4017_v3 = vmul.f32 %v4001_v18, %v3984_v56  ;;  %4365 = vmatprep.subr.bf16.mxu0 %v7271_v24  ;;  %v7272_v26 = vld [vmem:[#allocation19 + $0x270] ss:$8 sps:$4 sm:$0xff]  }
 0xdeb   :  { %4231 = vmatprep.mubr.bf16.mxu1 %v4078_v52  ;;  %v4080_v36 = vpack.c.bf16 %v4018_v31, %v4016_v42  ;;  %4724 = vmatpush1.bf16.msra.mxu1 %v7272_v26 }
 0xdec   :  { %v4015_v46 = vmul.f32 %v3999_v37, %v3982_v1  ;;  %4725 = vmatprep.subr.bf16.mxu1 %v7277_v44 }
 0xded   :  { %4366 = vmatpush1.bf16.msra.mxu0 %v7269_v13 }
 0xdee   :  { %v4079_v41 = vpack.c.bf16 %v4017_v3, %v4015_v46 }
 0xdef   :  { %4726 = vmatpush1.bf16.msra.mxu1 %v7275_v7 }
 0xdf0   :  { %4727 = vmatprep.subr.bf16.mxu1 %v7280_v9 }
 0xdf2   :  { %4232 = vmatmul.mubr.bf16.gmra.mxu1 %v4077_v54 }
 0xdf3   :  { %4239 = vmatprep.mubr.bf16.mxu1 %v4080_v36  ;;  %4728 = vmatpush1.bf16.msra.mxu1 %v7278_v10 }
 0xdf4   :  { %4729 = vmatprep.subr.bf16.mxu1 %v7283_v17 }
 0xdf7   :  { %4730 = vmatpush1.bf16.msra.mxu1 %v7281_v16 }
 0xdf8   :  { %4731 = vmatprep.subr.bf16.mxu1 %v7286_v60 }
 0xdfa   :  { %4240 = vmatmul.mubr.bf16.gmra.mxu1 %v4079_v41 }
 0xdfb   :  { %4732 = vmatpush1.bf16.msra.mxu1 %v7284_v5 }
 0xea2   :  { %v6784_v30 = vpop.f32.mrf.mxu1 }
 0xea4   :  { %v6785_v29 = vpop.f32.mrf.mxu1 }
 0xea5   :  { %v6786_v55 = vadd.f32 %v6785_v29, %v6784_v30 }
 0xea6   :  { %v6787_v47 = vpop.f32.mrf.mxu1 }
 0xea7   :  { %v4218_v23 = vadd.f32 %v6786_v55, %v6520_v63  ;;  %v7289_v55 = vld [vmem:[#allocation19 + $0x224] ss:$8 sps:$4 sm:$0xff]  }
 0xea8   :  { %v6788_v52 = vpop.f32.mrf.mxu1  ;;  %4733 = vmatprep.subr.bf16.mxu1 %v7289_v55 }
 0xea9   :  { %v6789_v0 = vadd.f32 %v6788_v52, %v6787_v47  ;;  %v4248_v33 = vmax.f32 %v4218_v23, 0.0  ;;  %v7287_v47 = vld [vmem:[#allocation19 + $0x220] ss:$8 sps:$4 sm:$0xff]   ;;  %v7292_v52 = vld [vmem:[#allocation19 + $0x214] ss:$8 sps:$4 sm:$0xff]  }
 0xeaa   :  { %v6790_v61 = vpop.f32.mrf.mxu1  ;;  %4734 = vmatpush1.bf16.msra.mxu1 %v7287_v47  ;;  %v7290_v23 = vld [vmem:[#allocation19 + $0x210] ss:$8 sps:$4 sm:$0xff]  }
 0xeab   :  { %v4221_v32 = vadd.f32 %v6789_v0, %v6520_v63  ;;  %4735 = vmatprep.subr.bf16.mxu1 %v7292_v52  ;;  %v7295_v0 = vld [vmem:[#allocation19 + $0x204] ss:$8 sps:$4 sm:$0xff]  }
 0xeac   :  { %v6791_v49 = vpop.f32.mrf.mxu1 }
 0xead   :  { %v4249_v15 = vmax.f32 %v4221_v32, 0.0  ;;  %v6792_v62 = vadd.f32 %v6791_v49, %v6790_v61  ;;  %v7293_v61 = vld [vmem:[#allocation19 + $0x200] ss:$8 sps:$4 sm:$0xff]   ;;  %v7298_v32 = vld [vmem:[#allocation19 + $0x2f4] ss:$8 sps:$4 sm:$0xff]  }
 0xeae   :  { %v6793_v25 = vpop.f32.mrf.mxu1  ;;  %4736 = vmatpush1.bf16.msra.mxu1 %v7290_v23  ;;  %v7301_v49 = vld [vmem:[#allocation19 + $0x2e4] ss:$8 sps:$4 sm:$0xff]  }
 0xeaf   :  { %v4256_v58 = vpack.c.bf16 %v4249_v15, %v4248_v33  ;;  %v4226_v31 = vadd.f32 %v6792_v62, %v6520_v63  ;;  %4737 = vmatprep.subr.bf16.mxu1 %v7295_v0  ;;  %v7299_v33 = vld [vmem:[#allocation19 + $0x2e0] ss:$8 sps:$4 sm:$0xff]   ;;  %v7304_v15 = vld [vmem:[#allocation19 + $0x2d4] ss:$8 sps:$4 sm:$0xff]   ;;  %v7302_v62 = vld [vmem:[#allocation19 + $0x2d0] ss:$8 sps:$4 sm:$0xff]  }
 0xeb0   :  { %v6794_v42 = vpop.f32.mrf.mxu1 }
 0xeb1   :  { %v6795_v54 = vadd.f32 %v6794_v42, %v6793_v25  ;;  %4384 = vmatmul.mubr.bf16.vlgmr.msra.gmra.mxu0 %v4256_v58  ;;  %v4250_v37 = vmax.f32 %v4226_v31, 0.0  ;;  %v7307_v25 = vld [vmem:[#allocation19 + $0x2c4] ss:$8 sps:$4 sm:$0xff]   ;;  %v7305_v58 = vld [vmem:[#allocation19 + $0x2c0] ss:$8 sps:$4 sm:$0xff]  }
 0xeb2   :  { %v6796_v1 = vpop.f32.mrf.mxu1  ;;  %4393 = vmatprep.mubr.bf16.mxu0 %v10346_v12  ;;  %4738 = vmatpush1.bf16.msra.mxu1 %v7293_v61  ;;  %v7310_v42 = vld [vmem:[#allocation19 + $0x2b4] ss:$8 sps:$4 sm:$0xff]   ;;  %v7308_v31 = vld [vmem:[#allocation19 + $0x2b0] ss:$8 sps:$4 sm:$0xff]  }
 0xeb3   :  { %v4229_v56 = vadd.f32 %v6795_v54, %v6520_v63  ;;  %4739 = vmatprep.subr.bf16.mxu1 %v7298_v32  ;;  %v7313_v54 = vld [vmem:[#allocation19 + $0x2a4] ss:$8 sps:$4 sm:$0xff]  }
 0xeb4   :  { %v6797_v36 = vpop.f32.mrf.mxu1 }
 0xeb5   :  { %v4251_v18 = vmax.f32 %v4229_v56, 0.0  ;;  %v6798_v46 = vadd.f32 %v6797_v36, %v6796_v1  ;;  %v7311_v1 = vld [vmem:[#allocation19 + $0x2a0] ss:$8 sps:$4 sm:$0xff]   ;;  %v7316_v56 = vld [vmem:[#allocation19 + $0x294] ss:$8 sps:$4 sm:$0xff]  }
 0xeb6   :  { %v6799_v3 = vpop.f32.mrf.mxu1  ;;  %v7314_v36 = vld [vmem:[#allocation19 + $0x290] ss:$8 sps:$4 sm:$0xff]  }
 0xeb7   :  { %v4257_v41 = vpack.c.bf16 %v4251_v18, %v4250_v37  ;;  %v4234_v14 = vadd.f32 %v6798_v46, %v6520_v63  ;;  %v7319_v37 = vld [vmem:[#allocation19 + $0x284] ss:$8 sps:$4 sm:$0xff]   ;;  %v7317_v18 = vld [vmem:[#allocation19 + $0x280] ss:$8 sps:$4 sm:$0xff]   ;;  %v6519_v46 = vld [vmem:[%s10161_s22 + $0x2] sm:$0x3] }
 0xeb8   :  { %v6800_v8 = vpop.f32.mrf.mxu1 }
 0xeb9   :  { %v6801_v39 = vadd.f32 %v6800_v8, %v6799_v3  ;;  %4394 = vmatmul.mubr.bf16.gmra.mxu0 %v4257_v41  ;;  %v4252_v26 = vmax.f32 %v4234_v14, 0.0  ;;  %v9699_v3 = vrot.slane %v6519_v46, %v8558_v20  ;;  %v9702_v41 = vrot.slane %v6519_v46, %v8556_v22 }
 0xeba   :  { %v6802_v21 = vpop.f32.mrf.mxu1  ;;  %4403 = vmatprep.mubr.bf16.mxu0 %v10346_v12 }
 0xebb   :  { %v4237_v24 = vadd.f32 %v6801_v39, %v6520_v63 }
 0xebc   :  { %v6803_v13 = vpop.f32.mrf.mxu1 }
 0xebd   :  { %v4253_v19 = vmax.f32 %v4237_v24, 0.0  ;;  %v6804_v44 = vadd.f32 %v6803_v13, %v6802_v21 }
 0xebe   :  { %v6805_v7 = vpop.f32.mrf.mxu1 }
 0xebf   :  { %v4258_v9 = vpack.c.bf16 %v4253_v19, %v4252_v26  ;;  %v4242_v17 = vadd.f32 %v6804_v44, %v6520_v63 }
 0xec0   :  { %v6806_v10 = vpop.f32.mrf.mxu1 }
 0xec1   :  { %v6807_v16 = vadd.f32 %v6806_v10, %v6805_v7  ;;  %4404 = vmatmul.mubr.bf16.gmra.mxu0 %v4258_v9  ;;  %v4254_v5 = vmax.f32 %v4242_v17, 0.0 }
 0xec2   :  { %4413 = vmatprep.mubr.bf16.mxu0 %v10346_v12 }
 0xec3   :  { %v4245_v60 = vadd.f32 %v6807_v16, %v6520_v63  ;;  %v7296_v63 = vld [vmem:[#allocation19 + $0x2f0] ss:$8 sps:$4 sm:$0xff]  }
 0xec4   :  { %4740 = vmatpush2.bf16.msra.mxu1 %v7296_v63 }
 0xec5   :  { %v4255_v30 = vmax.f32 %v4245_v60, 0.0  ;;  %4741 = vmatprep.subr.bf16.mxu1 %v7301_v49 }
 0xec7   :  { %v4259_v29 = vpack.c.bf16 %v4255_v30, %v4254_v5 }
 0xec8   :  { %4742 = vmatpush2.bf16.msra.mxu1 %v7299_v33 }
 0xec9   :  { %4414 = vmatmul.mubr.bf16.gmra.mxu0 %v4259_v29  ;;  %4743 = vmatprep.subr.bf16.mxu1 %v7304_v15 }
 0xeca   :  { %4836 = vmatprep.mubr.bf16.mxu0 %v10346_v12 }
 0xecc   :  { %4744 = vmatpush2.bf16.msra.mxu1 %v7302_v62 }
 0xecd   :  { %4745 = vmatprep.subr.bf16.mxu1 %v7307_v25 }
 0xed0   :  { %4746 = vmatpush2.bf16.msra.mxu1 %v7305_v58 }
 0xed1   :  { %4747 = vmatprep.subr.bf16.mxu1 %v7310_v42 }
 0xed4   :  { %4748 = vmatpush2.bf16.msra.mxu1 %v7308_v31 }
 0xed5   :  { %4749 = vmatprep.subr.bf16.mxu1 %v7313_v54 }
 0xed8   :  { %4750 = vmatpush2.bf16.msra.mxu1 %v7311_v1 }
 0xed9   :  { %4751 = vmatprep.subr.bf16.mxu1 %v7316_v56 }
 0xedc   :  { %4752 = vmatpush2.bf16.msra.mxu1 %v7314_v36 }
 0xedd   :  { %4753 = vmatprep.subr.bf16.mxu1 %v7319_v37 }
 0xee0   :  { %4754 = vmatpush2.bf16.msra.mxu1 %v7317_v18 }
 0xf71   :  { %v4385_v8 = vpop.f32.mrf.mxu0 }
 0xf72   :  { %v4386_v14 = vadd.f32 %v4385_v8, %v9699_v3 }
 0xf73   :  { %v4387_v39 = vpop.f32.mrf.mxu0 }
 0xf74   :  { %v6553_v21 = vmul.f32 -1.442695, %v4386_v14  ;;  %v4388_v24 = vadd.f32 %v4387_v39, %v9702_v41 }
 0xf75   :  { %v4389_v13 = vpop.f32.mrf.mxu0 }
 0xf76   :  { %7516 = vpow2.f32 %v6553_v21  ;;  %v6554_v26 = vmul.f32 -1.442695, %v4388_v24  ;;  %v4390_v19 = vadd.f32 %v4389_v13, %v9699_v3 }
 0xf77   :  { %v4391_v44 = vpop.f32.mrf.mxu0 }
 0xf78   :  { %7518 = vpow2.f32 %v6554_v26  ;;  %v6555_v7 = vmul.f32 -1.442695, %v4390_v19  ;;  %v4392_v9 = vadd.f32 %v4391_v44, %v9702_v41 }
 0xf79   :  { %v4395_v10 = vpop.f32.mrf.mxu0 }
 0xf7a   :  { %7520 = vpow2.f32 %v6555_v7  ;;  %v6556_v17 = vmul.f32 -1.442695, %v4392_v9  ;;  %v4396_v16 = vadd.f32 %v4395_v10, %v9699_v3 }
 0xf7b   :  { %v4397_v60 = vpop.f32.mrf.mxu0 }
 0xf7c   :  { %7522 = vpow2.f32 %v6556_v17  ;;  %v6557_v5 = vmul.f32 -1.442695, %v4396_v16  ;;  %v4398_v30 = vadd.f32 %v4397_v60, %v9702_v41 }
 0xf7d   :  { %v4399_v29 = vpop.f32.mrf.mxu0 }
 0xf7e   :  { %7524 = vpow2.f32 %v6557_v5  ;;  %v6558_v55 = vmul.f32 -1.442695, %v4398_v30  ;;  %v4400_v47 = vadd.f32 %v4399_v29, %v9699_v3 }
 0xf7f   :  { %v4401_v52 = vpop.f32.mrf.mxu0 }
 0xf80   :  { %7526 = vpow2.f32 %v6558_v55  ;;  %v6559_v23 = vmul.f32 -1.442695, %v4400_v47  ;;  %v4402_v0 = vadd.f32 %v4401_v52, %v9702_v41 }
 0xf81   :  { %v4405_v61 = vpop.f32.mrf.mxu0 }
 0xf82   :  { %7528 = vpow2.f32 %v6559_v23  ;;  %v6560_v32 = vmul.f32 -1.442695, %v4402_v0  ;;  %v4406_v63 = vadd.f32 %v4405_v61, %v9699_v3 }
 0xf83   :  { %v7517_v49 = vpop.eup %7516  ;;  %v4407_v33 = vpop.f32.mrf.mxu0 }
 0xf84   :  { %v4472_v15 = vadd.f32 1.0, %v7517_v49  ;;  %7530 = vpow2.f32 %v6560_v32  ;;  %v6561_v62 = vmul.f32 -1.442695, %v4406_v63  ;;  %v4408_v25 = vadd.f32 %v4407_v33, %v9702_v41 }
 0xf85   :  { %v7519_v58 = vpop.eup %7518  ;;  %v4409_v42 = vpop.f32.mrf.mxu0 }
 0xf86   :  { %7532 = vrcp.f32 %v4472_v15  ;;  %v4473_v31 = vadd.f32 1.0, %v7519_v58  ;;  %v6562_v54 = vmul.f32 -1.442695, %v4408_v25  ;;  %v4410_v1 = vadd.f32 %v4409_v42, %v9699_v3 }
 0xf87   :  { %v7521_v56 = vpop.eup %7520  ;;  %7534 = vpow2.f32 %v6561_v62  ;;  %v4411_v36 = vpop.f32.mrf.mxu0 }
 0xf88   :  { %7536 = vrcp.f32 %v4473_v31  ;;  %v4474_v37 = vadd.f32 1.0, %v7521_v56  ;;  %v6563_v18 = vmul.f32 -1.442695, %v4410_v1  ;;  %v4412_v46 = vadd.f32 %v4411_v36, %v9702_v41 }
 0xf89   :  { %v7523_v8 = vpop.eup %7522  ;;  %7538 = vpow2.f32 %v6562_v54  ;;  %v4415_v14 = vpop.f32.mrf.mxu0 }
 0xf8a   :  { %7540 = vrcp.f32 %v4474_v37  ;;  %v4475_v39 = vadd.f32 1.0, %v7523_v8  ;;  %v6564_v21 = vmul.f32 -1.442695, %v4412_v46  ;;  %v4416_v24 = vadd.f32 %v4415_v14, %v9699_v3 }
 0xf8b   :  { %v7525_v13 = vpop.eup %7524  ;;  %7542 = vpow2.f32 %v6563_v18  ;;  %v4417_v26 = vpop.f32.mrf.mxu0 }
 0xf8c   :  { %7544 = vrcp.f32 %v4475_v39  ;;  %v4476_v19 = vadd.f32 1.0, %v7525_v13  ;;  %v6565_v44 = vmul.f32 -1.442695, %v4416_v24  ;;  %v4418_v7 = vadd.f32 %v4417_v26, %v9702_v41 }
 0xf8d   :  { %v7527_v9 = vpop.eup %7526  ;;  %7546 = vpow2.f32 %v6564_v21  ;;  %v4419_v10 = vpop.f32.mrf.mxu0 }
 0xf8e   :  { %7548 = vrcp.f32 %v4476_v19  ;;  %v4477_v17 = vadd.f32 1.0, %v7527_v9  ;;  %v6566_v16 = vmul.f32 -1.442695, %v4418_v7  ;;  %v4420_v60 = vadd.f32 %v4419_v10, %v9699_v3 }
 0xf8f   :  { %v7529_v5 = vpop.eup %7528  ;;  %7550 = vpow2.f32 %v6565_v44  ;;  %v4421_v30 = vpop.f32.mrf.mxu0 }
 0xf90   :  { %7552 = vrcp.f32 %v4477_v17  ;;  %v4478_v29 = vadd.f32 1.0, %v7529_v5  ;;  %v6567_v55 = vmul.f32 -1.442695, %v4420_v60  ;;  %v4422_v47 = vadd.f32 %v4421_v30, %v9702_v41 }
 0xf91   :  { %v7531_v52 = vpop.eup %7530  ;;  %7554 = vpow2.f32 %v6566_v16 }
 0xf92   :  { %7556 = vrcp.f32 %v4478_v29  ;;  %v4479_v23 = vadd.f32 1.0, %v7531_v52  ;;  %v6568_v0 = vmul.f32 -1.442695, %v4422_v47 }
 0xf93   :  { %v7533_v61 = vpop.eup %7532  ;;  %7558 = vpow2.f32 %v6567_v55 }
 0xf94   :  { %v7535_v32 = vpop.eup %7534  ;;  %7560 = vrcp.f32 %v4479_v23 }
 0xf95   :  { %v7537_v63 = vpop.eup %7536  ;;  %7562 = vpow2.f32 %v6568_v0  ;;  %v4480_v42 = vadd.f32 1.0, %v7535_v32 }
 0xf96   :  { %v7539_v3 = vpop.eup %7538 }
 0xf97   :  { %v7541_v49 = vpop.eup %7540  ;;  %v4481_v33 = vadd.f32 1.0, %v7539_v3 }
 0xf98   :  { %v7543_v15 = vpop.eup %7542  ;;  %v4555_v1 = vpack.c.bf16 %v7541_v49, %v7533_v61 }
 0xf99   :  { %v7545_v62 = vpop.eup %7544  ;;  %v4482_v25 = vadd.f32 1.0, %v7543_v15  ;;  %7564 = vrcp.f32 %v4481_v33 }
 0xf9a   :  { %v7547_v58 = vpop.eup %7546  ;;  %v4556_v41 = vpack.c.bf16 %v7545_v62, %v7537_v63 }
 0xf9b   :  { %v7549_v31 = vpop.eup %7548  ;;  %v4483_v54 = vadd.f32 1.0, %v7547_v58  ;;  %7566 = vrcp.f32 %v4482_v25 }
 0xf9c   :  { %v7551_v56 = vpop.eup %7550  ;;  %4755 = vmatprep.mubr.bf16.mxu1 %v4556_v41 }
 0xf9d   :  { %v7553_v36 = vpop.eup %7552  ;;  %7568 = vrcp.f32 %v4483_v54  ;;  %4756 = vmatmul.mubr.bf16.vlgmr.msra.gmra.mxu1 %v4555_v1  ;;  %v4484_v24 = vadd.f32 1.0, %v7551_v56 }
 0xf9e   :  { %v7555_v37 = vpop.eup %7554  ;;  %7570 = vrcp.f32 %v4480_v42 }
 0xf9f   :  { %v7557_v18 = vpop.eup %7556  ;;  %v4485_v46 = vadd.f32 1.0, %v7555_v37 }
 0xfa0   :  { %v7559_v8 = vpop.eup %7558  ;;  %v4557_v19 = vpack.c.bf16 %v7557_v18, %v7549_v31 }
 0xfa1   :  { %v7561_v14 = vpop.eup %7560  ;;  %v4486_v39 = vadd.f32 1.0, %v7559_v8  ;;  %7572 = vrcp.f32 %v4485_v46 }
 0xfa2   :  { %v7563_v21 = vpop.eup %7562  ;;  %v4558_v13 = vpack.c.bf16 %v7561_v14, %v7553_v36  ;;  %v10465_v14 = vld [vmem:[#allocation38_spill] sm:$0xff] }
 0xfa3   :  { %v4487_v26 = vadd.f32 1.0, %v7563_v21  ;;  %7574 = vrcp.f32 %v4486_v39  ;;  %v10466_v39 = vld [vmem:[#allocation39_spill] sm:$0xff]  ;;  %v10467_v21 = vld [vmem:[#allocation40_spill] sm:$0xff] }
 0xfa4   :  { %4765 = vmatprep.mubr.bf16.mxu1 %v4558_v13  ;;  %v10469_v13 = vld [vmem:[#allocation42_spill] sm:$0xff] }
 0xfa5   :  { %7576 = vrcp.f32 %v4487_v26  ;;  %4766 = vmatmul.mubr.bf16.gmra.mxu1 %v4557_v19 }
 0xfa6   :  { %7578 = vrcp.f32 %v4484_v24  ;;  %v7565_v44 = vpop.eup %7564  ;;  %v10468_v24 = vld [vmem:[#allocation41_spill] sm:$0xff] }
 0xfa8   :  { %v7567_v7 = vpop.eup %7566 }
 0xfaa   :  { %v7569_v9 = vpop.eup %7568 }
 0xfab   :  { %v7571_v10 = vpop.eup %7570  ;;  %v4560_v17 = vpack.c.bf16 %v7569_v9, %v7565_v44 }
 0xfac   :  { %v4559_v16 = vpack.c.bf16 %v7567_v7, %v7571_v10 }
 0xfad   :  { %4775 = vmatprep.mubr.bf16.mxu1 %v4560_v17 }
 0xfae   :  { %4776 = vmatmul.mubr.bf16.gmra.mxu1 %v4559_v16  ;;  %v7573_v60 = vpop.eup %7572 }
 0xfb0   :  { %v7575_v5 = vpop.eup %7574 }
 0xfb2   :  { %v7577_v30 = vpop.eup %7576 }
 0xfb3   :  { %v7579_v29 = vpop.eup %7578  ;;  %v4562_v55 = vpack.c.bf16 %v7577_v30, %v7573_v60 }
 0xfb4   :  { %v4561_v47 = vpack.c.bf16 %v7575_v5, %v7579_v29 }
 0xfb5   :  { %4785 = vmatprep.mubr.bf16.mxu1 %v4562_v55 }
 0xfb6   :  { %4786 = vmatmul.mubr.bf16.gmra.mxu1 %v4561_v47  ;;  %v10470_v47 = vld [vmem:[#allocation59_spill] sm:$0xff] }
 0xfb7   :  { %4997 = vmatprep.mubr.bf16.mxu1 %v10346_v12 }
0x105d   :  { %v4757_v52 = vpop.f32.mrf.mxu1 }
0x105f   :  { %v4759_v23 = vpop.f32.mrf.mxu1 }
0x1061   :  { %v4761_v0 = vpop.f32.mrf.mxu1 }
0x1062   :  { %v4796_v8 = vpack.c.bf16 %v4761_v0, %v4757_v52 }
0x1063   :  { %v4763_v61 = vpop.f32.mrf.mxu1 }
0x1064   :  { %v4797_v46 = vpack.c.bf16 %v4763_v61, %v4759_v23  ;;  %v10471_v23 = vld [vmem:[#allocation60_spill] sm:$0xff] }
0x1065   :  { %v4767_v32 = vpop.f32.mrf.mxu1 }
0x1067   :  { %v4769_v63 = vpop.f32.mrf.mxu1 }
0x1069   :  { %v4771_v3 = vpop.f32.mrf.mxu1 }
0x106a   :  { %v4798_v18 = vpack.c.bf16 %v4771_v3, %v4767_v32 }
0x106b   :  { %v4773_v49 = vpop.f32.mrf.mxu1 }
0x106c   :  { %v4799_v37 = vpack.c.bf16 %v4773_v49, %v4769_v63 }
0x106e   :  { %v4777_v33 = vpop.f32.mrf.mxu1 }
0x1070   :  { %v4779_v15 = vpop.f32.mrf.mxu1 }
0x1072   :  { %v4781_v62 = vpop.f32.mrf.mxu1 }
0x1073   :  { %v4800_v36 = vpack.c.bf16 %v4781_v62, %v4777_v33 }
0x1074   :  { %v4783_v25 = vpop.f32.mrf.mxu1 }
0x1075   :  { %v4801_v56 = vpack.c.bf16 %v4783_v25, %v4779_v15 }
0x1076   :  { %v4787_v58 = vpop.f32.mrf.mxu1 }
0x1078   :  { %v4789_v42 = vpop.f32.mrf.mxu1 }
0x107a   :  { %v4791_v41 = vpop.f32.mrf.mxu1 }
0x107b   :  { %v4802_v1 = vpack.c.bf16 %v4791_v41, %v4787_v58 }
0x107c   :  { %v4793_v31 = vpop.f32.mrf.mxu1 }
0x107d   :  { %v4803_v54 = vpack.c.bf16 %v4793_v31, %v4789_v42 }
0x107f   :  { %4812 = vmatprep.subr.bf16.mxu0 %v4803_v54 }
0x1080   :  { %4813 = vmatpush1.bf16.msra.mxu0 %v4802_v1 }
0x1081   :  { %4814 = vmatprep.subr.bf16.mxu0 %v4801_v56 }
0x1084   :  { %4815 = vmatpush1.bf16.msra.mxu0 %v4800_v36 }
0x1085   :  { %4816 = vmatprep.subr.bf16.mxu0 %v4799_v37 }
0x1088   :  { %4817 = vmatpush1.bf16.msra.mxu0 %v4798_v18 }
0x1089   :  { %4818 = vmatprep.subr.bf16.mxu0 %v4797_v46 }
0x108c   :  { %4819 = vmatpush1.bf16.msra.mxu0 %v4796_v8 }
0x108f   :  { %6602 = vmatmul.mubr.msk.bf16.vlgmr.msra.gmra.mxu0 %vm713_vm0, %v10382_v27 }
0x1090   :  { %4846 = vmatprep.mubr.bf16.mxu0 %v10346_v12 }
0x1097   :  { %6603 = vmatmul.mubr.msk.bf16.gmra.mxu0 %vm713_vm0, %v10431_v51 }
0x1098   :  { %4856 = vmatprep.mubr.bf16.mxu0 %v10346_v12 }
0x109f   :  { %6604 = vmatmul.mubr.msk.bf16.gmra.mxu0 %vm713_vm0, %v10432_v11 }
0x10a0   :  { %4866 = vmatprep.mubr.bf16.mxu0 %v10346_v12 }
0x10a7   :  { %6605 = vmatmul.mubr.msk.bf16.gmra.mxu0 %vm713_vm0, %v10465_v14 }
0x10a8   :  { %4876 = vmatprep.mubr.bf16.mxu0 %v10346_v12 }
0x10af   :  { %6606 = vmatmul.mubr.msk.bf16.gmra.mxu0 %vm713_vm0, %v10466_v39 }
0x10b0   :  { %4886 = vmatprep.mubr.bf16.mxu0 %v10346_v12 }
0x10b7   :  { %6607 = vmatmul.mubr.msk.bf16.gmra.mxu0 %vm713_vm0, %v10467_v21 }
0x10b8   :  { %4896 = vmatprep.mubr.bf16.mxu0 %v10346_v12 }
0x10bf   :  { %6608 = vmatmul.mubr.msk.bf16.gmra.mxu0 %vm713_vm0, %v10468_v24 }
0x10c0   :  { %4906 = vmatprep.mubr.bf16.mxu0 %v10346_v12 }
0x10c7   :  { %6609 = vmatmul.mubr.msk.bf16.gmra.mxu0 %vm713_vm0, %v10469_v13 }
0x114f   :  { %v4838_v26 = vpop.f32.mrf.mxu0 }
0x1150   :  { %v9745_v7 = vmul.f32 %v4838_v26, %v8484_v2 }
0x1151   :  { %v4840_v19 = vpop.f32.mrf.mxu0 }
0x1152   :  { %v9751_v17 = vmul.f32 %v4840_v19, %v8484_v2 }
0x1153   :  { %v4842_v44 = vpop.f32.mrf.mxu0 }
0x1154   :  { %v9748_v9 = vmul.f32 %v4842_v44, %v8488_v4 }
0x1155   :  { %v4844_v10 = vpop.f32.mrf.mxu0 }
0x1156   :  { %v9756_v60 = vmul.f32 %v4844_v10, %v8488_v4 }
0x1157   :  { %v4848_v5 = vpop.f32.mrf.mxu0 }
0x1158   :  { %v9761_v52 = vmul.f32 %v4848_v5, %v10470_v47 }
0x1159   :  { %v4850_v29 = vpop.f32.mrf.mxu0 }
0x115a   :  { %v9767_v32 = vmul.f32 %v4850_v29, %v10470_v47 }
0x115b   :  { %v4852_v55 = vpop.f32.mrf.mxu0 }
0x115c   :  { %v9764_v0 = vmul.f32 %v4852_v55, %v10471_v23 }
0x115d   :  { %v4854_v61 = vpop.f32.mrf.mxu0 }
0x115e   :  { %v9772_v3 = vmul.f32 %v4854_v61, %v10471_v23 }
0x115f   :  { %v9774_v49 = vpop.f32.mrf.mxu0 }
0x1161   :  { %v4860_v15 = vpop.f32.mrf.mxu0 }
0x1163   :  { %v4862_v62 = vpop.f32.mrf.mxu0 }
0x1165   :  { %v4864_v25 = vpop.f32.mrf.mxu0 }
0x1167   :  { %v4868_v58 = vpop.f32.mrf.mxu0 }
0x1169   :  { %v4870_v42 = vpop.f32.mrf.mxu0 }
0x116b   :  { %v4872_v41 = vpop.f32.mrf.mxu0 }
0x116d   :  { %v4874_v31 = vpop.f32.mrf.mxu0 }
0x116f   :  { %v4878_v54 = vpop.f32.mrf.mxu0 }
0x1171   :  { %v4880_v1 = vpop.f32.mrf.mxu0 }
0x1173   :  { %v4882_v56 = vpop.f32.mrf.mxu0 }
0x1175   :  { %v4884_v36 = vpop.f32.mrf.mxu0 }
0x1177   :  { %v4888_v37 = vpop.f32.mrf.mxu0 }
0x1179   :  { %v4890_v18 = vpop.f32.mrf.mxu0 }
0x117b   :  { %v4892_v46 = vpop.f32.mrf.mxu0 }
0x117d   :  { %v4894_v8 = vpop.f32.mrf.mxu0 }
0x117e   :  { %v4940_v24 = vmul.f32 %v4894_v8, %v8442_v43  ;;  %v7326_v8 = vld [vmem:[#allocation20 + $0x160] sm:$0xff]  }
0x117f   :  { %v4898_v26 = vpop.f32.mrf.mxu0 }
0x1181   :  { %v4900_v19 = vpop.f32.mrf.mxu0 }
0x1182   :  { %v4942_v4 = vmul.f32 %v4900_v19, %v8432_v38 }
0x1183   :  { %v4902_v44 = vpop.f32.mrf.mxu0 }
0x1184   :  { %v4943_v23 = vmul.f32 %v4902_v44, %v8436_v40  ;;  %v7328_v44 = vld [vmem:[#allocation20 + $0x158] sm:$0xff]  }
0x1185   :  { %v4904_v10 = vpop.f32.mrf.mxu0 }
0x1186   :  { %v4944_v30 = vmul.f32 %v4904_v10, %v8436_v40  ;;  %v4938_v10 = vmul.f32 %v4890_v18, %v8470_v57 }
0x1187   :  { %v4908_v5 = vpop.f32.mrf.mxu0 }
0x1188   :  { %v4945_v2 = vmul.f32 %v4908_v5, %v8424_v34  ;;  %v4962_v21 = vpack.c.bf16 %v4944_v30, %v4942_v4  ;;  %v4936_v5 = vmul.f32 %v4884_v36, %v8452_v48  ;;  %v4960_v19 = vpack.c.bf16 %v4940_v24, %v4938_v10  ;;  %v7331_v10 = vld [vmem:[#allocation20 + $0x110] sm:$0xff]  }
0x1189   :  { %v4910_v29 = vpop.f32.mrf.mxu0  ;;  %v4935_v4 = vmul.f32 %v4882_v56, %v8452_v48  ;;  %v4931_v24 = vmul.f32 %v4872_v41, %v8462_v53  ;;  %v4928_v36 = vmul.f32 %v4864_v25, %v8474_v59  ;;  %v4926_v56 = vmul.f32 %v4860_v15, %v10438_v28 }
0x118a   :  { %v4946_v63 = vmul.f32 %v4910_v29, %v8424_v34  ;;  %v10472_v25 = vpack.c.bf16 %v9772_v3, %v9767_v32  ;;  %v10474_v15 = vpack.c.bf16 %v9756_v60, %v9751_v17  ;;  %v7662_v32 = vld [vmem:[#allocation5 + $0x10] sm:$0xff]   ;;  %v7320_v17 = vld [vmem:[#allocation20 + $0x178] sm:$0xff]  }
0x118b   :  { %v4912_v55 = vpop.f32.mrf.mxu0  ;;  %v7321_v60 = vld [vmem:[#allocation20 + $0x138] sm:$0xff]   ;;  %6808 = vmatprep.subr.bf16.mxu0 %v7320_v17  ;;  %v7325_v3 = vld [vmem:[#allocation20 + $0x128] sm:$0xff]  }
0x118c   :  { %v4947_v61 = vmul.f32 %v4912_v55, %v8426_v35  ;;  %v4941_v55 = vmul.f32 %v4898_v26, %v8432_v38  ;;  %6809 = vmatpush3.bf16.msra.mxu0 %v7321_v60  ;;  %v7327_v26 = vld [vmem:[#allocation20 + $0x120] sm:$0xff]  }
0x118d   :  { %v4914_v16 = vpop.f32.mrf.mxu0 }
0x118e   :  { %v4948_v33 = vmul.f32 %v4914_v16, %v8426_v35  ;;  %v4963_v13 = vpack.c.bf16 %v4947_v61, %v4945_v2  ;;  %v4939_v16 = vmul.f32 %v4892_v46, %v8442_v43  ;;  %v4961_v29 = vpack.c.bf16 %v4943_v23, %v4941_v55  ;;  %v7661_v46 = vld [vmem:[#allocation5 + $0x8] sm:$0xff]   ;;  %v7330_v55 = vld [vmem:[#allocation20 + $0x150] sm:$0xff]  }
0x118f   :  { %v4934_v2 = vmul.f32 %v4880_v1, %v8446_v45  ;;  %v4930_v23 = vmul.f32 %v4870_v42, %v8456_v50  ;;  %v4929_v1 = vmul.f32 %v4868_v58, %v8456_v50  ;;  %v4925_v42 = vmul.f32 %v9774_v49, %v10438_v28  ;;  %v7660_v49 = vld [vmem:[#allocation5] sm:$0xff]  }
0x1190   :  { %v4964_v47 = vpack.c.bf16 %v4948_v33, %v4946_v63  ;;  %v4937_v63 = vmul.f32 %v4888_v37, %v8470_v57  ;;  %v10473_v58 = vpack.c.bf16 %v9764_v0, %v9761_v52  ;;  %v7663_v52 = vld [vmem:[#allocation5 + $0x18] sm:$0xff]   ;;  %v7329_v61 = vld [vmem:[#allocation20 + $0x118] sm:$0xff]  }
0x1191   :  { %v4955_v18 = vpack.c.bf16 %v4931_v24, %v4929_v1  ;;  %v7324_v0 = vld [vmem:[#allocation20 + $0x168] sm:$0xff]  }
0x1192   :  { %4965 = vmatprep.subr.bf16.mxu1 %v4964_v47  ;;  %v4959_v30 = vpack.c.bf16 %v4939_v16, %v4937_v63  ;;  %v4958_v47 = vpack.c.bf16 %v4936_v5, %v4934_v2  ;;  %v7332_v16 = vld [vmem:[#allocation20 + $0x148] sm:$0xff]   ;;  %v7334_v5 = vld [vmem:[#allocation20 + $0x140] sm:$0xff]   ;;  %v7336_v63 = vld [vmem:[#allocation22 + $0x170] ss:$8 sps:$4 sm:$0xff]  }
0x1193   :  { %4966 = vmatpush1.bf16.msra.mxu1 %v4963_v13  ;;  %v4932_v13 = vmul.f32 %v4874_v31, %v8462_v53  ;;  %v4927_v31 = vmul.f32 %v4862_v62, %v8474_v59  ;;  %v10475_v62 = vpack.c.bf16 %v9748_v9, %v9745_v7  ;;  %v7322_v7 = vld [vmem:[#allocation20 + $0x170] sm:$0xff]   ;;  %v7345_v24 = vld [vmem:[#allocation22 + $0x140] ss:$8 sps:$4 sm:$0xff]  }
0x1194   :  { %4967 = vmatprep.subr.bf16.mxu1 %v4962_v21  ;;  %v4933_v21 = vmul.f32 %v4878_v54, %v8446_v45  ;;  %v4954_v54 = vpack.c.bf16 %v4928_v36, %v4926_v56  ;;  %v7323_v9 = vld [vmem:[#allocation20 + $0x130] sm:$0xff]   ;;  %6810 = vmatprep.subr.bf16.mxu0 %v7322_v7 }
0x1195   :  { %v4956_v37 = vpack.c.bf16 %v4932_v13, %v4930_v23  ;;  %v4953_v41 = vpack.c.bf16 %v4927_v31, %v4925_v42  ;;  %6811 = vmatpush3.bf16.msra.mxu0 %v7323_v9  ;;  %v7338_v2 = vld [vmem:[#allocation22 + $0x174] ss:$8 sps:$4 sm:$0xff]   ;;  %v6569_v23 = vld [vmem:[%s10155_s16 + $0x4] sm:$0x3] }
0x1196   :  { %v4957_v33 = vpack.c.bf16 %v4935_v4, %v4933_v21  ;;  %6812 = vmatprep.subr.bf16.mxu0 %v7324_v0  ;;  %v7341_v4 = vld [vmem:[#allocation22 + $0x164] ss:$8 sps:$4 sm:$0xff]   ;;  %v7344_v13 = vld [vmem:[#allocation22 + $0x154] ss:$8 sps:$4 sm:$0xff]   ;;  %v9827_v56 = vrot.slane %v6569_v23, %v8556_v22 }
0x1197   :  { %4968 = vmatpush1.bf16.msra.mxu1 %v4961_v29  ;;  %v7333_v29 = vld [vmem:[#allocation20 + $0x108] sm:$0xff]   ;;  %v10477_v9 = vld [vmem:[#allocation66_spill] sm:$0xff] }
0x1198   :  { %4969 = vmatprep.subr.bf16.mxu1 %v4960_v19  ;;  %v7335_v19 = vld [vmem:[#allocation20 + $0x100] sm:$0xff]  }
0x1199   :  { %6813 = vmatpush3.bf16.msra.mxu0 %v7325_v3  ;;  %v7347_v21 = vld [vmem:[#allocation22 + $0x144] ss:$8 sps:$4 sm:$0xff]  }
0x119a   :  { %6814 = vmatprep.subr.bf16.mxu0 %v7326_v8 }
0x119b   :  { %4970 = vmatpush1.bf16.msra.mxu1 %v4959_v30  ;;  %v7339_v30 = vld [vmem:[#allocation22 + $0x160] ss:$8 sps:$4 sm:$0xff]  }
0x119c   :  { %4971 = vmatprep.subr.bf16.mxu1 %v4958_v47  ;;  %v7342_v47 = vld [vmem:[#allocation22 + $0x150] ss:$8 sps:$4 sm:$0xff]  }
0x119d   :  { %6815 = vmatpush3.bf16.msra.mxu0 %v7327_v26 }
0x119e   :  { %6816 = vmatprep.subr.bf16.mxu0 %v7328_v44 }
0x119f   :  { %4972 = vmatpush1.bf16.msra.mxu1 %v4957_v33  ;;  %v7350_v33 = vld [vmem:[#allocation22 + $0x134] ss:$8 sps:$4 sm:$0xff]  }
0x11a0   :  { %4973 = vmatprep.subr.bf16.mxu1 %v4956_v37  ;;  %v9823_v37 = vrot.slane %v6569_v23, %v8558_v20 }
0x11a1   :  { %6817 = vmatpush3.bf16.msra.mxu0 %v7329_v61 }
0x11a2   :  { %6818 = vmatprep.subr.bf16.mxu0 %v7330_v55 }
0x11a3   :  { %4974 = vmatpush1.bf16.msra.mxu1 %v4955_v18  ;;  %v7348_v18 = vld [vmem:[#allocation22 + $0x130] ss:$8 sps:$4 sm:$0xff]  }
0x11a4   :  { %4975 = vmatprep.subr.bf16.mxu1 %v4954_v54 }
0x11a5   :  { %6819 = vmatpush3.bf16.msra.mxu0 %v7331_v10 }
0x11a6   :  { %6820 = vmatprep.subr.bf16.mxu0 %v7332_v16 }
0x11a7   :  { %4976 = vmatpush1.bf16.msra.mxu1 %v4953_v41 }
0x11a8   :  { %4977 = vmatprep.subr.bf16.mxu1 %v10472_v25 }
0x11a9   :  { %6821 = vmatpush3.bf16.msra.mxu0 %v7333_v29  ;;  %v10478_v29 = vld [vmem:[#allocation44_spill] sm:$0xff] }
0x11aa   :  { %6822 = vmatprep.subr.bf16.mxu0 %v7334_v5 }
0x11ab   :  { %4978 = vmatpush1.bf16.msra.mxu1 %v10473_v58  ;;  %v10476_v58 = vld [vmem:[#allocation65_spill] sm:$0xff] }
0x11ac   :  { %4979 = vmatprep.subr.bf16.mxu1 %v10474_v15 }
0x11ad   :  { %6823 = vmatpush3.bf16.msra.mxu0 %v7335_v19  ;;  %v10479_v19 = vld [vmem:[#allocation67_spill] sm:$0xff] }
0x11af   :  { %4980 = vmatpush1.bf16.msra.mxu1 %v10475_v62 }
0x11b0   :  { %5666 = vmatprep.subr.bf16.mxu1 %v7338_v2 }
0x11b2   :  { %4998 = vmatmul.mubr.bf16.vlgmr.msra.gmra.mxu1 %v7660_v49 }
0x11b3   :  { %5007 = vmatprep.mubr.bf16.mxu1 %v10346_v12  ;;  %5667 = vmatpush1.bf16.msra.mxu1 %v7336_v63 }
0x11b4   :  { %5668 = vmatprep.subr.bf16.mxu1 %v7341_v4 }
0x11b7   :  { %5669 = vmatpush1.bf16.msra.mxu1 %v7339_v30 }
0x11b8   :  { %5670 = vmatprep.subr.bf16.mxu1 %v7344_v13 }
0x11ba   :  { %5008 = vmatmul.mubr.bf16.gmra.mxu1 %v7661_v46 }
0x11bb   :  { %5017 = vmatprep.mubr.bf16.mxu1 %v10346_v12  ;;  %5671 = vmatpush1.bf16.msra.mxu1 %v7342_v47 }
0x11bc   :  { %5672 = vmatprep.subr.bf16.mxu1 %v7347_v21  ;;  %v10480_v21 = vld [vmem:[#allocation35_spill] sm:$0xff] }
0x11bf   :  { %5673 = vmatpush1.bf16.msra.mxu1 %v7345_v24 }
0x11c0   :  { %5674 = vmatprep.subr.bf16.mxu1 %v7350_v33 }
0x11c2   :  { %5018 = vmatmul.mubr.bf16.gmra.mxu1 %v7662_v32 }
0x11c3   :  { %5027 = vmatprep.mubr.bf16.mxu1 %v10346_v12  ;;  %5675 = vmatpush1.bf16.msra.mxu1 %v7348_v18 }
0x11ca   :  { %5028 = vmatmul.mubr.bf16.gmra.mxu1 %v7663_v52 }
0x11cb   :  { %5698 = vmatprep.mubr.bf16.mxu1 %v10346_v12 }
0x1272   :  { %v4999_v36 = vpop.f32.mrf.mxu1 }
0x1273   :  { %v5038_v1 = vmul.f32 %v4999_v36, %v10442_v6 }
0x1274   :  { %v5001_v31 = vpop.f32.mrf.mxu1 }
0x1275   :  { %v5039_v54 = vmul.f32 %v5001_v31, %v10442_v6  ;;  %v5065_v42 = vadd.f32 %v9823_v37, %v5038_v1  ;;  %v10481_v31 = vld [vmem:[#allocation43_spill] sm:$0xff] }
0x1276   :  { %v5003_v41 = vpop.f32.mrf.mxu1 }
0x1277   :  { %v5066_v25 = vadd.f32 %v9827_v56, %v5039_v54  ;;  %v5040_v15 = vmul.f32 %v5003_v41, %v10476_v58  ;;  %v5081_v32 = vmax.f32 %v5065_v42, 0.0  ;;  %v10482_v41 = vld [vmem:[#allocation45_spill] sm:$0xff] }
0x1278   :  { %v5005_v62 = vpop.f32.mrf.mxu1 }
0x1279   :  { %v5067_v49 = vadd.f32 %v9823_v37, %v5040_v15  ;;  %v5041_v46 = vmul.f32 %v5005_v62, %v10476_v58  ;;  %v5082_v17 = vmax.f32 %v5066_v25, 0.0  ;;  %v5097_v44 = vmul.f32 0.8, %v5081_v32 }
0x127a   :  { %v5009_v52 = vpop.f32.mrf.mxu1 }
0x127b   :  { %v5083_v60 = vmax.f32 %v5067_v49, 0.0  ;;  %v5068_v7 = vadd.f32 %v9827_v56, %v5041_v46  ;;  %v5042_v0 = vmul.f32 %v5009_v52, %v10477_v9  ;;  %v5098_v16 = vmul.f32 0.8, %v5082_v17  ;;  %v10483_v49 = vld [vmem:[#allocation68_spill] sm:$0xff] }
0x127c   :  { %v5011_v3 = vpop.f32.mrf.mxu1  ;;  %v9846_v23 = vadd.f32 %v5097_v44, %v10480_v21 }
0x127d   :  { %v5099_v8 = vmul.f32 0.8, %v5083_v60  ;;  %v5084_v26 = vmax.f32 %v5068_v7, 0.0  ;;  %v5069_v61 = vadd.f32 %v9823_v37, %v5042_v0  ;;  %v5043_v55 = vmul.f32 %v5011_v3, %v10477_v9  ;;  %v10484_v7 = vld [vmem:[#allocation46_spill] sm:$0xff] }
0x127e   :  { %v5013_v10 = vpop.f32.mrf.mxu1  ;;  %v9850_v18 = vadd.f32 %v5098_v16, %v10481_v31  ;;  %v5161_v60 = vmul.f32 %v9846_v23, %v9846_v23 }
0x127f   :  { %v9840_v5 = vadd.f32 %v5099_v8, %v10478_v29  ;;  %v5044_v63 = vmul.f32 %v5013_v10, %v10479_v19  ;;  %v5100_v2 = vmul.f32 0.8, %v5084_v26  ;;  %v5085_v4 = vmax.f32 %v5069_v61, 0.0  ;;  %v10485_v26 = vld [vmem:[#allocation47_spill] sm:$0xff]  ;;  %v10486_v10 = vld [vmem:[#allocation69_spill] sm:$0xff] }
0x1280   :  { %v5070_v30 = vadd.f32 %v9827_v56, %v5043_v55  ;;  %v5015_v13 = vpop.f32.mrf.mxu1  ;;  %v5162_v29 = vmul.f32 %v9850_v18, %v9850_v18 }
0x1281   :  { %v5071_v47 = vadd.f32 %v9823_v37, %v5044_v63  ;;  %v5101_v24 = vmul.f32 0.8, %v5085_v4  ;;  %v5045_v36 = vmul.f32 %v5015_v13, %v10479_v19  ;;  %v5163_v54 = vmul.f32 %v9840_v5, %v9840_v5  ;;  %v10487_v13 = vld [vmem:[#allocation48_spill] sm:$0xff] }
0x1282   :  { %v5086_v33 = vmax.f32 %v5070_v30, 0.0  ;;  %v5019_v1 = vpop.f32.mrf.mxu1  ;;  %v9855_v25 = vadd.f32 %v5100_v2, %v10482_v41  ;;  %v5133_v63 = vadd.f32 %v9840_v5, %v9846_v23 }
0x1283   :  { %v5087_v42 = vmax.f32 %v5071_v47, 0.0  ;;  %v5072_v62 = vadd.f32 %v9827_v56, %v5045_v36  ;;  %v5046_v46 = vmul.f32 %v5019_v1, %v10483_v49  ;;  %v9863_v0 = vadd.f32 %v5101_v24, %v10484_v7 }
0x1284   :  { %v5102_v15 = vmul.f32 0.8, %v5086_v33  ;;  %v5021_v32 = vpop.f32.mrf.mxu1  ;;  %v5177_v2 = vadd.f32 %v5163_v54, %v5161_v60  ;;  %v5164_v4 = vmul.f32 %v9855_v25, %v9855_v25  ;;  %v5146_v36 = vadd.f32 %v9855_v25, %v9850_v18 }
0x1285   :  { %v5103_v52 = vmul.f32 0.8, %v5087_v42  ;;  %v5047_v17 = vmul.f32 %v5021_v32, %v10483_v49  ;;  %v5088_v3 = vmax.f32 %v5072_v62, 0.0  ;;  %v5073_v61 = vadd.f32 %v9823_v37, %v5046_v46  ;;  %v10488_v46 = vld [vmem:[#allocation70_spill] sm:$0xff] }
0x1286   :  { %v5023_v8 = vpop.f32.mrf.mxu1  ;;  %v9866_v44 = vadd.f32 %v5102_v15, %v10485_v26  ;;  %v5165_v1 = vmul.f32 %v9863_v0, %v9863_v0  ;;  %v10489_v26 = vld [vmem:[#allocation49_spill] sm:$0xff] }
0x1287   :  { %v5074_v55 = vadd.f32 %v9827_v56, %v5047_v17  ;;  %v5048_v16 = vmul.f32 %v5023_v8, %v10486_v10  ;;  %v9878_v47 = vadd.f32 %v5103_v52, %v10487_v13  ;;  %v5104_v21 = vmul.f32 0.8, %v5088_v3  ;;  %v10490_v13 = vld [vmem:[#allocation50_spill] sm:$0xff] }
0x1288   :  { %v5025_v30 = vpop.f32.mrf.mxu1  ;;  %v5089_v24 = vmax.f32 %v5073_v61, 0.0  ;;  %v5166_v41 = vmul.f32 %v9866_v44, %v9866_v44  ;;  %v5190_v52 = vadd.f32 %v5164_v4, %v5162_v29  ;;  %v5134_v17 = vadd.f32 %v5133_v63, %v9863_v0 }
0x1289   :  { %v5090_v33 = vmax.f32 %v5074_v55, 0.0  ;;  %v5075_v31 = vadd.f32 %v9823_v37, %v5048_v16  ;;  %v5049_v54 = vmul.f32 %v5025_v30, %v10486_v10  ;;  %v5167_v8 = vmul.f32 %v9878_v47, %v9878_v47 }
0x128a   :  { %v5029_v42 = vpop.f32.mrf.mxu1  ;;  %v5105_v15 = vmul.f32 0.8, %v5089_v24  ;;  %v9894_v61 = vadd.f32 %v5104_v21, %v10489_v26  ;;  %v5178_v30 = vadd.f32 %v5177_v2, %v5165_v1  ;;  %v10492_v21 = vld [vmem:[#allocation52_spill] sm:$0xff] }
0x128b   :  { %v5106_v62 = vmul.f32 0.8, %v5090_v33  ;;  %v5050_v32 = vmul.f32 %v5029_v42, %v10488_v46  ;;  %v5091_v60 = vmax.f32 %v5075_v31, 0.0  ;;  %v5076_v7 = vadd.f32 %v9827_v56, %v5049_v54  ;;  %v10491_v42 = vld [vmem:[#allocation51_spill] sm:$0xff] }
0x128c   :  { %v5031_v3 = vpop.f32.mrf.mxu1  ;;  %v9899_v24 = vadd.f32 %v5105_v15, %v10490_v13  ;;  %v5147_v33 = vadd.f32 %v5146_v36, %v9866_v44  ;;  %v5191_v31 = vadd.f32 %v5190_v52, %v5166_v41  ;;  %v5135_v54 = vadd.f32 %v5134_v17, %v9878_v47  ;;  %v10494_v17 = vld [vmem:[#allocation53_spill] sm:$0xff] }
0x128d   :  { %v5077_v55 = vadd.f32 %v9823_v37, %v5050_v32  ;;  %v5051_v16 = vmul.f32 %v5031_v3, %v10488_v46  ;;  %v5107_v29 = vmul.f32 0.8, %v5091_v60  ;;  %v5092_v63 = vmax.f32 %v5076_v7, 0.0  ;;  %v10493_v7 = vld [vmem:[#allocation71_spill] sm:$0xff] }
0x128e   :  { %v5033_v4 = vpop.f32.mrf.mxu1  ;;  %v9904_v10 = vadd.f32 %v5106_v62, %v10491_v42  ;;  %v5179_v15 = vadd.f32 %v5178_v30, %v5167_v8  ;;  %v5168_v60 = vmul.f32 %v9894_v61, %v9894_v61  ;;  %v5148_v52 = vadd.f32 %v5147_v33, %v9894_v61  ;;  %v10495_v42 = vld [vmem:[#allocation54_spill] sm:$0xff] }
0x128f   :  { %v9907_v26 = vadd.f32 %v5107_v29, %v10492_v21  ;;  %v5108_v32 = vmul.f32 0.8, %v5092_v63  ;;  %v5093_v3 = vmax.f32 %v5077_v55, 0.0  ;;  %v5078_v2 = vadd.f32 %v9827_v56, %v5051_v16 }
0x1290   :  { %v5035_v1 = vpop.f32.mrf.mxu1  ;;  %v5052_v36 = vmul.f32 %v5033_v4, %v10493_v7  ;;  %v5169_v62 = vmul.f32 %v9899_v24, %v9899_v24  ;;  %v5136_v16 = vadd.f32 %v5135_v54, %v9899_v24  ;;  %v5149_v63 = vadd.f32 %v5148_v52, %v9904_v10  ;;  %v10496_v52 = vld [vmem:[#allocation56_spill] sm:$0xff] }
0x1291   :  { %v5053_v41 = vmul.f32 %v5035_v1, %v10493_v7  ;;  %v9918_v13 = vadd.f32 %v5108_v32, %v10494_v17  ;;  %v5109_v55 = vmul.f32 0.8, %v5093_v3  ;;  %v5094_v29 = vmax.f32 %v5078_v2, 0.0 }
0x1292   :  { %v5079_v8 = vadd.f32 %v9823_v37, %v5052_v36  ;;  %v5170_v4 = vmul.f32 %v9904_v10, %v9904_v10  ;;  %v5171_v33 = vmul.f32 %v9907_v26, %v9907_v26  ;;  %v5192_v32 = vadd.f32 %v5191_v31, %v5168_v60 }
0x1293   :  { %v5080_v30 = vadd.f32 %v9827_v56, %v5053_v41  ;;  %v9929_v21 = vadd.f32 %v5109_v55, %v10495_v42  ;;  %v5110_v3 = vmul.f32 0.8, %v5094_v29  ;;  %v5180_v2 = vadd.f32 %v5179_v15, %v5169_v62 }
0x1294   :  { %v5095_v1 = vmax.f32 %v5079_v8, 0.0  ;;  %v5137_v37 = vadd.f32 %v5136_v16, %v9907_v26  ;;  %v5150_v56 = vadd.f32 %v5149_v63, %v9918_v13  ;;  %v5172_v36 = vmul.f32 %v9918_v13, %v9918_v13  ;;  %v10497_v16 = vld [vmem:[#allocation57_spill] sm:$0xff] }
0x1295   :  { %v5096_v54 = vmax.f32 %v5080_v30, 0.0  ;;  %v5173_v41 = vmul.f32 %v9929_v21, %v9929_v21  ;;  %v9938_v17 = vadd.f32 %v5110_v3, %v10496_v52  ;;  %v5193_v31 = vadd.f32 %v5192_v32, %v5170_v4  ;;  %v10498_v30 = vld [vmem:[#allocation58_spill] sm:$0xff] }
0x1296   :  { %v5111_v55 = vmul.f32 0.8, %v5095_v1  ;;  %v5181_v60 = vadd.f32 %v5180_v2, %v5171_v33  ;;  %v5138_v29 = vadd.f32 %v5137_v37, %v9929_v21 }
0x1297   :  { %v5112_v42 = vmul.f32 0.8, %v5096_v54  ;;  %v5151_v15 = vadd.f32 %v5150_v56, %v9938_v17  ;;  %v5174_v62 = vmul.f32 %v9938_v17, %v9938_v17  ;;  %v5194_v58 = vadd.f32 %v5193_v31, %v5172_v36 }
0x1298   :  { %v9945_v8 = vadd.f32 %v5111_v55, %v10497_v16  ;;  %v5182_v3 = vadd.f32 %v5181_v60, %v5173_v41 }
0x1299   :  { %v9948_v63 = vadd.f32 %v5112_v42, %v10498_v30  ;;  %v5195_v32 = vadd.f32 %v5194_v58, %v5174_v62 }
0x129a   :  { %v5139_v1 = vadd.f32 %v5138_v29, %v9945_v8  ;;  %v5175_v4 = vmul.f32 %v9945_v8, %v9945_v8 }
0x129b   :  { %v5152_v33 = vadd.f32 %v5151_v15, %v9948_v63  ;;  %v5176_v54 = vmul.f32 %v9948_v63, %v9948_v63 }
0x129c   :  { %v5140_v2 = vrot.slane %v5139_v1, 4  ;;  %v5183_v37 = vadd.f32 %v5182_v3, %v5175_v4 }
0x129d   :  { %v5153_v56 = vrot.slane %v5152_v33, 4  ;;  %v5196_v52 = vadd.f32 %v5195_v32, %v5176_v54 }
0x129e   :  { %v5141_v55 = vadd.f32 %v5140_v2, %v5139_v1  ;;  %v5184_v42 = vrot.slane %v5183_v37, 4 }
0x129f   :  { %v5154_v16 = vadd.f32 %v5153_v56, %v5152_v33  ;;  %v5197_v36 = vrot.slane %v5196_v52, 4 }
0x12a0   :  { %v5142_v41 = vrot.slane %v5141_v55, 2  ;;  %v5185_v31 = vadd.f32 %v5184_v42, %v5183_v37 }
0x12a1   :  { %v5155_v60 = vrot.slane %v5154_v16, 2  ;;  %v5198_v29 = vadd.f32 %v5197_v36, %v5196_v52 }
0x12a2   :  { %v5143_v30 = vadd.f32 %v5142_v41, %v5141_v55  ;;  %v5186_v7 = vrot.slane %v5185_v31, 2 }
0x12a3   :  { %v5156_v19 = vadd.f32 %v5155_v60, %v5154_v16  ;;  %v5199_v15 = vrot.slane %v5198_v29, 2 }
0x12a4   :  { %v5144_v58 = vrot.slane %v5143_v30, 1  ;;  %v5187_v62 = vadd.f32 %v5186_v7, %v5185_v31 }
0x12a5   :  { %v5157_v49 = vrot.slane %v5156_v19, 1  ;;  %v5200_v6 = vadd.f32 %v5199_v15, %v5198_v29 }
0x12a6   :  { %v5145_v46 = vadd.f32 %v5144_v58, %v5143_v30  ;;  %v5188_v3 = vrot.slane %v5187_v62, 1 }
0x12a7   :  { %v5158_v4 = vadd.f32 %v5157_v49, %v5156_v19  ;;  %v5201_v32 = vrot.slane %v5200_v6, 1 }
0x12a8   :  { %v9956_v1 = vmul.f32 0.015625, %v5145_v46  ;;  %v5189_v33 = vadd.f32 %v5188_v3, %v5187_v62  ;;  %v6611_v46 = vld [vmem:[%s10157_s18 + $0x4] sm:$0x3] }
0x12a9   :  { %v9958_v54 = vmul.f32 0.015625, %v5158_v4  ;;  %v5202_v2 = vadd.f32 %v5201_v32, %v5200_v6  ;;  %v6610_v6 = vld [vmem:[%s10156_s17 + $0x4] sm:$0x3]  ;;  %v9977_v60 = vrot.slane %v6611_v46, %v8558_v20  ;;  %v9980_v29 = vrot.slane %v6611_v46, %v8556_v22 }
0x12aa   :  { %v5203_v37 = vmul.f32 0.015625, %v5189_v33  ;;  %v5205_v56 = vmul.f32 %v9956_v1, %v9956_v1  ;;  %v9971_v41 = vrot.slane %v6610_v6, %v8558_v20  ;;  %v9974_v31 = vrot.slane %v6610_v6, %v8556_v22 }
0x12ab   :  { %v5206_v52 = vmul.f32 %v9958_v54, %v9958_v54  ;;  %v5204_v7 = vmul.f32 0.015625, %v5202_v2  ;;  %v5211_v15 = vsub.f32 %v9846_v23, %v9956_v1  ;;  %v5213_v58 = vsub.f32 %v9840_v5, %v9956_v1 }
0x12ac   :  { %v5207_v55 = vsub.f32 %v5203_v37, %v5205_v56  ;;  %v5215_v62 = vsub.f32 %v9863_v0, %v9956_v1  ;;  %v5212_v4 = vsub.f32 %v9850_v18, %v9958_v54  ;;  %v5214_v32 = vsub.f32 %v9855_v25, %v9958_v54 }
0x12ad   :  { %v5208_v42 = vsub.f32 %v5204_v7, %v5206_v52  ;;  %v5216_v33 = vsub.f32 %v9866_v44, %v9958_v54  ;;  %v5218_v23 = vsub.f32 %v9894_v61, %v9958_v54  ;;  %v5217_v0 = vsub.f32 %v9878_v47, %v9956_v1  ;;  %v5303_v47 = vld [vmem:[#allocation7 + $0x188] sm:$0xff] }
0x12ae   :  { %v5209_v16 = vmax.f32 %v5207_v55, 0.0 }
0x12af   :  { %v5210_v36 = vmax.f32 %v5208_v42, 0.0  ;;  %v5220_v42 = vsub.f32 %v9904_v10, %v9958_v54 }
0x12b0   :  { %v5227_v19 = vadd.f32 1e-05, %v5209_v16 }
0x12b1   :  { %v5228_v49 = vadd.f32 1e-05, %v5210_v36 }
0x12b2   :  { %7580 = vrsqrt.f32 %v5227_v19  ;;  %v5302_v19 = vld [vmem:[#allocation7 + $0x180] sm:$0xff] }
0x12b3   :  { %7582 = vrsqrt.f32 %v5228_v49  ;;  %v5304_v49 = vld [vmem:[#allocation7 + $0x190] sm:$0xff] }
0x12bf   :  { %v9990_v3 = vpop.eup %7580 }
0x12c0   :  { %v7583_v2 = vpop.eup %7582  ;;  %v5231_v5 = vmul.f32 %v9990_v3, %v5211_v15  ;;  %v5233_v37 = vmul.f32 %v9990_v3, %v5213_v58  ;;  %v5235_v56 = vmul.f32 %v9990_v3, %v5215_v62  ;;  %v5237_v61 = vmul.f32 %v9990_v3, %v5217_v0  ;;  %v5305_v15 = vld [vmem:[#allocation7 + $0x198] sm:$0xff] }
0x12c1   :  { %v5232_v18 = vmul.f32 %v7583_v2, %v5212_v4  ;;  %v5234_v52 = vmul.f32 %v7583_v2, %v5214_v32  ;;  %v5236_v7 = vmul.f32 %v7583_v2, %v5216_v33  ;;  %v5238_v25 = vmul.f32 %v7583_v2, %v5218_v23  ;;  %v5307_v4 = vld [vmem:[#allocation7 + $0x1a8] sm:$0xff]  ;;  %v5309_v32 = vld [vmem:[#allocation7 + $0x1b8] sm:$0xff] }
0x12c2   :  { %v5258_v55 = vmul.f32 %v9971_v41, %v5231_v5  ;;  %v5260_v44 = vmul.f32 %v9971_v41, %v5233_v37  ;;  %v5262_v10 = vmul.f32 %v9971_v41, %v5235_v56  ;;  %v5264_v33 = vmul.f32 %v9971_v41, %v5237_v61 }
0x12c3   :  { %v5259_v16 = vmul.f32 %v9974_v31, %v5232_v18  ;;  %v5261_v36 = vmul.f32 %v9974_v31, %v5234_v52  ;;  %v5263_v6 = vmul.f32 %v9974_v31, %v5236_v7  ;;  %v5265_v46 = vmul.f32 %v9974_v31, %v5238_v25 }
0x12c4   :  { %v5285_v58 = vadd.f32 %v9977_v60, %v5258_v55  ;;  %v5287_v62 = vadd.f32 %v9977_v60, %v5260_v44  ;;  %v5222_v7 = vsub.f32 %v9918_v13, %v9958_v54  ;;  %v5219_v25 = vsub.f32 %v9899_v24, %v9956_v1 }
0x12c5   :  { %v5286_v23 = vadd.f32 %v9980_v29, %v5259_v16  ;;  %v5288_v5 = vadd.f32 %v9980_v29, %v5261_v36  ;;  %v5290_v37 = vadd.f32 %v9980_v29, %v5263_v6  ;;  %v5292_v0 = vadd.f32 %v9980_v29, %v5265_v46 }
0x12c6   :  { %v5318_v18 = vmul.f32 %v5302_v19, %v5285_v58  ;;  %v5320_v52 = vmul.f32 %v5304_v49, %v5287_v62  ;;  %v5240_v30 = vmul.f32 %v7583_v2, %v5220_v42  ;;  %v5242_v16 = vmul.f32 %v7583_v2, %v5222_v7  ;;  %v5308_v62 = vld [vmem:[#allocation7 + $0x1b0] sm:$0xff] }
0x12c7   :  { %v5319_v55 = vmul.f32 %v5303_v47, %v5286_v23  ;;  %v5321_v56 = vmul.f32 %v5305_v15, %v5288_v5  ;;  %v5323_v44 = vmul.f32 %v5307_v4, %v5290_v37  ;;  %v5325_v61 = vmul.f32 %v5309_v32, %v5292_v0  ;;  %v5313_v23 = vld [vmem:[#allocation7 + $0x1d8] sm:$0xff] }
0x12c8   :  { %v5221_v36 = vsub.f32 %v9907_v26, %v9956_v1  ;;  %v5224_v6 = vsub.f32 %v9938_v17, %v9958_v54  ;;  %v5388_v49 = vpack.c.bf16 %v5320_v52, %v5318_v18  ;;  %v5289_v46 = vadd.f32 %v9977_v60, %v5262_v10  ;;  %v5306_v26 = vld [vmem:[#allocation7 + $0x1a0] sm:$0xff] }
0x12c9   :  { %v5389_v19 = vpack.c.bf16 %v5321_v56, %v5319_v55  ;;  %v5291_v13 = vadd.f32 %v9977_v60, %v5264_v33  ;;  %v5267_v24 = vmul.f32 %v9974_v31, %v5240_v30  ;;  %v5269_v47 = vmul.f32 %v9974_v31, %v5242_v16  ;;  %v5311_v33 = vld [vmem:[#allocation7 + $0x1c8] sm:$0xff] }
0x12ca   :  { %v5239_v15 = vmul.f32 %v9990_v3, %v5219_v25  ;;  %v5241_v42 = vmul.f32 %v9990_v3, %v5221_v36  ;;  %v5391_v58 = vpack.c.bf16 %v5325_v61, %v5323_v44  ;;  %v5244_v4 = vmul.f32 %v7583_v2, %v5224_v6  ;;  %v5310_v36 = vld [vmem:[#allocation7 + $0x1c0] sm:$0xff]  ;;  %v5312_v6 = vld [vmem:[#allocation7 + $0x1d0] sm:$0xff] }
0x12cb   :  { %5530 = vmatprep.mubr.bf16.mxu0 %v5389_v19  ;;  %v10499_v17 = vsub.f32 %v9948_v63, %v9958_v54  ;;  %v5294_v10 = vadd.f32 %v9980_v29, %v5267_v24  ;;  %v5296_v30 = vadd.f32 %v9980_v29, %v5269_v47  ;;  %v5225_v5 = vsub.f32 %v9945_v8, %v9956_v1 }
0x12cc   :  { %5531 = vmatmul.mubr.bf16.vlgmr.msra.gmra.mxu0 %v5388_v49  ;;  %v5322_v37 = vmul.f32 %v5306_v26, %v5289_v46  ;;  %v5324_v0 = vmul.f32 %v5308_v62, %v5291_v13  ;;  %v5266_v18 = vmul.f32 %v9971_v41, %v5239_v15  ;;  %v5268_v52 = vmul.f32 %v9971_v41, %v5241_v42  ;;  %v5317_v46 = vld [vmem:[#allocation7 + $0x1f8] sm:$0xff]  ;;  %v5314_v62 = vld [vmem:[#allocation7 + $0x1e0] sm:$0xff] }
0x12cd   :  { %v5246_v32 = vmul.f32 %v7583_v2, %v10499_v17  ;;  %5538 = vmatprep.mubr.bf16.mxu0 %v5391_v58  ;;  %v5327_v7 = vmul.f32 %v5311_v33, %v5294_v10  ;;  %v5329_v63 = vmul.f32 %v5313_v23, %v5296_v30  ;;  %v5271_v54 = vmul.f32 %v9974_v31, %v5244_v4  ;;  %v7351_v10 = vld [vmem:[#allocation22 + $0x120] ss:$8 sps:$4 sm:$0xff]   ;;  %v7353_v30 = vld [vmem:[#allocation22 + $0x124] ss:$8 sps:$4 sm:$0xff]   ;;  %v7356_v33 = vld [vmem:[#allocation22 + $0x114] ss:$8 sps:$4 sm:$0xff]  }
0x12ce   :  { %v5223_v25 = vsub.f32 %v9929_v21, %v9956_v1  ;;  %v5245_v55 = vmul.f32 %v9990_v3, %v5225_v5  ;;  %v5390_v56 = vpack.c.bf16 %v5324_v0, %v5322_v37  ;;  %v5293_v8 = vadd.f32 %v9977_v60, %v5266_v18  ;;  %5676 = vmatprep.subr.bf16.mxu1 %v7353_v30  ;;  %v7359_v23 = vld [vmem:[#allocation22 + $0x104] ss:$8 sps:$4 sm:$0xff]   ;;  %v7357_v5 = vld [vmem:[#allocation22 + $0x100] ss:$8 sps:$4 sm:$0xff]   ;;  %v6614_v18 = vld [vmem:[%s10159_s20 + $0x2] ss:$0 sm:$0xff] }
0x12cf   :  { %v5273_v2 = vmul.f32 %v9974_v31, %v5246_v32  ;;  %v5295_v44 = vadd.f32 %v9977_v60, %v5268_v52  ;;  %v5393_v16 = vpack.c.bf16 %v5329_v63, %v5327_v7  ;;  %v5298_v19 = vadd.f32 %v9980_v29, %v5271_v54  ;;  %v5315_v31 = vld [vmem:[#allocation7 + $0x1e8] sm:$0xff]  ;;  %5677 = vmatpush1.bf16.msra.mxu1 %v7351_v10 }
0x12d0   :  { %v5243_v61 = vmul.f32 %v9990_v3, %v5223_v25  ;;  %v5326_v21 = vmul.f32 %v5310_v36, %v5293_v8  ;;  %v5272_v24 = vmul.f32 %v9971_v41, %v5245_v55  ;;  %5678 = vmatprep.subr.bf16.mxu1 %v7356_v33 }
0x12d1   :  { %v5300_v49 = vadd.f32 %v9980_v29, %v5273_v2  ;;  %v5328_v1 = vmul.f32 %v5312_v6, %v5295_v44  ;;  %v5331_v47 = vmul.f32 %v5315_v31, %v5298_v19  ;;  %v5316_v29 = vld [vmem:[#allocation7 + $0x1f0] sm:$0xff] }
0x12d2   :  { %v5270_v13 = vmul.f32 %v9971_v41, %v5243_v61  ;;  %v5299_v58 = vadd.f32 %v9977_v60, %v5272_v24  ;;  %v7354_v41 = vld [vmem:[#allocation22 + $0x110] ss:$8 sps:$4 sm:$0xff]  }
0x12d3   :  { %v5333_v15 = vmul.f32 %v5317_v46, %v5300_v49  ;;  %v5392_v3 = vpack.c.bf16 %v5328_v1, %v5326_v21  ;;  %5679 = vmatpush1.bf16.msra.mxu1 %v7354_v41 }
0x12d4   :  { %5539 = vmatmul.mubr.bf16.gmra.mxu0 %v5390_v56  ;;  %v5297_v42 = vadd.f32 %v9977_v60, %v5270_v13  ;;  %v5332_v17 = vmul.f32 %v5316_v29, %v5299_v58  ;;  %5680 = vmatprep.subr.bf16.mxu1 %v7359_v23 }
0x12d5   :  { %5546 = vmatprep.mubr.bf16.mxu0 %v5393_v16  ;;  %v5395_v26 = vpack.c.bf16 %v5333_v15, %v5331_v47 }
0x12d6   :  { %v5330_v4 = vmul.f32 %v5314_v62, %v5297_v42 }
0x12d7   :  { %5681 = vmatpush1.bf16.msra.mxu1 %v7357_v5 }
0x12d8   :  { %v5394_v32 = vpack.c.bf16 %v5332_v17, %v5330_v4 }
0x12dc   :  { %5547 = vmatmul.mubr.bf16.gmra.mxu0 %v5392_v3 }
0x12dd   :  { %5554 = vmatprep.mubr.bf16.mxu0 %v5395_v26 }
0x12e4   :  { %5555 = vmatmul.mubr.bf16.gmra.mxu0 %v5394_v32 }
0x138c   :  { %v6824_v60 = vpop.f32.mrf.mxu0 }
0x138e   :  { %v6825_v37 = vpop.f32.mrf.mxu0 }
0x138f   :  { %v6826_v0 = vadd.f32 %v6825_v37, %v6824_v60 }
0x1390   :  { %v6827_v52 = vpop.f32.mrf.mxu0 }
0x1391   :  { %v5533_v63 = vadd.f32 %v6826_v0, %v6614_v18  ;;  %v7360_v0 = vld [vmem:[#allocation23 + $0x78] sm:$0xff]  }
0x1392   :  { %v6828_v7 = vpop.f32.mrf.mxu0  ;;  %6848 = vmatprep.subr.bf16.mxu0 %v7360_v0 }
0x1393   :  { %v6829_v54 = vadd.f32 %v6828_v7, %v6827_v52  ;;  %v5563_v56 = vmax.f32 %v5533_v63, 0.0  ;;  %v7361_v52 = vld [vmem:[#allocation23 + $0x38] sm:$0xff]   ;;  %v7362_v7 = vld [vmem:[#allocation23 + $0x70] sm:$0xff]  }
0x1394   :  { %v6830_v2 = vpop.f32.mrf.mxu0  ;;  %6849 = vmatpush3.bf16.msra.mxu0 %v7361_v52  ;;  %v7363_v63 = vld [vmem:[#allocation23 + $0x30] sm:$0xff]  }
0x1395   :  { %v5536_v25 = vadd.f32 %v6829_v54, %v6614_v18  ;;  %6850 = vmatprep.subr.bf16.mxu0 %v7362_v7  ;;  %v7364_v54 = vld [vmem:[#allocation23 + $0x68] sm:$0xff]  }
0x1396   :  { %v6831_v55 = vpop.f32.mrf.mxu0 }
0x1397   :  { %v5564_v8 = vmax.f32 %v5536_v25, 0.0  ;;  %v6832_v44 = vadd.f32 %v6831_v55, %v6830_v2  ;;  %v7365_v2 = vld [vmem:[#allocation23 + $0x28] sm:$0xff]   ;;  %v7368_v25 = vld [vmem:[#allocation23 + $0x58] sm:$0xff]  }
0x1398   :  { %v6833_v61 = vpop.f32.mrf.mxu0  ;;  %6851 = vmatpush3.bf16.msra.mxu0 %v7363_v63  ;;  %v7369_v55 = vld [vmem:[#allocation23 + $0x18] sm:$0xff]  }
0x1399   :  { %v5571_v16 = vpack.c.bf16 %v5564_v8, %v5563_v56  ;;  %v5541_v6 = vadd.f32 %v6832_v44, %v6614_v18  ;;  %6852 = vmatprep.subr.bf16.mxu0 %v7364_v54  ;;  %v7371_v56 = vld [vmem:[#allocation23 + $0x10] sm:$0xff]   ;;  %v7372_v8 = vld [vmem:[#allocation23 + $0x48] sm:$0xff]  }
0x139a   :  { %v6834_v36 = vpop.f32.mrf.mxu0  ;;  %v7373_v44 = vld [vmem:[#allocation23 + $0x8] sm:$0xff]  }
0x139b   :  { %v6835_v19 = vadd.f32 %v6834_v36, %v6833_v61  ;;  %5699 = vmatmul.mubr.bf16.vlgmr.msra.gmra.mxu1 %v5571_v16  ;;  %v5565_v21 = vmax.f32 %v5541_v6, 0.0  ;;  %v7374_v61 = vld [vmem:[#allocation23 + $0x40] sm:$0xff]   ;;  %v6613_v36 = vld [vmem:[%s10161_s22 + $0x4] sm:$0x3] }
0x139c   :  { %v6836_v49 = vpop.f32.mrf.mxu0  ;;  %5708 = vmatprep.mubr.bf16.mxu1 %v10346_v12  ;;  %6853 = vmatpush3.bf16.msra.mxu0 %v7365_v2  ;;  %v7375_v16 = vld [vmem:[#allocation23] sm:$0xff]   ;;  %v10071_v6 = vrot.slane %v6613_v36, %v8558_v20 }
0x139d   :  { %v5544_v31 = vadd.f32 %v6835_v19, %v6614_v18  ;;  %v10074_v19 = vrot.slane %v6613_v36, %v8556_v22 }
0x139e   :  { %v6837_v46 = vpop.f32.mrf.mxu0 }
0x139f   :  { %v5566_v1 = vmax.f32 %v5544_v31, 0.0  ;;  %v6838_v13 = vadd.f32 %v6837_v46, %v6836_v49 }
0x13a0   :  { %v6839_v24 = vpop.f32.mrf.mxu0 }
0x13a1   :  { %v5572_v47 = vpack.c.bf16 %v5566_v1, %v5565_v21  ;;  %v5549_v3 = vadd.f32 %v6838_v13, %v6614_v18 }
0x13a2   :  { %v6840_v15 = vpop.f32.mrf.mxu0 }
0x13a3   :  { %v6841_v42 = vadd.f32 %v6840_v15, %v6839_v24  ;;  %5709 = vmatmul.mubr.bf16.gmra.mxu1 %v5572_v47  ;;  %v5567_v29 = vmax.f32 %v5549_v3, 0.0 }
0x13a4   :  { %v6842_v58 = vpop.f32.mrf.mxu0  ;;  %5718 = vmatprep.mubr.bf16.mxu1 %v10346_v12 }
0x13a5   :  { %v5552_v26 = vadd.f32 %v6841_v42, %v6614_v18 }
0x13a6   :  { %v6843_v62 = vpop.f32.mrf.mxu0 }
0x13a7   :  { %v5568_v4 = vmax.f32 %v5552_v26, 0.0  ;;  %v6844_v17 = vadd.f32 %v6843_v62, %v6842_v58 }
0x13a8   :  { %v6845_v32 = vpop.f32.mrf.mxu0 }
0x13a9   :  { %v5573_v10 = vpack.c.bf16 %v5568_v4, %v5567_v29  ;;  %v5557_v41 = vadd.f32 %v6844_v17, %v6614_v18 }
0x13aa   :  { %v6846_v30 = vpop.f32.mrf.mxu0 }
0x13ab   :  { %v6847_v33 = vadd.f32 %v6846_v30, %v6845_v32  ;;  %5719 = vmatmul.mubr.bf16.gmra.mxu1 %v5573_v10  ;;  %v5569_v5 = vmax.f32 %v5557_v41, 0.0 }
0x13ac   :  { %5728 = vmatprep.mubr.bf16.mxu1 %v10346_v12  ;;  %v7366_v12 = vld [vmem:[#allocation23 + $0x60] sm:$0xff]  }
0x13ad   :  { %v5560_v23 = vadd.f32 %v6847_v33, %v6614_v18  ;;  %v7367_v18 = vld [vmem:[#allocation23 + $0x20] sm:$0xff]   ;;  %6854 = vmatprep.subr.bf16.mxu0 %v7366_v12 }
0x13ae   :  { %6855 = vmatpush3.bf16.msra.mxu0 %v7367_v18 }
0x13af   :  { %v5570_v60 = vmax.f32 %v5560_v23, 0.0  ;;  %6856 = vmatprep.subr.bf16.mxu0 %v7368_v25 }
0x13b1   :  { %v5574_v37 = vpack.c.bf16 %v5570_v60, %v5569_v5 }
0x13b2   :  { %6857 = vmatpush3.bf16.msra.mxu0 %v7369_v55 }
0x13b3   :  { %5729 = vmatmul.mubr.bf16.gmra.mxu1 %v5574_v37 }
0x13b4   :  { %6920 = vmatprep.mubr.msk.bf16.mxu1 %vm713_vm0, %v10382_v27  ;;  %v7370_v27 = vld [vmem:[#allocation23 + $0x50] sm:$0xff]  }
0x13b5   :  { %6858 = vmatprep.subr.bf16.mxu0 %v7370_v27 }
0x13b6   :  { %6859 = vmatpush3.bf16.msra.mxu0 %v7371_v56 }
0x13b7   :  { %6860 = vmatprep.subr.bf16.mxu0 %v7372_v8 }
0x13ba   :  { %6861 = vmatpush3.bf16.msra.mxu0 %v7373_v44 }
0x13bb   :  { %6862 = vmatprep.subr.bf16.mxu0 %v7374_v61 }
0x13be   :  { %6863 = vmatpush3.bf16.msra.mxu0 %v7375_v16 }
0x145b   :  { %v5700_v49 = vpop.f32.mrf.mxu1 }
0x145c   :  { %v5701_v31 = vadd.f32 %v5700_v49, %v10071_v6 }
0x145d   :  { %v5702_v46 = vpop.f32.mrf.mxu1 }
0x145e   :  { %v6647_v21 = vmul.f32 -1.442695, %v5701_v31  ;;  %v5703_v1 = vadd.f32 %v5702_v46, %v10074_v19 }
0x145f   :  { %v5704_v13 = vpop.f32.mrf.mxu1 }
0x1460   :  { %7584 = vpow2.f32 %v6647_v21  ;;  %v6648_v24 = vmul.f32 -1.442695, %v5703_v1  ;;  %v5705_v47 = vadd.f32 %v5704_v13, %v10071_v6 }
0x1461   :  { %v5706_v15 = vpop.f32.mrf.mxu1 }
0x1462   :  { %7586 = vpow2.f32 %v6648_v24  ;;  %v6649_v3 = vmul.f32 -1.442695, %v5705_v47  ;;  %v5707_v20 = vadd.f32 %v5706_v15, %v10074_v19 }
0x1463   :  { %v5710_v42 = vpop.f32.mrf.mxu1 }
0x1464   :  { %7588 = vpow2.f32 %v6649_v3  ;;  %v6650_v22 = vmul.f32 -1.442695, %v5707_v20  ;;  %v5711_v58 = vadd.f32 %v5710_v42, %v10071_v6 }
0x1465   :  { %v5712_v26 = vpop.f32.mrf.mxu1 }
0x1466   :  { %7590 = vpow2.f32 %v6650_v22  ;;  %v6651_v62 = vmul.f32 -1.442695, %v5711_v58  ;;  %v5713_v29 = vadd.f32 %v5712_v26, %v10074_v19 }
0x1467   :  { %v5714_v4 = vpop.f32.mrf.mxu1 }
0x1468   :  { %7592 = vpow2.f32 %v6651_v62  ;;  %v6652_v17 = vmul.f32 -1.442695, %v5713_v29  ;;  %v5715_v32 = vadd.f32 %v5714_v4, %v10071_v6 }
0x1469   :  { %v5716_v10 = vpop.f32.mrf.mxu1 }
0x146a   :  { %7594 = vpow2.f32 %v6652_v17  ;;  %v6653_v30 = vmul.f32 -1.442695, %v5715_v32  ;;  %v5717_v41 = vadd.f32 %v5716_v10, %v10074_v19 }
0x146b   :  { %v5720_v33 = vpop.f32.mrf.mxu1 }
0x146c   :  { %7596 = vpow2.f32 %v6653_v30  ;;  %v6654_v23 = vmul.f32 -1.442695, %v5717_v41  ;;  %v5721_v5 = vadd.f32 %v5720_v33, %v10071_v6 }
0x146d   :  { %v7585_v60 = vpop.eup %7584  ;;  %v5722_v37 = vpop.f32.mrf.mxu1 }
0x146e   :  { %v5787_v0 = vadd.f32 1.0, %v7585_v60  ;;  %7598 = vpow2.f32 %v6654_v23  ;;  %v6655_v52 = vmul.f32 -1.442695, %v5721_v5  ;;  %v5723_v7 = vadd.f32 %v5722_v37, %v10074_v19 }
0x146f   :  { %v7587_v63 = vpop.eup %7586  ;;  %v5724_v54 = vpop.f32.mrf.mxu1 }
0x1470   :  { %7600 = vrcp.f32 %v5787_v0  ;;  %v5788_v2 = vadd.f32 1.0, %v7587_v63  ;;  %v6656_v12 = vmul.f32 -1.442695, %v5723_v7  ;;  %v5725_v18 = vadd.f32 %v5724_v54, %v10071_v6 }
0x1471   :  { %v7589_v25 = vpop.eup %7588  ;;  %7602 = vpow2.f32 %v6655_v52  ;;  %v5726_v55 = vpop.f32.mrf.mxu1 }
0x1472   :  { %7604 = vrcp.f32 %v5788_v2  ;;  %v5789_v27 = vadd.f32 1.0, %v7589_v25  ;;  %v6657_v56 = vmul.f32 -1.442695, %v5725_v18  ;;  %v5727_v8 = vadd.f32 %v5726_v55, %v10074_v19 }
0x1473   :  { %v7591_v44 = vpop.eup %7590  ;;  %7606 = vpow2.f32 %v6656_v12  ;;  %v5730_v61 = vpop.f32.mrf.mxu1 }
0x1474   :  { %7608 = vrcp.f32 %v5789_v27  ;;  %v5790_v16 = vadd.f32 1.0, %v7591_v44  ;;  %v6658_v36 = vmul.f32 -1.442695, %v5727_v8  ;;  %v5731_v49 = vadd.f32 %v5730_v61, %v10071_v6 }
0x1475   :  { %v7593_v31 = vpop.eup %7592  ;;  %7610 = vpow2.f32 %v6657_v56  ;;  %v5732_v46 = vpop.f32.mrf.mxu1 }
0x1476   :  { %7612 = vrcp.f32 %v5790_v16  ;;  %v5791_v21 = vadd.f32 1.0, %v7593_v31  ;;  %v6659_v1 = vmul.f32 -1.442695, %v5731_v49  ;;  %v5733_v13 = vadd.f32 %v5732_v46, %v10074_v19 }
0x1477   :  { %v7595_v24 = vpop.eup %7594  ;;  %7614 = vpow2.f32 %v6658_v36  ;;  %v5734_v47 = vpop.f32.mrf.mxu1 }
0x1478   :  { %7616 = vrcp.f32 %v5791_v21  ;;  %v5792_v15 = vadd.f32 1.0, %v7595_v24  ;;  %v6660_v3 = vmul.f32 -1.442695, %v5733_v13  ;;  %v5735_v20 = vadd.f32 %v5734_v47, %v10071_v6 }
0x1479   :  { %v7597_v42 = vpop.eup %7596  ;;  %7618 = vpow2.f32 %v6659_v1  ;;  %v5736_v22 = vpop.f32.mrf.mxu1 }
0x147a   :  { %7620 = vrcp.f32 %v5792_v15  ;;  %v5793_v58 = vadd.f32 1.0, %v7597_v42  ;;  %v6661_v26 = vmul.f32 -1.442695, %v5735_v20  ;;  %v5737_v62 = vadd.f32 %v5736_v22, %v10074_v19  ;;  %v7664_v22 = vld [vmem:[#allocation5] sm:$0xff]  }
0x147b   :  { %v7599_v29 = vpop.eup %7598  ;;  %7622 = vpow2.f32 %v6660_v3 }
0x147c   :  { %7624 = vrcp.f32 %v5793_v58  ;;  %v5794_v4 = vadd.f32 1.0, %v7599_v29  ;;  %v6662_v17 = vmul.f32 -1.442695, %v5737_v62 }
0x147d   :  { %v7601_v32 = vpop.eup %7600  ;;  %7626 = vpow2.f32 %v6661_v26 }
0x147e   :  { %v7603_v10 = vpop.eup %7602  ;;  %7628 = vrcp.f32 %v5794_v4 }
0x147f   :  { %v7605_v30 = vpop.eup %7604  ;;  %7630 = vpow2.f32 %v6662_v17  ;;  %v5795_v0 = vadd.f32 1.0, %v7603_v10 }
0x1480   :  { %v7607_v6 = vpop.eup %7606 }
0x1481   :  { %v7609_v41 = vpop.eup %7608  ;;  %v5796_v33 = vadd.f32 1.0, %v7607_v6 }
0x1482   :  { %v7611_v23 = vpop.eup %7610  ;;  %v5868_v63 = vpack.c.bf16 %v7609_v41, %v7601_v32 }
0x1483   :  { %v7613_v5 = vpop.eup %7612  ;;  %v5797_v60 = vadd.f32 1.0, %v7611_v23  ;;  %7632 = vrcp.f32 %v5796_v33 }
0x1484   :  { %v7615_v37 = vpop.eup %7614  ;;  %v5869_v19 = vpack.c.bf16 %v7613_v5, %v7605_v30 }
0x1485   :  { %v7617_v52 = vpop.eup %7616  ;;  %v5798_v7 = vadd.f32 1.0, %v7615_v37  ;;  %7634 = vrcp.f32 %v5797_v60 }
0x1486   :  { %v7619_v54 = vpop.eup %7618  ;;  %6004 = vmatprep.mubr.bf16.mxu0 %v5869_v19 }
0x1487   :  { %v7621_v2 = vpop.eup %7620  ;;  %7636 = vrcp.f32 %v5798_v7  ;;  %6005 = vmatmul.mubr.bf16.vlgmr.msra.gmra.mxu0 %v5868_v63  ;;  %v5799_v44 = vadd.f32 1.0, %v7619_v54 }
0x1488   :  { %v7623_v12 = vpop.eup %7622  ;;  %7638 = vrcp.f32 %v5795_v0 }
0x1489   :  { %v7625_v18 = vpop.eup %7624  ;;  %v5800_v25 = vadd.f32 1.0, %v7623_v12 }
0x148a   :  { %v7627_v55 = vpop.eup %7626  ;;  %v5870_v36 = vpack.c.bf16 %v7625_v18, %v7617_v52 }
0x148b   :  { %v7629_v27 = vpop.eup %7628  ;;  %v5801_v56 = vadd.f32 1.0, %v7627_v55  ;;  %7640 = vrcp.f32 %v5800_v25 }
0x148c   :  { %v7631_v8 = vpop.eup %7630  ;;  %v5871_v61 = vpack.c.bf16 %v7629_v27, %v7621_v2 }
0x148d   :  { %v5802_v16 = vadd.f32 1.0, %v7631_v8  ;;  %7642 = vrcp.f32 %v5801_v56  ;;  %v10500_v56 = vld [vmem:[#allocation40_spill] sm:$0xff]  ;;  %v10501_v8 = vld [vmem:[#allocation41_spill] sm:$0xff] }
0x148e   :  { %6012 = vmatprep.mubr.bf16.mxu0 %v5871_v61  ;;  %v7665_v61 = vld [vmem:[#allocation5 + $0x10] sm:$0xff]  }
0x148f   :  { %7644 = vrcp.f32 %v5802_v16  ;;  %6013 = vmatmul.mubr.bf16.gmra.mxu0 %v5870_v36 }
0x1490   :  { %7646 = vrcp.f32 %v5799_v44  ;;  %v7633_v49 = vpop.eup %7632  ;;  %v10502_v44 = vld [vmem:[#allocation42_spill] sm:$0xff] }
0x1492   :  { %v7635_v31 = vpop.eup %7634 }
0x1494   :  { %v7637_v46 = vpop.eup %7636 }
0x1495   :  { %v7639_v21 = vpop.eup %7638  ;;  %v5873_v1 = vpack.c.bf16 %v7637_v46, %v7633_v49 }
0x1496   :  { %v5872_v13 = vpack.c.bf16 %v7635_v31, %v7639_v21 }
0x1497   :  { %6020 = vmatprep.mubr.bf16.mxu0 %v5873_v1 }
0x1498   :  { %6021 = vmatmul.mubr.bf16.gmra.mxu0 %v5872_v13  ;;  %v7641_v24 = vpop.eup %7640 }
0x149a   :  { %v7643_v47 = vpop.eup %7642 }
0x149c   :  { %v7645_v15 = vpop.eup %7644 }
0x149d   :  { %v7647_v3 = vpop.eup %7646  ;;  %v5875_v20 = vpack.c.bf16 %v7645_v15, %v7641_v24 }
0x149e   :  { %v5874_v42 = vpack.c.bf16 %v7643_v47, %v7647_v3 }
0x149f   :  { %6028 = vmatprep.mubr.bf16.mxu0 %v5875_v20 }
0x14a0   :  { %6029 = vmatmul.mubr.bf16.gmra.mxu0 %v5874_v42 }
0x14a1   :  { %6952 = vmatprep.mubr.bf16.mxu0 %v7664_v22 }
0x1547   :  { %v6864_v58 = vpop.f32.mrf.mxu0 }
0x1549   :  { %v6865_v26 = vpop.f32.mrf.mxu0 }
0x154a   :  { %v6866_v55 = vadd.f32 %v6865_v26, %v6864_v58 }
0x154b   :  { %v6867_v62 = vpop.f32.mrf.mxu0 }
0x154d   :  { %v6868_v29 = vpop.f32.mrf.mxu0 }
0x154e   :  { %v6869_v18 = vadd.f32 %v6868_v29, %v6867_v62 }
0x154f   :  { %v6870_v4 = vpop.f32.mrf.mxu0 }
0x1550   :  { %v6037_v27 = vpack.c.bf16 %v6869_v18, %v6866_v55 }
0x1551   :  { %v6871_v17 = vpop.f32.mrf.mxu0 }
0x1552   :  { %v6872_v12 = vadd.f32 %v6871_v17, %v6870_v4 }
0x1553   :  { %v6873_v32 = vpop.f32.mrf.mxu0 }
0x1555   :  { %v6874_v10 = vpop.f32.mrf.mxu0 }
0x1556   :  { %v6875_v54 = vadd.f32 %v6874_v10, %v6873_v32 }
0x1558   :  { %v6876_v30 = vpop.f32.mrf.mxu0  ;;  %v6038_v25 = vpack.c.bf16 %v6875_v54, %v6872_v12 }
0x155a   :  { %v6877_v6 = vpop.f32.mrf.mxu0 }
0x155b   :  { %v6878_v7 = vadd.f32 %v6877_v6, %v6876_v30 }
0x155c   :  { %v6879_v41 = vpop.f32.mrf.mxu0 }
0x155e   :  { %v6880_v33 = vpop.f32.mrf.mxu0 }
0x155f   :  { %v6881_v0 = vadd.f32 %v6880_v33, %v6879_v41  ;;  %v10505_v41 = vld [vmem:[#allocation63_spill] sm:$0xff] }
0x1560   :  { %v6882_v23 = vpop.f32.mrf.mxu0 }
0x1561   :  { %v6039_v2 = vpack.c.bf16 %v6881_v0, %v6878_v7  ;;  %v10507_v7 = vld [vmem:[#allocation70_spill] sm:$0xff] }
0x1562   :  { %v6883_v5 = vpop.f32.mrf.mxu0 }
0x1563   :  { %v6884_v19 = vadd.f32 %v6883_v5, %v6882_v23  ;;  %v7666_v5 = vld [vmem:[#allocation5 + $0x8] sm:$0xff]  }
0x1564   :  { %v6885_v60 = vpop.f32.mrf.mxu0 }
0x1566   :  { %v6886_v37 = vpop.f32.mrf.mxu0 }
0x1567   :  { %v6887_v52 = vadd.f32 %v6886_v37, %v6885_v60  ;;  %v7667_v60 = vld [vmem:[#allocation5 + $0x18] sm:$0xff]   ;;  %v6687_v37 = vld [vmem:[%s10163_s24] ss:$0 sm:$0xff]  ;;  %s8007_s24 = smov [#allocation25]  }
0x1568   :  { %s6270_s11 = sshll.u32 %s8007_s24, 4  ;;  %s6271_s11 = int_to_ptr.vmem [resolvable:$true] %s6270_s11 }
0x1569   :  { %v6040_v63 = vpack.c.bf16 %v6887_v52, %v6884_v19  ;;  %s7948_s29 = scalar_lea.vmem %s6271_s11, 1024  ;;  %p7953_p1 = scmp.lt.s32.totalorder %s6271_s11, %s6271_s11 }
0x156a   :  { %p7949_p0 = scmp.ne.s32.totalorder %s6271_s11, %s7948_s29  ;;  %p7954_p2 = scmp.lt.s32.totalorder %s7948_s29, %s7948_s29 }
0x156b   :  { %6912 = vmatprep.subr.bf16.mxu1 %v6040_v63 }
0x156c   :  { %6913 = vmatpush3.bf16.msra.mxu1 %v6040_v63  ;;  %p7955_p3 = por %p7954_p2, %p7953_p1 }
0x156d   :  { %6914 = vmatprep.subr.bf16.mxu1 %v6039_v2 }
0x156e   :  { %p7956_p4 = pnand %p7955_p3, %p7949_p0 }
0x1570   :  { %6915 = vmatpush3.bf16.msra.mxu1 %v6039_v2 }
0x1571   :  { %6916 = vmatprep.subr.bf16.mxu1 %v6038_v25 }
0x1574   :  { %6917 = vmatpush3.bf16.msra.mxu1 %v6038_v25  ;;  %v10508_v25 = vld [vmem:[#allocation64_spill] sm:$0xff] }
0x1575   :  { %6918 = vmatprep.subr.bf16.mxu1 %v6037_v27 }
0x1578   :  { %6919 = vmatpush3.bf16.msra.mxu1 %v6037_v27  ;;  %v10509_v27 = vld [vmem:[#allocation68_spill] sm:$0xff] }
0x157b   :  { %6921 = vmatmul.mubr.msk.bf16.vlgmr.msra.gmra.mxu1 %vm713_vm0, %v10431_v51 }
0x157c   :  { %6924 = vmatprep.mubr.msk.bf16.mxu1 %vm713_vm0, %v10432_v11 }
0x1583   :  { %6925 = vmatmul.mubr.msk.bf16.gmra.mxu1 %vm713_vm0, %v10465_v14 }
0x1584   :  { %6928 = vmatprep.mubr.msk.bf16.mxu1 %vm713_vm0, %v10466_v39 }
0x158b   :  { %6929 = vmatmul.mubr.msk.bf16.gmra.mxu1 %vm713_vm0, %v10500_v56 }
0x158c   :  { %6932 = vmatprep.mubr.msk.bf16.mxu1 %vm713_vm0, %v10501_v8 }
0x1593   :  { %6933 = vmatmul.mubr.msk.bf16.gmra.mxu1 %vm713_vm0, %v10502_v44 }
0x1594   :  { %6956 = vmatprep.mubr.bf16.mxu1 %v7665_v61 }
0x163b   :  { %v6922_v51 = vpop.f32.mrf.mxu1 }
0x163d   :  { %v6075_v16 = vpop.f32.mrf.mxu1 }
0x163f   :  { %v6923_v11 = vpop.f32.mrf.mxu1 }
0x1641   :  { %v6078_v36 = vpop.f32.mrf.mxu1 }
0x1642   :  { %v6139_v33 = vmul.f32 %v6078_v36, %v10505_v41  ;;  %v10510_v36 = vld [vmem:[#allocation67_spill] sm:$0xff] }
0x1643   :  { %v6926_v49 = vpop.f32.mrf.mxu1 }
0x1644   :  { %v6144_v17 = vmul.f32 %v6926_v49, %v8456_v50 }
0x1645   :  { %v6091_v14 = vpop.f32.mrf.mxu1 }
0x1647   :  { %v6927_v31 = vpop.f32.mrf.mxu1 }
0x1649   :  { %v6094_v46 = vpop.f32.mrf.mxu1 }
0x164a   :  { %v6143_v32 = vmul.f32 %v6094_v46, %v8474_v59  ;;  %v10506_v59 = vld [vmem:[#allocation62_spill] sm:$0xff] }
0x164b   :  { %v6930_v39 = vpop.f32.mrf.mxu1  ;;  %v6138_v23 = vmul.f32 %v6075_v16, %v10506_v59 }
0x164c   :  { %v6148_v4 = vmul.f32 %v6930_v39, %v8470_v57 }
0x164d   :  { %v6107_v21 = vpop.f32.mrf.mxu1 }
0x164f   :  { %v6931_v1 = vpop.f32.mrf.mxu1 }
0x1650   :  { %v6149_v62 = vmul.f32 %v6931_v1, %v8442_v43  ;;  %v10512_v1 = vld [vmem:[#allocation65_spill] sm:$0xff] }
0x1651   :  { %v6110_v13 = vpop.f32.mrf.mxu1 }
0x1653   :  { %v6934_v24 = vpop.f32.mrf.mxu1 }
0x1654   :  { %v6152_v3 = vmul.f32 %v6934_v24, %v8424_v34  ;;  %v6159_v34 = vpack.c.bf16 %v6149_v62, %v6148_v4  ;;  %v10513_v24 = vld [vmem:[#allocation69_spill] sm:$0xff] }
0x1655   :  { %v6123_v47 = vpop.f32.mrf.mxu1 }
0x1656   :  { %v6150_v22 = vmul.f32 %v6123_v47, %v8432_v38  ;;  %v6146_v38 = vmul.f32 %v6107_v21, %v8446_v45  ;;  %v10503_v45 = vld [vmem:[#allocation60_spill] sm:$0xff] }
0x1657   :  { %v6935_v15 = vpop.f32.mrf.mxu1  ;;  %v6141_v10 = vmul.f32 %v6923_v11, %v10503_v45 }
0x1658   :  { %v6153_v20 = vmul.f32 %v6935_v15, %v8426_v35  ;;  %v6147_v35 = vmul.f32 %v6110_v13, %v8452_v48  ;;  %v6142_v48 = vmul.f32 %v6091_v14, %v10438_v28  ;;  %v6154_v28 = vpack.c.bf16 %v6139_v33, %v6138_v23  ;;  %v10511_v14 = vld [vmem:[#allocation71_spill] sm:$0xff] }
0x1659   :  { %v6126_v42 = vpop.f32.mrf.mxu1 }
0x165a   :  { %v6161_v58 = vpack.c.bf16 %v6153_v20, %v6152_v3  ;;  %v6151_v26 = vmul.f32 %v6126_v42, %v8436_v40  ;;  %v6145_v40 = vmul.f32 %v6927_v31, %v8462_v53  ;;  %v6158_v43 = vpack.c.bf16 %v6147_v35, %v6146_v38  ;;  %v10504_v53 = vld [vmem:[#allocation59_spill] sm:$0xff] }
0x165b   :  { %v6156_v30 = vpack.c.bf16 %v6143_v32, %v6142_v48  ;;  %v6140_v6 = vmul.f32 %v6922_v51, %v10504_v53 }
0x165c   :  { %v6160_v29 = vpack.c.bf16 %v6151_v26, %v6150_v22  ;;  %6936 = vmatprep.subr.bf16.mxu0 %v6161_v58  ;;  %6960 = vmatprep.subr.bf16.mxu1 %v6161_v58  ;;  %v6157_v57 = vpack.c.bf16 %v6145_v40, %v6144_v17 }
0x165d   :  { %6937 = vmatpush3.bf16.msra.mxu0 %v6161_v58  ;;  %6968 = vmatpush3.bf16.msra.mxu1 %v6161_v58  ;;  %v6155_v50 = vpack.c.bf16 %v6141_v10, %v6140_v6 }
0x165e   :  { %6938 = vmatprep.subr.bf16.mxu0 %v6160_v29  ;;  %6961 = vmatprep.subr.bf16.mxu1 %v6160_v29 }
0x1661   :  { %6939 = vmatpush3.bf16.msra.mxu0 %v6160_v29  ;;  %6969 = vmatpush3.bf16.msra.mxu1 %v6160_v29 }
0x1662   :  { %6940 = vmatprep.subr.bf16.mxu0 %v6159_v34  ;;  %6962 = vmatprep.subr.bf16.mxu1 %v6159_v34 }
0x1665   :  { %6941 = vmatpush3.bf16.msra.mxu0 %v6159_v34  ;;  %6970 = vmatpush3.bf16.msra.mxu1 %v6159_v34 }
0x1666   :  { %6942 = vmatprep.subr.bf16.mxu0 %v6158_v43  ;;  %6963 = vmatprep.subr.bf16.mxu1 %v6158_v43 }
0x1669   :  { %6943 = vmatpush3.bf16.msra.mxu0 %v6158_v43  ;;  %6971 = vmatpush3.bf16.msra.mxu1 %v6158_v43 }
0x166a   :  { %6944 = vmatprep.subr.bf16.mxu0 %v6157_v57  ;;  %6964 = vmatprep.subr.bf16.mxu1 %v6157_v57 }
0x166d   :  { %6945 = vmatpush3.bf16.msra.mxu0 %v6157_v57  ;;  %6972 = vmatpush3.bf16.msra.mxu1 %v6157_v57 }
0x166e   :  { %6946 = vmatprep.subr.bf16.mxu0 %v6156_v30  ;;  %6965 = vmatprep.subr.bf16.mxu1 %v6156_v30 }
0x1671   :  { %6947 = vmatpush3.bf16.msra.mxu0 %v6156_v30  ;;  %6973 = vmatpush3.bf16.msra.mxu1 %v6156_v30 }
0x1672   :  { %6948 = vmatprep.subr.bf16.mxu0 %v6155_v50  ;;  %6966 = vmatprep.subr.bf16.mxu1 %v6155_v50 }
0x1675   :  { %6949 = vmatpush3.bf16.msra.mxu0 %v6155_v50  ;;  %6974 = vmatpush3.bf16.msra.mxu1 %v6155_v50 }
0x1676   :  { %6950 = vmatprep.subr.bf16.mxu0 %v6154_v28  ;;  %6967 = vmatprep.subr.bf16.mxu1 %v6154_v28 }
0x1679   :  { %6951 = vmatpush3.bf16.msra.mxu0 %v6154_v28  ;;  %6975 = vmatpush3.bf16.msra.mxu1 %v6154_v28 }
0x167c   :  { %6953 = vmatmul.mubr.bf16.vlgmr.msra.gmra.mxu0 %v7666_v5  ;;  %6957 = vmatmul.mubr.bf16.vlgmr.msra.gmra.mxu1 %v7667_v60 }
0x173c   :  { %v6954_v0 = vpop.f32.mrf.mxu0  ;;  %v6958_v19 = vpop.f32.mrf.mxu1 }
0x173d   :  { %v6229_v52 = vmul.f32 %v6954_v0, %v10477_v9  ;;  %v6233_v63 = vmul.f32 %v6958_v19, %v10507_v7 }
0x173e   :  { %v6196_v54 = vpop.f32.mrf.mxu0  ;;  %v6212_v2 = vpop.f32.mrf.mxu1 }
0x173f   :  { %v6243_v12 = vadd.f32 %v6687_v37, %v6229_v52  ;;  %v6247_v18 = vadd.f32 %v6687_v37, %v6233_v63  ;;  %v6227_v55 = vmul.f32 %v6196_v54, %v10508_v25  ;;  %v6231_v56 = vmul.f32 %v6212_v2, %v10509_v27 }
0x1740   :  { %v6955_v8 = vpop.f32.mrf.mxu0  ;;  %v6959_v44 = vpop.f32.mrf.mxu1 }
0x1741   :  { %v6251_v61 = vmax.f32 %v6243_v12, 0.0  ;;  %v6255_v51 = vmax.f32 %v6247_v18, 0.0  ;;  %v6241_v16 = vadd.f32 %v6687_v37, %v6227_v55  ;;  %v6245_v11 = vadd.f32 %v6687_v37, %v6231_v56 }
0x1742   :  { %v6230_v49 = vmul.f32 %v6955_v8, %v10510_v36  ;;  %v6234_v9 = vmul.f32 %v6959_v44, %v10511_v14  ;;  %v6199_v31 = vpop.f32.mrf.mxu0  ;;  %v6215_v46 = vpop.f32.mrf.mxu1 }
0x1743   :  { %6259 = vst [vmem:[#allocation25 + $0x10] sm:$0xff] %v6251_v61  ;;  %6263 = vst [vmem:[#allocation25 + $0x30] sm:$0xff] %v6255_v51  ;;  %v6249_v39 = vmax.f32 %v6241_v16, 0.0  ;;  %v6253_v21 = vmax.f32 %v6245_v11, 0.0  ;;  %v6228_v13 = vmul.f32 %v6199_v31, %v10512_v1  ;;  %v6232_v47 = vmul.f32 %v6215_v46, %v10513_v24 }
0x1744   :  { %v6244_v15 = vadd.f32 %v6687_v37, %v6230_v49  ;;  %v6248_v3 = vadd.f32 %v6687_v37, %v6234_v9 }
0x1745   :  { %6257 = vst [vmem:[#allocation25] sm:$0xff] %v6249_v39  ;;  %6261 = vst [vmem:[#allocation25 + $0x20] sm:$0xff] %v6253_v21  ;;  %v6242_v20 = vadd.f32 %v6687_v37, %v6228_v13  ;;  %v6246_v42 = vadd.f32 %v6687_v37, %v6232_v47 }
0x1746   :  { %v6252_v22 = vmax.f32 %v6244_v15, 0.0  ;;  %v6256_v58 = vmax.f32 %v6248_v3, 0.0 }
0x1747   :  { %v6250_v26 = vmax.f32 %v6242_v20, 0.0  ;;  %v6254_v62 = vmax.f32 %v6246_v42, 0.0 }
0x1748   :  { %6260 = vst [vmem:[#allocation25 + $0x18] sm:$0xff] %v6252_v22  ;;  %6264 = vst [vmem:[#allocation25 + $0x38] sm:$0xff] %v6256_v58 }
0x1749   :  { %6258 = vst [vmem:[#allocation25 + $0x8] sm:$0xff] %v6250_v26  ;;  %6262 = vst [vmem:[#allocation25 + $0x28] sm:$0xff] %v6254_v62 }
0x174a   :  { %7959 = shalt.err (!%p7956_p4)
}
0x174b   :  { %s10514_s7 = sld [smem:[#allocation81_spill]] }
0x1751   :  { %6276 = dma.vmem_to_hbm [thread:$0]  %s6271_s11, 1024, %s10514_s7, [#allocation4], %s8001_s9, %s8001_s9, %s8002_s5  }
0x1752   :  { %7984 = dma.done.wait [#allocation4], 1024  }
0x1753   :  { %7985 = vsyncadd [#allocation4], 4294966272 }
0x1754   :  { %6280 = vsyncpa [#allocation3], 1 }
0x1755   :  { %6281 = vsyncpa [#allocation6], 1 }
0x1756   :  { %6282 = vsyncpa [#allocation9], 1 }
0x1757   :  { %6283 = vsyncpa [#allocation12], 1 }
0x1758   :  { %6284 = vsyncpa [#allocation15], 1 }
0x1759   :  { %6285 = vsyncpa [#allocation18], 1 }
0x175a   :  { %6286 = vsyncpa [#allocation21], 1 }
0x175b   :  { %6287 = vsyncpa [#allocation24], 1 }
0x175c   :  { %6288 = vsyncpa [#allocation4], 1 }

</bundles_post_ra>
